<compile_context>
chip_gen: v6e
topology: v6e:2x2x1
jax: 0.10.0
libtpu: 0.0.40
codegen_flags: <defaults>
</compile_context>

<pallas_src>
import math
import jax
import jax.numpy as jnp
from jax import lax
from jax.experimental import pallas as pl
from jax.experimental.pallas import tpu as pltpu


def _round_up(x: int, m: int) -> int:
    return (x + m - 1) // m * m


# --------------------------- fused Token_Predictor kernel ---------------------------
def _make_fused_kernel(n_layers: int, unroll):
    """Builds the fused kernel for a fixed (static) number of LSTM layers."""

    def kernel(*refs):
        x_ref = refs[0]                                  # [Bblk, D, Tc]  native layout
        layer_refs = refs[1:1 + 3 * n_layers]            # (w_ih, w_hh, bias) per layer
        w_proj_ref = refs[1 + 3 * n_layers]              # [Hp, K]
        b_proj_ref = refs[2 + 3 * n_layers]              # [1, K]
        out_ref = refs[3 + 3 * n_layers]                 # [Bblk, K, Tc]
        gx_scr = refs[4 + 3 * n_layers]                  # VMEM [Tc, Bblk, 4Hp]
        hseq_a = refs[5 + 3 * n_layers]                  # VMEM [Tc, Bblk, Hp]  (ping)
        hseq_b = refs[6 + 3 * n_layers]                  # VMEM [Tc, Bblk, Hp]  (pong)
        hc_scr = refs[7 + 3 * n_layers]                  # VMEM [2*n_layers, Bblk, Hp]

        tc, b_blk, hid = hseq_a.shape
        d_in = x_ref.shape[1]
        n_out = out_ref.shape[1]

        chunk = pl.program_id(1)                         # time-chunk axis (sequential)

        # h/c carries persist across time chunks; zero them on the first chunk only.
        @pl.when(chunk == 0)
        def _():
            hc_scr[...] = jnp.zeros(hc_scr.shape, hc_scr.dtype)

        # ---- in-kernel reorder of the native [B, D, Tc] block to time-major rows (t, b)
        #      (per-batch 2-D transposes of the small D-wide input slab; the following
        #       leading-dim reshapes are all multiples of 8 -> free regroups)
        x_cols = [x_ref[b].astype(jnp.float32).T for b in range(b_blk)]   # b x [Tc, D]
        layer_in = jnp.stack(x_cols, axis=1).reshape(tc * b_blk, d_in)    # [(t,b), D]

        read_buf = None
        write_buf = hseq_a
        for layer in range(n_layers):
            w_ih = layer_refs[3 * layer][...]             # [D_l, 4Hp]
            w_hh = layer_refs[3 * layer + 1][...]         # [Hp, 4Hp]
            bias = layer_refs[3 * layer + 2][...]         # [1, 4Hp]

            if layer > 0:
                # stream the previous layer's sequence from its (different) ping buffer
                layer_in = read_buf[...].reshape(tc * b_blk, hid)

            # ---- hoisted input-to-hidden matmul for the whole chunk (one tall MXU op)
            gx = jnp.dot(layer_in, w_ih, preferred_element_type=jnp.float32) + bias
            gx_scr[...] = gx.reshape(tc, b_blk, 4 * hid)  # bias = b_ih + b_hh, pre-folded

            # ---- serial recurrence over the chunk: only h @ W_hh remains per step.
            #      hid is a multiple of 128, so gate slices are lane-aligned vreg picks.
            def step(t, carry, w_hh=w_hh, write_buf=write_buf):
                h, c = carry
                gates = gx_scr[t] + jnp.dot(h, w_hh,
                                            preferred_element_type=jnp.float32)  # [B, 4Hp]
                i_g = jax.nn.sigmoid(gates[:, 0 * hid:1 * hid])
                f_g = jax.nn.sigmoid(gates[:, 1 * hid:2 * hid])
                g_g = jnp.tanh(gates[:, 2 * hid:3 * hid])
                o_g = jax.nn.sigmoid(gates[:, 3 * hid:4 * hid])
                c_new = f_g * c + i_g * g_g
                h_new = o_g * jnp.tanh(c_new)
                write_buf[t] = h_new
                return (h_new, c_new)

            h_last, c_last = lax.fori_loop(
                0, tc, step, (hc_scr[2 * layer], hc_scr[2 * layer + 1]), unroll=unroll)
            hc_scr[2 * layer] = h_last
            hc_scr[2 * layer + 1] = c_last

            # ping-pong: next layer reads what this layer wrote, writes the other buffer
            read_buf = write_buf
            write_buf = hseq_b if write_buf is hseq_a else hseq_a

        # ---- 1x1 Conv (matmul) + log_softmax, done in time-major layout (no transpose
        #      of the big hidden sequence); only the tiny K-wide result is reordered.
        h_seq = read_buf[...].reshape(tc * b_blk, hid)               # [(t,b), Hp]
        logits = jnp.dot(h_seq, w_proj_ref[...],
                         preferred_element_type=jnp.float32) + b_proj_ref[...]  # [(t,b), K]
        m = jnp.max(logits, axis=-1, keepdims=True)
        sh = logits - m
        lse = jnp.log(jnp.sum(jnp.exp(sh), axis=-1, keepdims=True))
        logp = (sh - lse).reshape(tc, b_blk, n_out)                  # [Tc, B, K]

        # assemble [B, K, Tc] (time on lanes) and write it with ONE lane-dense store.
        # TODO(synk): replace the per-batch tiny [Tc,K]->[K,Tc] transposes with a single
        #             batched rank-3 transpose once that lowering is guaranteed.
        out_slabs = [logp[:, b, :].T for b in range(b_blk)]          # b x [K, Tc]
        out_ref[...] = jnp.stack(out_slabs, axis=0).astype(out_ref.dtype)

    return kernel


# ----------------------------- weight preparation (padding) --------------------------
def _pad_gate_cols(w, h, h_pad):
    """Zero-pad each of the 4 gate column blocks [i|f|g|o] from width h to h_pad."""
    if h_pad == h:
        return w
    parts = []
    for g in range(4):
        blk = w[..., g * h:(g + 1) * h]
        pad_width = [(0, 0)] * (w.ndim - 1) + [(0, h_pad - h)]
        parts.append(jnp.pad(blk, pad_width))
    return jnp.concatenate(parts, axis=-1)


def _prepare_params(lstm_params, w_proj, b_proj):
    """Pad hidden size to a multiple of 128 (lane-aligned gate slices). Zero padding is
    exact: padded hidden lanes stay identically zero through the LSTM and projection."""
    h = lstm_params[0][1].shape[0]
    h_pad = max(_round_up(h, 128), 128)
    padded = []
    for i, (w_ih, w_hh, b) in enumerate(lstm_params):
        w_ih_p = _pad_gate_cols(w_ih.astype(jnp.float32), h, h_pad)
        if i > 0 and h_pad != h:
            w_ih_p = jnp.pad(w_ih_p, ((0, h_pad - h), (0, 0)))
        w_hh_p = _pad_gate_cols(w_hh.astype(jnp.float32), h, h_pad)
        if h_pad != h:
            w_hh_p = jnp.pad(w_hh_p, ((0, h_pad - h), (0, 0)))
        b_p = _pad_gate_cols(b.astype(jnp.float32), h, h_pad)
        padded.append((w_ih_p, w_hh_p, b_p))
    w_proj_p = w_proj.astype(jnp.float32)
    if h_pad != h:
        w_proj_p = jnp.pad(w_proj_p, ((0, h_pad - h), (0, 0)))
    return padded, w_proj_p, b_proj.astype(jnp.float32), h_pad


# --------------------------------- fused entry point ---------------------------------
def token_predictor_fused(encodings, lstm_params, w_proj, b_proj, *, t_chunk=None):
    """encodings: [B, N_Mel, T] (native layout).  Returns log-probs [B, Tokens+1, T]."""
    B, D, T = encodings.shape
    K = w_proj.shape[1]
    n_layers = len(lstm_params)

    lstm_p, w_proj_p, b_proj_p, H_pad = _prepare_params(lstm_params, w_proj, b_proj)
    weight_bytes = 4 * (sum(int(w.size) for lp in lstm_p for w in lp)
                        + int(w_proj_p.size) + int(b_proj_p.size))

    x = encodings.astype(jnp.float32)

    # Batch padding to a multiple of 8: sublane-aligned gate/h/c vregs and free
    # [Tc,B,*] <-> [Tc*B,*] regroups in-kernel.  Extra rows are zeros and discarded.
    B_pad = max(_round_up(B, 8), 8)
    if B_pad != B:
        x = jnp.pad(x, ((0, B_pad - B), (0, 0), (0, 0)))
    # Split batch into 2 "parallel" blocks when possible so v7x's 2 TensorCores share work.
    n_b_blocks = 2 if (B_pad >= 16 and B_pad % 16 == 0) else 1
    b_blk = B_pad // n_b_blocks

    # Time chunking: the chunk is the lane axis of both input and output blocks.
    if t_chunk is None:
        if T <= 256:
            t_chunk = T                       # single chunk: no lane-dim block constraint
        else:
            t_chunk = 128                     # multi-chunk: must be a multiple of 128
            for cand in (512, 384, 256):
                scratch = 4 * cand * b_blk * 6 * H_pad
                io = 4 * 2 * cand * b_blk * (D + K)
                if 2 * weight_bytes + scratch + io < 40 * 1024 * 1024:
                    t_chunk = cand
                    break
    T_pad = _round_up(T, t_chunk)
    if T_pad != T:
        # trailing zero padding is inert: the LSTM is causal, padded steps are sliced off
        x = jnp.pad(x, ((0, 0), (0, 0), (0, T_pad - T)))
    num_chunks = T_pad // t_chunk
    unroll = True if t_chunk <= 16 else 8

    kernel = _make_fused_kernel(n_layers, unroll)

    in_specs = [pl.BlockSpec((b_blk, D, t_chunk), lambda bi, c: (bi, 0, c))]
    flat_inputs = [x]
    for (w_ih, w_hh, b) in lstm_p:
        d_l = w_ih.shape[0]
        in_specs += [
            pl.BlockSpec((d_l, 4 * H_pad), lambda bi, c: (0, 0)),
            pl.BlockSpec((H_pad, 4 * H_pad), lambda bi, c: (0, 0)),
            pl.BlockSpec((1, 4 * H_pad), lambda bi, c: (0, 0)),
        ]
        flat_inputs += [w_ih, w_hh, b]
    in_specs += [pl.BlockSpec((H_pad, K), lambda bi, c: (0, 0)),
                 pl.BlockSpec((1, K), lambda bi, c: (0, 0))]
    flat_inputs += [w_proj_p, b_proj_p]

    scratch_shapes = [
        pltpu.VMEM((t_chunk, b_blk, 4 * H_pad), jnp.float32),   # hoisted input gates
        pltpu.VMEM((t_chunk, b_blk, H_pad), jnp.float32),       # hidden sequence (ping)
        pltpu.VMEM((t_chunk, b_blk, H_pad), jnp.float32),       # hidden sequence (pong)
        pltpu.VMEM((2 * n_layers, b_blk, H_pad), jnp.float32),  # per-layer (h, c) carries
    ]

    # Explicit VMEM budget (>= all per-chip scoped defaults; headroom for the pipeline).
    scratch_bytes = 4 * (t_chunk * b_blk * 6 * H_pad + 2 * n_layers * b_blk * H_pad)
    io_bytes = 4 * 2 * t_chunk * b_blk * (D + K)
    vmem_limit = int(min(100 * 1024 * 1024,
                         max(32 * 1024 * 1024,
                             2 * weight_bytes + scratch_bytes + io_bytes + (4 << 20))))

    # Advisory cost estimate so XLA schedules around the custom call.
    flops = 0
    for (w_ih, _, _) in lstm_p:
        flops += 2 * T_pad * B_pad * (w_ih.shape[0] + H_pad) * 4 * H_pad
    flops += 2 * T_pad * B_pad * H_pad * K
    transcendentals = T_pad * B_pad * (5 * H_pad * n_layers + K + 1)
    bytes_accessed = 4 * (B_pad * D * T_pad + B_pad * K * T_pad) + weight_bytes

    out = pl.pallas_call(
        kernel,
        out_shape=jax.ShapeDtypeStruct((B_pad, K, T_pad), jnp.float32),
        grid_spec=pltpu.PrefetchScalarGridSpec(
            num_scalar_prefetch=0,
            grid=(n_b_blocks, num_chunks),
            in_specs=in_specs,
            out_specs=pl.BlockSpec((b_blk, K, t_chunk), lambda bi, c: (bi, 0, c)),
            scratch_shapes=scratch_shapes,
        ),
        compiler_params=pltpu.CompilerParams(
            dimension_semantics=("parallel", "arbitrary"),
            vmem_limit_bytes=vmem_limit),
        cost_estimate=pl.CostEstimate(flops=int(flops),
                                      transcendentals=int(transcendentals),
                                      bytes_accessed=int(bytes_accessed)),
    )(*flat_inputs)

    return out[:B, :, :T]


# ---------------------------------- module wrapper ----------------------------------
def init_token_predictor_params(key, n_mel, hidden, n_layers, n_tokens):
    """Deterministic synthetic init (PyTorch-style uniform / xavier)."""
    params = {"lstm": []}
    bound = 1.0 / math.sqrt(hidden)
    for layer in range(n_layers):
        d_in = n_mel if layer == 0 else hidden
        key, k1, k2, k3, k4 = jax.random.split(key, 5)
        w_ih = jax.random.uniform(k1, (d_in, 4 * hidden), jnp.float32, -bound, bound)
        w_hh = jax.random.uniform(k2, (hidden, 4 * hidden), jnp.float32, -bound, bound)
        b_ih = jax.random.uniform(k3, (4 * hidden,), jnp.float32, -bound, bound)
        b_hh = jax.random.uniform(k4, (4 * hidden,), jnp.float32, -bound, bound)
        params["lstm"].append((w_ih, w_hh, (b_ih + b_hh)[None, :]))   # pre-folded bias
    # Conv1d(hidden, n_tokens+1, kernel_size=1) with xavier_uniform (gain='linear')
    key, kw = jax.random.split(key)
    k_out = n_tokens + 1
    limit = math.sqrt(6.0 / (hidden + k_out))
    w_proj = jax.random.uniform(kw, (hidden, k_out), jnp.float32, -limit, limit)
    b_proj = jnp.zeros((1, k_out), jnp.float32)
    params["proj"] = (w_proj, b_proj)
    return params


def token_predictor_forward(params, encodings):
    """encodings: [B, N_Mel, T]  ->  log-probs [B, Tokens+1, T] (native layout in & out)."""
    w_proj, b_proj = params["proj"]
    return token_predictor_fused(encodings, params["lstm"], w_proj, b_proj)


# ----------------------------- pure-JAX reference check ------------------------------
def _reference_forward(params, encodings):
    x = jnp.transpose(encodings, (2, 0, 1)).astype(jnp.float32)   # [T, B, D]
    for (w_ih, w_hh, b) in params["lstm"]:
        B = x.shape[1]
        H = w_hh.shape[0]

        def step(carry, x_t):
            h, c = carry
            gates = x_t @ w_ih + h @ w_hh + b[0]
            i = jax.nn.sigmoid(gates[:, :H])
            f = jax.nn.sigmoid(gates[:, H:2 * H])
            g = jnp.tanh(gates[:, 2 * H:3 * H])
            o = jax.nn.sigmoid(gates[:, 3 * H:4 * H])
            c = f * c + i * g
            h = o * jnp.tanh(c)
            return (h, c), h

        (_, _), hs = lax.scan(step, (jnp.zeros((B, H), jnp.float32),
                                     jnp.zeros((B, H), jnp.float32)), x)
        x = hs
    w_proj, b_proj = params["proj"]
    logits = jnp.einsum("tbh,hk->bkt", x, w_proj) + b_proj[0][None, :, None]
    return jax.nn.log_softmax(logits, axis=1)


if __name__ == "__main__":
    # Small hyper-parameters consistent with the module's forward.
    BATCH = 2
    N_MEL = 16        # hp.Sound.N_Mel   (Feature_d)
    T = 8             # Feature_t
    HIDDEN = 32       # hp.Token_Predictor.Size
    STACK = 2         # hp.Token_Predictor.LSTM.Stack
    TOKENS = 7        # hp.Tokens  -> output channels = Tokens + 1 = 8

    key = jax.random.PRNGKey(0)
    k_params, k_input = jax.random.split(key)

    params = init_token_predictor_params(k_params, N_MEL, HIDDEN, STACK, TOKENS)
    encodings = jax.random.normal(k_input, (BATCH, N_MEL, T), jnp.float32)

    out = token_predictor_forward(params, encodings)
    out = jax.block_until_ready(out)

    assert out.shape == (BATCH, TOKENS + 1, T), out.shape
    # log_softmax over dim=1: exp sums to 1 along the token axis.
    sums = jnp.sum(jnp.exp(out), axis=1)
    assert bool(jnp.all(jnp.abs(sums - 1.0) < 1e-4)), "log_softmax check failed"
    # Match the pure-JAX reference implementation of the module.
    ref = _reference_forward(params, encodings)
    assert bool(jnp.allclose(out, ref, atol=1e-4, rtol=1e-4)), "mismatch vs reference"

    print("KERNEL_OK")
</pallas_src>

<mosaic_0001>
module attributes {stable_mosaic.version = 11 : i64} {
  func.func @kernel(%arg0: i32, %arg1: i32, %arg2: memref<8x16x8xf32, #tpu.memory_space<vmem>>, %arg3: memref<16x512xf32, #tpu.memory_space<vmem>>, %arg4: memref<128x512xf32, #tpu.memory_space<vmem>>, %arg5: memref<1x512xf32, #tpu.memory_space<vmem>>, %arg6: memref<128x512xf32, #tpu.memory_space<vmem>>, %arg7: memref<128x512xf32, #tpu.memory_space<vmem>>, %arg8: memref<1x512xf32, #tpu.memory_space<vmem>>, %arg9: memref<128x8xf32, #tpu.memory_space<vmem>>, %arg10: memref<1x8xf32, #tpu.memory_space<vmem>>, %arg11: memref<8x8x8xf32, #tpu.memory_space<vmem>>, %arg12: memref<8x8x512xf32, #tpu.memory_space<vmem>>, %arg13: memref<8x8x128xf32, #tpu.memory_space<vmem>>, %arg14: memref<8x8x128xf32, #tpu.memory_space<vmem>>, %arg15: memref<4x8x128xf32, #tpu.memory_space<vmem>>) attributes {dimension_semantics = [#tpu.dimension_semantics<parallel>, #tpu.dimension_semantics<arbitrary>], iteration_bounds = array<i64: 1, 1>, scalar_prefetch = 0 : i64, scratch_operands = 4 : i64, tpu.core_type = #tpu.core_type<tc>, window_params = [{transform_indices = @transform_0, window_bounds = array<i64: 8, 16, 8>}, {pipeline_mode = #tpu.pipeline_mode<synchronous>, transform_indices = @transform_1, window_bounds = array<i64: 16, 512>}, {pipeline_mode = #tpu.pipeline_mode<synchronous>, transform_indices = @transform_2, window_bounds = array<i64: 128, 512>}, {pipeline_mode = #tpu.pipeline_mode<synchronous>, transform_indices = @transform_3, window_bounds = array<i64: 1, 512>}, {pipeline_mode = #tpu.pipeline_mode<synchronous>, transform_indices = @transform_4, window_bounds = array<i64: 128, 512>}, {pipeline_mode = #tpu.pipeline_mode<synchronous>, transform_indices = @transform_5, window_bounds = array<i64: 128, 512>}, {pipeline_mode = #tpu.pipeline_mode<synchronous>, transform_indices = @transform_6, window_bounds = array<i64: 1, 512>}, {pipeline_mode = #tpu.pipeline_mode<synchronous>, transform_indices = @transform_7, window_bounds = array<i64: 128, 8>}, {pipeline_mode = #tpu.pipeline_mode<synchronous>, transform_indices = @transform_8, window_bounds = array<i64: 1, 8>}, {transform_indices = @transform_9, window_bounds = array<i64: 8, 8, 8>}]} {
    %c0_i32 = arith.constant 0 : i32
    %0 = arith.cmpi eq, %arg1, %c0_i32 : i32
    %1 = arith.extui %0 : i1 to i32
    %c0_i32_0 = arith.constant 0 : i32
    %2 = arith.cmpi ne, %1, %c0_i32_0 : i32
    scf.if %2 {
      %cst_214 = arith.constant 0.000000e+00 : f32
      %671 = vector.broadcast %cst_214 : f32 to vector<4x8x128xf32>
      %c0_215 = arith.constant 0 : index
      %c0_216 = arith.constant 0 : index
      %c0_217 = arith.constant 0 : index
      %672 = vector.load %arg15[%c0_215, %c0_216, %c0_217] : memref<4x8x128xf32, #tpu.memory_space<vmem>>, vector<4x8x128xf32>
      tpu.vector_store %arg15[%c0_215, %c0_216, %c0_217], %671 {strides = array<i32>} : memref<4x8x128xf32, #tpu.memory_space<vmem>>, vector<4x8x128xf32>,
    } else {
    }
    %c0 = arith.constant 0 : index
    %c0_1 = arith.constant 0 : index
    %c0_2 = arith.constant 0 : index
    %3 = vector.load %arg2[%c0, %c0_1, %c0_2] : memref<8x16x8xf32, #tpu.memory_space<vmem>>, vector<1x16x8xf32>
    %4 = vector.shape_cast %3 : vector<1x16x8xf32> to vector<16x8xf32>
    %5 = tpu.transpose %4, [1, 0] : vector<16x8xf32> -> vector<8x16xf32>
    %c1 = arith.constant 1 : index
    %c0_3 = arith.constant 0 : index
    %c0_4 = arith.constant 0 : index
    %6 = vector.load %arg2[%c1, %c0_3, %c0_4] : memref<8x16x8xf32, #tpu.memory_space<vmem>>, vector<1x16x8xf32>
    %7 = vector.shape_cast %6 : vector<1x16x8xf32> to vector<16x8xf32>
    %8 = tpu.transpose %7, [1, 0] : vector<16x8xf32> -> vector<8x16xf32>
    %c2 = arith.constant 2 : index
    %c0_5 = arith.constant 0 : index
    %c0_6 = arith.constant 0 : index
    %9 = vector.load %arg2[%c2, %c0_5, %c0_6] : memref<8x16x8xf32, #tpu.memory_space<vmem>>, vector<1x16x8xf32>
    %10 = vector.shape_cast %9 : vector<1x16x8xf32> to vector<16x8xf32>
    %11 = tpu.transpose %10, [1, 0] : vector<16x8xf32> -> vector<8x16xf32>
    %c3 = arith.constant 3 : index
    %c0_7 = arith.constant 0 : index
    %c0_8 = arith.constant 0 : index
    %12 = vector.load %arg2[%c3, %c0_7, %c0_8] : memref<8x16x8xf32, #tpu.memory_space<vmem>>, vector<1x16x8xf32>
    %13 = vector.shape_cast %12 : vector<1x16x8xf32> to vector<16x8xf32>
    %14 = tpu.transpose %13, [1, 0] : vector<16x8xf32> -> vector<8x16xf32>
    %c4 = arith.constant 4 : index
    %c0_9 = arith.constant 0 : index
    %c0_10 = arith.constant 0 : index
    %15 = vector.load %arg2[%c4, %c0_9, %c0_10] : memref<8x16x8xf32, #tpu.memory_space<vmem>>, vector<1x16x8xf32>
    %16 = vector.shape_cast %15 : vector<1x16x8xf32> to vector<16x8xf32>
    %17 = tpu.transpose %16, [1, 0] : vector<16x8xf32> -> vector<8x16xf32>
    %c5 = arith.constant 5 : index
    %c0_11 = arith.constant 0 : index
    %c0_12 = arith.constant 0 : index
    %18 = vector.load %arg2[%c5, %c0_11, %c0_12] : memref<8x16x8xf32, #tpu.memory_space<vmem>>, vector<1x16x8xf32>
    %19 = vector.shape_cast %18 : vector<1x16x8xf32> to vector<16x8xf32>
    %20 = tpu.transpose %19, [1, 0] : vector<16x8xf32> -> vector<8x16xf32>
    %c6 = arith.constant 6 : index
    %c0_13 = arith.constant 0 : index
    %c0_14 = arith.constant 0 : index
    %21 = vector.load %arg2[%c6, %c0_13, %c0_14] : memref<8x16x8xf32, #tpu.memory_space<vmem>>, vector<1x16x8xf32>
    %22 = vector.shape_cast %21 : vector<1x16x8xf32> to vector<16x8xf32>
    %23 = tpu.transpose %22, [1, 0] : vector<16x8xf32> -> vector<8x16xf32>
    %c7 = arith.constant 7 : index
    %c0_15 = arith.constant 0 : index
    %c0_16 = arith.constant 0 : index
    %24 = vector.load %arg2[%c7, %c0_15, %c0_16] : memref<8x16x8xf32, #tpu.memory_space<vmem>>, vector<1x16x8xf32>
    %25 = vector.shape_cast %24 : vector<1x16x8xf32> to vector<16x8xf32>
    %26 = tpu.transpose %25, [1, 0] : vector<16x8xf32> -> vector<8x16xf32>
    %27 = vector.shape_cast %5 : vector<8x16xf32> to vector<8x1x16xf32>
    %28 = vector.shape_cast %8 : vector<8x16xf32> to vector<8x1x16xf32>
    %29 = vector.shape_cast %11 : vector<8x16xf32> to vector<8x1x16xf32>
    %30 = vector.shape_cast %14 : vector<8x16xf32> to vector<8x1x16xf32>
    %31 = vector.shape_cast %17 : vector<8x16xf32> to vector<8x1x16xf32>
    %32 = vector.shape_cast %20 : vector<8x16xf32> to vector<8x1x16xf32>
    %33 = vector.shape_cast %23 : vector<8x16xf32> to vector<8x1x16xf32>
    %34 = vector.shape_cast %26 : vector<8x16xf32> to vector<8x1x16xf32>
    %35 = tpu.concatenate %27, %28, %29, %30, %31, %32, %33, %34 in 1 : vector<8x1x16xf32>, vector<8x1x16xf32>, vector<8x1x16xf32>, vector<8x1x16xf32>, vector<8x1x16xf32>, vector<8x1x16xf32>, vector<8x1x16xf32>, vector<8x1x16xf32> -> vector<8x8x16xf32>
    %36 = vector.shape_cast %35 : vector<8x8x16xf32> to vector<64x16xf32>
    %c0_17 = arith.constant 0 : index
    %c0_18 = arith.constant 0 : index
    %37 = vector.load %arg3[%c0_17, %c0_18] : memref<16x512xf32, #tpu.memory_space<vmem>>, vector<16x512xf32>
    %c0_19 = arith.constant 0 : index
    %c0_20 = arith.constant 0 : index
    %38 = vector.load %arg4[%c0_19, %c0_20] : memref<128x512xf32, #tpu.memory_space<vmem>>, vector<128x512xf32>
    %c0_21 = arith.constant 0 : index
    %c0_22 = arith.constant 0 : index
    %39 = vector.load %arg5[%c0_21, %c0_22] : memref<1x512xf32, #tpu.memory_space<vmem>>, vector<1x512xf32>
    %cst = arith.constant dense<0.000000e+00> : vector<64x512xf32>
    %40 = tpu.matmul %36, %37, %cst {dimension_numbers = #tpu.dot_dimension_numbers<[1], [0], [0], [1], [0, 0, 1, 1], [], []>} : vector<64x16xf32>, vector<16x512xf32>, vector<64x512xf32> -> vector<64x512xf32>
    %41 = vector.broadcast %39 : vector<1x512xf32> to vector<64x512xf32>
    %42 = arith.addf %40, %41 : vector<64x512xf32>
    %43 = vector.shape_cast %42 : vector<64x512xf32> to vector<8x8x512xf32>
    %c0_23 = arith.constant 0 : index
    %c0_24 = arith.constant 0 : index
    %c0_25 = arith.constant 0 : index
    %44 = vector.load %arg12[%c0_23, %c0_24, %c0_25] : memref<8x8x512xf32, #tpu.memory_space<vmem>>, vector<8x8x512xf32>
    tpu.vector_store %arg12[%c0_23, %c0_24, %c0_25], %43 {strides = array<i32>} : memref<8x8x512xf32, #tpu.memory_space<vmem>>, vector<8x8x512xf32>,
    %c0_26 = arith.constant 0 : index
    %c0_27 = arith.constant 0 : index
    %c0_28 = arith.constant 0 : index
    %45 = vector.load %arg15[%c0_26, %c0_27, %c0_28] : memref<4x8x128xf32, #tpu.memory_space<vmem>>, vector<1x8x128xf32>
    %46 = vector.shape_cast %45 : vector<1x8x128xf32> to vector<8x128xf32>
    %c1_29 = arith.constant 1 : index
    %c0_30 = arith.constant 0 : index
    %c0_31 = arith.constant 0 : index
    %47 = vector.load %arg15[%c1_29, %c0_30, %c0_31] : memref<4x8x128xf32, #tpu.memory_space<vmem>>, vector<1x8x128xf32>
    %48 = vector.shape_cast %47 : vector<1x8x128xf32> to vector<8x128xf32>
    %c0_i32_32 = arith.constant 0 : i32
    %49 = arith.index_cast %c0_i32_32 : i32 to index
    %c0_33 = arith.constant 0 : index
    %c0_34 = arith.constant 0 : index
    %50 = vector.load %arg12[%49, %c0_33, %c0_34] : memref<8x8x512xf32, #tpu.memory_space<vmem>>, vector<1x8x512xf32>
    %51 = vector.shape_cast %50 : vector<1x8x512xf32> to vector<8x512xf32>
    %cst_35 = arith.constant dense<0.000000e+00> : vector<8x512xf32>
    %52 = tpu.matmul %46, %38, %cst_35 {dimension_numbers = #tpu.dot_dimension_numbers<[1], [0], [0], [1], [0, 0, 1, 1], [], []>} : vector<8x128xf32>, vector<128x512xf32>, vector<8x512xf32> -> vector<8x512xf32>
    %53 = arith.addf %51, %52 : vector<8x512xf32>
    %54 = vector.extract_strided_slice %53 {offsets = [0, 0], sizes = [8, 128], strides = [1, 1]} : vector<8x512xf32> to vector<8x128xf32>
    %55 = arith.negf %54 : vector<8x128xf32>
    %56 = math.exp %55 : vector<8x128xf32>
    %cst_36 = arith.constant 1.000000e+00 : f32
    %57 = vector.broadcast %cst_36 : f32 to vector<8x128xf32>
    %58 = arith.addf %57, %56 : vector<8x128xf32>
    %59 = arith.divf %57, %58 : vector<8x128xf32>
    %60 = vector.extract_strided_slice %53 {offsets = [0, 128], sizes = [8, 128], strides = [1, 1]} : vector<8x512xf32> to vector<8x128xf32>
    %61 = arith.negf %60 : vector<8x128xf32>
    %62 = math.exp %61 : vector<8x128xf32>
    %cst_37 = arith.constant 1.000000e+00 : f32
    %63 = vector.broadcast %cst_37 : f32 to vector<8x128xf32>
    %64 = arith.addf %63, %62 : vector<8x128xf32>
    %65 = arith.divf %63, %64 : vector<8x128xf32>
    %66 = vector.extract_strided_slice %53 {offsets = [0, 256], sizes = [8, 128], strides = [1, 1]} : vector<8x512xf32> to vector<8x128xf32>
    %67 = math.tanh %66 : vector<8x128xf32>
    %68 = vector.extract_strided_slice %53 {offsets = [0, 384], sizes = [8, 128], strides = [1, 1]} : vector<8x512xf32> to vector<8x128xf32>
    %69 = arith.negf %68 : vector<8x128xf32>
    %70 = math.exp %69 : vector<8x128xf32>
    %cst_38 = arith.constant 1.000000e+00 : f32
    %71 = vector.broadcast %cst_38 : f32 to vector<8x128xf32>
    %72 = arith.addf %71, %70 : vector<8x128xf32>
    %73 = arith.divf %71, %72 : vector<8x128xf32>
    %74 = arith.mulf %65, %48 : vector<8x128xf32>
    %75 = arith.mulf %59, %67 : vector<8x128xf32>
    %76 = arith.addf %74, %75 : vector<8x128xf32>
    %77 = math.tanh %76 : vector<8x128xf32>
    %78 = arith.mulf %73, %77 : vector<8x128xf32>
    %79 = arith.index_cast %c0_i32_32 : i32 to index
    %c0_39 = arith.constant 0 : index
    %c0_40 = arith.constant 0 : index
    %80 = vector.load %arg13[%79, %c0_39, %c0_40] : memref<8x8x128xf32, #tpu.memory_space<vmem>>, vector<1x8x128xf32>
    %81 = vector.shape_cast %80 : vector<1x8x128xf32> to vector<8x128xf32>
    %82 = vector.shape_cast %78 : vector<8x128xf32> to vector<1x8x128xf32>
    tpu.vector_store %arg13[%79, %c0_39, %c0_40], %82 {strides = array<i32>} : memref<8x8x128xf32, #tpu.memory_space<vmem>>, vector<1x8x128xf32>,
    %c1_i32 = arith.constant 1 : i32
    %83 = arith.index_cast %c1_i32 : i32 to index
    %c0_41 = arith.constant 0 : index
    %c0_42 = arith.constant 0 : index
    %84 = vector.load %arg12[%83, %c0_41, %c0_42] : memref<8x8x512xf32, #tpu.memory_space<vmem>>, vector<1x8x512xf32>
    %85 = vector.shape_cast %84 : vector<1x8x512xf32> to vector<8x512xf32>
    %cst_43 = arith.constant dense<0.000000e+00> : vector<8x512xf32>
    %86 = tpu.matmul %78, %38, %cst_43 {dimension_numbers = #tpu.dot_dimension_numbers<[1], [0], [0], [1], [0, 0, 1, 1], [], []>} : vector<8x128xf32>, vector<128x512xf32>, vector<8x512xf32> -> vector<8x512xf32>
    %87 = arith.addf %85, %86 : vector<8x512xf32>
    %88 = vector.extract_strided_slice %87 {offsets = [0, 0], sizes = [8, 128], strides = [1, 1]} : vector<8x512xf32> to vector<8x128xf32>
    %89 = arith.negf %88 : vector<8x128xf32>
    %90 = math.exp %89 : vector<8x128xf32>
    %cst_44 = arith.constant 1.000000e+00 : f32
    %91 = vector.broadcast %cst_44 : f32 to vector<8x128xf32>
    %92 = arith.addf %91, %90 : vector<8x128xf32>
    %93 = arith.divf %91, %92 : vector<8x128xf32>
    %94 = vector.extract_strided_slice %87 {offsets = [0, 128], sizes = [8, 128], strides = [1, 1]} : vector<8x512xf32> to vector<8x128xf32>
    %95 = arith.negf %94 : vector<8x128xf32>
    %96 = math.exp %95 : vector<8x128xf32>
    %cst_45 = arith.constant 1.000000e+00 : f32
    %97 = vector.broadcast %cst_45 : f32 to vector<8x128xf32>
    %98 = arith.addf %97, %96 : vector<8x128xf32>
    %99 = arith.divf %97, %98 : vector<8x128xf32>
    %100 = vector.extract_strided_slice %87 {offsets = [0, 256], sizes = [8, 128], strides = [1, 1]} : vector<8x512xf32> to vector<8x128xf32>
    %101 = math.tanh %100 : vector<8x128xf32>
    %102 = vector.extract_strided_slice %87 {offsets = [0, 384], sizes = [8, 128], strides = [1, 1]} : vector<8x512xf32> to vector<8x128xf32>
    %103 = arith.negf %102 : vector<8x128xf32>
    %104 = math.exp %103 : vector<8x128xf32>
    %cst_46 = arith.constant 1.000000e+00 : f32
    %105 = vector.broadcast %cst_46 : f32 to vector<8x128xf32>
    %106 = arith.addf %105, %104 : vector<8x128xf32>
    %107 = arith.divf %105, %106 : vector<8x128xf32>
    %108 = arith.mulf %99, %76 : vector<8x128xf32>
    %109 = arith.mulf %93, %101 : vector<8x128xf32>
    %110 = arith.addf %108, %109 : vector<8x128xf32>
    %111 = math.tanh %110 : vector<8x128xf32>
    %112 = arith.mulf %107, %111 : vector<8x128xf32>
    %113 = arith.index_cast %c1_i32 : i32 to index
    %c0_47 = arith.constant 0 : index
    %c0_48 = arith.constant 0 : index
    %114 = vector.load %arg13[%113, %c0_47, %c0_48] : memref<8x8x128xf32, #tpu.memory_space<vmem>>, vector<1x8x128xf32>
    %115 = vector.shape_cast %114 : vector<1x8x128xf32> to vector<8x128xf32>
    %116 = vector.shape_cast %112 : vector<8x128xf32> to vector<1x8x128xf32>
    tpu.vector_store %arg13[%113, %c0_47, %c0_48], %116 {strides = array<i32>} : memref<8x8x128xf32, #tpu.memory_space<vmem>>, vector<1x8x128xf32>,
    %c2_i32 = arith.constant 2 : i32
    %117 = arith.index_cast %c2_i32 : i32 to index
    %c0_49 = arith.constant 0 : index
    %c0_50 = arith.constant 0 : index
    %118 = vector.load %arg12[%117, %c0_49, %c0_50] : memref<8x8x512xf32, #tpu.memory_space<vmem>>, vector<1x8x512xf32>
    %119 = vector.shape_cast %118 : vector<1x8x512xf32> to vector<8x512xf32>
    %cst_51 = arith.constant dense<0.000000e+00> : vector<8x512xf32>
    %120 = tpu.matmul %112, %38, %cst_51 {dimension_numbers = #tpu.dot_dimension_numbers<[1], [0], [0], [1], [0, 0, 1, 1], [], []>} : vector<8x128xf32>, vector<128x512xf32>, vector<8x512xf32> -> vector<8x512xf32>
    %121 = arith.addf %119, %120 : vector<8x512xf32>
    %122 = vector.extract_strided_slice %121 {offsets = [0, 0], sizes = [8, 128], strides = [1, 1]} : vector<8x512xf32> to vector<8x128xf32>
    %123 = arith.negf %122 : vector<8x128xf32>
    %124 = math.exp %123 : vector<8x128xf32>
    %cst_52 = arith.constant 1.000000e+00 : f32
    %125 = vector.broadcast %cst_52 : f32 to vector<8x128xf32>
    %126 = arith.addf %125, %124 : vector<8x128xf32>
    %127 = arith.divf %125, %126 : vector<8x128xf32>
    %128 = vector.extract_strided_slice %121 {offsets = [0, 128], sizes = [8, 128], strides = [1, 1]} : vector<8x512xf32> to vector<8x128xf32>
    %129 = arith.negf %128 : vector<8x128xf32>
    %130 = math.exp %129 : vector<8x128xf32>
    %cst_53 = arith.constant 1.000000e+00 : f32
    %131 = vector.broadcast %cst_53 : f32 to vector<8x128xf32>
    %132 = arith.addf %131, %130 : vector<8x128xf32>
    %133 = arith.divf %131, %132 : vector<8x128xf32>
    %134 = vector.extract_strided_slice %121 {offsets = [0, 256], sizes = [8, 128], strides = [1, 1]} : vector<8x512xf32> to vector<8x128xf32>
    %135 = math.tanh %134 : vector<8x128xf32>
    %136 = vector.extract_strided_slice %121 {offsets = [0, 384], sizes = [8, 128], strides = [1, 1]} : vector<8x512xf32> to vector<8x128xf32>
    %137 = arith.negf %136 : vector<8x128xf32>
    %138 = math.exp %137 : vector<8x128xf32>
    %cst_54 = arith.constant 1.000000e+00 : f32
    %139 = vector.broadcast %cst_54 : f32 to vector<8x128xf32>
    %140 = arith.addf %139, %138 : vector<8x128xf32>
    %141 = arith.divf %139, %140 : vector<8x128xf32>
    %142 = arith.mulf %133, %110 : vector<8x128xf32>
    %143 = arith.mulf %127, %135 : vector<8x128xf32>
    %144 = arith.addf %142, %143 : vector<8x128xf32>
    %145 = math.tanh %144 : vector<8x128xf32>
    %146 = arith.mulf %141, %145 : vector<8x128xf32>
    %147 = arith.index_cast %c2_i32 : i32 to index
    %c0_55 = arith.constant 0 : index
    %c0_56 = arith.constant 0 : index
    %148 = vector.load %arg13[%147, %c0_55, %c0_56] : memref<8x8x128xf32, #tpu.memory_space<vmem>>, vector<1x8x128xf32>
    %149 = vector.shape_cast %148 : vector<1x8x128xf32> to vector<8x128xf32>
    %150 = vector.shape_cast %146 : vector<8x128xf32> to vector<1x8x128xf32>
    tpu.vector_store %arg13[%147, %c0_55, %c0_56], %150 {strides = array<i32>} : memref<8x8x128xf32, #tpu.memory_space<vmem>>, vector<1x8x128xf32>,
    %c3_i32 = arith.constant 3 : i32
    %151 = arith.index_cast %c3_i32 : i32 to index
    %c0_57 = arith.constant 0 : index
    %c0_58 = arith.constant 0 : index
    %152 = vector.load %arg12[%151, %c0_57, %c0_58] : memref<8x8x512xf32, #tpu.memory_space<vmem>>, vector<1x8x512xf32>
    %153 = vector.shape_cast %152 : vector<1x8x512xf32> to vector<8x512xf32>
    %cst_59 = arith.constant dense<0.000000e+00> : vector<8x512xf32>
    %154 = tpu.matmul %146, %38, %cst_59 {dimension_numbers = #tpu.dot_dimension_numbers<[1], [0], [0], [1], [0, 0, 1, 1], [], []>} : vector<8x128xf32>, vector<128x512xf32>, vector<8x512xf32> -> vector<8x512xf32>
    %155 = arith.addf %153, %154 : vector<8x512xf32>
    %156 = vector.extract_strided_slice %155 {offsets = [0, 0], sizes = [8, 128], strides = [1, 1]} : vector<8x512xf32> to vector<8x128xf32>
    %157 = arith.negf %156 : vector<8x128xf32>
    %158 = math.exp %157 : vector<8x128xf32>
    %cst_60 = arith.constant 1.000000e+00 : f32
    %159 = vector.broadcast %cst_60 : f32 to vector<8x128xf32>
    %160 = arith.addf %159, %158 : vector<8x128xf32>
    %161 = arith.divf %159, %160 : vector<8x128xf32>
    %162 = vector.extract_strided_slice %155 {offsets = [0, 128], sizes = [8, 128], strides = [1, 1]} : vector<8x512xf32> to vector<8x128xf32>
    %163 = arith.negf %162 : vector<8x128xf32>
    %164 = math.exp %163 : vector<8x128xf32>
    %cst_61 = arith.constant 1.000000e+00 : f32
    %165 = vector.broadcast %cst_61 : f32 to vector<8x128xf32>
    %166 = arith.addf %165, %164 : vector<8x128xf32>
    %167 = arith.divf %165, %166 : vector<8x128xf32>
    %168 = vector.extract_strided_slice %155 {offsets = [0, 256], sizes = [8, 128], strides = [1, 1]} : vector<8x512xf32> to vector<8x128xf32>
    %169 = math.tanh %168 : vector<8x128xf32>
    %170 = vector.extract_strided_slice %155 {offsets = [0, 384], sizes = [8, 128], strides = [1, 1]} : vector<8x512xf32> to vector<8x128xf32>
    %171 = arith.negf %170 : vector<8x128xf32>
    %172 = math.exp %171 : vector<8x128xf32>
    %cst_62 = arith.constant 1.000000e+00 : f32
    %173 = vector.broadcast %cst_62 : f32 to vector<8x128xf32>
    %174 = arith.addf %173, %172 : vector<8x128xf32>
    %175 = arith.divf %173, %174 : vector<8x128xf32>
    %176 = arith.mulf %167, %144 : vector<8x128xf32>
    %177 = arith.mulf %161, %169 : vector<8x128xf32>
    %178 = arith.addf %176, %177 : vector<8x128xf32>
    %179 = math.tanh %178 : vector<8x128xf32>
    %180 = arith.mulf %175, %179 : vector<8x128xf32>
    %181 = arith.index_cast %c3_i32 : i32 to index
    %c0_63 = arith.constant 0 : index
    %c0_64 = arith.constant 0 : index
    %182 = vector.load %arg13[%181, %c0_63, %c0_64] : memref<8x8x128xf32, #tpu.memory_space<vmem>>, vector<1x8x128xf32>
    %183 = vector.shape_cast %182 : vector<1x8x128xf32> to vector<8x128xf32>
    %184 = vector.shape_cast %180 : vector<8x128xf32> to vector<1x8x128xf32>
    tpu.vector_store %arg13[%181, %c0_63, %c0_64], %184 {strides = array<i32>} : memref<8x8x128xf32, #tpu.memory_space<vmem>>, vector<1x8x128xf32>,
    %c4_i32 = arith.constant 4 : i32
    %185 = arith.index_cast %c4_i32 : i32 to index
    %c0_65 = arith.constant 0 : index
    %c0_66 = arith.constant 0 : index
    %186 = vector.load %arg12[%185, %c0_65, %c0_66] : memref<8x8x512xf32, #tpu.memory_space<vmem>>, vector<1x8x512xf32>
    %187 = vector.shape_cast %186 : vector<1x8x512xf32> to vector<8x512xf32>
    %cst_67 = arith.constant dense<0.000000e+00> : vector<8x512xf32>
    %188 = tpu.matmul %180, %38, %cst_67 {dimension_numbers = #tpu.dot_dimension_numbers<[1], [0], [0], [1], [0, 0, 1, 1], [], []>} : vector<8x128xf32>, vector<128x512xf32>, vector<8x512xf32> -> vector<8x512xf32>
    %189 = arith.addf %187, %188 : vector<8x512xf32>
    %190 = vector.extract_strided_slice %189 {offsets = [0, 0], sizes = [8, 128], strides = [1, 1]} : vector<8x512xf32> to vector<8x128xf32>
    %191 = arith.negf %190 : vector<8x128xf32>
    %192 = math.exp %191 : vector<8x128xf32>
    %cst_68 = arith.constant 1.000000e+00 : f32
    %193 = vector.broadcast %cst_68 : f32 to vector<8x128xf32>
    %194 = arith.addf %193, %192 : vector<8x128xf32>
    %195 = arith.divf %193, %194 : vector<8x128xf32>
    %196 = vector.extract_strided_slice %189 {offsets = [0, 128], sizes = [8, 128], strides = [1, 1]} : vector<8x512xf32> to vector<8x128xf32>
    %197 = arith.negf %196 : vector<8x128xf32>
    %198 = math.exp %197 : vector<8x128xf32>
    %cst_69 = arith.constant 1.000000e+00 : f32
    %199 = vector.broadcast %cst_69 : f32 to vector<8x128xf32>
    %200 = arith.addf %199, %198 : vector<8x128xf32>
    %201 = arith.divf %199, %200 : vector<8x128xf32>
    %202 = vector.extract_strided_slice %189 {offsets = [0, 256], sizes = [8, 128], strides = [1, 1]} : vector<8x512xf32> to vector<8x128xf32>
    %203 = math.tanh %202 : vector<8x128xf32>
    %204 = vector.extract_strided_slice %189 {offsets = [0, 384], sizes = [8, 128], strides = [1, 1]} : vector<8x512xf32> to vector<8x128xf32>
    %205 = arith.negf %204 : vector<8x128xf32>
    %206 = math.exp %205 : vector<8x128xf32>
    %cst_70 = arith.constant 1.000000e+00 : f32
    %207 = vector.broadcast %cst_70 : f32 to vector<8x128xf32>
    %208 = arith.addf %207, %206 : vector<8x128xf32>
    %209 = arith.divf %207, %208 : vector<8x128xf32>
    %210 = arith.mulf %201, %178 : vector<8x128xf32>
    %211 = arith.mulf %195, %203 : vector<8x128xf32>
    %212 = arith.addf %210, %211 : vector<8x128xf32>
    %213 = math.tanh %212 : vector<8x128xf32>
    %214 = arith.mulf %209, %213 : vector<8x128xf32>
    %215 = arith.index_cast %c4_i32 : i32 to index
    %c0_71 = arith.constant 0 : index
    %c0_72 = arith.constant 0 : index
    %216 = vector.load %arg13[%215, %c0_71, %c0_72] : memref<8x8x128xf32, #tpu.memory_space<vmem>>, vector<1x8x128xf32>
    %217 = vector.shape_cast %216 : vector<1x8x128xf32> to vector<8x128xf32>
    %218 = vector.shape_cast %214 : vector<8x128xf32> to vector<1x8x128xf32>
    tpu.vector_store %arg13[%215, %c0_71, %c0_72], %218 {strides = array<i32>} : memref<8x8x128xf32, #tpu.memory_space<vmem>>, vector<1x8x128xf32>,
    %c5_i32 = arith.constant 5 : i32
    %219 = arith.index_cast %c5_i32 : i32 to index
    %c0_73 = arith.constant 0 : index
    %c0_74 = arith.constant 0 : index
    %220 = vector.load %arg12[%219, %c0_73, %c0_74] : memref<8x8x512xf32, #tpu.memory_space<vmem>>, vector<1x8x512xf32>
    %221 = vector.shape_cast %220 : vector<1x8x512xf32> to vector<8x512xf32>
    %cst_75 = arith.constant dense<0.000000e+00> : vector<8x512xf32>
    %222 = tpu.matmul %214, %38, %cst_75 {dimension_numbers = #tpu.dot_dimension_numbers<[1], [0], [0], [1], [0, 0, 1, 1], [], []>} : vector<8x128xf32>, vector<128x512xf32>, vector<8x512xf32> -> vector<8x512xf32>
    %223 = arith.addf %221, %222 : vector<8x512xf32>
    %224 = vector.extract_strided_slice %223 {offsets = [0, 0], sizes = [8, 128], strides = [1, 1]} : vector<8x512xf32> to vector<8x128xf32>
    %225 = arith.negf %224 : vector<8x128xf32>
    %226 = math.exp %225 : vector<8x128xf32>
    %cst_76 = arith.constant 1.000000e+00 : f32
    %227 = vector.broadcast %cst_76 : f32 to vector<8x128xf32>
    %228 = arith.addf %227, %226 : vector<8x128xf32>
    %229 = arith.divf %227, %228 : vector<8x128xf32>
    %230 = vector.extract_strided_slice %223 {offsets = [0, 128], sizes = [8, 128], strides = [1, 1]} : vector<8x512xf32> to vector<8x128xf32>
    %231 = arith.negf %230 : vector<8x128xf32>
    %232 = math.exp %231 : vector<8x128xf32>
    %cst_77 = arith.constant 1.000000e+00 : f32
    %233 = vector.broadcast %cst_77 : f32 to vector<8x128xf32>
    %234 = arith.addf %233, %232 : vector<8x128xf32>
    %235 = arith.divf %233, %234 : vector<8x128xf32>
    %236 = vector.extract_strided_slice %223 {offsets = [0, 256], sizes = [8, 128], strides = [1, 1]} : vector<8x512xf32> to vector<8x128xf32>
    %237 = math.tanh %236 : vector<8x128xf32>
    %238 = vector.extract_strided_slice %223 {offsets = [0, 384], sizes = [8, 128], strides = [1, 1]} : vector<8x512xf32> to vector<8x128xf32>
    %239 = arith.negf %238 : vector<8x128xf32>
    %240 = math.exp %239 : vector<8x128xf32>
    %cst_78 = arith.constant 1.000000e+00 : f32
    %241 = vector.broadcast %cst_78 : f32 to vector<8x128xf32>
    %242 = arith.addf %241, %240 : vector<8x128xf32>
    %243 = arith.divf %241, %242 : vector<8x128xf32>
    %244 = arith.mulf %235, %212 : vector<8x128xf32>
    %245 = arith.mulf %229, %237 : vector<8x128xf32>
    %246 = arith.addf %244, %245 : vector<8x128xf32>
    %247 = math.tanh %246 : vector<8x128xf32>
    %248 = arith.mulf %243, %247 : vector<8x128xf32>
    %249 = arith.index_cast %c5_i32 : i32 to index
    %c0_79 = arith.constant 0 : index
    %c0_80 = arith.constant 0 : index
    %250 = vector.load %arg13[%249, %c0_79, %c0_80] : memref<8x8x128xf32, #tpu.memory_space<vmem>>, vector<1x8x128xf32>
    %251 = vector.shape_cast %250 : vector<1x8x128xf32> to vector<8x128xf32>
    %252 = vector.shape_cast %248 : vector<8x128xf32> to vector<1x8x128xf32>
    tpu.vector_store %arg13[%249, %c0_79, %c0_80], %252 {strides = array<i32>} : memref<8x8x128xf32, #tpu.memory_space<vmem>>, vector<1x8x128xf32>,
    %c6_i32 = arith.constant 6 : i32
    %253 = arith.index_cast %c6_i32 : i32 to index
    %c0_81 = arith.constant 0 : index
    %c0_82 = arith.constant 0 : index
    %254 = vector.load %arg12[%253, %c0_81, %c0_82] : memref<8x8x512xf32, #tpu.memory_space<vmem>>, vector<1x8x512xf32>
    %255 = vector.shape_cast %254 : vector<1x8x512xf32> to vector<8x512xf32>
    %cst_83 = arith.constant dense<0.000000e+00> : vector<8x512xf32>
    %256 = tpu.matmul %248, %38, %cst_83 {dimension_numbers = #tpu.dot_dimension_numbers<[1], [0], [0], [1], [0, 0, 1, 1], [], []>} : vector<8x128xf32>, vector<128x512xf32>, vector<8x512xf32> -> vector<8x512xf32>
    %257 = arith.addf %255, %256 : vector<8x512xf32>
    %258 = vector.extract_strided_slice %257 {offsets = [0, 0], sizes = [8, 128], strides = [1, 1]} : vector<8x512xf32> to vector<8x128xf32>
    %259 = arith.negf %258 : vector<8x128xf32>
    %260 = math.exp %259 : vector<8x128xf32>
    %cst_84 = arith.constant 1.000000e+00 : f32
    %261 = vector.broadcast %cst_84 : f32 to vector<8x128xf32>
    %262 = arith.addf %261, %260 : vector<8x128xf32>
    %263 = arith.divf %261, %262 : vector<8x128xf32>
    %264 = vector.extract_strided_slice %257 {offsets = [0, 128], sizes = [8, 128], strides = [1, 1]} : vector<8x512xf32> to vector<8x128xf32>
    %265 = arith.negf %264 : vector<8x128xf32>
    %266 = math.exp %265 : vector<8x128xf32>
    %cst_85 = arith.constant 1.000000e+00 : f32
    %267 = vector.broadcast %cst_85 : f32 to vector<8x128xf32>
    %268 = arith.addf %267, %266 : vector<8x128xf32>
    %269 = arith.divf %267, %268 : vector<8x128xf32>
    %270 = vector.extract_strided_slice %257 {offsets = [0, 256], sizes = [8, 128], strides = [1, 1]} : vector<8x512xf32> to vector<8x128xf32>
    %271 = math.tanh %270 : vector<8x128xf32>
    %272 = vector.extract_strided_slice %257 {offsets = [0, 384], sizes = [8, 128], strides = [1, 1]} : vector<8x512xf32> to vector<8x128xf32>
    %273 = arith.negf %272 : vector<8x128xf32>
    %274 = math.exp %273 : vector<8x128xf32>
    %cst_86 = arith.constant 1.000000e+00 : f32
    %275 = vector.broadcast %cst_86 : f32 to vector<8x128xf32>
    %276 = arith.addf %275, %274 : vector<8x128xf32>
    %277 = arith.divf %275, %276 : vector<8x128xf32>
    %278 = arith.mulf %269, %246 : vector<8x128xf32>
    %279 = arith.mulf %263, %271 : vector<8x128xf32>
    %280 = arith.addf %278, %279 : vector<8x128xf32>
    %281 = math.tanh %280 : vector<8x128xf32>
    %282 = arith.mulf %277, %281 : vector<8x128xf32>
    %283 = arith.index_cast %c6_i32 : i32 to index
    %c0_87 = arith.constant 0 : index
    %c0_88 = arith.constant 0 : index
    %284 = vector.load %arg13[%283, %c0_87, %c0_88] : memref<8x8x128xf32, #tpu.memory_space<vmem>>, vector<1x8x128xf32>
    %285 = vector.shape_cast %284 : vector<1x8x128xf32> to vector<8x128xf32>
    %286 = vector.shape_cast %282 : vector<8x128xf32> to vector<1x8x128xf32>
    tpu.vector_store %arg13[%283, %c0_87, %c0_88], %286 {strides = array<i32>} : memref<8x8x128xf32, #tpu.memory_space<vmem>>, vector<1x8x128xf32>,
    %c7_i32 = arith.constant 7 : i32
    %287 = arith.index_cast %c7_i32 : i32 to index
    %c0_89 = arith.constant 0 : index
    %c0_90 = arith.constant 0 : index
    %288 = vector.load %arg12[%287, %c0_89, %c0_90] : memref<8x8x512xf32, #tpu.memory_space<vmem>>, vector<1x8x512xf32>
    %289 = vector.shape_cast %288 : vector<1x8x512xf32> to vector<8x512xf32>
    %cst_91 = arith.constant dense<0.000000e+00> : vector<8x512xf32>
    %290 = tpu.matmul %282, %38, %cst_91 {dimension_numbers = #tpu.dot_dimension_numbers<[1], [0], [0], [1], [0, 0, 1, 1], [], []>} : vector<8x128xf32>, vector<128x512xf32>, vector<8x512xf32> -> vector<8x512xf32>
    %291 = arith.addf %289, %290 : vector<8x512xf32>
    %292 = vector.extract_strided_slice %291 {offsets = [0, 0], sizes = [8, 128], strides = [1, 1]} : vector<8x512xf32> to vector<8x128xf32>
    %293 = arith.negf %292 : vector<8x128xf32>
    %294 = math.exp %293 : vector<8x128xf32>
    %cst_92 = arith.constant 1.000000e+00 : f32
    %295 = vector.broadcast %cst_92 : f32 to vector<8x128xf32>
    %296 = arith.addf %295, %294 : vector<8x128xf32>
    %297 = arith.divf %295, %296 : vector<8x128xf32>
    %298 = vector.extract_strided_slice %291 {offsets = [0, 128], sizes = [8, 128], strides = [1, 1]} : vector<8x512xf32> to vector<8x128xf32>
    %299 = arith.negf %298 : vector<8x128xf32>
    %300 = math.exp %299 : vector<8x128xf32>
    %cst_93 = arith.constant 1.000000e+00 : f32
    %301 = vector.broadcast %cst_93 : f32 to vector<8x128xf32>
    %302 = arith.addf %301, %300 : vector<8x128xf32>
    %303 = arith.divf %301, %302 : vector<8x128xf32>
    %304 = vector.extract_strided_slice %291 {offsets = [0, 256], sizes = [8, 128], strides = [1, 1]} : vector<8x512xf32> to vector<8x128xf32>
    %305 = math.tanh %304 : vector<8x128xf32>
    %306 = vector.extract_strided_slice %291 {offsets = [0, 384], sizes = [8, 128], strides = [1, 1]} : vector<8x512xf32> to vector<8x128xf32>
    %307 = arith.negf %306 : vector<8x128xf32>
    %308 = math.exp %307 : vector<8x128xf32>
    %cst_94 = arith.constant 1.000000e+00 : f32
    %309 = vector.broadcast %cst_94 : f32 to vector<8x128xf32>
    %310 = arith.addf %309, %308 : vector<8x128xf32>
    %311 = arith.divf %309, %310 : vector<8x128xf32>
    %312 = arith.mulf %303, %280 : vector<8x128xf32>
    %313 = arith.mulf %297, %305 : vector<8x128xf32>
    %314 = arith.addf %312, %313 : vector<8x128xf32>
    %315 = math.tanh %314 : vector<8x128xf32>
    %316 = arith.mulf %311, %315 : vector<8x128xf32>
    %317 = arith.index_cast %c7_i32 : i32 to index
    %c0_95 = arith.constant 0 : index
    %c0_96 = arith.constant 0 : index
    %318 = vector.load %arg13[%317, %c0_95, %c0_96] : memref<8x8x128xf32, #tpu.memory_space<vmem>>, vector<1x8x128xf32>
    %319 = vector.shape_cast %318 : vector<1x8x128xf32> to vector<8x128xf32>
    %320 = vector.shape_cast %316 : vector<8x128xf32> to vector<1x8x128xf32>
    tpu.vector_store %arg13[%317, %c0_95, %c0_96], %320 {strides = array<i32>} : memref<8x8x128xf32, #tpu.memory_space<vmem>>, vector<1x8x128xf32>,
    %c8_i32 = arith.constant 8 : i32
    %c0_97 = arith.constant 0 : index
    %c0_98 = arith.constant 0 : index
    %c0_99 = arith.constant 0 : index
    %321 = vector.load %arg15[%c0_97, %c0_98, %c0_99] : memref<4x8x128xf32, #tpu.memory_space<vmem>>, vector<1x8x128xf32>
    %322 = vector.shape_cast %321 : vector<1x8x128xf32> to vector<8x128xf32>
    %323 = vector.shape_cast %316 : vector<8x128xf32> to vector<1x8x128xf32>
    tpu.vector_store %arg15[%c0_97, %c0_98, %c0_99], %323 {strides = array<i32>} : memref<4x8x128xf32, #tpu.memory_space<vmem>>, vector<1x8x128xf32>,
    %c1_100 = arith.constant 1 : index
    %c0_101 = arith.constant 0 : index
    %c0_102 = arith.constant 0 : index
    %324 = vector.load %arg15[%c1_100, %c0_101, %c0_102] : memref<4x8x128xf32, #tpu.memory_space<vmem>>, vector<1x8x128xf32>
    %325 = vector.shape_cast %324 : vector<1x8x128xf32> to vector<8x128xf32>
    %326 = vector.shape_cast %314 : vector<8x128xf32> to vector<1x8x128xf32>
    tpu.vector_store %arg15[%c1_100, %c0_101, %c0_102], %326 {strides = array<i32>} : memref<4x8x128xf32, #tpu.memory_space<vmem>>, vector<1x8x128xf32>,
    %c0_103 = arith.constant 0 : index
    %c0_104 = arith.constant 0 : index
    %327 = vector.load %arg6[%c0_103, %c0_104] : memref<128x512xf32, #tpu.memory_space<vmem>>, vector<128x512xf32>
    %c0_105 = arith.constant 0 : index
    %c0_106 = arith.constant 0 : index
    %328 = vector.load %arg7[%c0_105, %c0_106] : memref<128x512xf32, #tpu.memory_space<vmem>>, vector<128x512xf32>
    %c0_107 = arith.constant 0 : index
    %c0_108 = arith.constant 0 : index
    %329 = vector.load %arg8[%c0_107, %c0_108] : memref<1x512xf32, #tpu.memory_space<vmem>>, vector<1x512xf32>
    %c0_109 = arith.constant 0 : index
    %c0_110 = arith.constant 0 : index
    %c0_111 = arith.constant 0 : index
    %330 = vector.load %arg13[%c0_109, %c0_110, %c0_111] : memref<8x8x128xf32, #tpu.memory_space<vmem>>, vector<8x8x128xf32>
    %331 = vector.shape_cast %330 : vector<8x8x128xf32> to vector<64x128xf32>
    %cst_112 = arith.constant dense<0.000000e+00> : vector<64x512xf32>
    %332 = tpu.matmul %331, %327, %cst_112 {dimension_numbers = #tpu.dot_dimension_numbers<[1], [0], [0], [1], [0, 0, 1, 1], [], []>} : vector<64x128xf32>, vector<128x512xf32>, vector<64x512xf32> -> vector<64x512xf32>
    %333 = vector.broadcast %329 : vector<1x512xf32> to vector<64x512xf32>
    %334 = arith.addf %332, %333 : vector<64x512xf32>
    %335 = vector.shape_cast %334 : vector<64x512xf32> to vector<8x8x512xf32>
    %c0_113 = arith.constant 0 : index
    %c0_114 = arith.constant 0 : index
    %c0_115 = arith.constant 0 : index
    %336 = vector.load %arg12[%c0_113, %c0_114, %c0_115] : memref<8x8x512xf32, #tpu.memory_space<vmem>>, vector<8x8x512xf32>
    tpu.vector_store %arg12[%c0_113, %c0_114, %c0_115], %335 {strides = array<i32>} : memref<8x8x512xf32, #tpu.memory_space<vmem>>, vector<8x8x512xf32>,
    %c2_116 = arith.constant 2 : index
    %c0_117 = arith.constant 0 : index
    %c0_118 = arith.constant 0 : index
    %337 = vector.load %arg15[%c2_116, %c0_117, %c0_118] : memref<4x8x128xf32, #tpu.memory_space<vmem>>, vector<1x8x128xf32>
    %338 = vector.shape_cast %337 : vector<1x8x128xf32> to vector<8x128xf32>
    %c3_119 = arith.constant 3 : index
    %c0_120 = arith.constant 0 : index
    %c0_121 = arith.constant 0 : index
    %339 = vector.load %arg15[%c3_119, %c0_120, %c0_121] : memref<4x8x128xf32, #tpu.memory_space<vmem>>, vector<1x8x128xf32>
    %340 = vector.shape_cast %339 : vector<1x8x128xf32> to vector<8x128xf32>
    %c0_i32_122 = arith.constant 0 : i32
    %341 = arith.index_cast %c0_i32_122 : i32 to index
    %c0_123 = arith.constant 0 : index
    %c0_124 = arith.constant 0 : index
    %342 = vector.load %arg12[%341, %c0_123, %c0_124] : memref<8x8x512xf32, #tpu.memory_space<vmem>>, vector<1x8x512xf32>
    %343 = vector.shape_cast %342 : vector<1x8x512xf32> to vector<8x512xf32>
    %cst_125 = arith.constant dense<0.000000e+00> : vector<8x512xf32>
    %344 = tpu.matmul %338, %328, %cst_125 {dimension_numbers = #tpu.dot_dimension_numbers<[1], [0], [0], [1], [0, 0, 1, 1], [], []>} : vector<8x128xf32>, vector<128x512xf32>, vector<8x512xf32> -> vector<8x512xf32>
    %345 = arith.addf %343, %344 : vector<8x512xf32>
    %346 = vector.extract_strided_slice %345 {offsets = [0, 0], sizes = [8, 128], strides = [1, 1]} : vector<8x512xf32> to vector<8x128xf32>
    %347 = arith.negf %346 : vector<8x128xf32>
    %348 = math.exp %347 : vector<8x128xf32>
    %cst_126 = arith.constant 1.000000e+00 : f32
    %349 = vector.broadcast %cst_126 : f32 to vector<8x128xf32>
    %350 = arith.addf %349, %348 : vector<8x128xf32>
    %351 = arith.divf %349, %350 : vector<8x128xf32>
    %352 = vector.extract_strided_slice %345 {offsets = [0, 128], sizes = [8, 128], strides = [1, 1]} : vector<8x512xf32> to vector<8x128xf32>
    %353 = arith.negf %352 : vector<8x128xf32>
    %354 = math.exp %353 : vector<8x128xf32>
    %cst_127 = arith.constant 1.000000e+00 : f32
    %355 = vector.broadcast %cst_127 : f32 to vector<8x128xf32>
    %356 = arith.addf %355, %354 : vector<8x128xf32>
    %357 = arith.divf %355, %356 : vector<8x128xf32>
    %358 = vector.extract_strided_slice %345 {offsets = [0, 256], sizes = [8, 128], strides = [1, 1]} : vector<8x512xf32> to vector<8x128xf32>
    %359 = math.tanh %358 : vector<8x128xf32>
    %360 = vector.extract_strided_slice %345 {offsets = [0, 384], sizes = [8, 128], strides = [1, 1]} : vector<8x512xf32> to vector<8x128xf32>
    %361 = arith.negf %360 : vector<8x128xf32>
    %362 = math.exp %361 : vector<8x128xf32>
    %cst_128 = arith.constant 1.000000e+00 : f32
    %363 = vector.broadcast %cst_128 : f32 to vector<8x128xf32>
    %364 = arith.addf %363, %362 : vector<8x128xf32>
    %365 = arith.divf %363, %364 : vector<8x128xf32>
    %366 = arith.mulf %357, %340 : vector<8x128xf32>
    %367 = arith.mulf %351, %359 : vector<8x128xf32>
    %368 = arith.addf %366, %367 : vector<8x128xf32>
    %369 = math.tanh %368 : vector<8x128xf32>
    %370 = arith.mulf %365, %369 : vector<8x128xf32>
    %371 = arith.index_cast %c0_i32_122 : i32 to index
    %c0_129 = arith.constant 0 : index
    %c0_130 = arith.constant 0 : index
    %372 = vector.load %arg14[%371, %c0_129, %c0_130] : memref<8x8x128xf32, #tpu.memory_space<vmem>>, vector<1x8x128xf32>
    %373 = vector.shape_cast %372 : vector<1x8x128xf32> to vector<8x128xf32>
    %374 = vector.shape_cast %370 : vector<8x128xf32> to vector<1x8x128xf32>
    tpu.vector_store %arg14[%371, %c0_129, %c0_130], %374 {strides = array<i32>} : memref<8x8x128xf32, #tpu.memory_space<vmem>>, vector<1x8x128xf32>,
    %c1_i32_131 = arith.constant 1 : i32
    %375 = arith.index_cast %c1_i32_131 : i32 to index
    %c0_132 = arith.constant 0 : index
    %c0_133 = arith.constant 0 : index
    %376 = vector.load %arg12[%375, %c0_132, %c0_133] : memref<8x8x512xf32, #tpu.memory_space<vmem>>, vector<1x8x512xf32>
    %377 = vector.shape_cast %376 : vector<1x8x512xf32> to vector<8x512xf32>
    %cst_134 = arith.constant dense<0.000000e+00> : vector<8x512xf32>
    %378 = tpu.matmul %370, %328, %cst_134 {dimension_numbers = #tpu.dot_dimension_numbers<[1], [0], [0], [1], [0, 0, 1, 1], [], []>} : vector<8x128xf32>, vector<128x512xf32>, vector<8x512xf32> -> vector<8x512xf32>
    %379 = arith.addf %377, %378 : vector<8x512xf32>
    %380 = vector.extract_strided_slice %379 {offsets = [0, 0], sizes = [8, 128], strides = [1, 1]} : vector<8x512xf32> to vector<8x128xf32>
    %381 = arith.negf %380 : vector<8x128xf32>
    %382 = math.exp %381 : vector<8x128xf32>
    %cst_135 = arith.constant 1.000000e+00 : f32
    %383 = vector.broadcast %cst_135 : f32 to vector<8x128xf32>
    %384 = arith.addf %383, %382 : vector<8x128xf32>
    %385 = arith.divf %383, %384 : vector<8x128xf32>
    %386 = vector.extract_strided_slice %379 {offsets = [0, 128], sizes = [8, 128], strides = [1, 1]} : vector<8x512xf32> to vector<8x128xf32>
    %387 = arith.negf %386 : vector<8x128xf32>
    %388 = math.exp %387 : vector<8x128xf32>
    %cst_136 = arith.constant 1.000000e+00 : f32
    %389 = vector.broadcast %cst_136 : f32 to vector<8x128xf32>
    %390 = arith.addf %389, %388 : vector<8x128xf32>
    %391 = arith.divf %389, %390 : vector<8x128xf32>
    %392 = vector.extract_strided_slice %379 {offsets = [0, 256], sizes = [8, 128], strides = [1, 1]} : vector<8x512xf32> to vector<8x128xf32>
    %393 = math.tanh %392 : vector<8x128xf32>
    %394 = vector.extract_strided_slice %379 {offsets = [0, 384], sizes = [8, 128], strides = [1, 1]} : vector<8x512xf32> to vector<8x128xf32>
    %395 = arith.negf %394 : vector<8x128xf32>
    %396 = math.exp %395 : vector<8x128xf32>
    %cst_137 = arith.constant 1.000000e+00 : f32
    %397 = vector.broadcast %cst_137 : f32 to vector<8x128xf32>
    %398 = arith.addf %397, %396 : vector<8x128xf32>
    %399 = arith.divf %397, %398 : vector<8x128xf32>
    %400 = arith.mulf %391, %368 : vector<8x128xf32>
    %401 = arith.mulf %385, %393 : vector<8x128xf32>
    %402 = arith.addf %400, %401 : vector<8x128xf32>
    %403 = math.tanh %402 : vector<8x128xf32>
    %404 = arith.mulf %399, %403 : vector<8x128xf32>
    %405 = arith.index_cast %c1_i32_131 : i32 to index
    %c0_138 = arith.constant 0 : index
    %c0_139 = arith.constant 0 : index
    %406 = vector.load %arg14[%405, %c0_138, %c0_139] : memref<8x8x128xf32, #tpu.memory_space<vmem>>, vector<1x8x128xf32>
    %407 = vector.shape_cast %406 : vector<1x8x128xf32> to vector<8x128xf32>
    %408 = vector.shape_cast %404 : vector<8x128xf32> to vector<1x8x128xf32>
    tpu.vector_store %arg14[%405, %c0_138, %c0_139], %408 {strides = array<i32>} : memref<8x8x128xf32, #tpu.memory_space<vmem>>, vector<1x8x128xf32>,
    %c2_i32_140 = arith.constant 2 : i32
    %409 = arith.index_cast %c2_i32_140 : i32 to index
    %c0_141 = arith.constant 0 : index
    %c0_142 = arith.constant 0 : index
    %410 = vector.load %arg12[%409, %c0_141, %c0_142] : memref<8x8x512xf32, #tpu.memory_space<vmem>>, vector<1x8x512xf32>
    %411 = vector.shape_cast %410 : vector<1x8x512xf32> to vector<8x512xf32>
    %cst_143 = arith.constant dense<0.000000e+00> : vector<8x512xf32>
    %412 = tpu.matmul %404, %328, %cst_143 {dimension_numbers = #tpu.dot_dimension_numbers<[1], [0], [0], [1], [0, 0, 1, 1], [], []>} : vector<8x128xf32>, vector<128x512xf32>, vector<8x512xf32> -> vector<8x512xf32>
    %413 = arith.addf %411, %412 : vector<8x512xf32>
    %414 = vector.extract_strided_slice %413 {offsets = [0, 0], sizes = [8, 128], strides = [1, 1]} : vector<8x512xf32> to vector<8x128xf32>
    %415 = arith.negf %414 : vector<8x128xf32>
    %416 = math.exp %415 : vector<8x128xf32>
    %cst_144 = arith.constant 1.000000e+00 : f32
    %417 = vector.broadcast %cst_144 : f32 to vector<8x128xf32>
    %418 = arith.addf %417, %416 : vector<8x128xf32>
    %419 = arith.divf %417, %418 : vector<8x128xf32>
    %420 = vector.extract_strided_slice %413 {offsets = [0, 128], sizes = [8, 128], strides = [1, 1]} : vector<8x512xf32> to vector<8x128xf32>
    %421 = arith.negf %420 : vector<8x128xf32>
    %422 = math.exp %421 : vector<8x128xf32>
    %cst_145 = arith.constant 1.000000e+00 : f32
    %423 = vector.broadcast %cst_145 : f32 to vector<8x128xf32>
    %424 = arith.addf %423, %422 : vector<8x128xf32>
    %425 = arith.divf %423, %424 : vector<8x128xf32>
    %426 = vector.extract_strided_slice %413 {offsets = [0, 256], sizes = [8, 128], strides = [1, 1]} : vector<8x512xf32> to vector<8x128xf32>
    %427 = math.tanh %426 : vector<8x128xf32>
    %428 = vector.extract_strided_slice %413 {offsets = [0, 384], sizes = [8, 128], strides = [1, 1]} : vector<8x512xf32> to vector<8x128xf32>
    %429 = arith.negf %428 : vector<8x128xf32>
    %430 = math.exp %429 : vector<8x128xf32>
    %cst_146 = arith.constant 1.000000e+00 : f32
    %431 = vector.broadcast %cst_146 : f32 to vector<8x128xf32>
    %432 = arith.addf %431, %430 : vector<8x128xf32>
    %433 = arith.divf %431, %432 : vector<8x128xf32>
    %434 = arith.mulf %425, %402 : vector<8x128xf32>
    %435 = arith.mulf %419, %427 : vector<8x128xf32>
    %436 = arith.addf %434, %435 : vector<8x128xf32>
    %437 = math.tanh %436 : vector<8x128xf32>
    %438 = arith.mulf %433, %437 : vector<8x128xf32>
    %439 = arith.index_cast %c2_i32_140 : i32 to index
    %c0_147 = arith.constant 0 : index
    %c0_148 = arith.constant 0 : index
    %440 = vector.load %arg14[%439, %c0_147, %c0_148] : memref<8x8x128xf32, #tpu.memory_space<vmem>>, vector<1x8x128xf32>
    %441 = vector.shape_cast %440 : vector<1x8x128xf32> to vector<8x128xf32>
    %442 = vector.shape_cast %438 : vector<8x128xf32> to vector<1x8x128xf32>
    tpu.vector_store %arg14[%439, %c0_147, %c0_148], %442 {strides = array<i32>} : memref<8x8x128xf32, #tpu.memory_space<vmem>>, vector<1x8x128xf32>,
    %c3_i32_149 = arith.constant 3 : i32
    %443 = arith.index_cast %c3_i32_149 : i32 to index
    %c0_150 = arith.constant 0 : index
    %c0_151 = arith.constant 0 : index
    %444 = vector.load %arg12[%443, %c0_150, %c0_151] : memref<8x8x512xf32, #tpu.memory_space<vmem>>, vector<1x8x512xf32>
    %445 = vector.shape_cast %444 : vector<1x8x512xf32> to vector<8x512xf32>
    %cst_152 = arith.constant dense<0.000000e+00> : vector<8x512xf32>
    %446 = tpu.matmul %438, %328, %cst_152 {dimension_numbers = #tpu.dot_dimension_numbers<[1], [0], [0], [1], [0, 0, 1, 1], [], []>} : vector<8x128xf32>, vector<128x512xf32>, vector<8x512xf32> -> vector<8x512xf32>
    %447 = arith.addf %445, %446 : vector<8x512xf32>
    %448 = vector.extract_strided_slice %447 {offsets = [0, 0], sizes = [8, 128], strides = [1, 1]} : vector<8x512xf32> to vector<8x128xf32>
    %449 = arith.negf %448 : vector<8x128xf32>
    %450 = math.exp %449 : vector<8x128xf32>
    %cst_153 = arith.constant 1.000000e+00 : f32
    %451 = vector.broadcast %cst_153 : f32 to vector<8x128xf32>
    %452 = arith.addf %451, %450 : vector<8x128xf32>
    %453 = arith.divf %451, %452 : vector<8x128xf32>
    %454 = vector.extract_strided_slice %447 {offsets = [0, 128], sizes = [8, 128], strides = [1, 1]} : vector<8x512xf32> to vector<8x128xf32>
    %455 = arith.negf %454 : vector<8x128xf32>
    %456 = math.exp %455 : vector<8x128xf32>
    %cst_154 = arith.constant 1.000000e+00 : f32
    %457 = vector.broadcast %cst_154 : f32 to vector<8x128xf32>
    %458 = arith.addf %457, %456 : vector<8x128xf32>
    %459 = arith.divf %457, %458 : vector<8x128xf32>
    %460 = vector.extract_strided_slice %447 {offsets = [0, 256], sizes = [8, 128], strides = [1, 1]} : vector<8x512xf32> to vector<8x128xf32>
    %461 = math.tanh %460 : vector<8x128xf32>
    %462 = vector.extract_strided_slice %447 {offsets = [0, 384], sizes = [8, 128], strides = [1, 1]} : vector<8x512xf32> to vector<8x128xf32>
    %463 = arith.negf %462 : vector<8x128xf32>
    %464 = math.exp %463 : vector<8x128xf32>
    %cst_155 = arith.constant 1.000000e+00 : f32
    %465 = vector.broadcast %cst_155 : f32 to vector<8x128xf32>
    %466 = arith.addf %465, %464 : vector<8x128xf32>
    %467 = arith.divf %465, %466 : vector<8x128xf32>
    %468 = arith.mulf %459, %436 : vector<8x128xf32>
    %469 = arith.mulf %453, %461 : vector<8x128xf32>
    %470 = arith.addf %468, %469 : vector<8x128xf32>
    %471 = math.tanh %470 : vector<8x128xf32>
    %472 = arith.mulf %467, %471 : vector<8x128xf32>
    %473 = arith.index_cast %c3_i32_149 : i32 to index
    %c0_156 = arith.constant 0 : index
    %c0_157 = arith.constant 0 : index
    %474 = vector.load %arg14[%473, %c0_156, %c0_157] : memref<8x8x128xf32, #tpu.memory_space<vmem>>, vector<1x8x128xf32>
    %475 = vector.shape_cast %474 : vector<1x8x128xf32> to vector<8x128xf32>
    %476 = vector.shape_cast %472 : vector<8x128xf32> to vector<1x8x128xf32>
    tpu.vector_store %arg14[%473, %c0_156, %c0_157], %476 {strides = array<i32>} : memref<8x8x128xf32, #tpu.memory_space<vmem>>, vector<1x8x128xf32>,
    %c4_i32_158 = arith.constant 4 : i32
    %477 = arith.index_cast %c4_i32_158 : i32 to index
    %c0_159 = arith.constant 0 : index
    %c0_160 = arith.constant 0 : index
    %478 = vector.load %arg12[%477, %c0_159, %c0_160] : memref<8x8x512xf32, #tpu.memory_space<vmem>>, vector<1x8x512xf32>
    %479 = vector.shape_cast %478 : vector<1x8x512xf32> to vector<8x512xf32>
    %cst_161 = arith.constant dense<0.000000e+00> : vector<8x512xf32>
    %480 = tpu.matmul %472, %328, %cst_161 {dimension_numbers = #tpu.dot_dimension_numbers<[1], [0], [0], [1], [0, 0, 1, 1], [], []>} : vector<8x128xf32>, vector<128x512xf32>, vector<8x512xf32> -> vector<8x512xf32>
    %481 = arith.addf %479, %480 : vector<8x512xf32>
    %482 = vector.extract_strided_slice %481 {offsets = [0, 0], sizes = [8, 128], strides = [1, 1]} : vector<8x512xf32> to vector<8x128xf32>
    %483 = arith.negf %482 : vector<8x128xf32>
    %484 = math.exp %483 : vector<8x128xf32>
    %cst_162 = arith.constant 1.000000e+00 : f32
    %485 = vector.broadcast %cst_162 : f32 to vector<8x128xf32>
    %486 = arith.addf %485, %484 : vector<8x128xf32>
    %487 = arith.divf %485, %486 : vector<8x128xf32>
    %488 = vector.extract_strided_slice %481 {offsets = [0, 128], sizes = [8, 128], strides = [1, 1]} : vector<8x512xf32> to vector<8x128xf32>
    %489 = arith.negf %488 : vector<8x128xf32>
    %490 = math.exp %489 : vector<8x128xf32>
    %cst_163 = arith.constant 1.000000e+00 : f32
    %491 = vector.broadcast %cst_163 : f32 to vector<8x128xf32>
    %492 = arith.addf %491, %490 : vector<8x128xf32>
    %493 = arith.divf %491, %492 : vector<8x128xf32>
    %494 = vector.extract_strided_slice %481 {offsets = [0, 256], sizes = [8, 128], strides = [1, 1]} : vector<8x512xf32> to vector<8x128xf32>
    %495 = math.tanh %494 : vector<8x128xf32>
    %496 = vector.extract_strided_slice %481 {offsets = [0, 384], sizes = [8, 128], strides = [1, 1]} : vector<8x512xf32> to vector<8x128xf32>
    %497 = arith.negf %496 : vector<8x128xf32>
    %498 = math.exp %497 : vector<8x128xf32>
    %cst_164 = arith.constant 1.000000e+00 : f32
    %499 = vector.broadcast %cst_164 : f32 to vector<8x128xf32>
    %500 = arith.addf %499, %498 : vector<8x128xf32>
    %501 = arith.divf %499, %500 : vector<8x128xf32>
    %502 = arith.mulf %493, %470 : vector<8x128xf32>
    %503 = arith.mulf %487, %495 : vector<8x128xf32>
    %504 = arith.addf %502, %503 : vector<8x128xf32>
    %505 = math.tanh %504 : vector<8x128xf32>
    %506 = arith.mulf %501, %505 : vector<8x128xf32>
    %507 = arith.index_cast %c4_i32_158 : i32 to index
    %c0_165 = arith.constant 0 : index
    %c0_166 = arith.constant 0 : index
    %508 = vector.load %arg14[%507, %c0_165, %c0_166] : memref<8x8x128xf32, #tpu.memory_space<vmem>>, vector<1x8x128xf32>
    %509 = vector.shape_cast %508 : vector<1x8x128xf32> to vector<8x128xf32>
    %510 = vector.shape_cast %506 : vector<8x128xf32> to vector<1x8x128xf32>
    tpu.vector_store %arg14[%507, %c0_165, %c0_166], %510 {strides = array<i32>} : memref<8x8x128xf32, #tpu.memory_space<vmem>>, vector<1x8x128xf32>,
    %c5_i32_167 = arith.constant 5 : i32
    %511 = arith.index_cast %c5_i32_167 : i32 to index
    %c0_168 = arith.constant 0 : index
    %c0_169 = arith.constant 0 : index
    %512 = vector.load %arg12[%511, %c0_168, %c0_169] : memref<8x8x512xf32, #tpu.memory_space<vmem>>, vector<1x8x512xf32>
    %513 = vector.shape_cast %512 : vector<1x8x512xf32> to vector<8x512xf32>
    %cst_170 = arith.constant dense<0.000000e+00> : vector<8x512xf32>
    %514 = tpu.matmul %506, %328, %cst_170 {dimension_numbers = #tpu.dot_dimension_numbers<[1], [0], [0], [1], [0, 0, 1, 1], [], []>} : vector<8x128xf32>, vector<128x512xf32>, vector<8x512xf32> -> vector<8x512xf32>
    %515 = arith.addf %513, %514 : vector<8x512xf32>
    %516 = vector.extract_strided_slice %515 {offsets = [0, 0], sizes = [8, 128], strides = [1, 1]} : vector<8x512xf32> to vector<8x128xf32>
    %517 = arith.negf %516 : vector<8x128xf32>
    %518 = math.exp %517 : vector<8x128xf32>
    %cst_171 = arith.constant 1.000000e+00 : f32
    %519 = vector.broadcast %cst_171 : f32 to vector<8x128xf32>
    %520 = arith.addf %519, %518 : vector<8x128xf32>
    %521 = arith.divf %519, %520 : vector<8x128xf32>
    %522 = vector.extract_strided_slice %515 {offsets = [0, 128], sizes = [8, 128], strides = [1, 1]} : vector<8x512xf32> to vector<8x128xf32>
    %523 = arith.negf %522 : vector<8x128xf32>
    %524 = math.exp %523 : vector<8x128xf32>
    %cst_172 = arith.constant 1.000000e+00 : f32
    %525 = vector.broadcast %cst_172 : f32 to vector<8x128xf32>
    %526 = arith.addf %525, %524 : vector<8x128xf32>
    %527 = arith.divf %525, %526 : vector<8x128xf32>
    %528 = vector.extract_strided_slice %515 {offsets = [0, 256], sizes = [8, 128], strides = [1, 1]} : vector<8x512xf32> to vector<8x128xf32>
    %529 = math.tanh %528 : vector<8x128xf32>
    %530 = vector.extract_strided_slice %515 {offsets = [0, 384], sizes = [8, 128], strides = [1, 1]} : vector<8x512xf32> to vector<8x128xf32>
    %531 = arith.negf %530 : vector<8x128xf32>
    %532 = math.exp %531 : vector<8x128xf32>
    %cst_173 = arith.constant 1.000000e+00 : f32
    %533 = vector.broadcast %cst_173 : f32 to vector<8x128xf32>
    %534 = arith.addf %533, %532 : vector<8x128xf32>
    %535 = arith.divf %533, %534 : vector<8x128xf32>
    %536 = arith.mulf %527, %504 : vector<8x128xf32>
    %537 = arith.mulf %521, %529 : vector<8x128xf32>
    %538 = arith.addf %536, %537 : vector<8x128xf32>
    %539 = math.tanh %538 : vector<8x128xf32>
    %540 = arith.mulf %535, %539 : vector<8x128xf32>
    %541 = arith.index_cast %c5_i32_167 : i32 to index
    %c0_174 = arith.constant 0 : index
    %c0_175 = arith.constant 0 : index
    %542 = vector.load %arg14[%541, %c0_174, %c0_175] : memref<8x8x128xf32, #tpu.memory_space<vmem>>, vector<1x8x128xf32>
    %543 = vector.shape_cast %542 : vector<1x8x128xf32> to vector<8x128xf32>
    %544 = vector.shape_cast %540 : vector<8x128xf32> to vector<1x8x128xf32>
    tpu.vector_store %arg14[%541, %c0_174, %c0_175], %544 {strides = array<i32>} : memref<8x8x128xf32, #tpu.memory_space<vmem>>, vector<1x8x128xf32>,
    %c6_i32_176 = arith.constant 6 : i32
    %545 = arith.index_cast %c6_i32_176 : i32 to index
    %c0_177 = arith.constant 0 : index
    %c0_178 = arith.constant 0 : index
    %546 = vector.load %arg12[%545, %c0_177, %c0_178] : memref<8x8x512xf32, #tpu.memory_space<vmem>>, vector<1x8x512xf32>
    %547 = vector.shape_cast %546 : vector<1x8x512xf32> to vector<8x512xf32>
    %cst_179 = arith.constant dense<0.000000e+00> : vector<8x512xf32>
    %548 = tpu.matmul %540, %328, %cst_179 {dimension_numbers = #tpu.dot_dimension_numbers<[1], [0], [0], [1], [0, 0, 1, 1], [], []>} : vector<8x128xf32>, vector<128x512xf32>, vector<8x512xf32> -> vector<8x512xf32>
    %549 = arith.addf %547, %548 : vector<8x512xf32>
    %550 = vector.extract_strided_slice %549 {offsets = [0, 0], sizes = [8, 128], strides = [1, 1]} : vector<8x512xf32> to vector<8x128xf32>
    %551 = arith.negf %550 : vector<8x128xf32>
    %552 = math.exp %551 : vector<8x128xf32>
    %cst_180 = arith.constant 1.000000e+00 : f32
    %553 = vector.broadcast %cst_180 : f32 to vector<8x128xf32>
    %554 = arith.addf %553, %552 : vector<8x128xf32>
    %555 = arith.divf %553, %554 : vector<8x128xf32>
    %556 = vector.extract_strided_slice %549 {offsets = [0, 128], sizes = [8, 128], strides = [1, 1]} : vector<8x512xf32> to vector<8x128xf32>
    %557 = arith.negf %556 : vector<8x128xf32>
    %558 = math.exp %557 : vector<8x128xf32>
    %cst_181 = arith.constant 1.000000e+00 : f32
    %559 = vector.broadcast %cst_181 : f32 to vector<8x128xf32>
    %560 = arith.addf %559, %558 : vector<8x128xf32>
    %561 = arith.divf %559, %560 : vector<8x128xf32>
    %562 = vector.extract_strided_slice %549 {offsets = [0, 256], sizes = [8, 128], strides = [1, 1]} : vector<8x512xf32> to vector<8x128xf32>
    %563 = math.tanh %562 : vector<8x128xf32>
    %564 = vector.extract_strided_slice %549 {offsets = [0, 384], sizes = [8, 128], strides = [1, 1]} : vector<8x512xf32> to vector<8x128xf32>
    %565 = arith.negf %564 : vector<8x128xf32>
    %566 = math.exp %565 : vector<8x128xf32>
    %cst_182 = arith.constant 1.000000e+00 : f32
    %567 = vector.broadcast %cst_182 : f32 to vector<8x128xf32>
    %568 = arith.addf %567, %566 : vector<8x128xf32>
    %569 = arith.divf %567, %568 : vector<8x128xf32>
    %570 = arith.mulf %561, %538 : vector<8x128xf32>
    %571 = arith.mulf %555, %563 : vector<8x128xf32>
    %572 = arith.addf %570, %571 : vector<8x128xf32>
    %573 = math.tanh %572 : vector<8x128xf32>
    %574 = arith.mulf %569, %573 : vector<8x128xf32>
    %575 = arith.index_cast %c6_i32_176 : i32 to index
    %c0_183 = arith.constant 0 : index
    %c0_184 = arith.constant 0 : index
    %576 = vector.load %arg14[%575, %c0_183, %c0_184] : memref<8x8x128xf32, #tpu.memory_space<vmem>>, vector<1x8x128xf32>
    %577 = vector.shape_cast %576 : vector<1x8x128xf32> to vector<8x128xf32>
    %578 = vector.shape_cast %574 : vector<8x128xf32> to vector<1x8x128xf32>
    tpu.vector_store %arg14[%575, %c0_183, %c0_184], %578 {strides = array<i32>} : memref<8x8x128xf32, #tpu.memory_space<vmem>>, vector<1x8x128xf32>,
    %c7_i32_185 = arith.constant 7 : i32
    %579 = arith.index_cast %c7_i32_185 : i32 to index
    %c0_186 = arith.constant 0 : index
    %c0_187 = arith.constant 0 : index
    %580 = vector.load %arg12[%579, %c0_186, %c0_187] : memref<8x8x512xf32, #tpu.memory_space<vmem>>, vector<1x8x512xf32>
    %581 = vector.shape_cast %580 : vector<1x8x512xf32> to vector<8x512xf32>
    %cst_188 = arith.constant dense<0.000000e+00> : vector<8x512xf32>
    %582 = tpu.matmul %574, %328, %cst_188 {dimension_numbers = #tpu.dot_dimension_numbers<[1], [0], [0], [1], [0, 0, 1, 1], [], []>} : vector<8x128xf32>, vector<128x512xf32>, vector<8x512xf32> -> vector<8x512xf32>
    %583 = arith.addf %581, %582 : vector<8x512xf32>
    %584 = vector.extract_strided_slice %583 {offsets = [0, 0], sizes = [8, 128], strides = [1, 1]} : vector<8x512xf32> to vector<8x128xf32>
    %585 = arith.negf %584 : vector<8x128xf32>
    %586 = math.exp %585 : vector<8x128xf32>
    %cst_189 = arith.constant 1.000000e+00 : f32
    %587 = vector.broadcast %cst_189 : f32 to vector<8x128xf32>
    %588 = arith.addf %587, %586 : vector<8x128xf32>
    %589 = arith.divf %587, %588 : vector<8x128xf32>
    %590 = vector.extract_strided_slice %583 {offsets = [0, 128], sizes = [8, 128], strides = [1, 1]} : vector<8x512xf32> to vector<8x128xf32>
    %591 = arith.negf %590 : vector<8x128xf32>
    %592 = math.exp %591 : vector<8x128xf32>
    %cst_190 = arith.constant 1.000000e+00 : f32
    %593 = vector.broadcast %cst_190 : f32 to vector<8x128xf32>
    %594 = arith.addf %593, %592 : vector<8x128xf32>
    %595 = arith.divf %593, %594 : vector<8x128xf32>
    %596 = vector.extract_strided_slice %583 {offsets = [0, 256], sizes = [8, 128], strides = [1, 1]} : vector<8x512xf32> to vector<8x128xf32>
    %597 = math.tanh %596 : vector<8x128xf32>
    %598 = vector.extract_strided_slice %583 {offsets = [0, 384], sizes = [8, 128], strides = [1, 1]} : vector<8x512xf32> to vector<8x128xf32>
    %599 = arith.negf %598 : vector<8x128xf32>
    %600 = math.exp %599 : vector<8x128xf32>
    %cst_191 = arith.constant 1.000000e+00 : f32
    %601 = vector.broadcast %cst_191 : f32 to vector<8x128xf32>
    %602 = arith.addf %601, %600 : vector<8x128xf32>
    %603 = arith.divf %601, %602 : vector<8x128xf32>
    %604 = arith.mulf %595, %572 : vector<8x128xf32>
    %605 = arith.mulf %589, %597 : vector<8x128xf32>
    %606 = arith.addf %604, %605 : vector<8x128xf32>
    %607 = math.tanh %606 : vector<8x128xf32>
    %608 = arith.mulf %603, %607 : vector<8x128xf32>
    %609 = arith.index_cast %c7_i32_185 : i32 to index
    %c0_192 = arith.constant 0 : index
    %c0_193 = arith.constant 0 : index
    %610 = vector.load %arg14[%609, %c0_192, %c0_193] : memref<8x8x128xf32, #tpu.memory_space<vmem>>, vector<1x8x128xf32>
    %611 = vector.shape_cast %610 : vector<1x8x128xf32> to vector<8x128xf32>
    %612 = vector.shape_cast %608 : vector<8x128xf32> to vector<1x8x128xf32>
    tpu.vector_store %arg14[%609, %c0_192, %c0_193], %612 {strides = array<i32>} : memref<8x8x128xf32, #tpu.memory_space<vmem>>, vector<1x8x128xf32>,
    %c8_i32_194 = arith.constant 8 : i32
    %c2_195 = arith.constant 2 : index
    %c0_196 = arith.constant 0 : index
    %c0_197 = arith.constant 0 : index
    %613 = vector.load %arg15[%c2_195, %c0_196, %c0_197] : memref<4x8x128xf32, #tpu.memory_space<vmem>>, vector<1x8x128xf32>
    %614 = vector.shape_cast %613 : vector<1x8x128xf32> to vector<8x128xf32>
    %615 = vector.shape_cast %608 : vector<8x128xf32> to vector<1x8x128xf32>
    tpu.vector_store %arg15[%c2_195, %c0_196, %c0_197], %615 {strides = array<i32>} : memref<4x8x128xf32, #tpu.memory_space<vmem>>, vector<1x8x128xf32>,
    %c3_198 = arith.constant 3 : index
    %c0_199 = arith.constant 0 : index
    %c0_200 = arith.constant 0 : index
    %616 = vector.load %arg15[%c3_198, %c0_199, %c0_200] : memref<4x8x128xf32, #tpu.memory_space<vmem>>, vector<1x8x128xf32>
    %617 = vector.shape_cast %616 : vector<1x8x128xf32> to vector<8x128xf32>
    %618 = vector.shape_cast %606 : vector<8x128xf32> to vector<1x8x128xf32>
    tpu.vector_store %arg15[%c3_198, %c0_199, %c0_200], %618 {strides = array<i32>} : memref<4x8x128xf32, #tpu.memory_space<vmem>>, vector<1x8x128xf32>,
    %c0_201 = arith.constant 0 : index
    %c0_202 = arith.constant 0 : index
    %c0_203 = arith.constant 0 : index
    %619 = vector.load %arg14[%c0_201, %c0_202, %c0_203] : memref<8x8x128xf32, #tpu.memory_space<vmem>>, vector<8x8x128xf32>
    %620 = vector.shape_cast %619 : vector<8x8x128xf32> to vector<64x128xf32>
    %c0_204 = arith.constant 0 : index
    %c0_205 = arith.constant 0 : index
    %621 = vector.load %arg9[%c0_204, %c0_205] : memref<128x8xf32, #tpu.memory_space<vmem>>, vector<128x8xf32>
    %cst_206 = arith.constant dense<0.000000e+00> : vector<64x8xf32>
    %622 = tpu.matmul %620, %621, %cst_206 {dimension_numbers = #tpu.dot_dimension_numbers<[1], [0], [0], [1], [0, 0, 1, 1], [], []>} : vector<64x128xf32>, vector<128x8xf32>, vector<64x8xf32> -> vector<64x8xf32>
    %c0_207 = arith.constant 0 : index
    %c0_208 = arith.constant 0 : index
    %623 = vector.load %arg10[%c0_207, %c0_208] : memref<1x8xf32, #tpu.memory_space<vmem>>, vector<1x8xf32>
    %624 = vector.broadcast %623 : vector<1x8xf32> to vector<64x8xf32>
    %625 = arith.addf %622, %624 : vector<64x8xf32>
    %cst_209 = arith.constant dense<0xFF800000> : vector<64xf32>
    %626 = vector.multi_reduction <maximumf>, %625, %cst_209 [1] : vector<64x8xf32> to vector<64xf32>
    %627 = vector.shape_cast %626 : vector<64xf32> to vector<64x1xf32>
    %628 = vector.broadcast %627 : vector<64x1xf32> to vector<64x8xf32>
    %629 = arith.subf %625, %628 : vector<64x8xf32>
    %630 = math.exp %629 : vector<64x8xf32>
    %cst_210 = arith.constant dense<0.000000e+00> : vector<64xf32>
    %631 = vector.multi_reduction <add>, %630, %cst_210 [1] : vector<64x8xf32> to vector<64xf32>
    %632 = vector.shape_cast %631 : vector<64xf32> to vector<64x1xf32>
    %633 = math.log %632 : vector<64x1xf32>
    %634 = vector.broadcast %633 : vector<64x1xf32> to vector<64x8xf32>
    %635 = arith.subf %629, %634 : vector<64x8xf32>
    %636 = vector.shape_cast %635 : vector<64x8xf32> to vector<8x8x8xf32>
    %637 = vector.extract_strided_slice %636 {offsets = [0, 0, 0], sizes = [8, 1, 8], strides = [1, 1, 1]} : vector<8x8x8xf32> to vector<8x1x8xf32>
    %638 = vector.shape_cast %637 : vector<8x1x8xf32> to vector<8x8xf32>
    %639 = tpu.transpose %638, [1, 0] : vector<8x8xf32> -> vector<8x8xf32>
    %640 = vector.extract_strided_slice %636 {offsets = [0, 1, 0], sizes = [8, 1, 8], strides = [1, 1, 1]} : vector<8x8x8xf32> to vector<8x1x8xf32>
    %641 = vector.shape_cast %640 : vector<8x1x8xf32> to vector<8x8xf32>
    %642 = tpu.transpose %641, [1, 0] : vector<8x8xf32> -> vector<8x8xf32>
    %643 = vector.extract_strided_slice %636 {offsets = [0, 2, 0], sizes = [8, 1, 8], strides = [1, 1, 1]} : vector<8x8x8xf32> to vector<8x1x8xf32>
    %644 = vector.shape_cast %643 : vector<8x1x8xf32> to vector<8x8xf32>
    %645 = tpu.transpose %644, [1, 0] : vector<8x8xf32> -> vector<8x8xf32>
    %646 = vector.extract_strided_slice %636 {offsets = [0, 3, 0], sizes = [8, 1, 8], strides = [1, 1, 1]} : vector<8x8x8xf32> to vector<8x1x8xf32>
    %647 = vector.shape_cast %646 : vector<8x1x8xf32> to vector<8x8xf32>
    %648 = tpu.transpose %647, [1, 0] : vector<8x8xf32> -> vector<8x8xf32>
    %649 = vector.extract_strided_slice %636 {offsets = [0, 4, 0], sizes = [8, 1, 8], strides = [1, 1, 1]} : vector<8x8x8xf32> to vector<8x1x8xf32>
    %650 = vector.shape_cast %649 : vector<8x1x8xf32> to vector<8x8xf32>
    %651 = tpu.transpose %650, [1, 0] : vector<8x8xf32> -> vector<8x8xf32>
    %652 = vector.extract_strided_slice %636 {offsets = [0, 5, 0], sizes = [8, 1, 8], strides = [1, 1, 1]} : vector<8x8x8xf32> to vector<8x1x8xf32>
    %653 = vector.shape_cast %652 : vector<8x1x8xf32> to vector<8x8xf32>
    %654 = tpu.transpose %653, [1, 0] : vector<8x8xf32> -> vector<8x8xf32>
    %655 = vector.extract_strided_slice %636 {offsets = [0, 6, 0], sizes = [8, 1, 8], strides = [1, 1, 1]} : vector<8x8x8xf32> to vector<8x1x8xf32>
    %656 = vector.shape_cast %655 : vector<8x1x8xf32> to vector<8x8xf32>
    %657 = tpu.transpose %656, [1, 0] : vector<8x8xf32> -> vector<8x8xf32>
    %658 = vector.extract_strided_slice %636 {offsets = [0, 7, 0], sizes = [8, 1, 8], strides = [1, 1, 1]} : vector<8x8x8xf32> to vector<8x1x8xf32>
    %659 = vector.shape_cast %658 : vector<8x1x8xf32> to vector<8x8xf32>
    %660 = tpu.transpose %659, [1, 0] : vector<8x8xf32> -> vector<8x8xf32>
    %661 = vector.shape_cast %639 : vector<8x8xf32> to vector<1x8x8xf32>
    %662 = vector.shape_cast %642 : vector<8x8xf32> to vector<1x8x8xf32>
    %663 = vector.shape_cast %645 : vector<8x8xf32> to vector<1x8x8xf32>
    %664 = vector.shape_cast %648 : vector<8x8xf32> to vector<1x8x8xf32>
    %665 = vector.shape_cast %651 : vector<8x8xf32> to vector<1x8x8xf32>
    %666 = vector.shape_cast %654 : vector<8x8xf32> to vector<1x8x8xf32>
    %667 = vector.shape_cast %657 : vector<8x8xf32> to vector<1x8x8xf32>
    %668 = vector.shape_cast %660 : vector<8x8xf32> to vector<1x8x8xf32>
    %669 = tpu.concatenate %661, %662, %663, %664, %665, %666, %667, %668 in 0 : vector<1x8x8xf32>, vector<1x8x8xf32>, vector<1x8x8xf32>, vector<1x8x8xf32>, vector<1x8x8xf32>, vector<1x8x8xf32>, vector<1x8x8xf32>, vector<1x8x8xf32> -> vector<8x8x8xf32>
    %c0_211 = arith.constant 0 : index
    %c0_212 = arith.constant 0 : index
    %c0_213 = arith.constant 0 : index
    %670 = vector.load %arg11[%c0_211, %c0_212, %c0_213] : memref<8x8x8xf32, #tpu.memory_space<vmem>>, vector<8x8x8xf32>
    tpu.vector_store %arg11[%c0_211, %c0_212, %c0_213], %669 {strides = array<i32>} : memref<8x8x8xf32, #tpu.memory_space<vmem>>, vector<8x8x8xf32>,
    return
  }
  func.func @transform_0(%arg0: i32, %arg1: i32) -> (i32, i32, i32) {
    %c0_i32 = arith.constant 0 : i32
    %c0_i32_0 = arith.constant 0 : i32
    return %arg0, %c0_i32, %arg1 : i32, i32, i32
  }
  func.func @transform_1(%arg0: i32, %arg1: i32) -> (i32, i32) {
    %c0_i32 = arith.constant 0 : i32
    %c0_i32_0 = arith.constant 0 : i32
    %c0_i32_1 = arith.constant 0 : i32
    return %c0_i32, %c0_i32_0 : i32, i32
  }
  func.func @transform_2(%arg0: i32, %arg1: i32) -> (i32, i32) {
    %c0_i32 = arith.constant 0 : i32
    %c0_i32_0 = arith.constant 0 : i32
    %c0_i32_1 = arith.constant 0 : i32
    return %c0_i32, %c0_i32_0 : i32, i32
  }
  func.func @transform_3(%arg0: i32, %arg1: i32) -> (i32, i32) {
    %c0_i32 = arith.constant 0 : i32
    %c0_i32_0 = arith.constant 0 : i32
    %c0_i32_1 = arith.constant 0 : i32
    return %c0_i32, %c0_i32_0 : i32, i32
  }
  func.func @transform_4(%arg0: i32, %arg1: i32) -> (i32, i32) {
    %c0_i32 = arith.constant 0 : i32
    %c0_i32_0 = arith.constant 0 : i32
    %c0_i32_1 = arith.constant 0 : i32
    return %c0_i32, %c0_i32_0 : i32, i32
  }
  func.func @transform_5(%arg0: i32, %arg1: i32) -> (i32, i32) {
    %c0_i32 = arith.constant 0 : i32
    %c0_i32_0 = arith.constant 0 : i32
    %c0_i32_1 = arith.constant 0 : i32
    return %c0_i32, %c0_i32_0 : i32, i32
  }
  func.func @transform_6(%arg0: i32, %arg1: i32) -> (i32, i32) {
    %c0_i32 = arith.constant 0 : i32
    %c0_i32_0 = arith.constant 0 : i32
    %c0_i32_1 = arith.constant 0 : i32
    return %c0_i32, %c0_i32_0 : i32, i32
  }
  func.func @transform_7(%arg0: i32, %arg1: i32) -> (i32, i32) {
    %c0_i32 = arith.constant 0 : i32
    %c0_i32_0 = arith.constant 0 : i32
    %c0_i32_1 = arith.constant 0 : i32
    return %c0_i32, %c0_i32_0 : i32, i32
  }
  func.func @transform_8(%arg0: i32, %arg1: i32) -> (i32, i32) {
    %c0_i32 = arith.constant 0 : i32
    %c0_i32_0 = arith.constant 0 : i32
    %c0_i32_1 = arith.constant 0 : i32
    return %c0_i32, %c0_i32_0 : i32, i32
  }
  func.func @transform_9(%arg0: i32, %arg1: i32) -> (i32, i32, i32) {
    %c0_i32 = arith.constant 0 : i32
    %c0_i32_0 = arith.constant 0 : i32
    return %arg0, %c0_i32, %arg1 : i32, i32, i32
  }
}

</mosaic_0001>

<bundles_post_ra>
// kernel: tpu_custom_call.1
= control target key start
LH: loop header
LB: loop body
LE: loop exit
PB: predicated region body
PF: predicated region fallthrough
CT: control target
= control target key end

     0   :  { %14 = vsyncpa [#allocation7], 0  ;;  %s8744_s0 = inlined_call_operand.vmem [shape: f32[8,16,8], index: 0, kind: input, shape index: {}]   ;;  %s8745_s1 = inlined_call_operand.vmem [shape: f32[16,512], index: 1, kind: input, shape index: {}]   ;;  %s8746_s2 = inlined_call_operand.hbm [shape: f32[128,512], index: 2, kind: input, shape index: {}]   ;;  %s8747_s3 = inlined_call_operand.vmem [shape: f32[1,512], index: 3, kind: input, shape index: {}]   ;;  %s8748_s4 = inlined_call_operand.hbm [shape: f32[128,512], index: 4, kind: input, shape index: {}]   ;;  %s8749_s5 = inlined_call_operand.hbm [shape: f32[128,512], index: 5, kind: input, shape index: {}]   ;;  %s8750_s6 = inlined_call_operand.vmem [shape: f32[1,512], index: 6, kind: input, shape index: {}]   ;;  %s8751_s7 = inlined_call_operand.vmem [shape: f32[128,8], index: 7, kind: input, shape index: {}]   ;;  %s8752_s8 = inlined_call_operand.vmem [shape: f32[1,8], index: 8, kind: input, shape index: {}]   ;;  %s8753_s9 = inlined_call_operand.hbm [shape: f32[8,8,8], index: 9, kind: output, shape index: {}]  }
   0x1   :  { %15 = vsyncpa [#allocation10], 0 }
   0x2   :  { %16 = vsyncpa [#allocation8], 0  ;;  %s6046_s30 = smov [#allocation9]   ;;  %s6047_s11 = smov [#allocation6]  }
   0x3   :  { %s40_s10 = sshll.u32 %s6046_s30, 4  ;;  %s26_s12 = sshll.u32 %s6047_s11, 4  ;;  %s41_s10 = int_to_ptr.vmem [resolvable:$true] %s40_s10  ;;  %s27_s12 = int_to_ptr.vmem [resolvable:$true] %s26_s12 }
   0x4   :  { %s5968_s13 = scalar_lea.vmem %s41_s10, 8192  ;;  %p5973_p1 = scmp.lt.s32.totalorder %s41_s10, %s41_s10 }
   0x5   :  { %p5969_p0 = scmp.ne.s32.totalorder %s41_s10, %s5968_s13  ;;  %p5974_p2 = scmp.lt.s32.totalorder %s5968_s13, %s5968_s13 }
   0x7   :  { %p5975_p3 = por %p5974_p2, %p5973_p1 }
   0x9   :  { %p5976_p4 = pnand %p5975_p3, %p5969_p0 }
   0xb   :  { %5979 = shalt.err (!%p5976_p4)
}
   0xc   :  { %s6048_s14 = smov 512   ;;  %s6049_s15 = smov 32  }
   0xd   :  { %46 = dma.hbm_to_vmem [thread:$0]  %s8748_s4, 8192, %s41_s10, [#allocation10], %s6048_s14, %s6048_s14, %s6049_s15  }
   0xe   :  { %s5988_s18 = scalar_lea.vmem %s27_s12, 8192  ;;  %p5993_p6 = scmp.lt.s32.totalorder %s27_s12, %s27_s12 }
   0xf   :  { %p5989_p5 = scmp.ne.s32.totalorder %s27_s12, %s5988_s18  ;;  %p5994_p7 = scmp.lt.s32.totalorder %s5988_s18, %s5988_s18 }
  0x11   :  { %p5995_p8 = por %p5994_p7, %p5993_p6 }
  0x13   :  { %p5996_p9 = pnand %p5995_p8, %p5989_p5 }
  0x15   :  { %5999 = shalt.err (!%p5996_p9)
}
  0x16   :  { %32 = dma.hbm_to_vmem [thread:$0]  %s8746_s2, 8192, %s27_s12, [#allocation7], %s6048_s14, %s6048_s14, %s6049_s15  }
  0x17   :  { %s6050_s21 = smov [#allocation11]  }
  0x18   :  { %s52_s22 = sshll.u32 %s6050_s21, 4  ;;  %s53_s22 = int_to_ptr.vmem [resolvable:$true] %s52_s22 }
  0x19   :  { %s6008_s23 = scalar_lea.vmem %s53_s22, 8192  ;;  %p6013_p11 = scmp.lt.s32.totalorder %s53_s22, %s53_s22 }
  0x1a   :  { %p6009_p10 = scmp.ne.s32.totalorder %s53_s22, %s6008_s23  ;;  %p6014_p12 = scmp.lt.s32.totalorder %s6008_s23, %s6008_s23 }
  0x1c   :  { %p6015_p13 = por %p6014_p12, %p6013_p11 }
  0x1e   :  { %p6016_p0 = pnand %p6015_p13, %p6009_p10 }
  0x20   :  { %6019 = shalt.err (!%p6016_p0)
}
  0x21   :  { %58 = dma.hbm_to_vmem [thread:$0]  %s8749_s5, 8192, %s53_s22, [#allocation10], %s6048_s14, %s6048_s14, %s6049_s15  }
  0x22   :  { %6040 = dma.done.wait [#allocation7], 8192  }
  0x23   :  { %6041 = vsyncadd [#allocation7], 4294959104 }
  0x24   :  { %6042 = dma.done.wait [#allocation10], 16384  }
  0x25   :  { %6043 = vsyncadd [#allocation10], 4294950912  ;;  %v5387_v0 = vld [vmem:[%s8744_s0 + $0x10] sm:$0xff]  ;;  %v5389_v1 = vld [vmem:[%s8744_s0 + $0x20] sm:$0xff]  ;;  %v8754_v25 = vmov 0.0   ;;  %v366_v28 = vlaneseq  ;;  %vm1049_vm0 = vcmask 1040384  }
  0x26   :  { %119 = vxpose.xlu0.b32.start [1/2] (short) (narrow) %v5387_v0, 8  ;;  %154 = vxpose.xlu1.b32.start [1/2] (short) (narrow) %v5389_v1, 8  ;;  %v5388_v2 = vld [vmem:[%s8744_s0 + $0x18] sm:$0xff]  ;;  %v5390_v3 = vld [vmem:[%s8744_s0 + $0x28] sm:$0xff]  ;;  %v82_v4 = vld [vmem:[%s8744_s0] sm:$0xff]  ;;  %vm1058_vm1 = vcmask 1041408  }
  0x27   :  { %v5391_v5 = vld [vmem:[%s8744_s0 + $0x30] sm:$0xff]  ;;  %v83_v6 = vld [vmem:[%s8744_s0 + $0x8] sm:$0xff]  ;;  %v5392_v7 = vld [vmem:[%s8744_s0 + $0x38] sm:$0xff]  ;;  %1295 = vmatprep.mubr.f32.mxu0 %v8754_v25  ;;  %1408 = vmatprep.mubr.f32.mxu1 %v8754_v25  ;;  %v6052_v26 = vmov 1966171168   ;;  %v6193_v30 = vshrl.u32 %v366_v28, 7 }
  0x28   :  { %v5393_v8 = vld [vmem:[%s8744_s0 + $0x40] sm:$0xff]  ;;  %v5395_v9 = vld [vmem:[%s8744_s0 + $0x50] sm:$0xff]  ;;  %v5394_v10 = vld [vmem:[%s8744_s0 + $0x48] sm:$0xff]  ;;  %v364_v27 = vunpack.c.l.s4 %v6052_v26  ;;  %vm1067_vm2 = vcmask 1042432   ;;  %vm1076_vm3 = vcmask 1043456   ;;  %vm1085_vm4 = vcmask 1044480  }
  0x29   :  { %v5396_v11 = vld [vmem:[%s8744_s0 + $0x58] sm:$0xff]  ;;  %v5397_v12 = vld [vmem:[%s8744_s0 + $0x60] sm:$0xff]  ;;  %v5399_v13 = vld [vmem:[%s8744_s0 + $0x70] sm:$0xff]  ;;  %8963 = vst [vmem:[#allocation16_spill] sm:$0xff] %v6193_v30  ;;  %v6205_v45 = vsub.s32 0, %v6193_v30  ;;  %vm1094_vm5 = vcmask 1045504  }
  0x2a   :  { %120 = vxpose.xlu0.b32.end [2/2] (short) (narrow) %v5388_v2, 8  ;;  %155 = vxpose.xlu1.b32.end [2/2] (short) (narrow) %v5390_v3, 8  ;;  %v5398_v14 = vld [vmem:[%s8744_s0 + $0x68] sm:$0xff]  ;;  %v5400_v15 = vld [vmem:[%s8744_s0 + $0x78] sm:$0xff]  ;;  %v1118_v18 = vld [vmem:[%s8745_s1 + $0x30] sm:$0xff]  ;;  %v365_v29 = vunpack.c.0.s8 %v364_v27  ;;  %vm1103_vm6 = vcmask 1046528  }
  0x2b   :  { %v1119_v16 = vld [vmem:[%s8745_s1 + $0x38] sm:$0xff]  ;;  %v1117_v17 = vld [vmem:[%s8745_s1 + $0x28] sm:$0xff]  ;;  %v1116_v19 = vld [vmem:[%s8745_s1 + $0x20] sm:$0xff]  ;;  %8964 = vst [vmem:[#allocation17_spill] sm:$0xff] %v6205_v45  ;;  %vm1206_vm7 = vcmask 130048   ;;  %vm4873_vm8 = vcmask 64512  }
  0x2c   :  { %1372 = vmatprep.subr.mxu1 %v1119_v16  ;;  %1259 = vmatprep.subr.mxu0 %v1117_v17  ;;  %v1115_v20 = vld [vmem:[%s8745_s1 + $0x18] sm:$0xff]  ;;  %v1113_v21 = vld [vmem:[%s8745_s1 + $0x8] sm:$0xff]  ;;  %v1114_v22 = vld [vmem:[%s8745_s1 + $0x10] sm:$0xff]  ;;  %v6196_v31 = vsub.s32 %v365_v29, %v6193_v30  ;;  %vm4979_vm9 = vcmask 1041409   ;;  %vm4982_vm10 = vcmask 1042434   ;;  %vm4985_vm11 = vcmask 1043459  }
  0x2d   :  { %1373 = vmatpush1.msra.mxu1 %v1118_v18  ;;  %1260 = vmatpush1.msra.mxu0 %v1116_v19  ;;  %v1112_v23 = vld [vmem:[%s8745_s1] sm:$0xff]  ;;  %v6187_v24 = vld [vmem:[#allocation6 + $0x1e8] sm:$0xff]  ;;  %vm4988_vm12 = vcmask 1044484   ;;  %vm4991_vm13 = vcmask 1045509   ;;  %vm4994_vm14 = vcmask 1046534   ;;  %vm4997_vm15 = vcmask 1047559  }
  0x2e   :  { %84 = vxpose.xlu0.b32.start [1/2] (short) (narrow) %v82_v4, 8  ;;  %189 = vxpose.xlu1.b32.start [1/2] (short) (narrow) %v5391_v5, 8 }
  0x2f   :  { %1374 = vmatprep.subr.mxu1 %v1115_v20  ;;  %1261 = vmatprep.subr.mxu0 %v1113_v21 }
  0x30   :  { %1375 = vmatpush1.msra.mxu1 %v1114_v22  ;;  %1262 = vmatpush1.msra.mxu0 %v1112_v23 }
  0x31   :  { %1496 = vmatprep.subr.mxu1 %v6187_v24  ;;  %1672 = vmatprep.subr.mxu0 %v6187_v24 }
  0x32   :  { %85 = vxpose.xlu0.b32.end [2/2] (short) (narrow) %v83_v6, 8  ;;  %190 = vxpose.xlu1.b32.end [2/2] (short) (narrow) %v5392_v7, 8 }
  0x36   :  { %224 = vxpose.xlu0.b32.start [1/2] (short) (narrow) %v5393_v8, 8  ;;  %259 = vxpose.xlu1.b32.start [1/2] (short) (narrow) %v5395_v9, 8 }
  0x3a   :  { %225 = vxpose.xlu0.b32.end [2/2] (short) (narrow) %v5394_v10, 8  ;;  %260 = vxpose.xlu1.b32.end [2/2] (short) (narrow) %v5396_v11, 8 }
  0x3e   :  { %294 = vxpose.xlu0.b32.start [1/2] (short) (narrow) %v5397_v12, 8  ;;  %329 = vxpose.xlu1.b32.start [1/2] (short) (narrow) %v5399_v13, 8 }
  0x42   :  { %295 = vxpose.xlu0.b32.end [2/2] (short) (narrow) %v5398_v14, 8  ;;  %330 = vxpose.xlu1.b32.end [2/2] (short) (narrow) %v5400_v15, 8 }
  0xa2   :  { %v135_v32 = vpop.trf.xlu0  ;;  %v170_v35 = vpop.trf.xlu1 }
  0xa3   :  { %v420_v33 = vcombine.high %v135_v32, %v135_v32  ;;  %v427_v34 = vrot.slane %v135_v32, %v6196_v31  ;;  %v470_v36 = vcombine.high %v170_v35, %v170_v35  ;;  %v477_v39 = vrot.slane %v170_v35, %v6196_v31 }
  0xa5   :  { %v434_v37 = vrot.slane %v420_v33, %v6196_v31  ;;  %v435_v38 = vcombine.high %v427_v34, %v427_v34  ;;  %v443_v40 = vrot.slane %v427_v34, %v6196_v31  ;;  %v484_v41 = vrot.slane %v470_v36, %v6196_v31 }
  0xa6   :  { %v485_v46 = vcombine.high %v477_v39, %v477_v39  ;;  %v493_v56 = vrot.slane %v477_v39, %v6196_v31 }
  0xa7   :  { %v436_v42 = vcombine.high %v434_v37, %v434_v37  ;;  %v457_v43 = vrot.slane %v435_v38, %v6196_v31  ;;  %v450_v49 = vrot.slane %v434_v37, %v6196_v31  ;;  %v465_v50 = vcombine.high %v443_v40, %v443_v40 }
  0xa8   :  { %v486_v51 = vcombine.high %v484_v41, %v484_v41  ;;  %v772_v58 = vrot.slane %v443_v40, %v6205_v45  ;;  %v500_v59 = vrot.slane %v484_v41, %v6196_v31  ;;  %v507_v60 = vrot.slane %v485_v46, %v6196_v31 }
  0xa9   :  { %v464_v53 = vrot.slane %v436_v42, %v6196_v31  ;;  %v467_v55 = vcombine.high %v457_v43, %v457_v43  ;;  %v466_v62 = vcombine.high %v450_v49, %v450_v49  ;;  %v776_v63 = vrot.slane %v457_v43, %v6205_v45 }
  0xaa   :  { %v100_v44 = vpop.trf.xlu0  ;;  %v205_v52 = vpop.trf.xlu1  ;;  %v780_v0 = vrot.slane %v465_v50, %v6205_v45  ;;  %v514_v1 = vrot.slane %v486_v51, %v6196_v31  ;;  %v788_v7 = vrot.slane %v450_v49, %v6205_v45  ;;  %v515_v8 = vcombine.high %v493_v56, %v493_v56 }
  0xab   :  { %v362_v47 = vcombine.high %v100_v44, %v100_v44  ;;  %v369_v48 = vrot.slane %v100_v44, %v6196_v31  ;;  %v520_v61 = vcombine.high %v205_v52, %v205_v52  ;;  %v468_v2 = vcombine.high %v464_v53, %v464_v53 }
  0xac   :  { %v527_v5 = vrot.slane %v205_v52, %v6196_v31  ;;  %v784_v6 = vrot.slane %v467_v55, %v6205_v45  ;;  %v792_v10 = vrot.slane %v464_v53, %v6205_v45  ;;  %v517_v11 = vcombine.high %v507_v60, %v507_v60 }
  0xad   :  { %v377_v54 = vcombine.high %v369_v48, %v369_v48  ;;  %v376_v57 = vrot.slane %v362_v47, %v6196_v31  ;;  %v385_v3 = vrot.slane %v369_v48, %v6196_v31  ;;  %v534_v13 = vrot.slane %v520_v61, %v6196_v31 }
  0xae   :  { %v796_v14 = vrot.slane %v466_v62, %v6205_v45  ;;  %v516_v15 = vcombine.high %v500_v59, %v500_v59  ;;  %v518_v16 = vcombine.high %v514_v1, %v514_v1  ;;  %v812_v17 = vrot.slane %v493_v56, %v6205_v45 }
  0xaf   :  { %v399_v4 = vrot.slane %v377_v54, %v6196_v31  ;;  %v378_v9 = vcombine.high %v376_v57, %v376_v57  ;;  %v392_v12 = vrot.slane %v376_v57, %v6196_v31  ;;  %v800_v18 = vrot.slane %v468_v2, %v6205_v45 }
  0xb0   :  { %v407_v19 = vcombine.high %v385_v3, %v385_v3  ;;  %v535_v21 = vcombine.high %v527_v5, %v527_v5  ;;  %v816_v22 = vrot.slane %v507_v60, %v6205_v45  ;;  %v820_v23 = vrot.slane %v515_v8, %v6205_v45 }
  0xb1   :  { %v409_v20 = vcombine.high %v399_v4, %v399_v4  ;;  %v828_v26 = vrot.slane %v500_v59, %v6205_v45  ;;  %v406_v27 = vrot.slane %v378_v9, %v6196_v31  ;;  %v824_v28 = vrot.slane %v517_v11, %v6205_v45 }
  0xb2   :  { %v832_v29 = vrot.slane %v514_v1, %v6205_v45  ;;  %v408_v32 = vcombine.high %v392_v12, %v392_v12  ;;  %v536_v33 = vcombine.high %v534_v13, %v534_v13  ;;  %v836_v34 = vrot.slane %v516_v15, %v6205_v45  ;;  %v240_v42 = vpop.trf.xlu0  ;;  %v275_v56 = vpop.trf.xlu1 }
  0xb3   :  { %v1050_v35 = vsel %vm1049_vm0, %v385_v3, %v772_v58  ;;  %v1051_v36 = vsel %vm1049_vm0, %v399_v4, %v776_v63  ;;  %v543_v37 = vrot.slane %v527_v5, %v6196_v31  ;;  %v6240_v38 = vrot.slane %v518_v16, %v6205_v45 }
  0xb4   :  { %v1052_v39 = vsel %vm1049_vm0, %v407_v19, %v780_v0  ;;  %v1053_v40 = vsel %vm1049_vm0, %v409_v20, %v784_v6  ;;  %v557_v41 = vrot.slane %v535_v21, %v6196_v31  ;;  %v410_v43 = vcombine.high %v406_v27, %v406_v27 }
  0xb5   :  { %v1054_v44 = vsel %vm1049_vm0, %v392_v12, %v788_v7  ;;  %v1055_v46 = vsel %vm1049_vm0, %v406_v27, %v792_v10  ;;  %v550_v47 = vrot.slane %v534_v13, %v6196_v31  ;;  %v1056_v48 = vsel %vm1049_vm0, %v408_v32, %v796_v14 }
  0xb6   :  { %v1059_v49 = vsel %vm1058_vm1, %v1050_v35, %v812_v17  ;;  %v1060_v50 = vsel %vm1058_vm1, %v1051_v36, %v816_v22  ;;  %v6252_v51 = vrot.slane %v536_v33, %v6196_v31  ;;  %v1061_v52 = vsel %vm1058_vm1, %v1052_v39, %v820_v23 }
  0xb7   :  { %v6256_v53 = vsel %vm1058_vm1, %v1053_v40, %v824_v28  ;;  %v565_v54 = vcombine.high %v543_v37, %v543_v37  ;;  %v570_v55 = vcombine.high %v240_v42, %v240_v42  ;;  %v1063_v57 = vsel %vm1058_vm1, %v1054_v44, %v828_v26 }
  0xb8   :  { %v6260_v58 = vsel %vm1058_vm1, %v1055_v46, %v832_v29  ;;  %v567_v59 = vcombine.high %v557_v41, %v557_v41  ;;  %v577_v60 = vrot.slane %v240_v42, %v6196_v31  ;;  %v6264_v61 = vsel %vm1049_vm0, %v410_v43, %v800_v18 }
  0xb9   :  { %v566_v62 = vcombine.high %v550_v47, %v550_v47  ;;  %v852_v63 = vrot.slane %v543_v37, %v6205_v45  ;;  %v856_v0 = vrot.slane %v557_v41, %v6205_v45  ;;  %v6269_v2 = vsel %vm1058_vm1, %v1056_v48, %v836_v34 }
  0xba   :  { %v310_v1 = vpop.trf.xlu0  ;;  %v568_v3 = vcombine.high %v6252_v51, %v6252_v51  ;;  %v620_v4 = vcombine.high %v275_v56, %v275_v56  ;;  %v627_v5 = vrot.slane %v275_v56, %v6196_v31  ;;  %v860_v6 = vrot.slane %v565_v54, %v6205_v45  ;;  %v6279_v10 = vpop.trf.xlu1 }
  0xbb   :  { %v868_v7 = vrot.slane %v550_v47, %v6205_v45  ;;  %v872_v8 = vrot.slane %v6252_v51, %v6205_v45  ;;  %v584_v9 = vrot.slane %v570_v55, %v6196_v31  ;;  %v6282_v11 = vrot.slane %v567_v59, %v6205_v45 }
  0xbc   :  { %v585_v12 = vcombine.high %v577_v60, %v577_v60  ;;  %v593_v13 = vrot.slane %v577_v60, %v6196_v31  ;;  %v677_v14 = vrot.slane %v310_v1, %v6196_v31  ;;  %v6287_v15 = vrot.slane %v566_v62, %v6205_v45 }
  0xbd   :  { %v1068_v16 = vsel %vm1067_vm2, %v1059_v49, %v852_v63  ;;  %v1069_v17 = vsel %vm1067_vm2, %v1060_v50, %v856_v0  ;;  %v670_v18 = vcombine.high %v310_v1, %v310_v1  ;;  %v6292_v19 = vrot.slane %v568_v3, %v6205_v45 }
  0xbe   :  { %v6295_v20 = vrot.slane %v620_v4, %v6196_v31  ;;  %v635_v21 = vcombine.high %v627_v5, %v627_v5  ;;  %v727_v22 = vrot.slane %v6279_v10, %v6196_v31  ;;  %v1070_v23 = vsel %vm1067_vm2, %v1061_v52, %v860_v6 }
  0xbf   :  { %v586_v26 = vcombine.high %v584_v9, %v584_v9  ;;  %v6301_v27 = vrot.slane %v584_v9, %v6196_v31  ;;  %v643_v28 = vrot.slane %v627_v5, %v6196_v31  ;;  %v6305_v29 = vsel %vm1067_vm2, %v1063_v57, %v868_v7 }
  0xc0   :  { %v607_v32 = vrot.slane %v585_v12, %v6196_v31  ;;  %v892_v33 = vrot.slane %v593_v13, %v6205_v45  ;;  %v685_v34 = vcombine.high %v677_v14, %v677_v14  ;;  %v615_v35 = vcombine.high %v593_v13, %v593_v13  ;;  %v6346_v12 = vld [vmem:[#allocation6 + $0x1e0] sm:$0xff] }
  0xc1   :  { %v6310_v36 = vrot.slane %v670_v18, %v6196_v31  ;;  %v693_v37 = vrot.slane %v677_v14, %v6196_v31  ;;  %v720_v39 = vcombine.high %v6279_v10, %v6279_v10  ;;  %v636_v40 = vcombine.high %v6295_v20, %v6295_v20  ;;  %v6350_v18 = vld [vmem:[#allocation6 + $0x1c8] sm:$0xff] }
  0xc2   :  { %v657_v41 = vrot.slane %v635_v21, %v6196_v31  ;;  %v735_v42 = vcombine.high %v727_v22, %v727_v22  ;;  %v743_v43 = vrot.slane %v727_v22, %v6196_v31  ;;  %v6320_v44 = vrot.slane %v586_v26, %v6196_v31  ;;  %v6356_v26 = vld [vmem:[#allocation6 + $0x1c0] sm:$0xff] }
  0xc3   :  { %v616_v46 = vcombine.high %v6301_v27, %v6301_v27  ;;  %v932_v47 = vrot.slane %v643_v28, %v6205_v45  ;;  %v707_v48 = vrot.slane %v685_v34, %v6196_v31  ;;  %v617_v49 = vcombine.high %v607_v32, %v607_v32  ;;  %v6363_v34 = vld [vmem:[#allocation6 + $0x1a8] sm:$0xff] }
  0xc4   :  { %v665_v50 = vcombine.high %v643_v28, %v643_v28  ;;  %v972_v52 = vrot.slane %v693_v37, %v6205_v45  ;;  %v1077_v54 = vsel %vm1076_vm3, %v1068_v16, %v892_v33  ;;  %v896_v55 = vrot.slane %v607_v32, %v6205_v45 }
  0xc5   :  { %v900_v56 = vrot.slane %v615_v35, %v6205_v45  ;;  %v908_v57 = vrot.slane %v6301_v27, %v6205_v45  ;;  %v6334_v59 = vrot.slane %v6295_v20, %v6196_v31  ;;  %v936_v60 = vrot.slane %v657_v41, %v6205_v45  ;;  %v6413_v20 = vld [vmem:[#allocation6 + $0x168] sm:$0xff] }
  0xc6   :  { %v715_v62 = vcombine.high %v693_v37, %v693_v37  ;;  %v757_v63 = vrot.slane %v735_v42, %v6196_v31  ;;  %v1012_v0 = vrot.slane %v743_v43, %v6205_v45  ;;  %v618_v1 = vcombine.high %v6320_v44, %v6320_v44 }
  0xc7   :  { %v667_v3 = vcombine.high %v657_v41, %v657_v41  ;;  %v976_v4 = vrot.slane %v707_v48, %v6205_v45  ;;  %v1086_v5 = vsel %vm1085_vm4, %v1077_v54, %v932_v47  ;;  %v904_v6 = vrot.slane %v617_v49, %v6205_v45 }
  0xc8   :  { %v940_v7 = vrot.slane %v665_v50, %v6205_v45  ;;  %v717_v9 = vcombine.high %v707_v48, %v707_v48  ;;  %v1095_v10 = vsel %vm1094_vm5, %v1086_v5, %v972_v52  ;;  %v765_v13 = vcombine.high %v743_v43, %v743_v43  ;;  %v6428_v5 = vld [vmem:[#allocation6 + $0x148] sm:$0xff] }
  0xc9   :  { %v1016_v14 = vrot.slane %v757_v63, %v6205_v45  ;;  %v1104_v16 = vsel %vm1103_vm6, %v1095_v10, %v1012_v0  ;;  %v1078_v21 = vsel %vm1076_vm3, %v1069_v17, %v896_v55  ;;  %v980_v22 = vrot.slane %v715_v62, %v6205_v45  ;;  %v6403_v55 = vld [vmem:[#allocation6 + $0x180] sm:$0xff] }
  0xca   :  { %5401 = vmatmul.mubr.msk.f32.vlgmr.msra.gmra.mxu0 %vm1206_vm7, %v1104_v16  ;;  %5409 = vmatmul.mubr.msk.f32.vlgmr.msra.gmra.mxu1 %vm1206_vm7, %v1104_v16  ;;  %v1087_v28 = vsel %vm1085_vm4, %v1078_v21, %v936_v60  ;;  %v1079_v32 = vsel %vm1076_vm3, %v1070_v23, %v900_v56  ;;  %v944_v33 = vrot.slane %v667_v3, %v6205_v45 }
  0xcb   :  { %1497 = vmatpush1.msra.mxu1 %v6346_v12  ;;  %1301 = vmatprep.mubr.f32.mxu0 %v8754_v25  ;;  %v1096_v17 = vsel %vm1094_vm5, %v1087_v28, %v976_v4  ;;  %v1071_v35 = vsel %vm1067_vm2, %v6256_v53, %v6282_v11  ;;  %v686_v37 = vcombine.high %v6310_v36, %v6310_v36  ;;  %v6381_v11 = vld [vmem:[#allocation6 + $0x1a0] sm:$0xff] }
  0xcc   :  { %v6373_v23 = vrot.slane %v6310_v36, %v6196_v31  ;;  %v734_v41 = vrot.slane %v720_v39, %v6196_v31  ;;  %1498 = vmatprep.subr.mxu1 %v6350_v18  ;;  %1414 = vmatprep.mubr.f32.mxu1 %v8754_v25  ;;  %v767_v42 = vcombine.high %v757_v63, %v757_v63  ;;  %v6387_v39 = vld [vmem:[#allocation6 + $0x188] sm:$0xff]  ;;  %v6420_v63 = vld [vmem:[#allocation6 + $0x160] sm:$0xff] }
  0xcd   :  { %v1020_v43 = vrot.slane %v765_v13, %v6205_v45  ;;  %1499 = vmatpush1.msra.mxu1 %v6356_v26  ;;  %v1105_v53 = vsel %vm1103_vm6, %v1096_v17, %v1016_v14  ;;  %v1088_v47 = vsel %vm1085_vm4, %v1079_v32, %v940_v7  ;;  %v984_v36 = vrot.slane %v717_v9, %v6205_v45  ;;  %v6446_v13 = vld [vmem:[#allocation6 + $0x140] sm:$0xff]  ;;  %v6476_v14 = vld [vmem:[#allocation6 + $0x108] sm:$0xff] }
  0xce   :  { %1500 = vmatprep.subr.mxu1 %v6363_v34  ;;  %5402 = vmatmul.mubr.msk.f32.gmra.mxu0 %vm1206_vm7, %v1105_v53  ;;  %v1097_v48 = vsel %vm1094_vm5, %v1088_v47, %v980_v22  ;;  %v1080_v49 = vsel %vm1076_vm3, %v1071_v35, %v904_v6  ;;  %v912_v50 = vrot.slane %v6320_v44, %v6205_v45  ;;  %v6485_v32 = vld [vmem:[#allocation6 + $0x100] sm:$0xff] }
  0xcf   :  { %v6394_v52 = vrot.slane %v616_v46, %v6205_v45  ;;  %v6400_v54 = vrot.slane %v636_v40, %v6196_v31  ;;  %5410 = vmatmul.mubr.msk.f32.gmra.mxu1 %vm1206_vm7, %v1105_v53  ;;  %1307 = vmatprep.mubr.f32.mxu0 %v8754_v25  ;;  %v948_v56 = vrot.slane %v6334_v59, %v6205_v45  ;;  %v6519_v47 = vld [vmem:[#allocation6 + $0xc0] sm:$0xff] }
  0xd0   :  { %v6409_v60 = vrot.slane %v686_v37, %v6196_v31  ;;  %v736_v46 = vcombine.high %v734_v41, %v734_v41  ;;  %1501 = vmatpush1.msra.mxu1 %v6381_v11  ;;  %1420 = vmatprep.mubr.f32.mxu1 %v8754_v25  ;;  %v6416_v40 = vrot.slane %v734_v41, %v6196_v31  ;;  %v6496_v37 = vld [vmem:[#allocation6 + $0xe8] sm:$0xff] }
  0xd1   :  { %1502 = vmatprep.subr.mxu1 %v6387_v39  ;;  %v1106_v62 = vsel %vm1103_vm6, %v1097_v48, %v1020_v43  ;;  %v1024_v0 = vrot.slane %v767_v42, %v6205_v45  ;;  %v1089_v3 = vsel %vm1085_vm4, %v1080_v49, %v944_v33  ;;  %v988_v4 = vrot.slane %v6373_v23, %v6205_v45 }
  0xd2   :  { %1503 = vmatpush1.msra.mxu1 %v6403_v55  ;;  %5403 = vmatmul.mubr.msk.f32.gmra.mxu0 %vm1206_vm7, %v1106_v62  ;;  %v1098_v6 = vsel %vm1094_vm5, %v1089_v3, %v984_v36  ;;  %v1081_v7 = vsel %vm1076_vm3, %v6305_v29, %v908_v57  ;;  %v6440_v9 = vrot.slane %v618_v1, %v6205_v45  ;;  %v6551_v3 = vld [vmem:[#allocation6 + $0x68] sm:$0xff] }
  0xd3   :  { %v666_v10 = vcombine.high %v6334_v59, %v6334_v59  ;;  %1504 = vmatprep.subr.mxu1 %v6413_v20  ;;  %5411 = vmatmul.mubr.msk.f32.gmra.mxu1 %vm1206_vm7, %v1106_v62  ;;  %v1073_v27 = vsel %vm1067_vm2, %v6260_v58, %v872_v8  ;;  %v952_v29 = vrot.slane %v6400_v54, %v6205_v45  ;;  %v6462_v59 = vld [vmem:[#allocation6 + $0x128] sm:$0xff]  ;;  %v6469_v8 = vld [vmem:[#allocation6 + $0x120] sm:$0xff] }
  0xd4   :  { %v716_v44 = vcombine.high %v6373_v23, %v6373_v23  ;;  %v6458_v57 = vrot.slane %v736_v46, %v6196_v31  ;;  %1505 = vmatpush1.msra.mxu1 %v6420_v63  ;;  %1313 = vmatprep.mubr.f32.mxu0 %v8754_v25  ;;  %v1028_v51 = vrot.slane %v6416_v40, %v6205_v45 }
  0xd5   :  { %1506 = vmatprep.subr.mxu1 %v6428_v5  ;;  %1426 = vmatprep.mubr.f32.mxu1 %v8754_v25  ;;  %v1107_v58 = vsel %vm1103_vm6, %v1098_v6, %v1024_v0  ;;  %v1090_v31 = vsel %vm1085_vm4, %v1081_v7, %v948_v56  ;;  %v992_v1 = vrot.slane %v6409_v60, %v6205_v45  ;;  %v6547_v0 = vld [vmem:[#allocation6 + $0x80] sm:$0xff] }
  0xd6   :  { %1507 = vmatpush1.msra.mxu1 %v6446_v13  ;;  %5404 = vmatmul.mubr.msk.f32.gmra.mxu0 %vm1206_vm7, %v1107_v58  ;;  %v1099_v16 = vsel %vm1094_vm5, %v1090_v31, %v988_v4  ;;  %v1082_v21 = vsel %vm1076_vm3, %v1073_v27, %v912_v50  ;;  %v668_v22 = vcombine.high %v6400_v54, %v6400_v54  ;;  %v6528_v50 = vld [vmem:[#allocation6 + $0xa8] sm:$0xff]  ;;  %v6533_v54 = vld [vmem:[#allocation6 + $0xa0] sm:$0xff] }
  0xd7   :  { %v956_v28 = vrot.slane %v666_v10, %v6205_v45  ;;  %1508 = vmatprep.subr.mxu1 %v6462_v59  ;;  %5412 = vmatmul.mubr.msk.f32.gmra.mxu1 %vm1206_vm7, %v1107_v58  ;;  %v1074_v33 = vsel %vm1067_vm2, %v6269_v2, %v6287_v15  ;;  %v718_v17 = vcombine.high %v6409_v60, %v6409_v60  ;;  %v6504_v15 = vld [vmem:[#allocation6 + $0xe0] sm:$0xff]  ;;  %v6539_v60 = vld [vmem:[#allocation6 + $0x88] sm:$0xff] }
  0xd8   :  { %v766_v35 = vcombine.high %v6416_v40, %v6416_v40  ;;  %1509 = vmatpush1.msra.mxu1 %v6469_v8  ;;  %1319 = vmatprep.mubr.f32.mxu0 %v8754_v25  ;;  %v1066_v23 = vsel %vm1058_vm1, %v6264_v61, %v6240_v38  ;;  %v1108_v2 = vsel %vm1103_vm6, %v1099_v16, %v1028_v51  ;;  %v6512_v38 = vld [vmem:[#allocation6 + $0xc8] sm:$0xff]  ;;  %v6556_v6 = vld [vmem:[#allocation6 + $0x60] sm:$0xff]  ;;  %v6591_v16 = vld [vmem:[#allocation6 + $0x1f0] sm:$0xff] }
  0xd9   :  { %1510 = vmatprep.subr.mxu1 %v6476_v14  ;;  %1432 = vmatprep.mubr.f32.mxu1 %v8754_v25  ;;  %v1032_v41 = vrot.slane %v6458_v57, %v6205_v45  ;;  %v1091_v42 = vsel %vm1085_vm4, %v1082_v21, %v952_v29  ;;  %v996_v43 = vrot.slane %v716_v44, %v6205_v45  ;;  %v6562_v10 = vld [vmem:[#allocation6 + $0x48] sm:$0xff]  ;;  %v6567_v29 = vld [vmem:[#allocation6 + $0x40] sm:$0xff]  ;;  %v6595_v21 = vld [vmem:[#allocation6 + $0x1d8] sm:$0xff] }
  0xda   :  { %1511 = vmatpush1.msra.mxu1 %v6485_v32  ;;  %5405 = vmatmul.mubr.msk.f32.gmra.mxu0 %vm1206_vm7, %v1108_v2  ;;  %v1100_v61 = vsel %vm1094_vm5, %v1091_v42, %v992_v1  ;;  %v1083_v53 = vsel %vm1076_vm3, %v1074_v33, %v6394_v52  ;;  %v1075_v36 = vsel %vm1067_vm2, %v1066_v23, %v6292_v19  ;;  %v6571_v44 = vld [vmem:[#allocation6 + $0x28] sm:$0xff]  ;;  %v6576_v51 = vld [vmem:[#allocation6 + $0x20] sm:$0xff]  ;;  %v6588_v1 = vld [vmem:[#allocation6 + $0x1f8] sm:$0xff] }
  0xdb   :  { %1512 = vmatprep.subr.mxu1 %v6496_v37  ;;  %5413 = vmatmul.mubr.msk.f32.gmra.mxu1 %vm1206_vm7, %v1108_v2  ;;  %v960_v48 = vrot.slane %v668_v22, %v6205_v45  ;;  %v768_v49 = vcombine.high %v6458_v57, %v6458_v57  ;;  %v1109_v52 = vsel %vm1103_vm6, %v1100_v61, %v1032_v41  ;;  %v6580_v58 = vld [vmem:[#allocation6 + $0x8] sm:$0xff]  ;;  %v6584_v31 = vld [vmem:[#allocation6] sm:$0xff]  ;;  %v6600_v22 = vld [vmem:[#allocation6 + $0x1d0] sm:$0xff] }
  0xdc   :  { %1513 = vmatpush1.msra.mxu1 %v6504_v15  ;;  %1325 = vmatprep.mubr.f32.mxu0 %v8754_v25  ;;  %v1036_v19 = vrot.slane %v766_v35, %v6205_v45  ;;  %v1092_v56 = vsel %vm1085_vm4, %v1083_v53, %v956_v28  ;;  %8965 = vst [vmem:[#allocation18_spill] sm:$0xff] %v6539_v60  ;;  %8966 = vst [vmem:[#allocation19_spill] sm:$0xff] %v6547_v0  ;;  %v6603_v28 = vld [vmem:[#allocation6 + $0x1b8] sm:$0xff]  ;;  %v6607_v33 = vld [vmem:[#allocation6 + $0x1b0] sm:$0xff] }
  0xdd   :  { %1514 = vmatprep.subr.mxu1 %v6512_v38  ;;  %1438 = vmatprep.mubr.f32.mxu1 %v8754_v25  ;;  %v1101_v46 = vsel %vm1094_vm5, %v1092_v56, %v996_v43  ;;  %v1000_v40 = vrot.slane %v718_v17, %v6205_v45  ;;  %v1084_v62 = vsel %vm1076_vm3, %v1075_v36, %v6440_v9  ;;  %v6611_v17 = vld [vmem:[#allocation6 + $0x198] sm:$0xff]  ;;  %v6615_v35 = vld [vmem:[#allocation6 + $0x190] sm:$0xff] }
  0xde   :  { %1515 = vmatpush1.msra.mxu1 %v6519_v47  ;;  %5406 = vmatmul.mubr.msk.f32.gmra.mxu0 %vm1206_vm7, %v1109_v52  ;;  %8967 = vst [vmem:[#allocation20_spill] sm:$0xff] %v6551_v3  ;;  %v1110_v4 = vsel %vm1103_vm6, %v1101_v46, %v1036_v19  ;;  %8968 = vst [vmem:[#allocation21_spill] sm:$0xff] %v6556_v6  ;;  %v1040_v7 = vrot.slane %v768_v49, %v6205_v45  ;;  %v6619_v23 = vld [vmem:[#allocation6 + $0x178] sm:$0xff]  ;;  %v6623_v2 = vld [vmem:[#allocation6 + $0x170] sm:$0xff] }
  0xdf   :  { %1516 = vmatprep.subr.mxu1 %v6528_v50  ;;  %5414 = vmatmul.mubr.msk.f32.gmra.mxu1 %vm1206_vm7, %v1109_v52  ;;  %v1093_v9 = vsel %vm1085_vm4, %v1084_v62, %v960_v48  ;;  %8969 = vst [vmem:[#allocation22_spill] sm:$0xff] %v6562_v10  ;;  %8970 = vst [vmem:[#allocation23_spill] sm:$0xff] %v6567_v29  ;;  %v6627_v41 = vld [vmem:[#allocation6 + $0x158] sm:$0xff]  ;;  %v6631_v42 = vld [vmem:[#allocation6 + $0x150] sm:$0xff] }
  0xe0   :  { %1517 = vmatpush1.msra.mxu1 %v6533_v54  ;;  %1331 = vmatprep.mubr.f32.mxu0 %v8754_v25  ;;  %v1102_v27 = vsel %vm1094_vm5, %v1093_v9, %v1000_v40  ;;  %8971 = vst [vmem:[#allocation24_spill] sm:$0xff] %v6571_v44  ;;  %8972 = vst [vmem:[#allocation25_spill] sm:$0xff] %v6576_v51  ;;  %v6635_v43 = vld [vmem:[#allocation6 + $0x138] sm:$0xff]  ;;  %v6639_v61 = vld [vmem:[#allocation6 + $0x130] sm:$0xff] }
  0xe1   :  { %1518 = vmatprep.subr.mxu1 %v6539_v60  ;;  %1444 = vmatprep.mubr.f32.mxu1 %v8754_v25  ;;  %v1111_v57 = vsel %vm1103_vm6, %v1102_v27, %v1040_v7  ;;  %8973 = vst [vmem:[#allocation26_spill] sm:$0xff] %v6580_v58  ;;  %8974 = vst [vmem:[#allocation27_spill] sm:$0xff] %v6584_v31  ;;  %v6643_v53 = vld [vmem:[#allocation6 + $0x118] sm:$0xff]  ;;  %v6647_v36 = vld [vmem:[#allocation6 + $0x110] sm:$0xff] }
  0xe2   :  { %1519 = vmatpush1.msra.mxu1 %v6547_v0  ;;  %5407 = vmatmul.mubr.msk.f32.gmra.mxu0 %vm1206_vm7, %v1110_v4  ;;  %8975 = vst [vmem:[#allocation28_spill] sm:$0xff] %v6588_v1  ;;  %v6651_v48 = vld [vmem:[#allocation6 + $0xf8] sm:$0xff]  ;;  %v6655_v49 = vld [vmem:[#allocation6 + $0xf0] sm:$0xff] }
  0xe3   :  { %1520 = vmatprep.subr.mxu1 %v6551_v3  ;;  %5415 = vmatmul.mubr.msk.f32.gmra.mxu1 %vm1206_vm7, %v1110_v4  ;;  %v6659_v52 = vld [vmem:[#allocation6 + $0xd8] sm:$0xff]  ;;  %v6663_v19 = vld [vmem:[#allocation6 + $0xd0] sm:$0xff] }
  0xe4   :  { %1521 = vmatpush1.msra.mxu1 %v6556_v6  ;;  %1337 = vmatprep.mubr.f32.mxu0 %v8754_v25  ;;  %v6667_v56 = vld [vmem:[#allocation6 + $0xb8] sm:$0xff]  ;;  %v6671_v46 = vld [vmem:[#allocation6 + $0xb0] sm:$0xff] }
  0xe5   :  { %1522 = vmatprep.subr.mxu1 %v6562_v10  ;;  %1450 = vmatprep.mubr.f32.mxu1 %v8754_v25  ;;  %v6675_v40 = vld [vmem:[#allocation6 + $0x98] sm:$0xff]  ;;  %v6679_v62 = vld [vmem:[#allocation6 + $0x90] sm:$0xff] }
  0xe6   :  { %1523 = vmatpush1.msra.mxu1 %v6567_v29  ;;  %5408 = vmatmul.mubr.msk.f32.gmra.mxu0 %vm1206_vm7, %v1111_v57  ;;  %8976 = vst [vmem:[#allocation29_spill] sm:$0xff] %v6675_v40  ;;  %8977 = vst [vmem:[#allocation30_spill] sm:$0xff] %v6679_v62  ;;  %v6683_v4 = vld [vmem:[#allocation6 + $0x78] sm:$0xff]  ;;  %v6687_v7 = vld [vmem:[#allocation6 + $0x70] sm:$0xff] }
  0xe7   :  { %1524 = vmatprep.subr.mxu1 %v6571_v44  ;;  %5416 = vmatmul.mubr.msk.f32.gmra.mxu1 %vm1206_vm7, %v1111_v57  ;;  %8978 = vst [vmem:[#allocation31_spill] sm:$0xff] %v6683_v4  ;;  %8979 = vst [vmem:[#allocation32_spill] sm:$0xff] %v6687_v7  ;;  %v6691_v9 = vld [vmem:[#allocation6 + $0x58] sm:$0xff]  ;;  %v6695_v27 = vld [vmem:[#allocation6 + $0x50] sm:$0xff] }
  0xe8   :  { %1525 = vmatpush1.msra.mxu1 %v6576_v51  ;;  %1560 = vmatprep.mubr.f32.mxu1 %v8754_v25  ;;  %8980 = vst [vmem:[#allocation33_spill] sm:$0xff] %v6691_v9  ;;  %8981 = vst [vmem:[#allocation34_spill] sm:$0xff] %v6695_v27  ;;  %v6699_v57 = vld [vmem:[#allocation6 + $0x38] sm:$0xff] }
  0xe9   :  { %1526 = vmatprep.subr.mxu1 %v6580_v58  ;;  %1673 = vmatpush1.msra.mxu0 %v6346_v12  ;;  %8982 = vst [vmem:[#allocation35_spill] sm:$0xff] %v6699_v57 }
  0xea   :  { %1527 = vmatpush1.msra.mxu1 %v6584_v31  ;;  %1674 = vmatprep.subr.mxu0 %v6350_v18 }
  0xeb   :  { %1567 = vmatprep.subr.mxu1 %v6588_v1  ;;  %1561 = vmatmul.mubr.f32.vlgmr.msra.gmra.mxu1 %v8754_v25 }
  0xec   :  { %1568 = vmatpush1.msra.mxu1 %v6591_v16  ;;  %1631 = vmatprep.mubr.f32.mxu1 %v8754_v25  ;;  %v6703_v25 = vld [vmem:[#allocation6 + $0x30] sm:$0xff] }
  0xed   :  { %1569 = vmatprep.subr.mxu1 %v6595_v21  ;;  %1675 = vmatpush1.msra.mxu0 %v6356_v26  ;;  %8983 = vst [vmem:[#allocation36_spill] sm:$0xff] %v6703_v25 }
  0xee   :  { %1570 = vmatpush1.msra.mxu1 %v6600_v22  ;;  %1676 = vmatprep.subr.mxu0 %v6363_v34 }
  0xef   :  { %1571 = vmatprep.subr.mxu1 %v6603_v28  ;;  %1677 = vmatpush1.msra.mxu0 %v6381_v11 }
  0xf0   :  { %1572 = vmatpush1.msra.mxu1 %v6607_v33  ;;  %1678 = vmatprep.subr.mxu0 %v6387_v39 }
  0xf1   :  { %1573 = vmatprep.subr.mxu1 %v6611_v17  ;;  %1679 = vmatpush1.msra.mxu0 %v6403_v55 }
  0xf2   :  { %1574 = vmatpush1.msra.mxu1 %v6615_v35  ;;  %1680 = vmatprep.subr.mxu0 %v6413_v20 }
  0xf3   :  { %1575 = vmatprep.subr.mxu1 %v6619_v23  ;;  %1681 = vmatpush1.msra.mxu0 %v6420_v63 }
  0xf4   :  { %1576 = vmatpush1.msra.mxu1 %v6623_v2  ;;  %1682 = vmatprep.subr.mxu0 %v6428_v5 }
  0xf5   :  { %1577 = vmatprep.subr.mxu1 %v6627_v41  ;;  %1683 = vmatpush1.msra.mxu0 %v6446_v13 }
  0xf6   :  { %1578 = vmatpush1.msra.mxu1 %v6631_v42  ;;  %1684 = vmatprep.subr.mxu0 %v6462_v59 }
  0xf7   :  { %1579 = vmatprep.subr.mxu1 %v6635_v43  ;;  %1685 = vmatpush1.msra.mxu0 %v6469_v8 }
  0xf8   :  { %1580 = vmatpush1.msra.mxu1 %v6639_v61  ;;  %1686 = vmatprep.subr.mxu0 %v6476_v14 }
  0xf9   :  { %1581 = vmatprep.subr.mxu1 %v6643_v53  ;;  %1687 = vmatpush1.msra.mxu0 %v6485_v32 }
  0xfa   :  { %1582 = vmatpush1.msra.mxu1 %v6647_v36  ;;  %1688 = vmatprep.subr.mxu0 %v6496_v37 }
  0xfb   :  { %1583 = vmatprep.subr.mxu1 %v6651_v48  ;;  %1689 = vmatpush1.msra.mxu0 %v6504_v15 }
  0xfc   :  { %1584 = vmatpush1.msra.mxu1 %v6655_v49  ;;  %1690 = vmatprep.subr.mxu0 %v6512_v38 }
  0xfd   :  { %1585 = vmatprep.subr.mxu1 %v6659_v52  ;;  %1691 = vmatpush1.msra.mxu0 %v6519_v47 }
  0xfe   :  { %1586 = vmatpush1.msra.mxu1 %v6663_v19  ;;  %1692 = vmatprep.subr.mxu0 %v6528_v50 }
  0xff   :  { %1587 = vmatprep.subr.mxu1 %v6667_v56  ;;  %1693 = vmatpush1.msra.mxu0 %v6533_v54 }
 0x100   :  { %1588 = vmatpush1.msra.mxu1 %v6671_v46  ;;  %1694 = vmatprep.subr.mxu0 %v6539_v60 }
 0x101   :  { %1589 = vmatprep.subr.mxu1 %v6675_v40  ;;  %1695 = vmatpush1.msra.mxu0 %v6547_v0 }
 0x102   :  { %1590 = vmatpush1.msra.mxu1 %v6679_v62  ;;  %1696 = vmatprep.subr.mxu0 %v6551_v3  ;;  %v6707_v3 = vld [vmem:[#allocation6 + $0x18] sm:$0xff] }
 0x103   :  { %1591 = vmatprep.subr.mxu1 %v6683_v4  ;;  %1697 = vmatpush1.msra.mxu0 %v6556_v6  ;;  %8984 = vst [vmem:[#allocation37_spill] sm:$0xff] %v6707_v3  ;;  %v6711_v6 = vld [vmem:[#allocation6 + $0x10] sm:$0xff] }
 0x104   :  { %1592 = vmatpush1.msra.mxu1 %v6687_v7  ;;  %1698 = vmatprep.subr.mxu0 %v6562_v10  ;;  %8985 = vst [vmem:[#allocation38_spill] sm:$0xff] %v6711_v6 }
 0x105   :  { %1593 = vmatprep.subr.mxu1 %v6691_v9  ;;  %1699 = vmatpush1.msra.mxu0 %v6567_v29  ;;  %v8986_v29 = vmov 0.0  }
 0x106   :  { %1594 = vmatpush1.msra.mxu1 %v6695_v27  ;;  %1700 = vmatprep.subr.mxu0 %v6571_v44 }
 0x107   :  { %1595 = vmatprep.subr.mxu1 %v6699_v57  ;;  %1701 = vmatpush1.msra.mxu0 %v6576_v51 }
 0x108   :  { %1596 = vmatpush1.msra.mxu1 %v6703_v25  ;;  %1702 = vmatprep.subr.mxu0 %v6580_v58  ;;  %v1184_v58 = vld [vmem:[%s8747_s3] sm:$0xf] }
 0x109   :  { %1597 = vmatprep.subr.mxu1 %v6707_v3  ;;  %1703 = vmatpush1.msra.mxu0 %v6584_v31 }
 0x10a   :  { %1598 = vmatpush1.msra.mxu1 %v6711_v6  ;;  %1736 = vmatprep.mubr.f32.mxu0 %v8986_v29 }
 0x10b   :  { %1632 = vmatmul.mubr.f32.vlgmr.msra.gmra.mxu1 %v8986_v29  ;;  %1743 = vmatprep.subr.mxu1 %v6588_v1 }
 0x10c   :  { %1744 = vmatpush1.msra.mxu1 %v6591_v16  ;;  %1807 = vmatprep.mubr.f32.mxu1 %v8986_v29  ;;  %v8791_v29 = vsub.s32 2, %v6193_v30 }
 0x10d   :  { %1745 = vmatprep.subr.mxu1 %v6595_v21  ;;  %1849 = vmatprep.subr.mxu0 %v6187_v24 }
 0x10e   :  { %1746 = vmatpush1.msra.mxu1 %v6600_v22 }
 0x10f   :  { %1747 = vmatprep.subr.mxu1 %v6603_v28 }
 0x110   :  { %1748 = vmatpush1.msra.mxu1 %v6607_v33 }
 0x111   :  { %1749 = vmatprep.subr.mxu1 %v6611_v17 }
 0x112   :  { %1750 = vmatpush1.msra.mxu1 %v6615_v35 }
 0x113   :  { %1751 = vmatprep.subr.mxu1 %v6619_v23 }
 0x114   :  { %1752 = vmatpush1.msra.mxu1 %v6623_v2 }
 0x115   :  { %1753 = vmatprep.subr.mxu1 %v6627_v41 }
 0x116   :  { %1754 = vmatpush1.msra.mxu1 %v6631_v42 }
 0x117   :  { %1755 = vmatprep.subr.mxu1 %v6635_v43 }
 0x118   :  { %1756 = vmatpush1.msra.mxu1 %v6639_v61 }
 0x119   :  { %1757 = vmatprep.subr.mxu1 %v6643_v53 }
 0x11a   :  { %1758 = vmatpush1.msra.mxu1 %v6647_v36 }
 0x11b   :  { %1759 = vmatprep.subr.mxu1 %v6651_v48 }
 0x11c   :  { %1760 = vmatpush1.msra.mxu1 %v6655_v49 }
 0x11d   :  { %1761 = vmatprep.subr.mxu1 %v6659_v52 }
 0x11e   :  { %1762 = vmatpush1.msra.mxu1 %v6663_v19 }
 0x11f   :  { %1763 = vmatprep.subr.mxu1 %v6667_v56 }
 0x120   :  { %1764 = vmatpush1.msra.mxu1 %v6671_v46 }
 0x121   :  { %1765 = vmatprep.subr.mxu1 %v6675_v40 }
 0x122   :  { %1766 = vmatpush1.msra.mxu1 %v6679_v62 }
 0x123   :  { %1767 = vmatprep.subr.mxu1 %v6683_v4 }
 0x124   :  { %1768 = vmatpush1.msra.mxu1 %v6687_v7  ;;  %v6784_v7 = vrot.slane %v1184_v58, %v6205_v45 }
 0x125   :  { %1769 = vmatprep.subr.mxu1 %v6691_v9 }
 0x126   :  { %1770 = vmatpush1.msra.mxu1 %v6695_v27 }
 0x127   :  { %1771 = vmatprep.subr.mxu1 %v6699_v57  ;;  %v8794_v57 = vsub.s32 3, %v6193_v30 }
 0x128   :  { %1772 = vmatpush1.msra.mxu1 %v6703_v25 }
 0x129   :  { %1773 = vmatprep.subr.mxu1 %v6707_v3  ;;  %v8800_v3 = vsub.s32 1, %v6193_v30  ;;  %v6776_v27 = vrot.slane %v1184_v58, %v8794_v57 }
 0x12a   :  { %1774 = vmatpush1.msra.mxu1 %v6711_v6  ;;  %v6769_v6 = vrot.slane %v1184_v58, %v8791_v29 }
 0x12b   :  { %1920 = vmatprep.subr.mxu1 %v6588_v1  ;;  %v6791_v62 = vrot.slane %v1184_v58, %v8800_v3 }
 0x12d   :  { %8991 = vst [vmem:[#allocation43_spill] sm:$0xff] %v6791_v62 }
 0x18a   :  { %v6756_v24 = vpop.f32.mrf.mxu0  ;;  %v6759_v31 = vpop.f32.mrf.mxu1 }
 0x18c   :  { %v1299_v51 = vpop.f32.mrf.mxu0  ;;  %v6765_v25 = vpop.f32.mrf.mxu1 }
 0x18e   :  { %v6771_v1 = vpop.f32.mrf.mxu0 }
 0x18f   :  { %8987 = vst [vmem:[#allocation39_spill] sm:$0xff] %v6771_v1  ;;  %v1416_v44 = vpop.f32.mrf.mxu1 }
 0x190   :  { %v6779_v9 = vadd.f32 %v1416_v44, %v6769_v6  ;;  %v6781_v10 = vpop.f32.mrf.mxu0 }
 0x191   :  { %8989 = vst [vmem:[#allocation41_spill] sm:$0xff] %v6781_v10  ;;  %v1418_v4 = vpop.f32.mrf.mxu1 }
 0x192   :  { %8988 = vst [vmem:[#allocation40_spill] sm:$0xff] %v6779_v9  ;;  %v6787_v29 = vadd.f32 %v1418_v4, %v6776_v27  ;;  %v1309_v1 = vpop.f32.mrf.mxu0 }
 0x193   :  { %v6794_v57 = vadd.f32 %v1309_v1, %v6784_v7  ;;  %v1422_v0 = vpop.f32.mrf.mxu1 }
 0x194   :  { %8990 = vst [vmem:[#allocation42_spill] sm:$0xff] %v6787_v29  ;;  %v6797_v44 = vadd.f32 %v1422_v0, %v6769_v6  ;;  %v1311_v9 = vpop.f32.mrf.mxu0 }
 0x195   :  { %8992 = vst [vmem:[#allocation44_spill] sm:$0xff] %v6794_v57  ;;  %v6800_v45 = vadd.f32 %v1311_v9, %v6791_v62  ;;  %v1424_v10 = vpop.f32.mrf.mxu1 }
 0x196   :  { %8993 = vst [vmem:[#allocation45_spill] sm:$0xff] %v6797_v44  ;;  %v6803_v4 = vadd.f32 %v1424_v10, %v6776_v27  ;;  %v1315_v29 = vpop.f32.mrf.mxu0 }
 0x197   :  { %8994 = vst [vmem:[#allocation46_spill] sm:$0xff] %v6800_v45  ;;  %v6806_v30 = vadd.f32 %v1315_v29, %v6784_v7  ;;  %v1428_v58 = vpop.f32.mrf.mxu1 }
 0x198   :  { %8995 = vst [vmem:[#allocation47_spill] sm:$0xff] %v6803_v4  ;;  %v6809_v1 = vadd.f32 %v1428_v58, %v6769_v6  ;;  %v1317_v3 = vpop.f32.mrf.mxu0 }
 0x199   :  { %8996 = vst [vmem:[#allocation48_spill] sm:$0xff] %v6806_v30  ;;  %v6812_v0 = vadd.f32 %v1317_v3, %v6791_v62  ;;  %v1430_v44 = vpop.f32.mrf.mxu1 }
 0x19a   :  { %8997 = vst [vmem:[#allocation49_spill] sm:$0xff] %v6809_v1  ;;  %v6815_v9 = vadd.f32 %v1430_v44, %v6776_v27  ;;  %v1321_v45 = vpop.f32.mrf.mxu0 }
 0x19b   :  { %8998 = vst [vmem:[#allocation50_spill] sm:$0xff] %v6812_v0  ;;  %v6818_v10 = vadd.f32 %v1321_v45, %v6784_v7  ;;  %v1434_v4 = vpop.f32.mrf.mxu1 }
 0x19c   :  { %8999 = vst [vmem:[#allocation51_spill] sm:$0xff] %v6815_v9  ;;  %v6821_v29 = vadd.f32 %v1434_v4, %v6769_v6  ;;  %v1323_v30 = vpop.f32.mrf.mxu0 }
 0x19d   :  { %9000 = vst [vmem:[#allocation52_spill] sm:$0xff] %v6818_v10  ;;  %v6824_v58 = vadd.f32 %v1323_v30, %v6791_v62  ;;  %v1436_v1 = vpop.f32.mrf.mxu1 }
 0x19e   :  { %9001 = vst [vmem:[#allocation53_spill] sm:$0xff] %v6821_v29  ;;  %v6827_v3 = vadd.f32 %v1436_v1, %v6776_v27  ;;  %v1327_v0 = vpop.f32.mrf.mxu0 }
 0x19f   :  { %9002 = vst [vmem:[#allocation54_spill] sm:$0xff] %v6824_v58  ;;  %v6830_v44 = vadd.f32 %v1327_v0, %v6784_v7  ;;  %v1440_v9 = vpop.f32.mrf.mxu1 }
 0x1a0   :  { %9003 = vst [vmem:[#allocation55_spill] sm:$0xff] %v6827_v3  ;;  %v6833_v45 = vadd.f32 %v1440_v9, %v6769_v6  ;;  %v1329_v10 = vpop.f32.mrf.mxu0 }
 0x1a1   :  { %9004 = vst [vmem:[#allocation56_spill] sm:$0xff] %v6830_v44  ;;  %v6836_v4 = vadd.f32 %v1329_v10, %v6791_v62  ;;  %v1442_v29 = vpop.f32.mrf.mxu1 }
 0x1a2   :  { %9005 = vst [vmem:[#allocation57_spill] sm:$0xff] %v6833_v45  ;;  %v6839_v30 = vadd.f32 %v1442_v29, %v6776_v27  ;;  %v1333_v58 = vpop.f32.mrf.mxu0 }
 0x1a3   :  { %9006 = vst [vmem:[#allocation58_spill] sm:$0xff] %v6836_v4  ;;  %v6842_v1 = vadd.f32 %v1333_v58, %v6784_v7  ;;  %v1446_v3 = vpop.f32.mrf.mxu1 }
 0x1a4   :  { %9007 = vst [vmem:[#allocation59_spill] sm:$0xff] %v6839_v30  ;;  %v6845_v0 = vadd.f32 %v1446_v3, %v6769_v6  ;;  %v1335_v44 = vpop.f32.mrf.mxu0 }
 0x1a5   :  { %9008 = vst [vmem:[#allocation60_spill] sm:$0xff] %v6842_v1  ;;  %v6848_v9 = vadd.f32 %v1335_v44, %v6791_v62  ;;  %v1448_v45 = vpop.f32.mrf.mxu1  ;;  %v1300_v44 = vadd.f32 %v1299_v51, %v6791_v62  ;;  %v1413_v51 = vadd.f32 %v6765_v25, %v6776_v27 }
 0x1a6   :  { %9009 = vst [vmem:[#allocation61_spill] sm:$0xff] %v6845_v0  ;;  %v6851_v10 = vadd.f32 %v1448_v45, %v6776_v27  ;;  %v1339_v4 = vpop.f32.mrf.mxu0  ;;  %v1298_v45 = vadd.f32 %v6756_v24, %v6784_v7 }
 0x1a7   :  { %9010 = vst [vmem:[#allocation62_spill] sm:$0xff] %v6848_v9  ;;  %v6854_v29 = vadd.f32 %v1339_v4, %v6784_v7  ;;  %v1452_v30 = vpop.f32.mrf.mxu1 }
 0x1a8   :  { %9011 = vst [vmem:[#allocation63_spill] sm:$0xff] %v6851_v10  ;;  %v6857_v58 = vadd.f32 %v1452_v30, %v6769_v6 }
 0x1a9   :  { %9012 = vst [vmem:[#allocation64_spill] sm:$0xff] %v6854_v29  ;;  %v1454_v1 = vpop.f32.mrf.mxu1 }
 0x1aa   :  { %9013 = vst [vmem:[#allocation65_spill] sm:$0xff] %v6857_v58  ;;  %v6860_v3 = vadd.f32 %v1454_v1, %v6776_v27  ;;  %v1411_v1 = vadd.f32 %v6759_v31, %v6769_v6 }
 0x1ab   :  { %v1562_v0 = vpop.f32.mrf.mxu1 }
 0x1ac   :  { %9014 = vst [vmem:[#allocation66_spill] sm:$0xff] %v6860_v3  ;;  %v1638_v9 = vadd.f32 %v1562_v0, %v1298_v45 }
 0x1ad   :  { %v1564_v57 = vpop.f32.mrf.mxu1 }
 0x1ae   :  { %v1639_v10 = vadd.f32 %v1564_v57, %v1300_v44  ;;  %v5417_v4 = vmul.f32 -1.442695, %v1638_v9 }
 0x1b0   :  { %v5418_v40 = vmul.f32 -1.442695, %v1639_v10 }
 0x1b2   :  { %5544 = vpow2.f32 %v5418_v40 }
 0x1b3   :  { %5546 = vpow2.f32 %v5417_v4  ;;  %v9019_v4 = vld [vmem:[#allocation30_spill] sm:$0xff] }
 0x1bf   :  { %v5545_v29 = vpop.eup %5544 }
 0x1c0   :  { %v5547_v30 = vpop.eup %5546  ;;  %v1651_v58 = vadd.f32 1.0, %v5545_v29 }
 0x1c1   :  { %v1645_v60 = vadd.f32 1.0, %v5547_v30  ;;  %v9020_v30 = vld [vmem:[#allocation20_spill] sm:$0xff] }
 0x1c2   :  { %5548 = vrcp.f32 %v1651_v58  ;;  %v9017_v58 = vld [vmem:[#allocation29_spill] sm:$0xff] }
 0x1c3   :  { %5550 = vrcp.f32 %v1645_v60 }
 0x1cb   :  { %v1633_v3 = vpop.f32.mrf.mxu1 }
 0x1cc   :  { %v1640_v62 = vadd.f32 %v1633_v3, %v1411_v1  ;;  %v9018_v3 = vld [vmem:[#allocation19_spill] sm:$0xff] }
 0x1cd   :  { %v1635_v57 = vpop.f32.mrf.mxu1  ;;  %v9021_v1 = vld [vmem:[#allocation31_spill] sm:$0xff] }
 0x1ce   :  { %5552 = vtanh.f32 %v1640_v62  ;;  %v1641_v24 = vadd.f32 %v1635_v57, %v1413_v51  ;;  %v9016_v62 = vld [vmem:[#allocation18_spill] sm:$0xff]  ;;  %v9022_v51 = vld [vmem:[#allocation21_spill] sm:$0xff]  ;;  %v9023_v57 = vld [vmem:[#allocation32_spill] sm:$0xff] }
 0x1cf   :  { %v5549_v40 = vpop.eup %5548 }
 0x1d0   :  { %v5419_v0 = vmul.f32 -1.442695, %v1641_v24  ;;  %v5551_v9 = vpop.eup %5550  ;;  %v1661_v29 = vmul.f32 0.0, %v5549_v40  ;;  %v9024_v24 = vld [vmem:[#allocation22_spill] sm:$0xff]  ;;  %v9026_v40 = vld [vmem:[#allocation23_spill] sm:$0xff] }
 0x1d2   :  { %5554 = vpow2.f32 %v5419_v0  ;;  %v9025_v0 = vld [vmem:[#allocation33_spill] sm:$0xff] }
 0x1db   :  { %v5553_v10 = vpop.eup %5552 }
 0x1dc   :  { %v1662_v44 = vmul.f32 %v5553_v10, %v5551_v9  ;;  %v9027_v9 = vld [vmem:[#allocation34_spill] sm:$0xff]  ;;  %v9028_v10 = vld [vmem:[#allocation24_spill] sm:$0xff] }
 0x1de   :  { %v6869_v45 = vadd.f32 %v1662_v44, %v1661_v29  ;;  %v9029_v29 = vld [vmem:[#allocation35_spill] sm:$0xff]  ;;  %v9030_v44 = vld [vmem:[#allocation25_spill] sm:$0xff] }
 0x1df   :  { %v5555_v6 = vpop.eup %5554 }
 0x1e0   :  { %v1658_v31 = vadd.f32 1.0, %v5555_v6  ;;  %5556 = vtanh.f32 %v6869_v45  ;;  %v9031_v6 = vld [vmem:[#allocation36_spill] sm:$0xff] }
 0x1e2   :  { %5558 = vrcp.f32 %v1658_v31  ;;  %v9032_v31 = vld [vmem:[#allocation26_spill] sm:$0xff] }
 0x1ed   :  { %v5557_v25 = vpop.eup %5556 }
 0x1ef   :  { %v5559_v27 = vpop.eup %5558 }
 0x1f0   :  { %v6872_v60 = vmul.f32 %v5559_v27, %v5557_v25  ;;  %v9033_v25 = vld [vmem:[#allocation37_spill] sm:$0xff]  ;;  %v9034_v27 = vld [vmem:[#allocation27_spill] sm:$0xff] }
 0x1f2   :  { %9015 = vst [vmem:[#allocation67_spill] sm:$0xff] %v6872_v60  ;;  %1737 = vmatmul.mubr.f32.vlgmr.msra.gmra.mxu0 %v6872_v60  ;;  %1808 = vmatmul.mubr.f32.vlgmr.msra.gmra.mxu1 %v6872_v60  ;;  %v9035_v60 = vmov 0.0  }
 0x1f3   :  { %1850 = vmatpush1.msra.mxu0 %v6346_v12  ;;  %1921 = vmatpush1.msra.mxu1 %v6591_v16 }
 0x1f4   :  { %1851 = vmatprep.subr.mxu0 %v6350_v18  ;;  %1922 = vmatprep.subr.mxu1 %v6595_v21 }
 0x1f5   :  { %1852 = vmatpush1.msra.mxu0 %v6356_v26  ;;  %1923 = vmatpush1.msra.mxu1 %v6600_v22 }
 0x1f6   :  { %1853 = vmatprep.subr.mxu0 %v6363_v34  ;;  %1924 = vmatprep.subr.mxu1 %v6603_v28 }
 0x1f7   :  { %1854 = vmatpush1.msra.mxu0 %v6381_v11  ;;  %1925 = vmatpush1.msra.mxu1 %v6607_v33 }
 0x1f8   :  { %1855 = vmatprep.subr.mxu0 %v6387_v39  ;;  %1926 = vmatprep.subr.mxu1 %v6611_v17 }
 0x1f9   :  { %1856 = vmatpush1.msra.mxu0 %v6403_v55  ;;  %1927 = vmatpush1.msra.mxu1 %v6615_v35 }
 0x1fa   :  { %1857 = vmatprep.subr.mxu0 %v6413_v20  ;;  %1928 = vmatprep.subr.mxu1 %v6619_v23 }
 0x1fb   :  { %1858 = vmatpush1.msra.mxu0 %v6420_v63  ;;  %1929 = vmatpush1.msra.mxu1 %v6623_v2 }
 0x1fc   :  { %1859 = vmatprep.subr.mxu0 %v6428_v5  ;;  %1930 = vmatprep.subr.mxu1 %v6627_v41 }
 0x1fd   :  { %1860 = vmatpush1.msra.mxu0 %v6446_v13  ;;  %1931 = vmatpush1.msra.mxu1 %v6631_v42 }
 0x1fe   :  { %1861 = vmatprep.subr.mxu0 %v6462_v59  ;;  %1932 = vmatprep.subr.mxu1 %v6635_v43 }
 0x1ff   :  { %1862 = vmatpush1.msra.mxu0 %v6469_v8  ;;  %1933 = vmatpush1.msra.mxu1 %v6639_v61 }
 0x200   :  { %1863 = vmatprep.subr.mxu0 %v6476_v14  ;;  %1934 = vmatprep.subr.mxu1 %v6643_v53 }
 0x201   :  { %1864 = vmatpush1.msra.mxu0 %v6485_v32  ;;  %1935 = vmatpush1.msra.mxu1 %v6647_v36 }
 0x202   :  { %1865 = vmatprep.subr.mxu0 %v6496_v37  ;;  %1936 = vmatprep.subr.mxu1 %v6651_v48 }
 0x203   :  { %1866 = vmatpush1.msra.mxu0 %v6504_v15  ;;  %1937 = vmatpush1.msra.mxu1 %v6655_v49 }
 0x204   :  { %1867 = vmatprep.subr.mxu0 %v6512_v38  ;;  %1938 = vmatprep.subr.mxu1 %v6659_v52 }
 0x205   :  { %1868 = vmatpush1.msra.mxu0 %v6519_v47  ;;  %1939 = vmatpush1.msra.mxu1 %v6663_v19 }
 0x206   :  { %1869 = vmatprep.subr.mxu0 %v6528_v50  ;;  %1940 = vmatprep.subr.mxu1 %v6667_v56 }
 0x207   :  { %1870 = vmatpush1.msra.mxu0 %v6533_v54  ;;  %1941 = vmatpush1.msra.mxu1 %v6671_v46 }
 0x208   :  { %1871 = vmatprep.subr.mxu0 %v9016_v62  ;;  %1942 = vmatprep.subr.mxu1 %v9017_v58 }
 0x209   :  { %1872 = vmatpush1.msra.mxu0 %v9018_v3  ;;  %1943 = vmatpush1.msra.mxu1 %v9019_v4  ;;  %v9044_v4 = vld [vmem:[#allocation40_spill] sm:$0xff] }
 0x20a   :  { %1873 = vmatprep.subr.mxu0 %v9020_v30  ;;  %1944 = vmatprep.subr.mxu1 %v9021_v1  ;;  %v9043_v30 = vld [vmem:[#allocation42_spill] sm:$0xff] }
 0x20b   :  { %1874 = vmatpush1.msra.mxu0 %v9022_v51  ;;  %1945 = vmatpush1.msra.mxu1 %v9023_v57 }
 0x20c   :  { %1875 = vmatprep.subr.mxu0 %v9024_v24  ;;  %1946 = vmatprep.subr.mxu1 %v9025_v0  ;;  %v9036_v0 = vld [vmem:[#allocation38_spill] sm:$0xff] }
 0x20d   :  { %1876 = vmatpush1.msra.mxu0 %v9026_v40  ;;  %1947 = vmatpush1.msra.mxu1 %v9027_v9  ;;  %v6940_v9 = vld [vmem:[#allocation6 + $0x1e8] sm:$0xff] }
 0x20e   :  { %1877 = vmatprep.subr.mxu0 %v9028_v10  ;;  %1948 = vmatprep.subr.mxu1 %v9029_v29  ;;  %9037 = vst [vmem:[#allocation18_spill] sm:$0xff] %v6940_v9  ;;  %v9038_v29 = vld [vmem:[#allocation28_spill] sm:$0xff]  ;;  %v9041_v10 = vld [vmem:[#allocation43_spill] sm:$0xff] }
 0x20f   :  { %1878 = vmatpush1.msra.mxu0 %v9030_v44  ;;  %1949 = vmatpush1.msra.mxu1 %v9031_v6  ;;  %v6944_v44 = vpop.f32.mrf.mxu0 }
 0x210   :  { %1879 = vmatprep.subr.mxu0 %v9032_v31  ;;  %1950 = vmatprep.subr.mxu1 %v9033_v25  ;;  %9039 = vst [vmem:[#allocation68_spill] sm:$0xff] %v6944_v44  ;;  %v9040_v31 = vld [vmem:[#allocation39_spill] sm:$0xff] }
 0x211   :  { %1880 = vmatpush1.msra.mxu0 %v9034_v27  ;;  %1913 = vmatprep.mubr.f32.mxu0 %v9035_v60  ;;  %v1304_v6 = vadd.f32 %v9040_v31, %v6784_v7  ;;  %v9042_v27 = vld [vmem:[#allocation41_spill] sm:$0xff] }
 0x212   :  { %1951 = vmatpush1.msra.mxu1 %v9036_v0  ;;  %1984 = vmatprep.mubr.f32.mxu1 %v9035_v60  ;;  %v1306_v40 = vadd.f32 %v9042_v27, %v9041_v10  ;;  %v9069_v27 = vld [vmem:[#allocation46_spill] sm:$0xff]  ;;  %v7285_v10 = vld [vmem:[#allocation6 + $0x38] sm:$0xff] }
 0x213   :  { %2026 = vmatprep.subr.mxu0 %v6940_v9  ;;  %2097 = vmatprep.subr.mxu1 %v9038_v29 }
 0x2b2   :  { %v1738_v25 = vpop.f32.mrf.mxu0  ;;  %v1809_v60 = vpop.f32.mrf.mxu1 }
 0x2b3   :  { %v1814_v24 = vadd.f32 %v1738_v25, %v1304_v6  ;;  %v1816_v44 = vadd.f32 %v1809_v60, %v9044_v4 }
 0x2b4   :  { %v1740_v57 = vpop.f32.mrf.mxu0  ;;  %v1811_v9 = vpop.f32.mrf.mxu1 }
 0x2b5   :  { %v5420_v0 = vmul.f32 -1.442695, %v1814_v24  ;;  %v1815_v51 = vadd.f32 %v1740_v57, %v1306_v40  ;;  %v1817_v29 = vadd.f32 %v1811_v9, %v9043_v30 }
 0x2b7   :  { %5560 = vpow2.f32 %v5420_v0  ;;  %v5421_v1 = vmul.f32 -1.442695, %v1815_v51  ;;  %v5422_v3 = vmul.f32 -1.442695, %v1817_v29 }
 0x2b9   :  { %5562 = vpow2.f32 %v5421_v1 }
 0x2ba   :  { %5564 = vtanh.f32 %v1816_v44 }
 0x2bb   :  { %5566 = vpow2.f32 %v5422_v3  ;;  %v9068_v3 = vld [vmem:[#allocation44_spill] sm:$0xff] }
 0x2c4   :  { %v5561_v58 = vpop.eup %5560 }
 0x2c5   :  { %v1821_v7 = vadd.f32 1.0, %v5561_v58 }
 0x2c6   :  { %v5563_v31 = vpop.eup %5562 }
 0x2c7   :  { %5568 = vrcp.f32 %v1821_v7  ;;  %v1827_v6 = vadd.f32 1.0, %v5563_v31  ;;  %v5565_v24 = vpop.eup %5564 }
 0x2c8   :  { %v5567_v57 = vpop.eup %5566 }
 0x2c9   :  { %5570 = vrcp.f32 %v1827_v6  ;;  %v1834_v1 = vadd.f32 1.0, %v5567_v57  ;;  %v9070_v57 = vld [vmem:[#allocation47_spill] sm:$0xff] }
 0x2cb   :  { %5572 = vrcp.f32 %v1834_v1 }
 0x2d4   :  { %v5569_v0 = vpop.eup %5568 }
 0x2d5   :  { %v1838_v40 = vmul.f32 %v5569_v0, %v5565_v24 }
 0x2d6   :  { %v5571_v51 = vpop.eup %5570 }
 0x2d7   :  { %v1837_v25 = vmul.f32 %v5571_v51, %v6869_v45  ;;  %v9067_v45 = vld [vmem:[#allocation28_spill] sm:$0xff] }
 0x2d8   :  { %v5573_v60 = vpop.eup %5572 }
 0x2d9   :  { %v6953_v30 = vadd.f32 %v1838_v40, %v1837_v25  ;;  %v9071_v40 = vld [vmem:[#allocation45_spill] sm:$0xff] }
 0x2db   :  { %5574 = vtanh.f32 %v6953_v30 }
 0x2e8   :  { %v5575_v58 = vpop.eup %5574 }
 0x2e9   :  { %v6956_v4 = vmul.f32 %v5575_v58, %v5573_v60 }
 0x2eb   :  { %9045 = vst [vmem:[#allocation39_spill] sm:$0xff] %v6956_v4  ;;  %1914 = vmatmul.mubr.f32.vlgmr.msra.gmra.mxu0 %v6956_v4  ;;  %1985 = vmatmul.mubr.f32.vlgmr.msra.gmra.mxu1 %v6956_v4  ;;  %v7295_v4 = vld [vmem:[#allocation6 + $0x18] sm:$0xff] }
 0x2ec   :  { %2027 = vmatpush1.msra.mxu0 %v6346_v12  ;;  %2098 = vmatpush1.msra.mxu1 %v6591_v16  ;;  %v9046_v12 = vld [vmem:[#allocation29_spill] sm:$0xff] }
 0x2ed   :  { %2028 = vmatprep.subr.mxu0 %v6350_v18  ;;  %2099 = vmatprep.subr.mxu1 %v6595_v21  ;;  %v9047_v18 = vld [vmem:[#allocation19_spill] sm:$0xff] }
 0x2ee   :  { %2029 = vmatpush1.msra.mxu0 %v6356_v26  ;;  %2100 = vmatpush1.msra.mxu1 %v6600_v22  ;;  %v9048_v26 = vld [vmem:[#allocation30_spill] sm:$0xff] }
 0x2ef   :  { %2030 = vmatprep.subr.mxu0 %v6363_v34  ;;  %2101 = vmatprep.subr.mxu1 %v6603_v28  ;;  %v9049_v34 = vld [vmem:[#allocation20_spill] sm:$0xff] }
 0x2f0   :  { %2031 = vmatpush1.msra.mxu0 %v6381_v11  ;;  %2102 = vmatpush1.msra.mxu1 %v6607_v33  ;;  %v9050_v11 = vld [vmem:[#allocation31_spill] sm:$0xff] }
 0x2f1   :  { %2032 = vmatprep.subr.mxu0 %v6387_v39  ;;  %2103 = vmatprep.subr.mxu1 %v6611_v17  ;;  %v9051_v39 = vld [vmem:[#allocation21_spill] sm:$0xff] }
 0x2f2   :  { %2033 = vmatpush1.msra.mxu0 %v6403_v55  ;;  %2104 = vmatpush1.msra.mxu1 %v6615_v35  ;;  %v9052_v55 = vld [vmem:[#allocation32_spill] sm:$0xff] }
 0x2f3   :  { %2034 = vmatprep.subr.mxu0 %v6413_v20  ;;  %2105 = vmatprep.subr.mxu1 %v6619_v23  ;;  %v9053_v20 = vld [vmem:[#allocation22_spill] sm:$0xff] }
 0x2f4   :  { %2035 = vmatpush1.msra.mxu0 %v6420_v63  ;;  %2106 = vmatpush1.msra.mxu1 %v6623_v2  ;;  %v9054_v63 = vld [vmem:[#allocation33_spill] sm:$0xff] }
 0x2f5   :  { %2036 = vmatprep.subr.mxu0 %v6428_v5  ;;  %2107 = vmatprep.subr.mxu1 %v6627_v41  ;;  %v9055_v5 = vld [vmem:[#allocation23_spill] sm:$0xff] }
 0x2f6   :  { %2037 = vmatpush1.msra.mxu0 %v6446_v13  ;;  %2108 = vmatpush1.msra.mxu1 %v6631_v42  ;;  %v9056_v13 = vld [vmem:[#allocation34_spill] sm:$0xff] }
 0x2f7   :  { %2038 = vmatprep.subr.mxu0 %v6462_v59  ;;  %2109 = vmatprep.subr.mxu1 %v6635_v43  ;;  %v9057_v59 = vld [vmem:[#allocation24_spill] sm:$0xff] }
 0x2f8   :  { %2039 = vmatpush1.msra.mxu0 %v6469_v8  ;;  %2110 = vmatpush1.msra.mxu1 %v6639_v61  ;;  %v9058_v8 = vld [vmem:[#allocation35_spill] sm:$0xff]  ;;  %9090 = vst [vmem:[#allocation24_spill] sm:$0xff] %v7285_v10 }
 0x2f9   :  { %2040 = vmatprep.subr.mxu0 %v6476_v14  ;;  %2111 = vmatprep.subr.mxu1 %v6643_v53  ;;  %v9059_v14 = vld [vmem:[#allocation25_spill] sm:$0xff] }
 0x2fa   :  { %2041 = vmatpush1.msra.mxu0 %v6485_v32  ;;  %2112 = vmatpush1.msra.mxu1 %v6647_v36  ;;  %v9060_v32 = vld [vmem:[#allocation36_spill] sm:$0xff] }
 0x2fb   :  { %2042 = vmatprep.subr.mxu0 %v6496_v37  ;;  %2113 = vmatprep.subr.mxu1 %v6651_v48  ;;  %v9061_v37 = vld [vmem:[#allocation26_spill] sm:$0xff]  ;;  %9093 = vst [vmem:[#allocation36_spill] sm:$0xff] %v7295_v4 }
 0x2fc   :  { %2043 = vmatpush1.msra.mxu0 %v6504_v15  ;;  %2114 = vmatpush1.msra.mxu1 %v6655_v49  ;;  %v9062_v15 = vld [vmem:[#allocation37_spill] sm:$0xff] }
 0x2fd   :  { %2044 = vmatprep.subr.mxu0 %v6512_v38  ;;  %2115 = vmatprep.subr.mxu1 %v6659_v52  ;;  %v9063_v38 = vld [vmem:[#allocation27_spill] sm:$0xff] }
 0x2fe   :  { %2045 = vmatpush1.msra.mxu0 %v6519_v47  ;;  %2116 = vmatpush1.msra.mxu1 %v6663_v19  ;;  %v9064_v47 = vmov 0.0  }
 0x2ff   :  { %2046 = vmatprep.subr.mxu0 %v6528_v50  ;;  %2117 = vmatprep.subr.mxu1 %v6667_v56  ;;  %v9065_v50 = vld [vmem:[#allocation38_spill] sm:$0xff] }
 0x300   :  { %2047 = vmatpush1.msra.mxu0 %v6533_v54  ;;  %2118 = vmatpush1.msra.mxu1 %v6671_v46  ;;  %v9066_v54 = vld [vmem:[#allocation18_spill] sm:$0xff] }
 0x301   :  { %2048 = vmatprep.subr.mxu0 %v9016_v62  ;;  %2119 = vmatprep.subr.mxu1 %v9046_v12 }
 0x302   :  { %2049 = vmatpush1.msra.mxu0 %v9047_v18  ;;  %2120 = vmatpush1.msra.mxu1 %v9048_v26 }
 0x303   :  { %2050 = vmatprep.subr.mxu0 %v9049_v34  ;;  %2121 = vmatprep.subr.mxu1 %v9050_v11 }
 0x304   :  { %2051 = vmatpush1.msra.mxu0 %v9051_v39  ;;  %2122 = vmatpush1.msra.mxu1 %v9052_v55 }
 0x305   :  { %2052 = vmatprep.subr.mxu0 %v9053_v20  ;;  %2123 = vmatprep.subr.mxu1 %v9054_v63 }
 0x306   :  { %2053 = vmatpush1.msra.mxu0 %v9055_v5  ;;  %2124 = vmatpush1.msra.mxu1 %v9056_v13 }
 0x307   :  { %2054 = vmatprep.subr.mxu0 %v9057_v59  ;;  %2125 = vmatprep.subr.mxu1 %v9058_v8 }
 0x308   :  { %2055 = vmatpush1.msra.mxu0 %v9059_v14  ;;  %2126 = vmatpush1.msra.mxu1 %v9060_v32 }
 0x309   :  { %2056 = vmatprep.subr.mxu0 %v9061_v37  ;;  %2127 = vmatprep.subr.mxu1 %v9062_v15 }
 0x30a   :  { %2057 = vmatpush1.msra.mxu0 %v9063_v38  ;;  %2090 = vmatprep.mubr.f32.mxu0 %v9064_v47 }
 0x30b   :  { %2128 = vmatpush1.msra.mxu1 %v9065_v50  ;;  %2161 = vmatprep.mubr.f32.mxu1 %v9064_v47 }
 0x30c   :  { %2203 = vmatprep.subr.mxu0 %v9066_v54  ;;  %2274 = vmatprep.subr.mxu1 %v9067_v45 }
 0x3ab   :  { %v1915_v62 = vpop.f32.mrf.mxu0  ;;  %v1986_v31 = vpop.f32.mrf.mxu1 }
 0x3ac   :  { %v1991_v9 = vadd.f32 %v1915_v62, %v9068_v3  ;;  %v1993_v51 = vadd.f32 %v1986_v31, %v9071_v40  ;;  %v7054_v31 = vld [vmem:[#allocation6 + $0x1a0] sm:$0xff]  ;;  %v9083_v40 = vld [vmem:[#allocation49_spill] sm:$0xff] }
 0x3ad   :  { %v1917_v29 = vpop.f32.mrf.mxu0  ;;  %v1988_v24 = vpop.f32.mrf.mxu1 }
 0x3ae   :  { %v5423_v44 = vmul.f32 -1.442695, %v1991_v9  ;;  %v1992_v7 = vadd.f32 %v1917_v29, %v9069_v27  ;;  %v1994_v0 = vadd.f32 %v1988_v24, %v9070_v57  ;;  %v7046_v27 = vld [vmem:[#allocation6 + $0x1c0] sm:$0xff]  ;;  %v9082_v57 = vld [vmem:[#allocation51_spill] sm:$0xff] }
 0x3b0   :  { %5576 = vpow2.f32 %v5423_v44  ;;  %v5424_v6 = vmul.f32 -1.442695, %v1992_v7  ;;  %v5425_v1 = vmul.f32 -1.442695, %v1994_v0  ;;  %v7038_v44 = vld [vmem:[#allocation6 + $0x1e0] sm:$0xff]  ;;  %v7050_v7 = vld [vmem:[#allocation6 + $0x1a8] sm:$0xff] }
 0x3b2   :  { %5578 = vpow2.f32 %v5424_v6 }
 0x3b3   :  { %5580 = vtanh.f32 %v1993_v51 }
 0x3b4   :  { %5582 = vpow2.f32 %v5425_v1 }
 0x3bd   :  { %v5577_v25 = vpop.eup %5576 }
 0x3be   :  { %v1998_v60 = vadd.f32 1.0, %v5577_v25 }
 0x3bf   :  { %v5579_v58 = vpop.eup %5578 }
 0x3c0   :  { %5584 = vrcp.f32 %v1998_v60  ;;  %v2004_v18 = vadd.f32 1.0, %v5579_v58  ;;  %v5581_v34 = vpop.eup %5580 }
 0x3c1   :  { %v5583_v39 = vpop.eup %5582 }
 0x3c2   :  { %5586 = vrcp.f32 %v2004_v18  ;;  %v2011_v14 = vadd.f32 1.0, %v5583_v39 }
 0x3c4   :  { %5588 = vrcp.f32 %v2011_v14 }
 0x3cd   :  { %v5585_v20 = vpop.eup %5584 }
 0x3ce   :  { %v2015_v5 = vmul.f32 %v5585_v20, %v5581_v34 }
 0x3cf   :  { %v5587_v59 = vpop.eup %5586 }
 0x3d0   :  { %v2014_v45 = vmul.f32 %v5587_v59, %v6953_v30  ;;  %v7042_v30 = vld [vmem:[#allocation6 + $0x1c8] sm:$0xff] }
 0x3d1   :  { %v5589_v3 = vpop.eup %5588 }
 0x3d2   :  { %v7031_v62 = vadd.f32 %v2015_v5, %v2014_v45 }
 0x3d4   :  { %5590 = vtanh.f32 %v7031_v62 }
 0x3e1   :  { %v5591_v9 = vpop.eup %5590 }
 0x3e2   :  { %v7034_v29 = vmul.f32 %v5591_v9, %v5589_v3 }
 0x3e4   :  { %9072 = vst [vmem:[#allocation41_spill] sm:$0xff] %v7034_v29  ;;  %2091 = vmatmul.mubr.f32.vlgmr.msra.gmra.mxu0 %v7034_v29  ;;  %2162 = vmatmul.mubr.f32.vlgmr.msra.gmra.mxu1 %v7034_v29  ;;  %v7292_v29 = vld [vmem:[#allocation6 + $0x8] sm:$0xff] }
 0x3e5   :  { %2204 = vmatpush1.msra.mxu0 %v7038_v44  ;;  %2275 = vmatpush1.msra.mxu1 %v6591_v16  ;;  %v7058_v16 = vld [vmem:[#allocation6 + $0x188] sm:$0xff]  ;;  %9092 = vst [vmem:[#allocation25_spill] sm:$0xff] %v7292_v29 }
 0x3e6   :  { %2205 = vmatprep.subr.mxu0 %v7042_v30  ;;  %2276 = vmatprep.subr.mxu1 %v6595_v21  ;;  %v7062_v21 = vld [vmem:[#allocation6 + $0x180] sm:$0xff] }
 0x3e7   :  { %2206 = vmatpush1.msra.mxu0 %v7046_v27  ;;  %2277 = vmatpush1.msra.mxu1 %v6600_v22  ;;  %v7066_v22 = vld [vmem:[#allocation6 + $0x168] sm:$0xff] }
 0x3e8   :  { %2207 = vmatprep.subr.mxu0 %v7050_v7  ;;  %2278 = vmatprep.subr.mxu1 %v6603_v28  ;;  %v7070_v28 = vld [vmem:[#allocation6 + $0x160] sm:$0xff] }
 0x3e9   :  { %2208 = vmatpush1.msra.mxu0 %v7054_v31  ;;  %2279 = vmatpush1.msra.mxu1 %v6607_v33  ;;  %v7074_v33 = vld [vmem:[#allocation6 + $0x148] sm:$0xff] }
 0x3ea   :  { %2209 = vmatprep.subr.mxu0 %v7058_v16  ;;  %2280 = vmatprep.subr.mxu1 %v6611_v17  ;;  %v7078_v17 = vld [vmem:[#allocation6 + $0x140] sm:$0xff] }
 0x3eb   :  { %2210 = vmatpush1.msra.mxu0 %v7062_v21  ;;  %2281 = vmatpush1.msra.mxu1 %v6615_v35  ;;  %v7082_v35 = vld [vmem:[#allocation6 + $0x128] sm:$0xff] }
 0x3ec   :  { %2211 = vmatprep.subr.mxu0 %v7066_v22  ;;  %2282 = vmatprep.subr.mxu1 %v6619_v23  ;;  %v7086_v23 = vld [vmem:[#allocation6 + $0x120] sm:$0xff] }
 0x3ed   :  { %2212 = vmatpush1.msra.mxu0 %v7070_v28  ;;  %2283 = vmatpush1.msra.mxu1 %v6623_v2  ;;  %v7090_v2 = vld [vmem:[#allocation6 + $0x108] sm:$0xff] }
 0x3ee   :  { %2213 = vmatprep.subr.mxu0 %v7074_v33  ;;  %2284 = vmatprep.subr.mxu1 %v6627_v41  ;;  %v7094_v41 = vld [vmem:[#allocation6 + $0x100] sm:$0xff] }
 0x3ef   :  { %2214 = vmatpush1.msra.mxu0 %v7078_v17  ;;  %2285 = vmatpush1.msra.mxu1 %v6631_v42  ;;  %v7098_v42 = vld [vmem:[#allocation6 + $0xe8] sm:$0xff] }
 0x3f0   :  { %2215 = vmatprep.subr.mxu0 %v7082_v35  ;;  %2286 = vmatprep.subr.mxu1 %v6635_v43  ;;  %v7102_v43 = vld [vmem:[#allocation6 + $0xe0] sm:$0xff] }
 0x3f1   :  { %2216 = vmatpush1.msra.mxu0 %v7086_v23  ;;  %2287 = vmatpush1.msra.mxu1 %v6639_v61  ;;  %v7106_v61 = vld [vmem:[#allocation6 + $0xc8] sm:$0xff] }
 0x3f2   :  { %2217 = vmatprep.subr.mxu0 %v7090_v2  ;;  %2288 = vmatprep.subr.mxu1 %v6643_v53  ;;  %v7110_v53 = vld [vmem:[#allocation6 + $0xc0] sm:$0xff] }
 0x3f3   :  { %2218 = vmatpush1.msra.mxu0 %v7094_v41  ;;  %2289 = vmatpush1.msra.mxu1 %v6647_v36  ;;  %v7114_v36 = vld [vmem:[#allocation6 + $0xa8] sm:$0xff] }
 0x3f4   :  { %2219 = vmatprep.subr.mxu0 %v7098_v42  ;;  %2290 = vmatprep.subr.mxu1 %v6651_v48  ;;  %v7118_v48 = vld [vmem:[#allocation6 + $0xa0] sm:$0xff] }
 0x3f5   :  { %2220 = vmatpush1.msra.mxu0 %v7102_v43  ;;  %2291 = vmatpush1.msra.mxu1 %v6655_v49  ;;  %v7122_v49 = vld [vmem:[#allocation6 + $0x88] sm:$0xff] }
 0x3f6   :  { %2221 = vmatprep.subr.mxu0 %v7106_v61  ;;  %2292 = vmatprep.subr.mxu1 %v6659_v52  ;;  %v7126_v52 = vld [vmem:[#allocation6 + $0x80] sm:$0xff] }
 0x3f7   :  { %2222 = vmatpush1.msra.mxu0 %v7110_v53  ;;  %2293 = vmatpush1.msra.mxu1 %v6663_v19  ;;  %v7130_v19 = vld [vmem:[#allocation6 + $0x68] sm:$0xff] }
 0x3f8   :  { %2223 = vmatprep.subr.mxu0 %v7114_v36  ;;  %2294 = vmatprep.subr.mxu1 %v6667_v56  ;;  %9073 = vst [vmem:[#allocation42_spill] sm:$0xff] %v7130_v19  ;;  %v7134_v56 = vld [vmem:[#allocation6 + $0x60] sm:$0xff] }
 0x3f9   :  { %2224 = vmatpush1.msra.mxu0 %v7118_v48  ;;  %2295 = vmatpush1.msra.mxu1 %v6671_v46  ;;  %9074 = vst [vmem:[#allocation40_spill] sm:$0xff] %v7134_v56  ;;  %v7138_v46 = vld [vmem:[#allocation6 + $0x48] sm:$0xff] }
 0x3fa   :  { %2225 = vmatprep.subr.mxu0 %v7122_v49  ;;  %2296 = vmatprep.subr.mxu1 %v9046_v12  ;;  %9075 = vst [vmem:[#allocation29_spill] sm:$0xff] %v7138_v46  ;;  %v7142_v12 = vld [vmem:[#allocation6 + $0x40] sm:$0xff] }
 0x3fb   :  { %2226 = vmatpush1.msra.mxu0 %v7126_v52  ;;  %2297 = vmatpush1.msra.mxu1 %v9048_v26  ;;  %9076 = vst [vmem:[#allocation19_spill] sm:$0xff] %v7142_v12  ;;  %v7146_v26 = vld [vmem:[#allocation6 + $0x28] sm:$0xff] }
 0x3fc   :  { %2227 = vmatprep.subr.mxu0 %v7130_v19  ;;  %2298 = vmatprep.subr.mxu1 %v9050_v11  ;;  %9077 = vst [vmem:[#allocation30_spill] sm:$0xff] %v7146_v26  ;;  %v7150_v11 = vld [vmem:[#allocation6 + $0x20] sm:$0xff] }
 0x3fd   :  { %2228 = vmatpush1.msra.mxu0 %v7134_v56  ;;  %2299 = vmatpush1.msra.mxu1 %v9052_v55  ;;  %9078 = vst [vmem:[#allocation20_spill] sm:$0xff] %v7150_v11  ;;  %v7161_v55 = vld [vmem:[#allocation6 + $0x1f8] sm:$0xff] }
 0x3fe   :  { %2229 = vmatprep.subr.mxu0 %v7138_v46  ;;  %2300 = vmatprep.subr.mxu1 %v9054_v63  ;;  %9079 = vst [vmem:[#allocation31_spill] sm:$0xff] %v7161_v55 }
 0x3ff   :  { %2230 = vmatpush1.msra.mxu0 %v7142_v12  ;;  %2301 = vmatpush1.msra.mxu1 %v9056_v13  ;;  %v9080_v13 = vld [vmem:[#allocation48_spill] sm:$0xff] }
 0x400   :  { %2231 = vmatprep.subr.mxu0 %v7146_v26  ;;  %2302 = vmatprep.subr.mxu1 %v9058_v8 }
 0x401   :  { %2232 = vmatpush1.msra.mxu0 %v7150_v11  ;;  %2303 = vmatpush1.msra.mxu1 %v9060_v32 }
 0x402   :  { %2233 = vmatprep.subr.mxu0 %v9061_v37  ;;  %2304 = vmatprep.subr.mxu1 %v9062_v15  ;;  %v9081_v15 = vld [vmem:[#allocation50_spill] sm:$0xff] }
 0x403   :  { %2234 = vmatpush1.msra.mxu0 %v9063_v38  ;;  %2267 = vmatprep.mubr.f32.mxu0 %v9064_v47 }
 0x404   :  { %2305 = vmatpush1.msra.mxu1 %v9065_v50  ;;  %2338 = vmatprep.mubr.f32.mxu1 %v9064_v47 }
 0x405   :  { %2380 = vmatprep.subr.mxu0 %v9066_v54  ;;  %2451 = vmatprep.subr.mxu1 %v7161_v55 }
 0x4a4   :  { %v2092_v63 = vpop.f32.mrf.mxu0  ;;  %v2163_v38 = vpop.f32.mrf.mxu1 }
 0x4a5   :  { %v2168_v8 = vadd.f32 %v2092_v63, %v9080_v13  ;;  %v2170_v51 = vadd.f32 %v2163_v38, %v9083_v40  ;;  %v7201_v38 = vld [vmem:[#allocation6 + $0x190] sm:$0xff]  ;;  %v7221_v40 = vld [vmem:[#allocation6 + $0x138] sm:$0xff] }
 0x4a6   :  { %v2094_v32 = vpop.f32.mrf.mxu0  ;;  %v2165_v50 = vpop.f32.mrf.mxu1 }
 0x4a7   :  { %v5426_v37 = vmul.f32 -1.442695, %v2168_v8  ;;  %v2169_v6 = vadd.f32 %v2094_v32, %v9081_v15  ;;  %v2171_v0 = vadd.f32 %v2165_v50, %v9082_v57  ;;  %v7177_v8 = vld [vmem:[#allocation6 + $0x1f0] sm:$0xff]  ;;  %v7213_v57 = vld [vmem:[#allocation6 + $0x158] sm:$0xff] }
 0x4a8   :  { %v7185_v32 = vld [vmem:[#allocation6 + $0x1d0] sm:$0xff] }
 0x4a9   :  { %5592 = vpow2.f32 %v5426_v37  ;;  %v5427_v24 = vmul.f32 -1.442695, %v2169_v6  ;;  %v5428_v1 = vmul.f32 -1.442695, %v2171_v0  ;;  %v7189_v37 = vld [vmem:[#allocation6 + $0x1b8] sm:$0xff]  ;;  %v7193_v15 = vld [vmem:[#allocation6 + $0x1b0] sm:$0xff] }
 0x4aa   :  { %v7197_v6 = vld [vmem:[#allocation6 + $0x198] sm:$0xff]  ;;  %v7209_v50 = vld [vmem:[#allocation6 + $0x170] sm:$0xff] }
 0x4ab   :  { %5594 = vpow2.f32 %v5427_v24  ;;  %v7205_v24 = vld [vmem:[#allocation6 + $0x178] sm:$0xff]  ;;  %v7217_v0 = vld [vmem:[#allocation6 + $0x150] sm:$0xff] }
 0x4ac   :  { %5596 = vtanh.f32 %v2170_v51  ;;  %v7225_v51 = vld [vmem:[#allocation6 + $0x130] sm:$0xff] }
 0x4ad   :  { %5598 = vpow2.f32 %v5428_v1  ;;  %v7229_v1 = vld [vmem:[#allocation6 + $0x118] sm:$0xff] }
 0x4b6   :  { %v5593_v25 = vpop.eup %5592 }
 0x4b7   :  { %v2175_v60 = vadd.f32 1.0, %v5593_v25  ;;  %v7233_v25 = vld [vmem:[#allocation6 + $0x110] sm:$0xff] }
 0x4b8   :  { %v5595_v58 = vpop.eup %5594 }
 0x4b9   :  { %5600 = vrcp.f32 %v2175_v60  ;;  %v2181_v18 = vadd.f32 1.0, %v5595_v58  ;;  %v5597_v34 = vpop.eup %5596  ;;  %v7237_v60 = vld [vmem:[#allocation6 + $0xf8] sm:$0xff]  ;;  %v7241_v58 = vld [vmem:[#allocation6 + $0xf0] sm:$0xff] }
 0x4ba   :  { %v5599_v39 = vpop.eup %5598 }
 0x4bb   :  { %5602 = vrcp.f32 %v2181_v18  ;;  %v2188_v14 = vadd.f32 1.0, %v5599_v39  ;;  %v7245_v18 = vld [vmem:[#allocation6 + $0xd8] sm:$0xff] }
 0x4bc   :  { %v7253_v39 = vld [vmem:[#allocation6 + $0xb8] sm:$0xff] }
 0x4bd   :  { %5604 = vrcp.f32 %v2188_v14  ;;  %v7269_v14 = vld [vmem:[#allocation6 + $0x78] sm:$0xff] }
 0x4be   :  { %9086 = vst [vmem:[#allocation22_spill] sm:$0xff] %v7269_v14 }
 0x4c6   :  { %v5601_v20 = vpop.eup %5600 }
 0x4c7   :  { %v2192_v5 = vmul.f32 %v5601_v20, %v5597_v34  ;;  %v7249_v34 = vld [vmem:[#allocation6 + $0xd0] sm:$0xff] }
 0x4c8   :  { %v5603_v59 = vpop.eup %5602  ;;  %v7257_v20 = vld [vmem:[#allocation6 + $0xb0] sm:$0xff] }
 0x4c9   :  { %v2191_v45 = vmul.f32 %v5603_v59, %v7031_v62  ;;  %v7181_v62 = vld [vmem:[#allocation6 + $0x1d8] sm:$0xff]  ;;  %v7265_v59 = vld [vmem:[#allocation6 + $0x90] sm:$0xff] }
 0x4ca   :  { %v5605_v9 = vpop.eup %5604  ;;  %9085 = vst [vmem:[#allocation32_spill] sm:$0xff] %v7265_v59 }
 0x4cb   :  { %v7169_v3 = vadd.f32 %v2192_v5, %v2191_v45  ;;  %v7261_v5 = vld [vmem:[#allocation6 + $0x98] sm:$0xff]  ;;  %v7273_v45 = vld [vmem:[#allocation6 + $0x70] sm:$0xff] }
 0x4cc   :  { %9087 = vst [vmem:[#allocation33_spill] sm:$0xff] %v7273_v45 }
 0x4cd   :  { %5606 = vtanh.f32 %v7169_v3 }
 0x4da   :  { %v5607_v63 = vpop.eup %5606 }
 0x4db   :  { %v7172_v13 = vmul.f32 %v5607_v63, %v5605_v9  ;;  %v7277_v9 = vld [vmem:[#allocation6 + $0x58] sm:$0xff]  ;;  %v7281_v63 = vld [vmem:[#allocation6 + $0x50] sm:$0xff] }
 0x4dc   :  { %9088 = vst [vmem:[#allocation23_spill] sm:$0xff] %v7277_v9  ;;  %9089 = vst [vmem:[#allocation34_spill] sm:$0xff] %v7281_v63 }
 0x4dd   :  { %9084 = vst [vmem:[#allocation21_spill] sm:$0xff] %v7172_v13  ;;  %2268 = vmatmul.mubr.f32.vlgmr.msra.gmra.mxu0 %v7172_v13  ;;  %2339 = vmatmul.mubr.f32.vlgmr.msra.gmra.mxu1 %v7172_v13  ;;  %v7289_v13 = vld [vmem:[#allocation6 + $0x30] sm:$0xff] }
 0x4de   :  { %2381 = vmatpush1.msra.mxu0 %v7038_v44  ;;  %2452 = vmatpush1.msra.mxu1 %v7177_v8  ;;  %9091 = vst [vmem:[#allocation35_spill] sm:$0xff] %v7289_v13 }
 0x4df   :  { %2382 = vmatprep.subr.mxu0 %v7042_v30  ;;  %2453 = vmatprep.subr.mxu1 %v7181_v62 }
 0x4e0   :  { %2383 = vmatpush1.msra.mxu0 %v7046_v27  ;;  %2454 = vmatpush1.msra.mxu1 %v7185_v32 }
 0x4e1   :  { %2384 = vmatprep.subr.mxu0 %v7050_v7  ;;  %2455 = vmatprep.subr.mxu1 %v7189_v37 }
 0x4e2   :  { %2385 = vmatpush1.msra.mxu0 %v7054_v31  ;;  %2456 = vmatpush1.msra.mxu1 %v7193_v15 }
 0x4e3   :  { %2386 = vmatprep.subr.mxu0 %v7058_v16  ;;  %2457 = vmatprep.subr.mxu1 %v7197_v6 }
 0x4e4   :  { %2387 = vmatpush1.msra.mxu0 %v7062_v21  ;;  %2458 = vmatpush1.msra.mxu1 %v7201_v38 }
 0x4e5   :  { %2388 = vmatprep.subr.mxu0 %v7066_v22  ;;  %2459 = vmatprep.subr.mxu1 %v7205_v24 }
 0x4e6   :  { %2389 = vmatpush1.msra.mxu0 %v7070_v28  ;;  %2460 = vmatpush1.msra.mxu1 %v7209_v50 }
 0x4e7   :  { %2390 = vmatprep.subr.mxu0 %v7074_v33  ;;  %2461 = vmatprep.subr.mxu1 %v7213_v57 }
 0x4e8   :  { %2391 = vmatpush1.msra.mxu0 %v7078_v17  ;;  %2462 = vmatpush1.msra.mxu1 %v7217_v0 }
 0x4e9   :  { %2392 = vmatprep.subr.mxu0 %v7082_v35  ;;  %2463 = vmatprep.subr.mxu1 %v7221_v40 }
 0x4ea   :  { %2393 = vmatpush1.msra.mxu0 %v7086_v23  ;;  %2464 = vmatpush1.msra.mxu1 %v7225_v51 }
 0x4eb   :  { %2394 = vmatprep.subr.mxu0 %v7090_v2  ;;  %2465 = vmatprep.subr.mxu1 %v7229_v1 }
 0x4ec   :  { %2395 = vmatpush1.msra.mxu0 %v7094_v41  ;;  %2466 = vmatpush1.msra.mxu1 %v7233_v25 }
 0x4ed   :  { %2396 = vmatprep.subr.mxu0 %v7098_v42  ;;  %2467 = vmatprep.subr.mxu1 %v7237_v60 }
 0x4ee   :  { %2397 = vmatpush1.msra.mxu0 %v7102_v43  ;;  %2468 = vmatpush1.msra.mxu1 %v7241_v58 }
 0x4ef   :  { %2398 = vmatprep.subr.mxu0 %v7106_v61  ;;  %2469 = vmatprep.subr.mxu1 %v7245_v18 }
 0x4f0   :  { %2399 = vmatpush1.msra.mxu0 %v7110_v53  ;;  %2470 = vmatpush1.msra.mxu1 %v7249_v34 }
 0x4f1   :  { %2400 = vmatprep.subr.mxu0 %v7114_v36  ;;  %2471 = vmatprep.subr.mxu1 %v7253_v39 }
 0x4f2   :  { %2401 = vmatpush1.msra.mxu0 %v7118_v48  ;;  %2472 = vmatpush1.msra.mxu1 %v7257_v20 }
 0x4f3   :  { %2402 = vmatprep.subr.mxu0 %v7122_v49  ;;  %2473 = vmatprep.subr.mxu1 %v7261_v5 }
 0x4f4   :  { %2403 = vmatpush1.msra.mxu0 %v7126_v52  ;;  %2474 = vmatpush1.msra.mxu1 %v7265_v59 }
 0x4f5   :  { %2404 = vmatprep.subr.mxu0 %v7130_v19  ;;  %2475 = vmatprep.subr.mxu1 %v7269_v14  ;;  %v9099_v14 = vld [vmem:[#allocation53_spill] sm:$0xff] }
 0x4f6   :  { %2405 = vmatpush1.msra.mxu0 %v7134_v56  ;;  %2476 = vmatpush1.msra.mxu1 %v7273_v45  ;;  %v9098_v56 = vld [vmem:[#allocation55_spill] sm:$0xff] }
 0x4f7   :  { %2406 = vmatprep.subr.mxu0 %v7138_v46  ;;  %2477 = vmatprep.subr.mxu1 %v7277_v9 }
 0x4f8   :  { %2407 = vmatpush1.msra.mxu0 %v7142_v12  ;;  %2478 = vmatpush1.msra.mxu1 %v7281_v63  ;;  %v7298_v63 = vld [vmem:[#allocation6] sm:$0xff]  ;;  %v9097_v12 = vld [vmem:[#allocation54_spill] sm:$0xff] }
 0x4f9   :  { %2408 = vmatprep.subr.mxu0 %v7146_v26  ;;  %2479 = vmatprep.subr.mxu1 %v7285_v10  ;;  %9094 = vst [vmem:[#allocation26_spill] sm:$0xff] %v7298_v63  ;;  %v7302_v10 = vld [vmem:[#allocation6 + $0x10] sm:$0xff] }
 0x4fa   :  { %2409 = vmatpush1.msra.mxu0 %v7150_v11  ;;  %2480 = vmatpush1.msra.mxu1 %v7289_v13  ;;  %9095 = vst [vmem:[#allocation37_spill] sm:$0xff] %v7302_v10  ;;  %v9096_v13 = vld [vmem:[#allocation52_spill] sm:$0xff] }
 0x4fb   :  { %2410 = vmatprep.subr.mxu0 %v7292_v29  ;;  %2481 = vmatprep.subr.mxu1 %v7295_v4 }
 0x4fc   :  { %2411 = vmatpush1.msra.mxu0 %v7298_v63  ;;  %2444 = vmatprep.mubr.f32.mxu0 %v9064_v47 }
 0x4fd   :  { %2482 = vmatpush1.msra.mxu1 %v7302_v10  ;;  %2515 = vmatprep.mubr.f32.mxu1 %v9064_v47 }
 0x4fe   :  { %2557 = vmatprep.subr.mxu0 %v9066_v54  ;;  %2628 = vmatprep.subr.mxu1 %v7161_v55 }
 0x59d   :  { %v2269_v29 = vpop.f32.mrf.mxu0  ;;  %v2340_v63 = vpop.f32.mrf.mxu1 }
 0x59e   :  { %v2345_v11 = vadd.f32 %v2269_v29, %v9096_v13  ;;  %v2347_v47 = vadd.f32 %v2340_v63, %v9099_v14  ;;  %v9105_v14 = vld [vmem:[#allocation33_spill] sm:$0xff]  ;;  %v9107_v63 = vld [vmem:[#allocation23_spill] sm:$0xff] }
 0x59f   :  { %v2271_v4 = vpop.f32.mrf.mxu0  ;;  %v2342_v45 = vpop.f32.mrf.mxu1 }
 0x5a0   :  { %v5429_v26 = vmul.f32 -1.442695, %v2345_v11  ;;  %v2346_v9 = vadd.f32 %v2271_v4, %v9097_v12  ;;  %v2348_v10 = vadd.f32 %v2342_v45, %v9098_v56  ;;  %v9106_v45 = vld [vmem:[#allocation29_spill] sm:$0xff] }
 0x5a2   :  { %5608 = vpow2.f32 %v5429_v26  ;;  %v5430_v46 = vmul.f32 -1.442695, %v2346_v9  ;;  %v5431_v19 = vmul.f32 -1.442695, %v2348_v10 }
 0x5a4   :  { %5610 = vpow2.f32 %v5430_v46 }
 0x5a5   :  { %5612 = vtanh.f32 %v2347_v47 }
 0x5a6   :  { %5614 = vpow2.f32 %v5431_v19  ;;  %v9101_v19 = vld [vmem:[#allocation32_spill] sm:$0xff] }
 0x5af   :  { %v5609_v54 = vpop.eup %5608 }
 0x5b0   :  { %v2352_v59 = vadd.f32 1.0, %v5609_v54 }
 0x5b1   :  { %v5611_v55 = vpop.eup %5610 }
 0x5b2   :  { %5616 = vrcp.f32 %v2352_v59  ;;  %v2358_v29 = vadd.f32 1.0, %v5611_v55  ;;  %v5613_v11 = vpop.eup %5612  ;;  %v9102_v55 = vld [vmem:[#allocation42_spill] sm:$0xff]  ;;  %v9104_v59 = vld [vmem:[#allocation40_spill] sm:$0xff] }
 0x5b3   :  { %v5615_v4 = vpop.eup %5614 }
 0x5b4   :  { %5618 = vrcp.f32 %v2358_v29  ;;  %v2365_v46 = vadd.f32 1.0, %v5615_v4  ;;  %v9108_v29 = vld [vmem:[#allocation19_spill] sm:$0xff]  ;;  %v9110_v4 = vld [vmem:[#allocation30_spill] sm:$0xff] }
 0x5b6   :  { %5620 = vrcp.f32 %v2365_v46  ;;  %v9114_v46 = vld [vmem:[#allocation25_spill] sm:$0xff] }
 0x5bf   :  { %v5617_v12 = vpop.eup %5616 }
 0x5c0   :  { %v2369_v26 = vmul.f32 %v5617_v12, %v5613_v11  ;;  %v9109_v11 = vld [vmem:[#allocation34_spill] sm:$0xff]  ;;  %v9111_v12 = vld [vmem:[#allocation24_spill] sm:$0xff] }
 0x5c1   :  { %v5619_v13 = vpop.eup %5618 }
 0x5c2   :  { %v2368_v9 = vmul.f32 %v5619_v13, %v7169_v3  ;;  %v9103_v3 = vld [vmem:[#allocation22_spill] sm:$0xff]  ;;  %v9113_v13 = vld [vmem:[#allocation35_spill] sm:$0xff] }
 0x5c3   :  { %v5621_v10 = vpop.eup %5620 }
 0x5c4   :  { %v7313_v56 = vadd.f32 %v2369_v26, %v2368_v9  ;;  %v9112_v26 = vld [vmem:[#allocation20_spill] sm:$0xff] }
 0x5c5   :  { %v9115_v9 = vld [vmem:[#allocation36_spill] sm:$0xff] }
 0x5c6   :  { %5622 = vtanh.f32 %v7313_v56 }
 0x5d3   :  { %v5623_v47 = vpop.eup %5622 }
 0x5d4   :  { %v7316_v54 = vmul.f32 %v5623_v47, %v5621_v10  ;;  %v9116_v10 = vld [vmem:[#allocation26_spill] sm:$0xff]  ;;  %v9117_v47 = vmov 0.0  }
 0x5d6   :  { %9100 = vst [vmem:[#allocation27_spill] sm:$0xff] %v7316_v54  ;;  %2445 = vmatmul.mubr.f32.vlgmr.msra.gmra.mxu0 %v7316_v54  ;;  %2516 = vmatmul.mubr.f32.vlgmr.msra.gmra.mxu1 %v7316_v54  ;;  %v9118_v54 = vld [vmem:[#allocation37_spill] sm:$0xff] }
 0x5d7   :  { %2558 = vmatpush1.msra.mxu0 %v7038_v44  ;;  %2629 = vmatpush1.msra.mxu1 %v7177_v8 }
 0x5d8   :  { %2559 = vmatprep.subr.mxu0 %v7042_v30  ;;  %2630 = vmatprep.subr.mxu1 %v7181_v62 }
 0x5d9   :  { %2560 = vmatpush1.msra.mxu0 %v7046_v27  ;;  %2631 = vmatpush1.msra.mxu1 %v7185_v32 }
 0x5da   :  { %2561 = vmatprep.subr.mxu0 %v7050_v7  ;;  %2632 = vmatprep.subr.mxu1 %v7189_v37 }
 0x5db   :  { %2562 = vmatpush1.msra.mxu0 %v7054_v31  ;;  %2633 = vmatpush1.msra.mxu1 %v7193_v15 }
 0x5dc   :  { %2563 = vmatprep.subr.mxu0 %v7058_v16  ;;  %2634 = vmatprep.subr.mxu1 %v7197_v6 }
 0x5dd   :  { %2564 = vmatpush1.msra.mxu0 %v7062_v21  ;;  %2635 = vmatpush1.msra.mxu1 %v7201_v38 }
 0x5de   :  { %2565 = vmatprep.subr.mxu0 %v7066_v22  ;;  %2636 = vmatprep.subr.mxu1 %v7205_v24 }
 0x5df   :  { %2566 = vmatpush1.msra.mxu0 %v7070_v28  ;;  %2637 = vmatpush1.msra.mxu1 %v7209_v50 }
 0x5e0   :  { %2567 = vmatprep.subr.mxu0 %v7074_v33  ;;  %2638 = vmatprep.subr.mxu1 %v7213_v57 }
 0x5e1   :  { %2568 = vmatpush1.msra.mxu0 %v7078_v17  ;;  %2639 = vmatpush1.msra.mxu1 %v7217_v0 }
 0x5e2   :  { %2569 = vmatprep.subr.mxu0 %v7082_v35  ;;  %2640 = vmatprep.subr.mxu1 %v7221_v40 }
 0x5e3   :  { %2570 = vmatpush1.msra.mxu0 %v7086_v23  ;;  %2641 = vmatpush1.msra.mxu1 %v7225_v51 }
 0x5e4   :  { %2571 = vmatprep.subr.mxu0 %v7090_v2  ;;  %2642 = vmatprep.subr.mxu1 %v7229_v1 }
 0x5e5   :  { %2572 = vmatpush1.msra.mxu0 %v7094_v41  ;;  %2643 = vmatpush1.msra.mxu1 %v7233_v25 }
 0x5e6   :  { %2573 = vmatprep.subr.mxu0 %v7098_v42  ;;  %2644 = vmatprep.subr.mxu1 %v7237_v60 }
 0x5e7   :  { %2574 = vmatpush1.msra.mxu0 %v7102_v43  ;;  %2645 = vmatpush1.msra.mxu1 %v7241_v58 }
 0x5e8   :  { %2575 = vmatprep.subr.mxu0 %v7106_v61  ;;  %2646 = vmatprep.subr.mxu1 %v7245_v18 }
 0x5e9   :  { %2576 = vmatpush1.msra.mxu0 %v7110_v53  ;;  %2647 = vmatpush1.msra.mxu1 %v7249_v34 }
 0x5ea   :  { %2577 = vmatprep.subr.mxu0 %v7114_v36  ;;  %2648 = vmatprep.subr.mxu1 %v7253_v39 }
 0x5eb   :  { %2578 = vmatpush1.msra.mxu0 %v7118_v48  ;;  %2649 = vmatpush1.msra.mxu1 %v7257_v20 }
 0x5ec   :  { %2579 = vmatprep.subr.mxu0 %v7122_v49  ;;  %2650 = vmatprep.subr.mxu1 %v7261_v5 }
 0x5ed   :  { %2580 = vmatpush1.msra.mxu0 %v7126_v52  ;;  %2651 = vmatpush1.msra.mxu1 %v9101_v19 }
 0x5ee   :  { %2581 = vmatprep.subr.mxu0 %v9102_v55  ;;  %2652 = vmatprep.subr.mxu1 %v9103_v3  ;;  %v9124_v3 = vld [vmem:[#allocation57_spill] sm:$0xff] }
 0x5ef   :  { %2582 = vmatpush1.msra.mxu0 %v9104_v59  ;;  %2653 = vmatpush1.msra.mxu1 %v9105_v14  ;;  %v9123_v59 = vld [vmem:[#allocation59_spill] sm:$0xff] }
 0x5f0   :  { %2583 = vmatprep.subr.mxu0 %v9106_v45  ;;  %2654 = vmatprep.subr.mxu1 %v9107_v63 }
 0x5f1   :  { %2584 = vmatpush1.msra.mxu0 %v9108_v29  ;;  %2655 = vmatpush1.msra.mxu1 %v9109_v11  ;;  %v9119_v11 = vld [vmem:[#allocation18_spill] sm:$0xff] }
 0x5f2   :  { %2585 = vmatprep.subr.mxu0 %v9110_v4  ;;  %2656 = vmatprep.subr.mxu1 %v9111_v12  ;;  %v9120_v4 = vld [vmem:[#allocation31_spill] sm:$0xff] }
 0x5f3   :  { %2586 = vmatpush1.msra.mxu0 %v9112_v26  ;;  %2657 = vmatpush1.msra.mxu1 %v9113_v13  ;;  %v9121_v26 = vld [vmem:[#allocation56_spill] sm:$0xff] }
 0x5f4   :  { %2587 = vmatprep.subr.mxu0 %v9114_v46  ;;  %2658 = vmatprep.subr.mxu1 %v9115_v9  ;;  %v9122_v46 = vld [vmem:[#allocation58_spill] sm:$0xff] }
 0x5f5   :  { %2588 = vmatpush1.msra.mxu0 %v9116_v10  ;;  %2621 = vmatprep.mubr.f32.mxu0 %v9117_v47 }
 0x5f6   :  { %2659 = vmatpush1.msra.mxu1 %v9118_v54  ;;  %2692 = vmatprep.mubr.f32.mxu1 %v9117_v47 }
 0x5f7   :  { %2734 = vmatprep.subr.mxu0 %v9119_v11  ;;  %2805 = vmatprep.subr.mxu1 %v9120_v4 }
 0x696   :  { %v2446_v12 = vpop.f32.mrf.mxu0  ;;  %v2517_v9 = vpop.f32.mrf.mxu1 }
 0x697   :  { %v2522_v29 = vadd.f32 %v2446_v12, %v9121_v26  ;;  %v2524_v47 = vadd.f32 %v2517_v9, %v9124_v3 }
 0x698   :  { %v2448_v13 = vpop.f32.mrf.mxu0  ;;  %v2519_v14 = vpop.f32.mrf.mxu1 }
 0x699   :  { %v5432_v63 = vmul.f32 -1.442695, %v2522_v29  ;;  %v2523_v45 = vadd.f32 %v2448_v13, %v9122_v46  ;;  %v2525_v54 = vadd.f32 %v2519_v14, %v9123_v59 }
 0x69b   :  { %5624 = vpow2.f32 %v5432_v63  ;;  %v5433_v10 = vmul.f32 -1.442695, %v2523_v45  ;;  %v5434_v55 = vmul.f32 -1.442695, %v2525_v54 }
 0x69d   :  { %5626 = vpow2.f32 %v5433_v10 }
 0x69e   :  { %5628 = vtanh.f32 %v2524_v47 }
 0x69f   :  { %5630 = vpow2.f32 %v5434_v55 }
 0x6a8   :  { %v5625_v11 = vpop.eup %5624 }
 0x6a9   :  { %v2529_v19 = vadd.f32 1.0, %v5625_v11  ;;  %v2968_v11 = vld [vmem:[#allocation9 + $0x1e0] sm:$0xff] }
 0x6aa   :  { %v5627_v4 = vpop.eup %5626 }
 0x6ab   :  { %5632 = vrcp.f32 %v2529_v19  ;;  %v2535_v12 = vadd.f32 1.0, %v5627_v4  ;;  %v5629_v29 = vpop.eup %5628  ;;  %v2970_v4 = vld [vmem:[#allocation9 + $0x1f0] sm:$0xff] }
 0x6ac   :  { %v5631_v26 = vpop.eup %5630 }
 0x6ad   :  { %5634 = vrcp.f32 %v2535_v12  ;;  %v2542_v46 = vadd.f32 1.0, %v5631_v26  ;;  %v2965_v12 = vld [vmem:[#allocation9 + $0x1c8] sm:$0xff]  ;;  %v2964_v26 = vld [vmem:[#allocation9 + $0x1c0] sm:$0xff] }
 0x6af   :  { %5636 = vrcp.f32 %v2542_v46  ;;  %v2960_v46 = vld [vmem:[#allocation9 + $0x1a0] sm:$0xff] }
 0x6b8   :  { %v5633_v63 = vpop.eup %5632 }
 0x6b9   :  { %v2546_v13 = vmul.f32 %v5633_v63, %v5629_v29  ;;  %v2967_v29 = vld [vmem:[#allocation9 + $0x1d8] sm:$0xff]  ;;  %v2966_v63 = vld [vmem:[#allocation9 + $0x1d0] sm:$0xff] }
 0x6ba   :  { %v5635_v45 = vpop.eup %5634 }
 0x6bb   :  { %v2545_v10 = vmul.f32 %v5635_v45, %v7313_v56  ;;  %v2963_v45 = vld [vmem:[#allocation9 + $0x1b8] sm:$0xff] }
 0x6bc   :  { %v5637_v54 = vpop.eup %5636 }
 0x6bd   :  { %v7391_v59 = vadd.f32 %v2546_v13, %v2545_v10  ;;  %v2961_v13 = vld [vmem:[#allocation9 + $0x1a8] sm:$0xff]  ;;  %v2962_v10 = vld [vmem:[#allocation9 + $0x1b0] sm:$0xff] }
 0x6bf   :  { %5638 = vtanh.f32 %v7391_v59 }
 0x6cc   :  { %v5639_v3 = vpop.eup %5638 }
 0x6cd   :  { %v7394_v14 = vmul.f32 %v5639_v3, %v5637_v54  ;;  %v2959_v54 = vld [vmem:[#allocation9 + $0x198] sm:$0xff]  ;;  %v2956_v3 = vld [vmem:[#allocation9 + $0x180] sm:$0xff] }
 0x6cf   :  { %2622 = vmatmul.mubr.f32.vlgmr.msra.gmra.mxu0 %v7394_v14  ;;  %2693 = vmatmul.mubr.f32.vlgmr.msra.gmra.mxu1 %v7394_v14 }
 0x6d0   :  { %2735 = vmatpush1.msra.mxu0 %v7038_v44  ;;  %2806 = vmatpush1.msra.mxu1 %v7177_v8  ;;  %v9125_v44 = vld [vmem:[#allocation32_spill] sm:$0xff] }
 0x6d1   :  { %2736 = vmatprep.subr.mxu0 %v7042_v30  ;;  %2807 = vmatprep.subr.mxu1 %v7181_v62  ;;  %v9126_v30 = vld [vmem:[#allocation42_spill] sm:$0xff] }
 0x6d2   :  { %2737 = vmatpush1.msra.mxu0 %v7046_v27  ;;  %2808 = vmatpush1.msra.mxu1 %v7185_v32  ;;  %v9127_v27 = vld [vmem:[#allocation22_spill] sm:$0xff] }
 0x6d3   :  { %2738 = vmatprep.subr.mxu0 %v7050_v7  ;;  %2809 = vmatprep.subr.mxu1 %v7189_v37  ;;  %v9128_v7 = vld [vmem:[#allocation40_spill] sm:$0xff]  ;;  %v9144_v32 = vld [vmem:[#allocation62_spill] sm:$0xff] }
 0x6d4   :  { %2739 = vmatpush1.msra.mxu0 %v7054_v31  ;;  %2810 = vmatpush1.msra.mxu1 %v7193_v15  ;;  %v9129_v31 = vld [vmem:[#allocation33_spill] sm:$0xff] }
 0x6d5   :  { %2740 = vmatprep.subr.mxu0 %v7058_v16  ;;  %2811 = vmatprep.subr.mxu1 %v7197_v6  ;;  %v9130_v16 = vld [vmem:[#allocation29_spill] sm:$0xff] }
 0x6d6   :  { %2741 = vmatpush1.msra.mxu0 %v7062_v21  ;;  %2812 = vmatpush1.msra.mxu1 %v7201_v38  ;;  %v9131_v21 = vld [vmem:[#allocation23_spill] sm:$0xff] }
 0x6d7   :  { %2742 = vmatprep.subr.mxu0 %v7066_v22  ;;  %2813 = vmatprep.subr.mxu1 %v7205_v24  ;;  %v9132_v22 = vld [vmem:[#allocation19_spill] sm:$0xff] }
 0x6d8   :  { %2743 = vmatpush1.msra.mxu0 %v7070_v28  ;;  %2814 = vmatpush1.msra.mxu1 %v7209_v50  ;;  %v9133_v28 = vld [vmem:[#allocation34_spill] sm:$0xff]  ;;  %v9145_v24 = vld [vmem:[#allocation63_spill] sm:$0xff] }
 0x6d9   :  { %2744 = vmatprep.subr.mxu0 %v7074_v33  ;;  %2815 = vmatprep.subr.mxu1 %v7213_v57  ;;  %v9134_v33 = vld [vmem:[#allocation30_spill] sm:$0xff]  ;;  %v9146_v57 = vld [vmem:[#allocation61_spill] sm:$0xff] }
 0x6da   :  { %2745 = vmatpush1.msra.mxu0 %v7078_v17  ;;  %2816 = vmatpush1.msra.mxu1 %v7217_v0  ;;  %v9135_v17 = vld [vmem:[#allocation24_spill] sm:$0xff] }
 0x6db   :  { %2746 = vmatprep.subr.mxu0 %v7082_v35  ;;  %2817 = vmatprep.subr.mxu1 %v7221_v40  ;;  %v9136_v35 = vld [vmem:[#allocation20_spill] sm:$0xff] }
 0x6dc   :  { %2747 = vmatpush1.msra.mxu0 %v7086_v23  ;;  %2818 = vmatpush1.msra.mxu1 %v7225_v51  ;;  %v9137_v23 = vld [vmem:[#allocation35_spill] sm:$0xff] }
 0x6dd   :  { %2748 = vmatprep.subr.mxu0 %v7090_v2  ;;  %2819 = vmatprep.subr.mxu1 %v7229_v1  ;;  %v9138_v2 = vld [vmem:[#allocation25_spill] sm:$0xff] }
 0x6de   :  { %2749 = vmatpush1.msra.mxu0 %v7094_v41  ;;  %2820 = vmatpush1.msra.mxu1 %v7233_v25  ;;  %v9139_v41 = vld [vmem:[#allocation36_spill] sm:$0xff] }
 0x6df   :  { %2750 = vmatprep.subr.mxu0 %v7098_v42  ;;  %2821 = vmatprep.subr.mxu1 %v7237_v60  ;;  %v9140_v42 = vld [vmem:[#allocation26_spill] sm:$0xff] }
 0x6e0   :  { %2751 = vmatpush1.msra.mxu0 %v7102_v43  ;;  %2822 = vmatpush1.msra.mxu1 %v7241_v58  ;;  %v9141_v43 = vld [vmem:[#allocation37_spill] sm:$0xff] }
 0x6e1   :  { %2752 = vmatprep.subr.mxu0 %v7106_v61  ;;  %2823 = vmatprep.subr.mxu1 %v7245_v18  ;;  %v9142_v61 = vmov 0.0  }
 0x6e2   :  { %2753 = vmatpush1.msra.mxu0 %v7110_v53  ;;  %2824 = vmatpush1.msra.mxu1 %v7249_v34  ;;  %v2969_v53 = vld [vmem:[#allocation9 + $0x1e8] sm:$0xff] }
 0x6e3   :  { %2754 = vmatprep.subr.mxu0 %v7114_v36  ;;  %2825 = vmatprep.subr.mxu1 %v7253_v39  ;;  %v2971_v36 = vld [vmem:[#allocation9 + $0x1f8] sm:$0xff] }
 0x6e4   :  { %2755 = vmatpush1.msra.mxu0 %v7118_v48  ;;  %2826 = vmatpush1.msra.mxu1 %v7257_v20 }
 0x6e5   :  { %2756 = vmatprep.subr.mxu0 %v7122_v49  ;;  %2827 = vmatprep.subr.mxu1 %v7261_v5  ;;  %v9143_v49 = vld [vmem:[#allocation60_spill] sm:$0xff] }
 0x6e6   :  { %2757 = vmatpush1.msra.mxu0 %v7126_v52  ;;  %2828 = vmatpush1.msra.mxu1 %v9125_v44  ;;  %v2958_v44 = vld [vmem:[#allocation9 + $0x190] sm:$0xff] }
 0x6e7   :  { %2758 = vmatprep.subr.mxu0 %v9126_v30  ;;  %2829 = vmatprep.subr.mxu1 %v9127_v27  ;;  %v2953_v30 = vld [vmem:[#allocation9 + $0x168] sm:$0xff]  ;;  %v2955_v27 = vld [vmem:[#allocation9 + $0x178] sm:$0xff] }
 0x6e8   :  { %2759 = vmatpush1.msra.mxu0 %v9128_v7  ;;  %2830 = vmatpush1.msra.mxu1 %v9129_v31  ;;  %v2952_v7 = vld [vmem:[#allocation9 + $0x160] sm:$0xff]  ;;  %v2954_v31 = vld [vmem:[#allocation9 + $0x170] sm:$0xff] }
 0x6e9   :  { %2760 = vmatprep.subr.mxu0 %v9130_v16  ;;  %2831 = vmatprep.subr.mxu1 %v9131_v21  ;;  %v2949_v16 = vld [vmem:[#allocation9 + $0x148] sm:$0xff]  ;;  %v2951_v21 = vld [vmem:[#allocation9 + $0x158] sm:$0xff] }
 0x6ea   :  { %2761 = vmatpush1.msra.mxu0 %v9132_v22  ;;  %2832 = vmatpush1.msra.mxu1 %v9133_v28  ;;  %v2948_v22 = vld [vmem:[#allocation9 + $0x140] sm:$0xff]  ;;  %v2950_v28 = vld [vmem:[#allocation9 + $0x150] sm:$0xff] }
 0x6eb   :  { %2762 = vmatprep.subr.mxu0 %v9134_v33  ;;  %2833 = vmatprep.subr.mxu1 %v9135_v17  ;;  %v2945_v33 = vld [vmem:[#allocation9 + $0x128] sm:$0xff]  ;;  %v2947_v17 = vld [vmem:[#allocation9 + $0x138] sm:$0xff] }
 0x6ec   :  { %2763 = vmatpush1.msra.mxu0 %v9136_v35  ;;  %2834 = vmatpush1.msra.mxu1 %v9137_v23  ;;  %v2944_v35 = vld [vmem:[#allocation9 + $0x120] sm:$0xff]  ;;  %v2946_v23 = vld [vmem:[#allocation9 + $0x130] sm:$0xff] }
 0x6ed   :  { %2764 = vmatprep.subr.mxu0 %v9138_v2  ;;  %2835 = vmatprep.subr.mxu1 %v9139_v41  ;;  %v2941_v2 = vld [vmem:[#allocation9 + $0x108] sm:$0xff]  ;;  %v2943_v41 = vld [vmem:[#allocation9 + $0x118] sm:$0xff] }
 0x6ee   :  { %2765 = vmatpush1.msra.mxu0 %v9140_v42  ;;  %2836 = vmatpush1.msra.mxu1 %v9141_v43  ;;  %v2940_v42 = vld [vmem:[#allocation9 + $0x100] sm:$0xff]  ;;  %v2942_v43 = vld [vmem:[#allocation9 + $0x110] sm:$0xff] }
 0x6ef   :  { %2798 = vmatprep.mubr.f32.mxu0 %v9142_v61  ;;  %2869 = vmatprep.mubr.f32.mxu1 %v9142_v61 }
 0x6f0   :  { %3066 = vmatprep.subr.mxu0 %v2969_v53  ;;  %3179 = vmatprep.subr.mxu1 %v2971_v36  ;;  %v2937_v53 = vld [vmem:[#allocation9 + $0xe8] sm:$0xff]  ;;  %v2939_v36 = vld [vmem:[#allocation9 + $0xf8] sm:$0xff] }
 0x78f   :  { %v2623_v48 = vpop.f32.mrf.mxu0  ;;  %v2694_v15 = vpop.f32.mrf.mxu1 }
 0x790   :  { %v2699_v52 = vadd.f32 %v2623_v48, %v9143_v49  ;;  %v2701_v0 = vadd.f32 %v2694_v15, %v9146_v57  ;;  %v2936_v48 = vld [vmem:[#allocation9 + $0xe0] sm:$0xff]  ;;  %v2938_v49 = vld [vmem:[#allocation9 + $0xf0] sm:$0xff]  ;;  %v2931_v15 = vld [vmem:[#allocation9 + $0xb8] sm:$0xff] }
 0x791   :  { %v2625_v8 = vpop.f32.mrf.mxu0  ;;  %v2696_v38 = vpop.f32.mrf.mxu1  ;;  %v2924_v57 = vld [vmem:[#allocation9 + $0x80] sm:$0xff] }
 0x792   :  { %v5435_v62 = vmul.f32 -1.442695, %v2699_v52  ;;  %v2700_v37 = vadd.f32 %v2625_v8, %v9144_v32  ;;  %v2702_v50 = vadd.f32 %v2696_v38, %v9145_v24  ;;  %v2933_v52 = vld [vmem:[#allocation9 + $0xc8] sm:$0xff]  ;;  %v2935_v8 = vld [vmem:[#allocation9 + $0xd8] sm:$0xff]  ;;  %v2934_v32 = vld [vmem:[#allocation9 + $0xd0] sm:$0xff] }
 0x793   :  { %v2930_v38 = vld [vmem:[#allocation9 + $0xb0] sm:$0xff]  ;;  %v2925_v24 = vld [vmem:[#allocation9 + $0x88] sm:$0xff] }
 0x794   :  { %5640 = vpow2.f32 %v5435_v62  ;;  %v5436_v6 = vmul.f32 -1.442695, %v2700_v37  ;;  %v5437_v40 = vmul.f32 -1.442695, %v2702_v50  ;;  %v2932_v62 = vld [vmem:[#allocation9 + $0xc0] sm:$0xff]  ;;  %v2929_v37 = vld [vmem:[#allocation9 + $0xa8] sm:$0xff] }
 0x795   :  { %v2927_v50 = vld [vmem:[#allocation9 + $0x98] sm:$0xff] }
 0x796   :  { %5642 = vpow2.f32 %v5436_v6  ;;  %v2928_v6 = vld [vmem:[#allocation9 + $0xa0] sm:$0xff] }
 0x797   :  { %5644 = vtanh.f32 %v2701_v0  ;;  %v2926_v0 = vld [vmem:[#allocation9 + $0x90] sm:$0xff] }
 0x798   :  { %5646 = vpow2.f32 %v5437_v40  ;;  %v2921_v40 = vld [vmem:[#allocation9 + $0x68] sm:$0xff] }
 0x7a1   :  { %v5641_v51 = vpop.eup %5640 }
 0x7a2   :  { %v2706_v1 = vadd.f32 1.0, %v5641_v51  ;;  %v2923_v51 = vld [vmem:[#allocation9 + $0x78] sm:$0xff] }
 0x7a3   :  { %v5643_v25 = vpop.eup %5642 }
 0x7a4   :  { %5648 = vrcp.f32 %v2706_v1  ;;  %v2712_v60 = vadd.f32 1.0, %v5643_v25  ;;  %v5645_v58 = vpop.eup %5644  ;;  %v2920_v1 = vld [vmem:[#allocation9 + $0x60] sm:$0xff]  ;;  %v2922_v25 = vld [vmem:[#allocation9 + $0x70] sm:$0xff] }
 0x7a5   :  { %v5647_v18 = vpop.eup %5646 }
 0x7a6   :  { %5650 = vrcp.f32 %v2712_v60  ;;  %v2719_v5 = vadd.f32 1.0, %v5647_v18  ;;  %v2917_v60 = vld [vmem:[#allocation9 + $0x48] sm:$0xff]  ;;  %v2916_v18 = vld [vmem:[#allocation9 + $0x40] sm:$0xff] }
 0x7a8   :  { %5652 = vrcp.f32 %v2719_v5  ;;  %v2912_v5 = vld [vmem:[#allocation9 + $0x20] sm:$0xff] }
 0x7b1   :  { %v5649_v34 = vpop.eup %5648 }
 0x7b2   :  { %v2723_v39 = vmul.f32 %v5649_v34, %v5645_v58  ;;  %v2919_v58 = vld [vmem:[#allocation9 + $0x58] sm:$0xff]  ;;  %v2918_v34 = vld [vmem:[#allocation9 + $0x50] sm:$0xff] }
 0x7b3   :  { %v5651_v20 = vpop.eup %5650 }
 0x7b4   :  { %v2722_v56 = vmul.f32 %v5651_v20, %v7391_v59  ;;  %v2957_v59 = vld [vmem:[#allocation9 + $0x188] sm:$0xff]  ;;  %v2915_v20 = vld [vmem:[#allocation9 + $0x38] sm:$0xff] }
 0x7b5   :  { %v5653_v55 = vpop.eup %5652 }
 0x7b6   :  { %v7467_v19 = vadd.f32 %v2723_v39, %v2722_v56  ;;  %v2913_v39 = vld [vmem:[#allocation9 + $0x28] sm:$0xff]  ;;  %v2914_v56 = vld [vmem:[#allocation9 + $0x30] sm:$0xff] }
 0x7b8   :  { %5654 = vtanh.f32 %v7467_v19 }
 0x7c5   :  { %v5655_v9 = vpop.eup %5654 }
 0x7c6   :  { %v7470_v47 = vmul.f32 %v5655_v9, %v5653_v55  ;;  %v2909_v55 = vld [vmem:[#allocation9 + $0x8] sm:$0xff]  ;;  %v2911_v9 = vld [vmem:[#allocation9 + $0x18] sm:$0xff] }
 0x7c8   :  { %2799 = vmatmul.mubr.f32.vlgmr.msra.gmra.mxu0 %v7470_v47  ;;  %2870 = vmatmul.mubr.f32.vlgmr.msra.gmra.mxu1 %v7470_v47 }
 0x7c9   :  { %3067 = vmatpush1.msra.mxu0 %v2968_v11  ;;  %3180 = vmatpush1.msra.mxu1 %v2970_v4  ;;  %v2908_v11 = vld [vmem:[#allocation9] sm:$0xff]  ;;  %v2910_v4 = vld [vmem:[#allocation9 + $0x10] sm:$0xff] }
 0x7ca   :  { %3068 = vmatprep.subr.mxu0 %v2965_v12  ;;  %3181 = vmatprep.subr.mxu1 %v2967_v29  ;;  %v9147_v12 = vld [vmem:[#allocation67_spill] sm:$0xff] }
 0x7cb   :  { %3069 = vmatpush1.msra.mxu0 %v2964_v26  ;;  %3182 = vmatpush1.msra.mxu1 %v2966_v63  ;;  %v9148_v29 = vld [vmem:[#allocation39_spill] sm:$0xff]  ;;  %v9149_v26 = vld [vmem:[#allocation41_spill] sm:$0xff] }
 0x7cc   :  { %3070 = vmatprep.subr.mxu0 %v2961_v13  ;;  %3183 = vmatprep.subr.mxu1 %v2963_v45  ;;  %v9150_v63 = vld [vmem:[#allocation21_spill] sm:$0xff]  ;;  %v9151_v13 = vld [vmem:[#allocation27_spill] sm:$0xff] }
 0x7cd   :  { %3071 = vmatpush1.msra.mxu0 %v2960_v46  ;;  %3184 = vmatpush1.msra.mxu1 %v2962_v10  ;;  %v7504_v45 = vld [vmem:[#allocation11 + $0x1e8] sm:$0xff]  ;;  %v7506_v46 = vld [vmem:[#allocation11 + $0x1e0] sm:$0xff]  ;;  %v7508_v10 = vld [vmem:[#allocation11 + $0x1f8] sm:$0xff] }
 0x7ce   :  { %3072 = vmatprep.subr.mxu0 %v2957_v59  ;;  %3185 = vmatprep.subr.mxu1 %v2959_v54  ;;  %9152 = vst [vmem:[#allocation38_spill] sm:$0xff] %v7504_v45  ;;  %9153 = vst [vmem:[#allocation28_spill] sm:$0xff] %v7508_v10  ;;  %v7514_v59 = vld [vmem:[#allocation11 + $0x1f0] sm:$0xff]  ;;  %v7520_v54 = vld [vmem:[#allocation11 + $0x1d8] sm:$0xff] }
 0x7cf   :  { %3073 = vmatpush1.msra.mxu0 %v2956_v3  ;;  %3186 = vmatpush1.msra.mxu1 %v2958_v44  ;;  %v7522_v3 = vld [vmem:[#allocation11 + $0x1a8] sm:$0xff]  ;;  %v7526_v44 = vld [vmem:[#allocation11 + $0x1d0] sm:$0xff] }
 0x7d0   :  { %3074 = vmatprep.subr.mxu0 %v2953_v30  ;;  %3187 = vmatprep.subr.mxu1 %v2955_v27  ;;  %v7528_v30 = vld [vmem:[#allocation11 + $0x1a0] sm:$0xff]  ;;  %v7530_v27 = vld [vmem:[#allocation11 + $0x1b8] sm:$0xff] }
 0x7d1   :  { %3075 = vmatpush1.msra.mxu0 %v2952_v7  ;;  %3188 = vmatpush1.msra.mxu1 %v2954_v31  ;;  %v7534_v7 = vld [vmem:[#allocation11 + $0x188] sm:$0xff]  ;;  %v7536_v31 = vld [vmem:[#allocation11 + $0x1b0] sm:$0xff] }
 0x7d2   :  { %3076 = vmatprep.subr.mxu0 %v2949_v16  ;;  %3189 = vmatprep.subr.mxu1 %v2951_v21  ;;  %v7540_v16 = vld [vmem:[#allocation11 + $0x180] sm:$0xff]  ;;  %v7542_v21 = vld [vmem:[#allocation11 + $0x198] sm:$0xff] }
 0x7d3   :  { %3077 = vmatpush1.msra.mxu0 %v2948_v22  ;;  %3190 = vmatpush1.msra.mxu1 %v2950_v28  ;;  %v7544_v22 = vld [vmem:[#allocation11 + $0x190] sm:$0xff]  ;;  %v7548_v28 = vld [vmem:[#allocation11 + $0x168] sm:$0xff] }
 0x7d4   :  { %3078 = vmatprep.subr.mxu0 %v2945_v33  ;;  %3191 = vmatprep.subr.mxu1 %v2947_v17  ;;  %v7550_v33 = vld [vmem:[#allocation11 + $0x178] sm:$0xff]  ;;  %v7554_v17 = vld [vmem:[#allocation11 + $0x160] sm:$0xff] }
 0x7d5   :  { %3079 = vmatpush1.msra.mxu0 %v2944_v35  ;;  %3192 = vmatpush1.msra.mxu1 %v2946_v23  ;;  %v7556_v35 = vld [vmem:[#allocation11 + $0x170] sm:$0xff]  ;;  %v7560_v23 = vld [vmem:[#allocation11 + $0x148] sm:$0xff] }
 0x7d6   :  { %3080 = vmatprep.subr.mxu0 %v2941_v2  ;;  %3193 = vmatprep.subr.mxu1 %v2943_v41  ;;  %v7562_v2 = vld [vmem:[#allocation11 + $0x158] sm:$0xff]  ;;  %v7566_v41 = vld [vmem:[#allocation11 + $0x140] sm:$0xff] }
 0x7d7   :  { %3081 = vmatpush1.msra.mxu0 %v2940_v42  ;;  %3194 = vmatpush1.msra.mxu1 %v2942_v43  ;;  %v7568_v42 = vld [vmem:[#allocation11 + $0x150] sm:$0xff]  ;;  %v7572_v43 = vld [vmem:[#allocation11 + $0x128] sm:$0xff] }
 0x7d8   :  { %3082 = vmatprep.subr.mxu0 %v2937_v53  ;;  %3195 = vmatprep.subr.mxu1 %v2939_v36  ;;  %v7574_v53 = vld [vmem:[#allocation11 + $0x138] sm:$0xff]  ;;  %v7578_v36 = vld [vmem:[#allocation11 + $0x120] sm:$0xff] }
 0x7d9   :  { %3083 = vmatpush1.msra.mxu0 %v2936_v48  ;;  %3196 = vmatpush1.msra.mxu1 %v2938_v49  ;;  %v7580_v48 = vld [vmem:[#allocation11 + $0x130] sm:$0xff]  ;;  %v7584_v49 = vld [vmem:[#allocation11 + $0x108] sm:$0xff] }
 0x7da   :  { %3084 = vmatprep.subr.mxu0 %v2933_v52  ;;  %3197 = vmatprep.subr.mxu1 %v2935_v8  ;;  %v7586_v52 = vld [vmem:[#allocation11 + $0x118] sm:$0xff]  ;;  %v7590_v8 = vld [vmem:[#allocation11 + $0x100] sm:$0xff] }
 0x7db   :  { %3085 = vmatpush1.msra.mxu0 %v2932_v62  ;;  %3198 = vmatpush1.msra.mxu1 %v2934_v32  ;;  %v7592_v62 = vld [vmem:[#allocation11 + $0x110] sm:$0xff]  ;;  %v7596_v32 = vld [vmem:[#allocation11 + $0xe8] sm:$0xff] }
 0x7dc   :  { %3086 = vmatprep.subr.mxu0 %v2929_v37  ;;  %3199 = vmatprep.subr.mxu1 %v2931_v15  ;;  %v7598_v37 = vld [vmem:[#allocation11 + $0xf8] sm:$0xff]  ;;  %v7602_v15 = vld [vmem:[#allocation11 + $0xe0] sm:$0xff] }
 0x7dd   :  { %3087 = vmatpush1.msra.mxu0 %v2928_v6  ;;  %3200 = vmatpush1.msra.mxu1 %v2930_v38  ;;  %v7604_v6 = vld [vmem:[#allocation11 + $0xf0] sm:$0xff]  ;;  %v7608_v38 = vld [vmem:[#allocation11 + $0xc8] sm:$0xff] }
 0x7de   :  { %3088 = vmatprep.subr.mxu0 %v2925_v24  ;;  %3201 = vmatprep.subr.mxu1 %v2927_v50  ;;  %v7610_v24 = vld [vmem:[#allocation11 + $0xd8] sm:$0xff]  ;;  %v7614_v50 = vld [vmem:[#allocation11 + $0xc0] sm:$0xff] }
 0x7df   :  { %3089 = vmatpush1.msra.mxu0 %v2924_v57  ;;  %3202 = vmatpush1.msra.mxu1 %v2926_v0  ;;  %v7616_v57 = vld [vmem:[#allocation11 + $0xd0] sm:$0xff]  ;;  %v7620_v0 = vld [vmem:[#allocation11 + $0xa8] sm:$0xff] }
 0x7e0   :  { %3090 = vmatprep.subr.mxu0 %v2921_v40  ;;  %3203 = vmatprep.subr.mxu1 %v2923_v51  ;;  %v7622_v40 = vld [vmem:[#allocation11 + $0xb8] sm:$0xff]  ;;  %v7626_v51 = vld [vmem:[#allocation11 + $0xa0] sm:$0xff] }
 0x7e1   :  { %3091 = vmatpush1.msra.mxu0 %v2920_v1  ;;  %3204 = vmatpush1.msra.mxu1 %v2922_v25  ;;  %v7628_v1 = vld [vmem:[#allocation11 + $0xb0] sm:$0xff]  ;;  %v7632_v25 = vld [vmem:[#allocation11 + $0x88] sm:$0xff] }
 0x7e2   :  { %3092 = vmatprep.subr.mxu0 %v2917_v60  ;;  %3205 = vmatprep.subr.mxu1 %v2919_v58  ;;  %9154 = vst [vmem:[#allocation44_spill] sm:$0xff] %v7628_v1  ;;  %9155 = vst [vmem:[#allocation46_spill] sm:$0xff] %v7632_v25  ;;  %v7634_v60 = vld [vmem:[#allocation11 + $0x98] sm:$0xff]  ;;  %v7638_v58 = vld [vmem:[#allocation11 + $0x80] sm:$0xff] }
 0x7e3   :  { %3093 = vmatpush1.msra.mxu0 %v2916_v18  ;;  %3206 = vmatpush1.msra.mxu1 %v2918_v34  ;;  %9156 = vst [vmem:[#allocation47_spill] sm:$0xff] %v7634_v60  ;;  %9157 = vst [vmem:[#allocation45_spill] sm:$0xff] %v7638_v58  ;;  %v7640_v18 = vld [vmem:[#allocation11 + $0x90] sm:$0xff]  ;;  %v7644_v34 = vld [vmem:[#allocation11 + $0x68] sm:$0xff] }
 0x7e4   :  { %3094 = vmatprep.subr.mxu0 %v2913_v39  ;;  %3207 = vmatprep.subr.mxu1 %v2915_v20  ;;  %9158 = vst [vmem:[#allocation48_spill] sm:$0xff] %v7640_v18  ;;  %9159 = vst [vmem:[#allocation50_spill] sm:$0xff] %v7644_v34  ;;  %v7646_v39 = vld [vmem:[#allocation11 + $0x78] sm:$0xff]  ;;  %v7650_v20 = vld [vmem:[#allocation11 + $0x60] sm:$0xff] }
 0x7e5   :  { %3095 = vmatpush1.msra.mxu0 %v2912_v5  ;;  %3208 = vmatpush1.msra.mxu1 %v2914_v56  ;;  %9160 = vst [vmem:[#allocation51_spill] sm:$0xff] %v7646_v39  ;;  %9161 = vst [vmem:[#allocation49_spill] sm:$0xff] %v7650_v20  ;;  %v7652_v5 = vld [vmem:[#allocation11 + $0x70] sm:$0xff]  ;;  %v7656_v56 = vld [vmem:[#allocation11 + $0x48] sm:$0xff] }
 0x7e6   :  { %3096 = vmatprep.subr.mxu0 %v2909_v55  ;;  %3209 = vmatprep.subr.mxu1 %v2911_v9  ;;  %9162 = vst [vmem:[#allocation52_spill] sm:$0xff] %v7652_v5  ;;  %9163 = vst [vmem:[#allocation54_spill] sm:$0xff] %v7656_v56  ;;  %v7658_v55 = vld [vmem:[#allocation11 + $0x58] sm:$0xff]  ;;  %v7662_v9 = vld [vmem:[#allocation11 + $0x40] sm:$0xff] }
 0x7e7   :  { %3097 = vmatpush1.msra.mxu0 %v2908_v11  ;;  %3130 = vmatprep.mubr.f32.mxu0 %v9142_v61  ;;  %9164 = vst [vmem:[#allocation55_spill] sm:$0xff] %v7658_v55  ;;  %9165 = vst [vmem:[#allocation53_spill] sm:$0xff] %v7662_v9  ;;  %v7664_v11 = vld [vmem:[#allocation11 + $0x50] sm:$0xff] }
 0x7e8   :  { %3210 = vmatpush1.msra.mxu1 %v2910_v4  ;;  %3243 = vmatprep.mubr.f32.mxu1 %v9142_v61  ;;  %9166 = vst [vmem:[#allocation18_spill] sm:$0xff] %v7664_v11  ;;  %v7668_v4 = vld [vmem:[#allocation11 + $0x28] sm:$0xff] }
 0x7e9   :  { %3131 = vmatmul.mubr.f32.vlgmr.msra.gmra.mxu0 %v9147_v12  ;;  %3244 = vmatmul.mubr.f32.vlgmr.msra.gmra.mxu1 %v9147_v12  ;;  %9167 = vst [vmem:[#allocation31_spill] sm:$0xff] %v7668_v4  ;;  %v7670_v12 = vld [vmem:[#allocation11 + $0x38] sm:$0xff] }
 0x7ea   :  { %3136 = vmatprep.mubr.f32.mxu0 %v9142_v61  ;;  %3249 = vmatprep.mubr.f32.mxu1 %v9142_v61  ;;  %9168 = vst [vmem:[#allocation56_spill] sm:$0xff] %v7670_v12 }
 0x7eb   :  { %3332 = vmatprep.subr.mxu0 %v7504_v45  ;;  %3403 = vmatprep.subr.mxu1 %v7508_v10 }
 0x7ec   :  { %3333 = vmatpush1.msra.mxu0 %v7506_v46  ;;  %3404 = vmatpush1.msra.mxu1 %v7514_v59 }
 0x7ed   :  { %3137 = vmatmul.mubr.f32.gmra.mxu0 %v9148_v29  ;;  %3250 = vmatmul.mubr.f32.gmra.mxu1 %v9148_v29  ;;  %v7674_v29 = vld [vmem:[#allocation11 + $0x20] sm:$0xff] }
 0x7ee   :  { %3142 = vmatprep.mubr.f32.mxu0 %v9142_v61  ;;  %3255 = vmatprep.mubr.f32.mxu1 %v9142_v61  ;;  %9169 = vst [vmem:[#allocation58_spill] sm:$0xff] %v7674_v29 }
 0x7ef   :  { %3405 = vmatprep.subr.mxu1 %v7520_v54 }
 0x7f0   :  { %3406 = vmatpush1.msra.mxu1 %v7526_v44 }
 0x7f1   :  { %3143 = vmatmul.mubr.f32.gmra.mxu0 %v9149_v26  ;;  %3256 = vmatmul.mubr.f32.gmra.mxu1 %v9149_v26  ;;  %v7676_v26 = vld [vmem:[#allocation11 + $0x30] sm:$0xff] }
 0x7f2   :  { %3148 = vmatprep.mubr.f32.mxu0 %v9142_v61  ;;  %3261 = vmatprep.mubr.f32.mxu1 %v9142_v61  ;;  %9170 = vst [vmem:[#allocation59_spill] sm:$0xff] %v7676_v26 }
 0x7f3   :  { %3407 = vmatprep.subr.mxu1 %v7530_v27 }
 0x7f4   :  { %3408 = vmatpush1.msra.mxu1 %v7536_v31 }
 0x7f5   :  { %3149 = vmatmul.mubr.f32.gmra.mxu0 %v9150_v63  ;;  %3262 = vmatmul.mubr.f32.gmra.mxu1 %v9150_v63  ;;  %v7680_v63 = vld [vmem:[#allocation11 + $0x8] sm:$0xff] }
 0x7f6   :  { %3154 = vmatprep.mubr.f32.mxu0 %v9142_v61  ;;  %3267 = vmatprep.mubr.f32.mxu1 %v9142_v61  ;;  %9171 = vst [vmem:[#allocation57_spill] sm:$0xff] %v7680_v63 }
 0x7f7   :  { %3409 = vmatprep.subr.mxu1 %v7542_v21 }
 0x7f8   :  { %3410 = vmatpush1.msra.mxu1 %v7544_v22 }
 0x7f9   :  { %3155 = vmatmul.mubr.f32.gmra.mxu0 %v9151_v13  ;;  %3268 = vmatmul.mubr.f32.gmra.mxu1 %v9151_v13  ;;  %v7682_v13 = vld [vmem:[#allocation11 + $0x18] sm:$0xff] }
 0x7fa   :  { %3160 = vmatprep.mubr.f32.mxu0 %v9142_v61  ;;  %3273 = vmatprep.mubr.f32.mxu1 %v9142_v61  ;;  %9172 = vst [vmem:[#allocation32_spill] sm:$0xff] %v7682_v13 }
 0x7fb   :  { %3411 = vmatprep.subr.mxu1 %v7550_v33 }
 0x7fc   :  { %3412 = vmatpush1.msra.mxu1 %v7556_v35 }
 0x7fd   :  { %3161 = vmatmul.mubr.f32.gmra.mxu0 %v7394_v14  ;;  %3274 = vmatmul.mubr.f32.gmra.mxu1 %v7394_v14  ;;  %v7512_v14 = vld [vmem:[#allocation11 + $0x1c8] sm:$0xff] }
 0x7fe   :  { %3166 = vmatprep.mubr.f32.mxu0 %v9142_v61  ;;  %3279 = vmatprep.mubr.f32.mxu1 %v9142_v61 }
 0x7ff   :  { %3334 = vmatprep.subr.mxu0 %v7512_v14  ;;  %3413 = vmatprep.subr.mxu1 %v7562_v2 }
 0x800   :  { %3414 = vmatpush1.msra.mxu1 %v7568_v42 }
 0x801   :  { %3167 = vmatmul.mubr.f32.gmra.mxu0 %v7470_v47  ;;  %3280 = vmatmul.mubr.f32.gmra.mxu1 %v7470_v47  ;;  %v7518_v47 = vld [vmem:[#allocation11 + $0x1c0] sm:$0xff] }
 0x802   :  { %3172 = vmatprep.mubr.f32.mxu0 %v9142_v61  ;;  %3285 = vmatprep.mubr.f32.mxu1 %v9142_v61 }
 0x803   :  { %3335 = vmatpush1.msra.mxu0 %v7518_v47  ;;  %3415 = vmatprep.subr.mxu1 %v7574_v53 }
 0x804   :  { %3336 = vmatprep.subr.mxu0 %v7522_v3  ;;  %3416 = vmatpush1.msra.mxu1 %v7580_v48 }
 0x805   :  { %3337 = vmatpush1.msra.mxu0 %v7528_v30  ;;  %3417 = vmatprep.subr.mxu1 %v7586_v52 }
 0x806   :  { %3338 = vmatprep.subr.mxu0 %v7534_v7  ;;  %3418 = vmatpush1.msra.mxu1 %v7592_v62 }
 0x807   :  { %3339 = vmatpush1.msra.mxu0 %v7540_v16  ;;  %3419 = vmatprep.subr.mxu1 %v7598_v37 }
 0x808   :  { %3340 = vmatprep.subr.mxu0 %v7548_v28  ;;  %3420 = vmatpush1.msra.mxu1 %v7604_v6 }
 0x809   :  { %3341 = vmatpush1.msra.mxu0 %v7554_v17  ;;  %3421 = vmatprep.subr.mxu1 %v7610_v24 }
 0x80a   :  { %3342 = vmatprep.subr.mxu0 %v7560_v23  ;;  %3422 = vmatpush1.msra.mxu1 %v7616_v57 }
 0x80b   :  { %3343 = vmatpush1.msra.mxu0 %v7566_v41  ;;  %3423 = vmatprep.subr.mxu1 %v7622_v40 }
 0x80c   :  { %3344 = vmatprep.subr.mxu0 %v7572_v43  ;;  %3424 = vmatpush1.msra.mxu1 %v7628_v1 }
 0x80d   :  { %3345 = vmatpush1.msra.mxu0 %v7578_v36  ;;  %3425 = vmatprep.subr.mxu1 %v7634_v60 }
 0x80e   :  { %3346 = vmatprep.subr.mxu0 %v7584_v49  ;;  %3426 = vmatpush1.msra.mxu1 %v7640_v18  ;;  %v9179_v18 = vld [vmem:[#allocation65_spill] sm:$0xff] }
 0x80f   :  { %3347 = vmatpush1.msra.mxu0 %v7590_v8  ;;  %3427 = vmatprep.subr.mxu1 %v7646_v39 }
 0x810   :  { %3348 = vmatprep.subr.mxu0 %v7596_v32  ;;  %3428 = vmatpush1.msra.mxu1 %v7652_v5  ;;  %v7686_v5 = vld [vmem:[#allocation11] sm:$0xff] }
 0x811   :  { %3349 = vmatpush1.msra.mxu0 %v7602_v15  ;;  %3429 = vmatprep.subr.mxu1 %v7658_v55  ;;  %9173 = vst [vmem:[#allocation42_spill] sm:$0xff] %v7686_v5  ;;  %v9177_v55 = vld [vmem:[#allocation64_spill] sm:$0xff] }
 0x812   :  { %3350 = vmatprep.subr.mxu0 %v7608_v38  ;;  %3430 = vmatpush1.msra.mxu1 %v7664_v11  ;;  %v9176_v11 = vld [vmem:[#allocation68_spill] sm:$0xff] }
 0x813   :  { %3351 = vmatpush1.msra.mxu0 %v7614_v50  ;;  %3431 = vmatprep.subr.mxu1 %v7670_v12 }
 0x814   :  { %3352 = vmatprep.subr.mxu0 %v7620_v0  ;;  %3432 = vmatpush1.msra.mxu1 %v7676_v26 }
 0x815   :  { %3353 = vmatpush1.msra.mxu0 %v7626_v51  ;;  %3433 = vmatprep.subr.mxu1 %v7682_v13 }
 0x816   :  { %3354 = vmatprep.subr.mxu0 %v7632_v25 }
 0x817   :  { %3355 = vmatpush1.msra.mxu0 %v7638_v58 }
 0x818   :  { %3356 = vmatprep.subr.mxu0 %v7644_v34  ;;  %v9178_v34 = vld [vmem:[#allocation66_spill] sm:$0xff] }
 0x819   :  { %3357 = vmatpush1.msra.mxu0 %v7650_v20 }
 0x81a   :  { %3358 = vmatprep.subr.mxu0 %v7656_v56  ;;  %v7688_v56 = vld [vmem:[#allocation11 + $0x10] sm:$0xff] }
 0x81b   :  { %3359 = vmatpush1.msra.mxu0 %v7662_v9  ;;  %9174 = vst [vmem:[#allocation22_spill] sm:$0xff] %v7688_v56  ;;  %3434 = vmatpush1.msra.mxu1 %v7688_v56 }
 0x81c   :  { %3360 = vmatprep.subr.mxu0 %v7668_v4  ;;  %3578 = vmatprep.subr.mxu1 %v7508_v10  ;;  %v9175_v4 = vld [vmem:[#allocation43_spill] sm:$0xff] }
 0x81d   :  { %3361 = vmatpush1.msra.mxu0 %v7674_v29  ;;  %v1342_v9 = vadd.f32 %v9176_v11, %v9175_v4 }
 0x81e   :  { %3362 = vmatprep.subr.mxu0 %v7680_v63 }
 0x81f   :  { %3363 = vmatpush1.msra.mxu0 %v7686_v5 }
 0x820   :  { %3507 = vmatprep.subr.mxu0 %v7504_v45 }
 0x888   :  { %v2800_v12 = vpop.f32.mrf.mxu0  ;;  %v2871_v63 = vpop.f32.mrf.mxu1 }
 0x889   :  { %v2876_v29 = vadd.f32 %v2800_v12, %v9177_v55  ;;  %v2878_v45 = vadd.f32 %v2871_v63, %v9179_v18  ;;  %v9187_v63 = vld [vmem:[#allocation52_spill] sm:$0xff] }
 0x88a   :  { %v2802_v20 = vpop.f32.mrf.mxu0  ;;  %v2873_v5 = vpop.f32.mrf.mxu1 }
 0x88b   :  { %v5438_v26 = vmul.f32 -1.442695, %v2876_v29  ;;  %v2877_v39 = vadd.f32 %v2802_v20, %v1342_v9  ;;  %v2879_v56 = vadd.f32 %v2873_v5, %v9178_v34 }
 0x88d   :  { %5656 = vpow2.f32 %v5438_v26  ;;  %v5439_v13 = vmul.f32 -1.442695, %v2877_v39  ;;  %v5440_v58 = vmul.f32 -1.442695, %v2879_v56  ;;  %v9185_v56 = vld [vmem:[#allocation51_spill] sm:$0xff]  ;;  %v9186_v26 = vld [vmem:[#allocation49_spill] sm:$0xff] }
 0x88f   :  { %5658 = vpow2.f32 %v5439_v13  ;;  %v9188_v13 = vld [vmem:[#allocation54_spill] sm:$0xff] }
 0x890   :  { %5660 = vtanh.f32 %v2878_v45  ;;  %v9181_v45 = vld [vmem:[#allocation47_spill] sm:$0xff] }
 0x891   :  { %5662 = vpow2.f32 %v5440_v58  ;;  %v9184_v58 = vld [vmem:[#allocation50_spill] sm:$0xff] }
 0x89a   :  { %v5657_v10 = vpop.eup %5656 }
 0x89b   :  { %v2883_v60 = vadd.f32 1.0, %v5657_v10 }
 0x89c   :  { %v5659_v25 = vpop.eup %5658 }
 0x89d   :  { %5664 = vrcp.f32 %v2883_v60  ;;  %v2889_v55 = vadd.f32 1.0, %v5659_v25  ;;  %v5661_v11 = vpop.eup %5660  ;;  %v9182_v25 = vld [vmem:[#allocation45_spill] sm:$0xff]  ;;  %v9183_v60 = vld [vmem:[#allocation48_spill] sm:$0xff] }
 0x89e   :  { %v5663_v20 = vpop.eup %5662 }
 0x89f   :  { %5666 = vrcp.f32 %v2889_v55  ;;  %v2896_v12 = vadd.f32 1.0, %v5663_v20  ;;  %v9189_v55 = vld [vmem:[#allocation55_spill] sm:$0xff]  ;;  %v9191_v20 = vld [vmem:[#allocation18_spill] sm:$0xff] }
 0x8a1   :  { %5668 = vrcp.f32 %v2896_v12  ;;  %v9195_v12 = vld [vmem:[#allocation59_spill] sm:$0xff] }
 0x8aa   :  { %v5665_v9 = vpop.eup %5664 }
 0x8ab   :  { %v2900_v4 = vmul.f32 %v5665_v9, %v5661_v11  ;;  %v9190_v11 = vld [vmem:[#allocation53_spill] sm:$0xff]  ;;  %v9192_v9 = vld [vmem:[#allocation31_spill] sm:$0xff] }
 0x8ac   :  { %v5667_v39 = vpop.eup %5666 }
 0x8ad   :  { %v2899_v29 = vmul.f32 %v5667_v39, %v7467_v19  ;;  %v9180_v19 = vld [vmem:[#allocation46_spill] sm:$0xff] }
 0x8ae   :  { %v5669_v18 = vpop.eup %5668  ;;  %v9194_v39 = vld [vmem:[#allocation58_spill] sm:$0xff] }
 0x8af   :  { %v2901_v34 = vadd.f32 %v2900_v4, %v2899_v29  ;;  %v9193_v4 = vld [vmem:[#allocation56_spill] sm:$0xff]  ;;  %v9196_v29 = vld [vmem:[#allocation57_spill] sm:$0xff] }
 0x8b1   :  { %5670 = vtanh.f32 %v2901_v34  ;;  %v9197_v34 = vld [vmem:[#allocation32_spill] sm:$0xff] }
 0x8be   :  { %v5671_v5 = vpop.eup %5670 }
 0x8bf   :  { %v2903_v10 = vmul.f32 %v5671_v5, %v5669_v18  ;;  %v9198_v18 = vld [vmem:[#allocation42_spill] sm:$0xff] }
 0x8c0   :  { %v9199_v5 = vld [vmem:[#allocation22_spill] sm:$0xff] }
 0x8c1   :  { %3173 = vmatmul.mubr.f32.gmra.mxu0 %v2903_v10  ;;  %3286 = vmatmul.mubr.f32.gmra.mxu1 %v2903_v10  ;;  %v9200_v10 = vld [vmem:[#allocation38_spill] sm:$0xff] }
 0x8c2   :  { %3396 = vmatprep.mubr.f32.mxu0 %v9142_v61  ;;  %3467 = vmatprep.mubr.f32.mxu1 %v9142_v61 }
 0x8c5   :  { %3397 = vmatmul.mubr.f32.vlgmr.msra.gmra.mxu0 %v9142_v61  ;;  %3468 = vmatmul.mubr.f32.vlgmr.msra.gmra.mxu1 %v9142_v61 }
 0x8c6   :  { %3508 = vmatpush1.msra.mxu0 %v7506_v46  ;;  %3579 = vmatpush1.msra.mxu1 %v7514_v59 }
 0x8c7   :  { %3509 = vmatprep.subr.mxu0 %v7512_v14  ;;  %3580 = vmatprep.subr.mxu1 %v7520_v54 }
 0x8c8   :  { %3510 = vmatpush1.msra.mxu0 %v7518_v47  ;;  %3581 = vmatpush1.msra.mxu1 %v7526_v44 }
 0x8c9   :  { %3511 = vmatprep.subr.mxu0 %v7522_v3  ;;  %3582 = vmatprep.subr.mxu1 %v7530_v27 }
 0x8ca   :  { %3512 = vmatpush1.msra.mxu0 %v7528_v30  ;;  %3583 = vmatpush1.msra.mxu1 %v7536_v31 }
 0x8cb   :  { %3513 = vmatprep.subr.mxu0 %v7534_v7  ;;  %3584 = vmatprep.subr.mxu1 %v7542_v21 }
 0x8cc   :  { %3514 = vmatpush1.msra.mxu0 %v7540_v16  ;;  %3585 = vmatpush1.msra.mxu1 %v7544_v22 }
 0x8cd   :  { %3515 = vmatprep.subr.mxu0 %v7548_v28  ;;  %3586 = vmatprep.subr.mxu1 %v7550_v33 }
 0x8ce   :  { %3516 = vmatpush1.msra.mxu0 %v7554_v17  ;;  %3587 = vmatpush1.msra.mxu1 %v7556_v35 }
 0x8cf   :  { %3517 = vmatprep.subr.mxu0 %v7560_v23  ;;  %3588 = vmatprep.subr.mxu1 %v7562_v2 }
 0x8d0   :  { %3518 = vmatpush1.msra.mxu0 %v7566_v41  ;;  %3589 = vmatpush1.msra.mxu1 %v7568_v42 }
 0x8d1   :  { %3519 = vmatprep.subr.mxu0 %v7572_v43  ;;  %3590 = vmatprep.subr.mxu1 %v7574_v53 }
 0x8d2   :  { %3520 = vmatpush1.msra.mxu0 %v7578_v36  ;;  %3591 = vmatpush1.msra.mxu1 %v7580_v48 }
 0x8d3   :  { %3521 = vmatprep.subr.mxu0 %v7584_v49  ;;  %3592 = vmatprep.subr.mxu1 %v7586_v52 }
 0x8d4   :  { %3522 = vmatpush1.msra.mxu0 %v7590_v8  ;;  %3593 = vmatpush1.msra.mxu1 %v7592_v62 }
 0x8d5   :  { %3523 = vmatprep.subr.mxu0 %v7596_v32  ;;  %3594 = vmatprep.subr.mxu1 %v7598_v37 }
 0x8d6   :  { %3524 = vmatpush1.msra.mxu0 %v7602_v15  ;;  %3595 = vmatpush1.msra.mxu1 %v7604_v6 }
 0x8d7   :  { %3525 = vmatprep.subr.mxu0 %v7608_v38  ;;  %3596 = vmatprep.subr.mxu1 %v7610_v24 }
 0x8d8   :  { %3526 = vmatpush1.msra.mxu0 %v7614_v50  ;;  %3597 = vmatpush1.msra.mxu1 %v7616_v57 }
 0x8d9   :  { %3527 = vmatprep.subr.mxu0 %v7620_v0  ;;  %3598 = vmatprep.subr.mxu1 %v7622_v40 }
 0x8da   :  { %3528 = vmatpush1.msra.mxu0 %v7626_v51  ;;  %3599 = vmatpush1.msra.mxu1 %v7628_v1 }
 0x8db   :  { %3529 = vmatprep.subr.mxu0 %v9180_v19  ;;  %3600 = vmatprep.subr.mxu1 %v9181_v45 }
 0x8dc   :  { %3530 = vmatpush1.msra.mxu0 %v9182_v25  ;;  %3601 = vmatpush1.msra.mxu1 %v9183_v60 }
 0x8dd   :  { %3531 = vmatprep.subr.mxu0 %v9184_v58  ;;  %3602 = vmatprep.subr.mxu1 %v9185_v56 }
 0x8de   :  { %3532 = vmatpush1.msra.mxu0 %v9186_v26  ;;  %3603 = vmatpush1.msra.mxu1 %v9187_v63 }
 0x8df   :  { %3533 = vmatprep.subr.mxu0 %v9188_v13  ;;  %3604 = vmatprep.subr.mxu1 %v9189_v55 }
 0x8e0   :  { %3534 = vmatpush1.msra.mxu0 %v9190_v11  ;;  %3605 = vmatpush1.msra.mxu1 %v9191_v20 }
 0x8e1   :  { %3535 = vmatprep.subr.mxu0 %v9192_v9  ;;  %3606 = vmatprep.subr.mxu1 %v9193_v4  ;;  %v9201_v9 = vld [vmem:[#allocation28_spill] sm:$0xff]  ;;  %v3132_v4 = vpop.f32.mrf.mxu0 }
 0x8e2   :  { %3536 = vmatpush1.msra.mxu0 %v9194_v39  ;;  %3607 = vmatpush1.msra.mxu1 %v9195_v12  ;;  %v3245_v39 = vpop.f32.mrf.mxu1 }
 0x8e3   :  { %3537 = vmatprep.subr.mxu0 %v9196_v29  ;;  %3608 = vmatprep.subr.mxu1 %v9197_v34  ;;  %v3134_v20 = vpop.f32.mrf.mxu0 }
 0x8e4   :  { %3538 = vmatpush1.msra.mxu0 %v9198_v18  ;;  %3571 = vmatprep.mubr.f32.mxu0 %v9142_v61  ;;  %v3247_v12 = vpop.f32.mrf.mxu1 }
 0x8e5   :  { %3609 = vmatpush1.msra.mxu1 %v9199_v5  ;;  %3642 = vmatprep.mubr.f32.mxu1 %v9142_v61  ;;  %v7774_v11 = vpop.f32.mrf.mxu0 }
 0x8e6   :  { %3683 = vmatprep.subr.mxu0 %v9200_v10  ;;  %3754 = vmatprep.subr.mxu1 %v9201_v9  ;;  %9202 = vst [vmem:[#allocation40_spill] sm:$0xff] %v7774_v11  ;;  %v7776_v29 = vpop.f32.mrf.mxu1 }
 0x8e7   :  { %9203 = vst [vmem:[#allocation33_spill] sm:$0xff] %v7776_v29  ;;  %v7778_v34 = vpop.f32.mrf.mxu0 }
 0x8e8   :  { %9204 = vst [vmem:[#allocation29_spill] sm:$0xff] %v7778_v34  ;;  %v7780_v18 = vpop.f32.mrf.mxu1 }
 0x8e9   :  { %9205 = vst [vmem:[#allocation23_spill] sm:$0xff] %v7780_v18  ;;  %v7782_v55 = vpop.f32.mrf.mxu0 }
 0x8ea   :  { %9206 = vst [vmem:[#allocation19_spill] sm:$0xff] %v7782_v55  ;;  %v7784_v5 = vpop.f32.mrf.mxu1 }
 0x8eb   :  { %9207 = vst [vmem:[#allocation34_spill] sm:$0xff] %v7784_v5  ;;  %v7786_v61 = vpop.f32.mrf.mxu0 }
 0x8ec   :  { %9208 = vst [vmem:[#allocation30_spill] sm:$0xff] %v7786_v61  ;;  %v7788_v10 = vpop.f32.mrf.mxu1 }
 0x8ed   :  { %9209 = vst [vmem:[#allocation24_spill] sm:$0xff] %v7788_v10  ;;  %v7790_v9 = vpop.f32.mrf.mxu0 }
 0x8ee   :  { %9210 = vst [vmem:[#allocation20_spill] sm:$0xff] %v7790_v9  ;;  %v7792_v13 = vpop.f32.mrf.mxu1 }
 0x8ef   :  { %9211 = vst [vmem:[#allocation35_spill] sm:$0xff] %v7792_v13  ;;  %v7794_v63 = vpop.f32.mrf.mxu0 }
 0x8f0   :  { %9212 = vst [vmem:[#allocation25_spill] sm:$0xff] %v7794_v63  ;;  %v7796_v11 = vpop.f32.mrf.mxu1 }
 0x8f1   :  { %9213 = vst [vmem:[#allocation36_spill] sm:$0xff] %v7796_v11  ;;  %v7798_v29 = vpop.f32.mrf.mxu0 }
 0x8f2   :  { %9214 = vst [vmem:[#allocation26_spill] sm:$0xff] %v7798_v29  ;;  %v7800_v34 = vpop.f32.mrf.mxu1 }
 0x8f3   :  { %9215 = vst [vmem:[#allocation37_spill] sm:$0xff] %v7800_v34  ;;  %v7802_v18 = vpop.f32.mrf.mxu0  ;;  %v3036_v34 = vld [vmem:[%s8750_s6] sm:$0xf] }
 0x8f4   :  { %9216 = vst [vmem:[#allocation60_spill] sm:$0xff] %v7802_v18  ;;  %v7804_v55 = vpop.f32.mrf.mxu1  ;;  %v9225_v18 = vld [vmem:[#allocation17_spill] sm:$0xff] }
 0x8f5   :  { %9217 = vst [vmem:[#allocation62_spill] sm:$0xff] %v7804_v55  ;;  %v7806_v5 = vpop.f32.mrf.mxu0  ;;  %v7824_v55 = vrot.slane %v3036_v34, %v9225_v18 }
 0x8f6   :  { %9218 = vst [vmem:[#allocation63_spill] sm:$0xff] %v7806_v5  ;;  %v7808_v61 = vpop.f32.mrf.mxu1 }
 0x8f7   :  { %9219 = vst [vmem:[#allocation61_spill] sm:$0xff] %v7808_v61  ;;  %v7810_v10 = vpop.f32.mrf.mxu0  ;;  %9226 = vst [vmem:[#allocation43_spill] sm:$0xff] %v7824_v55  ;;  %v3133_v26 = vadd.f32 %v3132_v4, %v7824_v55 }
 0x8f8   :  { %9220 = vst [vmem:[#allocation67_spill] sm:$0xff] %v7810_v10  ;;  %v7812_v9 = vpop.f32.mrf.mxu1  ;;  %v9229_v10 = vld [vmem:[#allocation16_spill] sm:$0xff] }
 0x8f9   :  { %9221 = vst [vmem:[#allocation39_spill] sm:$0xff] %v7812_v9  ;;  %v7814_v13 = vpop.f32.mrf.mxu0  ;;  %v9230_v11 = vsub.s32 1, %v9229_v10 }
 0x8fa   :  { %9222 = vst [vmem:[#allocation41_spill] sm:$0xff] %v7814_v13  ;;  %v7816_v63 = vpop.f32.mrf.mxu1 }
 0x8fb   :  { %9223 = vst [vmem:[#allocation21_spill] sm:$0xff] %v7816_v63  ;;  %v7821_v29 = vpop.f32.mrf.mxu0  ;;  %v7832_v9 = vrot.slane %v3036_v34, %v9230_v11  ;;  %v9234_v11 = vsub.s32 3, %v9229_v10 }
 0x8fc   :  { %9224 = vst [vmem:[#allocation27_spill] sm:$0xff] %v7821_v29  ;;  %v7826_v5 = vpop.f32.mrf.mxu1 }
 0x8fd   :  { %9227 = vst [vmem:[#allocation68_spill] sm:$0xff] %v7826_v5  ;;  %v3135_v29 = vadd.f32 %v3134_v20, %v7832_v9  ;;  %v7844_v19 = vrot.slane %v3036_v34, %v9234_v11 }
 0x8ff   :  { %9235 = vst [vmem:[#allocation16_spill] sm:$0xff] %v7844_v19  ;;  %v3248_v4 = vadd.f32 %v3247_v12, %v7844_v19 }
 0x981   :  { %v7828_v61 = vpop.f32.mrf.mxu0  ;;  %v7834_v13 = vpop.f32.mrf.mxu1 }
 0x982   :  { %9228 = vst [vmem:[#allocation64_spill] sm:$0xff] %v7828_v61  ;;  %9231 = vst [vmem:[#allocation66_spill] sm:$0xff] %v7834_v13 }
 0x983   :  { %v7836_v63 = vpop.f32.mrf.mxu0  ;;  %v7840_v58 = vpop.f32.mrf.mxu1 }
 0x984   :  { %9232 = vst [vmem:[#allocation65_spill] sm:$0xff] %v7836_v63  ;;  %9233 = vst [vmem:[#allocation17_spill] sm:$0xff] %v7840_v58  ;;  %v9236_v63 = vsub.s32 2, %v9229_v10 }
 0x985   :  { %v3398_v56 = vpop.f32.mrf.mxu0  ;;  %v3469_v61 = vpop.f32.mrf.mxu1 }
 0x986   :  { %v3474_v18 = vadd.f32 %v3398_v56, %v3133_v26  ;;  %v7849_v20 = vrot.slane %v3036_v34, %v9236_v63 }
 0x987   :  { %v3400_v60 = vpop.f32.mrf.mxu0  ;;  %v3471_v13 = vpop.f32.mrf.mxu1 }
 0x988   :  { %v5441_v5 = vmul.f32 -1.442695, %v3474_v18  ;;  %v3475_v25 = vadd.f32 %v3400_v60, %v3135_v29  ;;  %v3477_v58 = vadd.f32 %v3471_v13, %v3248_v4  ;;  %v3246_v56 = vadd.f32 %v3245_v39, %v7849_v20  ;;  %v9239_v4 = vld [vmem:[#allocation47_spill] sm:$0xff] }
 0x98a   :  { %5672 = vpow2.f32 %v5441_v5  ;;  %v5442_v45 = vmul.f32 -1.442695, %v3475_v25  ;;  %v5443_v26 = vmul.f32 -1.442695, %v3477_v58  ;;  %v3476_v29 = vadd.f32 %v3469_v61, %v3246_v56  ;;  %v9240_v56 = vld [vmem:[#allocation45_spill] sm:$0xff] }
 0x98c   :  { %5674 = vpow2.f32 %v5442_v45 }
 0x98d   :  { %5676 = vpow2.f32 %v5443_v26  ;;  %v9241_v26 = vld [vmem:[#allocation48_spill] sm:$0xff] }
 0x997   :  { %v5673_v60 = vpop.eup %5672 }
 0x998   :  { %v3481_v5 = vadd.f32 1.0, %v5673_v60  ;;  %v9242_v60 = vld [vmem:[#allocation50_spill] sm:$0xff] }
 0x999   :  { %v5675_v25 = vpop.eup %5674 }
 0x99a   :  { %5678 = vrcp.f32 %v3481_v5  ;;  %v3487_v18 = vadd.f32 1.0, %v5675_v25  ;;  %v5677_v45 = vpop.eup %5676  ;;  %v9244_v5 = vld [vmem:[#allocation49_spill] sm:$0xff]  ;;  %v9245_v25 = vld [vmem:[#allocation52_spill] sm:$0xff] }
 0x99b   :  { %5680 = vtanh.f32 %v3476_v29  ;;  %v3494_v10 = vadd.f32 1.0, %v5677_v45  ;;  %v9243_v29 = vld [vmem:[#allocation51_spill] sm:$0xff] }
 0x99c   :  { %5682 = vrcp.f32 %v3487_v18  ;;  %v9246_v18 = vld [vmem:[#allocation54_spill] sm:$0xff]  ;;  %v9247_v45 = vld [vmem:[#allocation55_spill] sm:$0xff] }
 0x99d   :  { %5684 = vrcp.f32 %v3494_v10  ;;  %v9250_v10 = vld [vmem:[#allocation31_spill] sm:$0xff] }
 0x9a7   :  { %v5679_v11 = vpop.eup %5678 }
 0x9a8   :  { %v5681_v12 = vpop.eup %5680 }
 0x9a9   :  { %v5683_v19 = vpop.eup %5682  ;;  %v3498_v34 = vmul.f32 %v5681_v12, %v5679_v11  ;;  %v9248_v11 = vld [vmem:[#allocation53_spill] sm:$0xff]  ;;  %v9249_v12 = vld [vmem:[#allocation18_spill] sm:$0xff] }
 0x9aa   :  { %v3497_v63 = vmul.f32 0.0, %v5683_v19  ;;  %v5685_v61 = vpop.eup %5684  ;;  %v9238_v19 = vld [vmem:[#allocation46_spill] sm:$0xff] }
 0x9ac   :  { %v7852_v13 = vadd.f32 %v3498_v34, %v3497_v63  ;;  %v9251_v63 = vld [vmem:[#allocation56_spill] sm:$0xff]  ;;  %v9252_v34 = vld [vmem:[#allocation58_spill] sm:$0xff] }
 0x9ae   :  { %5686 = vtanh.f32 %v7852_v13 }
 0x9bb   :  { %v5687_v58 = vpop.eup %5686 }
 0x9bc   :  { %v7855_v39 = vmul.f32 %v5687_v58, %v5685_v61  ;;  %v9253_v61 = vld [vmem:[#allocation59_spill] sm:$0xff]  ;;  %v9254_v58 = vld [vmem:[#allocation57_spill] sm:$0xff] }
 0x9be   :  { %9237 = vst [vmem:[#allocation69_spill] sm:$0xff] %v7855_v39  ;;  %3572 = vmatmul.mubr.f32.vlgmr.msra.gmra.mxu0 %v7855_v39  ;;  %3643 = vmatmul.mubr.f32.vlgmr.msra.gmra.mxu1 %v7855_v39  ;;  %v9255_v39 = vld [vmem:[#allocation32_spill] sm:$0xff] }
 0x9bf   :  { %3684 = vmatpush1.msra.mxu0 %v7506_v46  ;;  %3755 = vmatpush1.msra.mxu1 %v7514_v59 }
 0x9c0   :  { %3685 = vmatprep.subr.mxu0 %v7512_v14  ;;  %3756 = vmatprep.subr.mxu1 %v7520_v54 }
 0x9c1   :  { %3686 = vmatpush1.msra.mxu0 %v7518_v47  ;;  %3757 = vmatpush1.msra.mxu1 %v7526_v44 }
 0x9c2   :  { %3687 = vmatprep.subr.mxu0 %v7522_v3  ;;  %3758 = vmatprep.subr.mxu1 %v7530_v27 }
 0x9c3   :  { %3688 = vmatpush1.msra.mxu0 %v7528_v30  ;;  %3759 = vmatpush1.msra.mxu1 %v7536_v31 }
 0x9c4   :  { %3689 = vmatprep.subr.mxu0 %v7534_v7  ;;  %3760 = vmatprep.subr.mxu1 %v7542_v21 }
 0x9c5   :  { %3690 = vmatpush1.msra.mxu0 %v7540_v16  ;;  %3761 = vmatpush1.msra.mxu1 %v7544_v22 }
 0x9c6   :  { %3691 = vmatprep.subr.mxu0 %v7548_v28  ;;  %3762 = vmatprep.subr.mxu1 %v7550_v33 }
 0x9c7   :  { %3692 = vmatpush1.msra.mxu0 %v7554_v17  ;;  %3763 = vmatpush1.msra.mxu1 %v7556_v35 }
 0x9c8   :  { %3693 = vmatprep.subr.mxu0 %v7560_v23  ;;  %3764 = vmatprep.subr.mxu1 %v7562_v2 }
 0x9c9   :  { %3694 = vmatpush1.msra.mxu0 %v7566_v41  ;;  %3765 = vmatpush1.msra.mxu1 %v7568_v42 }
 0x9ca   :  { %3695 = vmatprep.subr.mxu0 %v7572_v43  ;;  %3766 = vmatprep.subr.mxu1 %v7574_v53 }
 0x9cb   :  { %3696 = vmatpush1.msra.mxu0 %v7578_v36  ;;  %3767 = vmatpush1.msra.mxu1 %v7580_v48 }
 0x9cc   :  { %3697 = vmatprep.subr.mxu0 %v7584_v49  ;;  %3768 = vmatprep.subr.mxu1 %v7586_v52 }
 0x9cd   :  { %3698 = vmatpush1.msra.mxu0 %v7590_v8  ;;  %3769 = vmatpush1.msra.mxu1 %v7592_v62 }
 0x9ce   :  { %3699 = vmatprep.subr.mxu0 %v7596_v32  ;;  %3770 = vmatprep.subr.mxu1 %v7598_v37 }
 0x9cf   :  { %3700 = vmatpush1.msra.mxu0 %v7602_v15  ;;  %3771 = vmatpush1.msra.mxu1 %v7604_v6 }
 0x9d0   :  { %3701 = vmatprep.subr.mxu0 %v7608_v38  ;;  %3772 = vmatprep.subr.mxu1 %v7610_v24 }
 0x9d1   :  { %3702 = vmatpush1.msra.mxu0 %v7614_v50  ;;  %3773 = vmatpush1.msra.mxu1 %v7616_v57 }
 0x9d2   :  { %3703 = vmatprep.subr.mxu0 %v7620_v0  ;;  %3774 = vmatprep.subr.mxu1 %v7622_v40 }
 0x9d3   :  { %3704 = vmatpush1.msra.mxu0 %v7626_v51  ;;  %3775 = vmatpush1.msra.mxu1 %v7628_v1 }
 0x9d4   :  { %3705 = vmatprep.subr.mxu0 %v9238_v19  ;;  %3776 = vmatprep.subr.mxu1 %v9239_v4  ;;  %v9265_v4 = vld [vmem:[#allocation33_spill] sm:$0xff] }
 0x9d5   :  { %3706 = vmatpush1.msra.mxu0 %v9240_v56  ;;  %3777 = vmatpush1.msra.mxu1 %v9241_v26  ;;  %v9263_v26 = vld [vmem:[#allocation16_spill] sm:$0xff] }
 0x9d6   :  { %3707 = vmatprep.subr.mxu0 %v9242_v60  ;;  %3778 = vmatprep.subr.mxu1 %v9243_v29 }
 0x9d7   :  { %3708 = vmatpush1.msra.mxu0 %v9244_v5  ;;  %3779 = vmatpush1.msra.mxu1 %v9245_v25  ;;  %v9256_v25 = vld [vmem:[#allocation42_spill] sm:$0xff] }
 0x9d8   :  { %3709 = vmatprep.subr.mxu0 %v9246_v18  ;;  %3780 = vmatprep.subr.mxu1 %v9247_v45  ;;  %v9257_v18 = vmov 0.0   ;;  %v9258_v45 = vld [vmem:[#allocation22_spill] sm:$0xff] }
 0x9d9   :  { %3710 = vmatpush1.msra.mxu0 %v9248_v11  ;;  %3781 = vmatpush1.msra.mxu1 %v9249_v12  ;;  %v9259_v12 = vld [vmem:[#allocation38_spill] sm:$0xff] }
 0x9da   :  { %3711 = vmatprep.subr.mxu0 %v9250_v10  ;;  %3782 = vmatprep.subr.mxu1 %v9251_v63  ;;  %v9260_v10 = vld [vmem:[#allocation28_spill] sm:$0xff] }
 0x9db   :  { %3712 = vmatpush1.msra.mxu0 %v9252_v34  ;;  %3783 = vmatpush1.msra.mxu1 %v9253_v61  ;;  %v9261_v34 = vld [vmem:[#allocation40_spill] sm:$0xff] }
 0x9dc   :  { %3713 = vmatprep.subr.mxu0 %v9254_v58  ;;  %3784 = vmatprep.subr.mxu1 %v9255_v39  ;;  %v3139_v63 = vadd.f32 %v9261_v34, %v7824_v55  ;;  %v9262_v58 = vld [vmem:[#allocation29_spill] sm:$0xff]  ;;  %v3252_v34 = vadd.f32 %v9265_v4, %v7849_v20 }
 0x9dd   :  { %3714 = vmatpush1.msra.mxu0 %v9256_v25  ;;  %3747 = vmatprep.mubr.f32.mxu0 %v9257_v18  ;;  %v3141_v11 = vadd.f32 %v9262_v58, %v7832_v9 }
 0x9de   :  { %3785 = vmatpush1.msra.mxu1 %v9258_v45  ;;  %3818 = vmatprep.mubr.f32.mxu1 %v9257_v18 }
 0x9df   :  { %3859 = vmatprep.subr.mxu0 %v9259_v12  ;;  %3930 = vmatprep.subr.mxu1 %v9260_v10  ;;  %v9264_v12 = vld [vmem:[#allocation23_spill] sm:$0xff] }
 0x9e0   :  { %v3254_v56 = vadd.f32 %v9264_v12, %v9263_v26 }
 0xa7e   :  { %v3573_v61 = vpop.f32.mrf.mxu0  ;;  %v3644_v60 = vpop.f32.mrf.mxu1 }
 0xa7f   :  { %v3649_v39 = vadd.f32 %v3573_v61, %v3139_v63  ;;  %v3651_v55 = vadd.f32 %v3644_v60, %v3252_v34  ;;  %v9285_v60 = vld [vmem:[#allocation32_spill] sm:$0xff]  ;;  %v9287_v61 = vmov 0.0   ;;  %v9288_v34 = vld [vmem:[#allocation22_spill] sm:$0xff] }
 0xa80   :  { %v3575_v5 = vpop.f32.mrf.mxu0  ;;  %v3646_v18 = vpop.f32.mrf.mxu1 }
 0xa81   :  { %v5444_v25 = vmul.f32 -1.442695, %v3649_v39  ;;  %v3650_v29 = vadd.f32 %v3575_v5, %v3141_v11  ;;  %v3652_v10 = vadd.f32 %v3646_v18, %v3254_v56 }
 0xa83   :  { %5688 = vpow2.f32 %v5444_v25  ;;  %v5445_v45 = vmul.f32 -1.442695, %v3650_v29  ;;  %v5446_v19 = vmul.f32 -1.442695, %v3652_v10  ;;  %v9286_v10 = vld [vmem:[#allocation42_spill] sm:$0xff] }
 0xa85   :  { %5690 = vpow2.f32 %v5445_v45 }
 0xa86   :  { %5692 = vtanh.f32 %v3651_v55 }
 0xa87   :  { %5694 = vpow2.f32 %v5446_v19  ;;  %v9284_v19 = vld [vmem:[#allocation57_spill] sm:$0xff] }
 0xa90   :  { %v5689_v1 = vpop.eup %5688 }
 0xa91   :  { %v3656_v58 = vadd.f32 1.0, %v5689_v1 }
 0xa92   :  { %v5691_v63 = vpop.eup %5690 }
 0xa93   :  { %5696 = vrcp.f32 %v3656_v58  ;;  %v3662_v39 = vadd.f32 1.0, %v5691_v63  ;;  %v5693_v29 = vpop.eup %5692  ;;  %v9289_v58 = vld [vmem:[#allocation38_spill] sm:$0xff]  ;;  %v9290_v63 = vld [vmem:[#allocation28_spill] sm:$0xff] }
 0xa94   :  { %v5695_v5 = vpop.eup %5694 }
 0xa95   :  { %5698 = vrcp.f32 %v3662_v39  ;;  %v3669_v12 = vadd.f32 1.0, %v5695_v5  ;;  %v9291_v39 = vld [vmem:[#allocation43_spill] sm:$0xff] }
 0xa97   :  { %5700 = vrcp.f32 %v3669_v12 }
 0xaa0   :  { %v5697_v25 = vpop.eup %5696 }
 0xaa1   :  { %v3673_v45 = vmul.f32 %v5697_v25, %v5693_v29  ;;  %v9292_v29 = vld [vmem:[#allocation19_spill] sm:$0xff] }
 0xaa2   :  { %v5699_v11 = vpop.eup %5698  ;;  %v3145_v5 = vadd.f32 %v9292_v29, %v9291_v39 }
 0xaa3   :  { %v3672_v56 = vmul.f32 %v5699_v11, %v7852_v13  ;;  %v9283_v13 = vld [vmem:[#allocation59_spill] sm:$0xff] }
 0xaa4   :  { %v5701_v1 = vpop.eup %5700 }
 0xaa5   :  { %v7934_v18 = vadd.f32 %v3673_v45, %v3672_v56  ;;  %v9293_v45 = vld [vmem:[#allocation30_spill] sm:$0xff] }
 0xaa6   :  { %v3147_v11 = vadd.f32 %v9293_v45, %v7832_v9 }
 0xaa7   :  { %5702 = vtanh.f32 %v7934_v18 }
 0xab4   :  { %v5703_v55 = vpop.eup %5702 }
 0xab5   :  { %v7937_v4 = vmul.f32 %v5703_v55, %v5701_v1 }
 0xab7   :  { %9266 = vst [vmem:[#allocation40_spill] sm:$0xff] %v7937_v4  ;;  %3748 = vmatmul.mubr.f32.vlgmr.msra.gmra.mxu0 %v7937_v4  ;;  %3819 = vmatmul.mubr.f32.vlgmr.msra.gmra.mxu1 %v7937_v4 }
 0xab8   :  { %3860 = vmatpush1.msra.mxu0 %v7506_v46  ;;  %3931 = vmatpush1.msra.mxu1 %v7514_v59  ;;  %v9267_v46 = vld [vmem:[#allocation44_spill] sm:$0xff]  ;;  %v9269_v59 = vld [vmem:[#allocation47_spill] sm:$0xff] }
 0xab9   :  { %3861 = vmatprep.subr.mxu0 %v7512_v14  ;;  %3932 = vmatprep.subr.mxu1 %v7520_v54  ;;  %v9268_v14 = vld [vmem:[#allocation46_spill] sm:$0xff]  ;;  %v9271_v54 = vld [vmem:[#allocation48_spill] sm:$0xff] }
 0xaba   :  { %3862 = vmatpush1.msra.mxu0 %v7518_v47  ;;  %3933 = vmatpush1.msra.mxu1 %v7526_v44  ;;  %v9270_v47 = vld [vmem:[#allocation45_spill] sm:$0xff]  ;;  %v9273_v44 = vld [vmem:[#allocation51_spill] sm:$0xff] }
 0xabb   :  { %3863 = vmatprep.subr.mxu0 %v7522_v3  ;;  %3934 = vmatprep.subr.mxu1 %v7530_v27  ;;  %v9272_v3 = vld [vmem:[#allocation50_spill] sm:$0xff]  ;;  %v9275_v27 = vld [vmem:[#allocation52_spill] sm:$0xff] }
 0xabc   :  { %3864 = vmatpush1.msra.mxu0 %v7528_v30  ;;  %3935 = vmatpush1.msra.mxu1 %v7536_v31  ;;  %v9274_v30 = vld [vmem:[#allocation49_spill] sm:$0xff]  ;;  %v9277_v31 = vld [vmem:[#allocation55_spill] sm:$0xff] }
 0xabd   :  { %3865 = vmatprep.subr.mxu0 %v7534_v7  ;;  %3936 = vmatprep.subr.mxu1 %v7542_v21  ;;  %v9276_v7 = vld [vmem:[#allocation54_spill] sm:$0xff] }
 0xabe   :  { %3866 = vmatpush1.msra.mxu0 %v7540_v16  ;;  %3937 = vmatpush1.msra.mxu1 %v7544_v22  ;;  %v9278_v16 = vld [vmem:[#allocation53_spill] sm:$0xff]  ;;  %v9279_v21 = vld [vmem:[#allocation18_spill] sm:$0xff]  ;;  %v9280_v22 = vld [vmem:[#allocation31_spill] sm:$0xff] }
 0xabf   :  { %3867 = vmatprep.subr.mxu0 %v7548_v28  ;;  %3938 = vmatprep.subr.mxu1 %v7550_v33  ;;  %v9281_v28 = vld [vmem:[#allocation56_spill] sm:$0xff]  ;;  %v9282_v33 = vld [vmem:[#allocation58_spill] sm:$0xff] }
 0xac0   :  { %3868 = vmatpush1.msra.mxu0 %v7554_v17  ;;  %3939 = vmatpush1.msra.mxu1 %v7556_v35 }
 0xac1   :  { %3869 = vmatprep.subr.mxu0 %v7560_v23  ;;  %3940 = vmatprep.subr.mxu1 %v7562_v2 }
 0xac2   :  { %3870 = vmatpush1.msra.mxu0 %v7566_v41  ;;  %3941 = vmatpush1.msra.mxu1 %v7568_v42 }
 0xac3   :  { %3871 = vmatprep.subr.mxu0 %v7572_v43  ;;  %3942 = vmatprep.subr.mxu1 %v7574_v53 }
 0xac4   :  { %3872 = vmatpush1.msra.mxu0 %v7578_v36  ;;  %3943 = vmatpush1.msra.mxu1 %v7580_v48 }
 0xac5   :  { %3873 = vmatprep.subr.mxu0 %v7584_v49  ;;  %3944 = vmatprep.subr.mxu1 %v7586_v52 }
 0xac6   :  { %3874 = vmatpush1.msra.mxu0 %v7590_v8  ;;  %3945 = vmatpush1.msra.mxu1 %v7592_v62 }
 0xac7   :  { %3875 = vmatprep.subr.mxu0 %v7596_v32  ;;  %3946 = vmatprep.subr.mxu1 %v7598_v37 }
 0xac8   :  { %3876 = vmatpush1.msra.mxu0 %v7602_v15  ;;  %3947 = vmatpush1.msra.mxu1 %v7604_v6 }
 0xac9   :  { %3877 = vmatprep.subr.mxu0 %v7608_v38  ;;  %3948 = vmatprep.subr.mxu1 %v7610_v24 }
 0xaca   :  { %3878 = vmatpush1.msra.mxu0 %v7614_v50  ;;  %3949 = vmatpush1.msra.mxu1 %v7616_v57 }
 0xacb   :  { %3879 = vmatprep.subr.mxu0 %v7620_v0  ;;  %3950 = vmatprep.subr.mxu1 %v7622_v40 }
 0xacc   :  { %3880 = vmatpush1.msra.mxu0 %v7626_v51  ;;  %3951 = vmatpush1.msra.mxu1 %v9267_v46 }
 0xacd   :  { %3881 = vmatprep.subr.mxu0 %v9268_v14  ;;  %3952 = vmatprep.subr.mxu1 %v9269_v59 }
 0xace   :  { %3882 = vmatpush1.msra.mxu0 %v9270_v47  ;;  %3953 = vmatpush1.msra.mxu1 %v9271_v54 }
 0xacf   :  { %3883 = vmatprep.subr.mxu0 %v9272_v3  ;;  %3954 = vmatprep.subr.mxu1 %v9273_v44 }
 0xad0   :  { %3884 = vmatpush1.msra.mxu0 %v9274_v30  ;;  %3955 = vmatpush1.msra.mxu1 %v9275_v27 }
 0xad1   :  { %3885 = vmatprep.subr.mxu0 %v9276_v7  ;;  %3956 = vmatprep.subr.mxu1 %v9277_v31 }
 0xad2   :  { %3886 = vmatpush1.msra.mxu0 %v9278_v16  ;;  %3957 = vmatpush1.msra.mxu1 %v9279_v21 }
 0xad3   :  { %3887 = vmatprep.subr.mxu0 %v9280_v22  ;;  %3958 = vmatprep.subr.mxu1 %v9281_v28 }
 0xad4   :  { %3888 = vmatpush1.msra.mxu0 %v9282_v33  ;;  %3959 = vmatpush1.msra.mxu1 %v9283_v13 }
 0xad5   :  { %3889 = vmatprep.subr.mxu0 %v9284_v19  ;;  %3960 = vmatprep.subr.mxu1 %v9285_v60  ;;  %v9295_v60 = vld [vmem:[#allocation34_spill] sm:$0xff] }
 0xad6   :  { %3890 = vmatpush1.msra.mxu0 %v9286_v10  ;;  %3923 = vmatprep.mubr.f32.mxu0 %v9287_v61  ;;  %v3258_v29 = vadd.f32 %v9295_v60, %v7849_v20 }
 0xad7   :  { %3961 = vmatpush1.msra.mxu1 %v9288_v34  ;;  %3994 = vmatprep.mubr.f32.mxu1 %v9287_v61 }
 0xad8   :  { %4035 = vmatprep.subr.mxu0 %v9289_v58  ;;  %4106 = vmatprep.subr.mxu1 %v9290_v63  ;;  %v9294_v58 = vld [vmem:[#allocation24_spill] sm:$0xff] }
 0xad9   :  { %v3260_v10 = vadd.f32 %v9294_v58, %v9263_v26  ;;  %v8032_v58 = vld [vmem:[#allocation11 + $0x1d8] sm:$0xff] }
 0xb77   :  { %v3749_v25 = vpop.f32.mrf.mxu0  ;;  %v3820_v4 = vpop.f32.mrf.mxu1 }
 0xb78   :  { %v3825_v12 = vadd.f32 %v3749_v25, %v3145_v5  ;;  %v3827_v39 = vadd.f32 %v3820_v4, %v3258_v29  ;;  %v8038_v29 = vld [vmem:[#allocation11 + $0x1d0] sm:$0xff] }
 0xb79   :  { %v3751_v56 = vpop.f32.mrf.mxu0  ;;  %v3822_v61 = vpop.f32.mrf.mxu1 }
 0xb7a   :  { %v5447_v1 = vmul.f32 -1.442695, %v3825_v12  ;;  %v3826_v55 = vadd.f32 %v3751_v56, %v3147_v11  ;;  %v3828_v63 = vadd.f32 %v3822_v61, %v3260_v10 }
 0xb7c   :  { %5704 = vpow2.f32 %v5447_v1  ;;  %v5448_v34 = vmul.f32 -1.442695, %v3826_v55  ;;  %v5449_v19 = vmul.f32 -1.442695, %v3828_v63  ;;  %v8035_v63 = vld [vmem:[#allocation11 + $0x1c0] sm:$0xff] }
 0xb7e   :  { %5706 = vpow2.f32 %v5448_v34 }
 0xb7f   :  { %5708 = vtanh.f32 %v3827_v39  ;;  %v8026_v39 = vld [vmem:[#allocation11 + $0x1f0] sm:$0xff] }
 0xb80   :  { %5710 = vpow2.f32 %v5449_v19  ;;  %v8023_v19 = vld [vmem:[#allocation11 + $0x1e0] sm:$0xff] }
 0xb89   :  { %v5705_v13 = vpop.eup %5704 }
 0xb8a   :  { %v3832_v45 = vadd.f32 1.0, %v5705_v13 }
 0xb8b   :  { %v5707_v5 = vpop.eup %5706 }
 0xb8c   :  { %5712 = vrcp.f32 %v3832_v45  ;;  %v3838_v25 = vadd.f32 1.0, %v5707_v5  ;;  %v5709_v11 = vpop.eup %5708  ;;  %v8041_v45 = vld [vmem:[#allocation11 + $0x1a8] sm:$0xff]  ;;  %v8044_v5 = vld [vmem:[#allocation11 + $0x1b8] sm:$0xff] }
 0xb8d   :  { %v5711_v34 = vpop.eup %5710 }
 0xb8e   :  { %5714 = vrcp.f32 %v3838_v25  ;;  %v3845_v55 = vadd.f32 1.0, %v5711_v34  ;;  %v8047_v25 = vld [vmem:[#allocation11 + $0x1a0] sm:$0xff]  ;;  %v8053_v34 = vld [vmem:[#allocation11 + $0x188] sm:$0xff] }
 0xb90   :  { %5716 = vrcp.f32 %v3845_v55  ;;  %v8065_v55 = vld [vmem:[#allocation11 + $0x168] sm:$0xff] }
 0xb99   :  { %v5713_v12 = vpop.eup %5712 }
 0xb9a   :  { %v3849_v56 = vmul.f32 %v5713_v12, %v5709_v11  ;;  %v8050_v11 = vld [vmem:[#allocation11 + $0x1b0] sm:$0xff]  ;;  %v8056_v12 = vld [vmem:[#allocation11 + $0x198] sm:$0xff] }
 0xb9b   :  { %v5715_v1 = vpop.eup %5714 }
 0xb9c   :  { %v3848_v10 = vmul.f32 %v5715_v1, %v7934_v18  ;;  %v8029_v18 = vld [vmem:[#allocation11 + $0x1c8] sm:$0xff]  ;;  %v8062_v1 = vld [vmem:[#allocation11 + $0x190] sm:$0xff] }
 0xb9d   :  { %v5717_v4 = vpop.eup %5716 }
 0xb9e   :  { %v8016_v61 = vadd.f32 %v3849_v56, %v3848_v10  ;;  %v8059_v56 = vld [vmem:[#allocation11 + $0x180] sm:$0xff]  ;;  %v8068_v10 = vld [vmem:[#allocation11 + $0x178] sm:$0xff] }
 0xba0   :  { %5718 = vtanh.f32 %v8016_v61 }
 0xbad   :  { %v5719_v13 = vpop.eup %5718 }
 0xbae   :  { %v8019_v60 = vmul.f32 %v5719_v13, %v5717_v4 }
 0xbb0   :  { %9296 = vst [vmem:[#allocation29_spill] sm:$0xff] %v8019_v60  ;;  %3924 = vmatmul.mubr.f32.vlgmr.msra.gmra.mxu0 %v8019_v60  ;;  %3995 = vmatmul.mubr.f32.vlgmr.msra.gmra.mxu1 %v8019_v60  ;;  %v8274_v60 = vld [vmem:[#allocation11 + $0x38] sm:$0xff] }
 0xbb1   :  { %4036 = vmatpush1.msra.mxu0 %v8023_v19  ;;  %4107 = vmatpush1.msra.mxu1 %v8026_v39  ;;  %9325 = vst [vmem:[#allocation56_spill] sm:$0xff] %v8274_v60 }
 0xbb2   :  { %4037 = vmatprep.subr.mxu0 %v8029_v18  ;;  %4108 = vmatprep.subr.mxu1 %v8032_v58 }
 0xbb3   :  { %4038 = vmatpush1.msra.mxu0 %v8035_v63  ;;  %4109 = vmatpush1.msra.mxu1 %v8038_v29 }
 0xbb4   :  { %4039 = vmatprep.subr.mxu0 %v8041_v45  ;;  %4110 = vmatprep.subr.mxu1 %v8044_v5 }
 0xbb5   :  { %4040 = vmatpush1.msra.mxu0 %v8047_v25  ;;  %4111 = vmatpush1.msra.mxu1 %v8050_v11 }
 0xbb6   :  { %4041 = vmatprep.subr.mxu0 %v8053_v34  ;;  %4112 = vmatprep.subr.mxu1 %v8056_v12 }
 0xbb7   :  { %4042 = vmatpush1.msra.mxu0 %v8059_v56  ;;  %4113 = vmatpush1.msra.mxu1 %v8062_v1 }
 0xbb8   :  { %4043 = vmatprep.subr.mxu0 %v8065_v55  ;;  %4114 = vmatprep.subr.mxu1 %v8068_v10 }
 0xbb9   :  { %4044 = vmatpush1.msra.mxu0 %v7554_v17  ;;  %4115 = vmatpush1.msra.mxu1 %v7556_v35  ;;  %v9297_v17 = vld [vmem:[#allocation59_spill] sm:$0xff]  ;;  %v9298_v35 = vld [vmem:[#allocation57_spill] sm:$0xff] }
 0xbba   :  { %4045 = vmatprep.subr.mxu0 %v7560_v23  ;;  %4116 = vmatprep.subr.mxu1 %v7562_v2  ;;  %v9299_v23 = vld [vmem:[#allocation32_spill] sm:$0xff]  ;;  %v9300_v2 = vld [vmem:[#allocation42_spill] sm:$0xff] }
 0xbbb   :  { %4046 = vmatpush1.msra.mxu0 %v7566_v41  ;;  %4117 = vmatpush1.msra.mxu1 %v7568_v42  ;;  %v9301_v41 = vmov 0.0   ;;  %v9302_v42 = vld [vmem:[#allocation22_spill] sm:$0xff] }
 0xbbc   :  { %4047 = vmatprep.subr.mxu0 %v7572_v43  ;;  %4118 = vmatprep.subr.mxu1 %v7574_v53  ;;  %v8119_v43 = vld [vmem:[#allocation11 + $0x1e8] sm:$0xff]  ;;  %v8122_v53 = vld [vmem:[#allocation11 + $0x1f8] sm:$0xff] }
 0xbbd   :  { %4048 = vmatpush1.msra.mxu0 %v7578_v36  ;;  %4119 = vmatpush1.msra.mxu1 %v7580_v48  ;;  %9303 = vst [vmem:[#allocation16_spill] sm:$0xff] %v8119_v43  ;;  %9304 = vst [vmem:[#allocation23_spill] sm:$0xff] %v8122_v53  ;;  %v9305_v36 = vld [vmem:[#allocation43_spill] sm:$0xff]  ;;  %v9306_v48 = vld [vmem:[#allocation20_spill] sm:$0xff] }
 0xbbe   :  { %4049 = vmatprep.subr.mxu0 %v7584_v49  ;;  %4120 = vmatprep.subr.mxu1 %v7586_v52  ;;  %v3151_v49 = vadd.f32 %v9306_v48, %v9305_v36  ;;  %v8175_v48 = vld [vmem:[#allocation11 + $0x128] sm:$0xff] }
 0xbbf   :  { %4050 = vmatpush1.msra.mxu0 %v7590_v8  ;;  %4121 = vmatpush1.msra.mxu1 %v7592_v62  ;;  %v9307_v8 = vld [vmem:[#allocation25_spill] sm:$0xff] }
 0xbc0   :  { %4051 = vmatprep.subr.mxu0 %v7596_v32  ;;  %4122 = vmatprep.subr.mxu1 %v7598_v37  ;;  %v3153_v62 = vadd.f32 %v9307_v8, %v7832_v9  ;;  %v8184_v8 = vld [vmem:[#allocation11 + $0x130] sm:$0xff] }
 0xbc1   :  { %4052 = vmatpush1.msra.mxu0 %v7602_v15  ;;  %4123 = vmatpush1.msra.mxu1 %v7604_v6 }
 0xbc2   :  { %4053 = vmatprep.subr.mxu0 %v7608_v38  ;;  %4124 = vmatprep.subr.mxu1 %v7610_v24 }
 0xbc3   :  { %4054 = vmatpush1.msra.mxu0 %v7614_v50  ;;  %4125 = vmatpush1.msra.mxu1 %v7616_v57  ;;  %v9308_v57 = vld [vmem:[#allocation36_spill] sm:$0xff] }
 0xbc4   :  { %4055 = vmatprep.subr.mxu0 %v7620_v0  ;;  %4126 = vmatprep.subr.mxu1 %v7622_v40  ;;  %v3266_v0 = vadd.f32 %v9308_v57, %v9263_v26  ;;  %v8211_v57 = vld [vmem:[#allocation11 + $0xc8] sm:$0xff] }
 0xbc5   :  { %4056 = vmatpush1.msra.mxu0 %v7626_v51  ;;  %4127 = vmatpush1.msra.mxu1 %v9267_v46  ;;  %v9309_v51 = vld [vmem:[#allocation35_spill] sm:$0xff] }
 0xbc6   :  { %4057 = vmatprep.subr.mxu0 %v9268_v14  ;;  %4128 = vmatprep.subr.mxu1 %v9269_v59  ;;  %v3264_v46 = vadd.f32 %v9309_v51, %v7849_v20  ;;  %v8220_v51 = vld [vmem:[#allocation11 + $0xd0] sm:$0xff] }
 0xbc7   :  { %4058 = vmatpush1.msra.mxu0 %v9270_v47  ;;  %4129 = vmatpush1.msra.mxu1 %v9271_v54 }
 0xbc8   :  { %4059 = vmatprep.subr.mxu0 %v9272_v3  ;;  %4130 = vmatprep.subr.mxu1 %v9273_v44 }
 0xbc9   :  { %4060 = vmatpush1.msra.mxu0 %v9274_v30  ;;  %4131 = vmatpush1.msra.mxu1 %v9275_v27 }
 0xbca   :  { %4061 = vmatprep.subr.mxu0 %v9276_v7  ;;  %4132 = vmatprep.subr.mxu1 %v9277_v31 }
 0xbcb   :  { %4062 = vmatpush1.msra.mxu0 %v9278_v16  ;;  %4133 = vmatpush1.msra.mxu1 %v9279_v21 }
 0xbcc   :  { %4063 = vmatprep.subr.mxu0 %v9280_v22  ;;  %4134 = vmatprep.subr.mxu1 %v9281_v28 }
 0xbcd   :  { %4064 = vmatpush1.msra.mxu0 %v9282_v33  ;;  %4135 = vmatpush1.msra.mxu1 %v9297_v17  ;;  %v8160_v17 = vld [vmem:[#allocation11 + $0x170] sm:$0xff] }
 0xbce   :  { %4065 = vmatprep.subr.mxu0 %v9298_v35  ;;  %4136 = vmatprep.subr.mxu1 %v9299_v23  ;;  %v8163_v35 = vld [vmem:[#allocation11 + $0x148] sm:$0xff]  ;;  %v8166_v23 = vld [vmem:[#allocation11 + $0x158] sm:$0xff] }
 0xbcf   :  { %4066 = vmatpush1.msra.mxu0 %v9300_v2  ;;  %4099 = vmatprep.mubr.f32.mxu0 %v9301_v41  ;;  %v8169_v2 = vld [vmem:[#allocation11 + $0x140] sm:$0xff] }
 0xbd0   :  { %4137 = vmatpush1.msra.mxu1 %v9302_v42  ;;  %4170 = vmatprep.mubr.f32.mxu1 %v9301_v41  ;;  %v8172_v42 = vld [vmem:[#allocation11 + $0x150] sm:$0xff] }
 0xbd1   :  { %4211 = vmatprep.subr.mxu0 %v8119_v43  ;;  %4282 = vmatprep.subr.mxu1 %v8122_v53 }
 0xc70   :  { %v3925_v52 = vpop.f32.mrf.mxu0  ;;  %v3996_v38 = vpop.f32.mrf.mxu1 }
 0xc71   :  { %v4001_v32 = vadd.f32 %v3925_v52, %v3151_v49  ;;  %v4003_v14 = vadd.f32 %v3996_v38, %v3264_v46  ;;  %v8178_v49 = vld [vmem:[#allocation11 + $0x138] sm:$0xff]  ;;  %v8181_v52 = vld [vmem:[#allocation11 + $0x120] sm:$0xff]  ;;  %v8223_v46 = vld [vmem:[#allocation11 + $0xa8] sm:$0xff] }
 0xc72   :  { %v3927_v37 = vpop.f32.mrf.mxu0  ;;  %v3998_v50 = vpop.f32.mrf.mxu1  ;;  %v8202_v38 = vld [vmem:[#allocation11 + $0xf8] sm:$0xff] }
 0xc73   :  { %v5450_v15 = vmul.f32 -1.442695, %v4001_v32  ;;  %v4002_v6 = vadd.f32 %v3927_v37, %v3153_v62  ;;  %v4004_v40 = vadd.f32 %v3998_v50, %v3266_v0  ;;  %v8187_v62 = vld [vmem:[#allocation11 + $0x108] sm:$0xff]  ;;  %v8190_v32 = vld [vmem:[#allocation11 + $0x118] sm:$0xff]  ;;  %v8193_v37 = vld [vmem:[#allocation11 + $0x100] sm:$0xff] }
 0xc74   :  { %v8208_v50 = vld [vmem:[#allocation11 + $0xf0] sm:$0xff]  ;;  %v8214_v0 = vld [vmem:[#allocation11 + $0xd8] sm:$0xff] }
 0xc75   :  { %5720 = vpow2.f32 %v5450_v15  ;;  %v5451_v24 = vmul.f32 -1.442695, %v4002_v6  ;;  %v5452_v59 = vmul.f32 -1.442695, %v4004_v40  ;;  %v8196_v15 = vld [vmem:[#allocation11 + $0x110] sm:$0xff]  ;;  %v8199_v6 = vld [vmem:[#allocation11 + $0xe8] sm:$0xff] }
 0xc76   :  { %v8217_v40 = vld [vmem:[#allocation11 + $0xc0] sm:$0xff] }
 0xc77   :  { %5722 = vpow2.f32 %v5451_v24  ;;  %v8205_v24 = vld [vmem:[#allocation11 + $0xe0] sm:$0xff] }
 0xc78   :  { %5724 = vtanh.f32 %v4003_v14  ;;  %v8226_v14 = vld [vmem:[#allocation11 + $0xb8] sm:$0xff] }
 0xc79   :  { %5726 = vpow2.f32 %v5452_v59  ;;  %v8229_v59 = vld [vmem:[#allocation11 + $0xa0] sm:$0xff] }
 0xc82   :  { %v5721_v47 = vpop.eup %5720 }
 0xc83   :  { %v4008_v54 = vadd.f32 1.0, %v5721_v47  ;;  %v8232_v47 = vld [vmem:[#allocation11 + $0xb0] sm:$0xff] }
 0xc84   :  { %v5723_v3 = vpop.eup %5722  ;;  %9311 = vst [vmem:[#allocation44_spill] sm:$0xff] %v8232_v47 }
 0xc85   :  { %5728 = vrcp.f32 %v4008_v54  ;;  %v4014_v44 = vadd.f32 1.0, %v5723_v3  ;;  %v5725_v30 = vpop.eup %5724  ;;  %v8235_v54 = vld [vmem:[#allocation11 + $0x88] sm:$0xff]  ;;  %v8238_v3 = vld [vmem:[#allocation11 + $0x98] sm:$0xff] }
 0xc86   :  { %v5727_v27 = vpop.eup %5726  ;;  %9312 = vst [vmem:[#allocation46_spill] sm:$0xff] %v8235_v54  ;;  %9313 = vst [vmem:[#allocation47_spill] sm:$0xff] %v8238_v3 }
 0xc87   :  { %5730 = vrcp.f32 %v4014_v44  ;;  %v4021_v21 = vadd.f32 1.0, %v5727_v27  ;;  %v8241_v44 = vld [vmem:[#allocation11 + $0x80] sm:$0xff]  ;;  %v8247_v27 = vld [vmem:[#allocation11 + $0x68] sm:$0xff] }
 0xc88   :  { %9314 = vst [vmem:[#allocation45_spill] sm:$0xff] %v8241_v44  ;;  %9316 = vst [vmem:[#allocation50_spill] sm:$0xff] %v8247_v27 }
 0xc89   :  { %5732 = vrcp.f32 %v4021_v21  ;;  %v8259_v21 = vld [vmem:[#allocation11 + $0x48] sm:$0xff] }
 0xc8a   :  { %9320 = vst [vmem:[#allocation54_spill] sm:$0xff] %v8259_v21 }
 0xc92   :  { %v5729_v7 = vpop.eup %5728 }
 0xc93   :  { %v4025_v31 = vmul.f32 %v5729_v7, %v5725_v30  ;;  %v8244_v30 = vld [vmem:[#allocation11 + $0x90] sm:$0xff]  ;;  %v8250_v7 = vld [vmem:[#allocation11 + $0x78] sm:$0xff] }
 0xc94   :  { %v5731_v16 = vpop.eup %5730  ;;  %9315 = vst [vmem:[#allocation48_spill] sm:$0xff] %v8244_v30  ;;  %9317 = vst [vmem:[#allocation51_spill] sm:$0xff] %v8250_v7 }
 0xc95   :  { %v4024_v22 = vmul.f32 %v5731_v16, %v8016_v61  ;;  %v8157_v61 = vld [vmem:[#allocation11 + $0x160] sm:$0xff]  ;;  %v8256_v16 = vld [vmem:[#allocation11 + $0x70] sm:$0xff] }
 0xc96   :  { %v5733_v33 = vpop.eup %5732  ;;  %9319 = vst [vmem:[#allocation52_spill] sm:$0xff] %v8256_v16 }
 0xc97   :  { %v8134_v28 = vadd.f32 %v4025_v31, %v4024_v22  ;;  %v8253_v31 = vld [vmem:[#allocation11 + $0x60] sm:$0xff]  ;;  %v8262_v22 = vld [vmem:[#allocation11 + $0x58] sm:$0xff] }
 0xc98   :  { %9318 = vst [vmem:[#allocation49_spill] sm:$0xff] %v8253_v31  ;;  %9321 = vst [vmem:[#allocation55_spill] sm:$0xff] %v8262_v22 }
 0xc99   :  { %5734 = vtanh.f32 %v8134_v28 }
 0xca6   :  { %v5735_v4 = vpop.eup %5734 }
 0xca7   :  { %v8137_v13 = vmul.f32 %v5735_v4, %v5733_v33  ;;  %v8265_v33 = vld [vmem:[#allocation11 + $0x40] sm:$0xff]  ;;  %v8268_v4 = vld [vmem:[#allocation11 + $0x50] sm:$0xff] }
 0xca8   :  { %9322 = vst [vmem:[#allocation53_spill] sm:$0xff] %v8265_v33  ;;  %9323 = vst [vmem:[#allocation18_spill] sm:$0xff] %v8268_v4 }
 0xca9   :  { %9310 = vst [vmem:[#allocation33_spill] sm:$0xff] %v8137_v13  ;;  %4100 = vmatmul.mubr.f32.vlgmr.msra.gmra.mxu0 %v8137_v13  ;;  %4171 = vmatmul.mubr.f32.vlgmr.msra.gmra.mxu1 %v8137_v13  ;;  %v8271_v13 = vld [vmem:[#allocation11 + $0x28] sm:$0xff] }
 0xcaa   :  { %4212 = vmatpush1.msra.mxu0 %v8023_v19  ;;  %4283 = vmatpush1.msra.mxu1 %v8026_v39  ;;  %9324 = vst [vmem:[#allocation31_spill] sm:$0xff] %v8271_v13 }
 0xcab   :  { %4213 = vmatprep.subr.mxu0 %v8029_v18  ;;  %4284 = vmatprep.subr.mxu1 %v8032_v58 }
 0xcac   :  { %4214 = vmatpush1.msra.mxu0 %v8035_v63  ;;  %4285 = vmatpush1.msra.mxu1 %v8038_v29 }
 0xcad   :  { %4215 = vmatprep.subr.mxu0 %v8041_v45  ;;  %4286 = vmatprep.subr.mxu1 %v8044_v5 }
 0xcae   :  { %4216 = vmatpush1.msra.mxu0 %v8047_v25  ;;  %4287 = vmatpush1.msra.mxu1 %v8050_v11 }
 0xcaf   :  { %4217 = vmatprep.subr.mxu0 %v8053_v34  ;;  %4288 = vmatprep.subr.mxu1 %v8056_v12 }
 0xcb0   :  { %4218 = vmatpush1.msra.mxu0 %v8059_v56  ;;  %4289 = vmatpush1.msra.mxu1 %v8062_v1 }
 0xcb1   :  { %4219 = vmatprep.subr.mxu0 %v8065_v55  ;;  %4290 = vmatprep.subr.mxu1 %v8068_v10 }
 0xcb2   :  { %4220 = vmatpush1.msra.mxu0 %v8157_v61  ;;  %4291 = vmatpush1.msra.mxu1 %v8160_v17 }
 0xcb3   :  { %4221 = vmatprep.subr.mxu0 %v8163_v35  ;;  %4292 = vmatprep.subr.mxu1 %v8166_v23 }
 0xcb4   :  { %4222 = vmatpush1.msra.mxu0 %v8169_v2  ;;  %4293 = vmatpush1.msra.mxu1 %v8172_v42 }
 0xcb5   :  { %4223 = vmatprep.subr.mxu0 %v8175_v48  ;;  %4294 = vmatprep.subr.mxu1 %v8178_v49 }
 0xcb6   :  { %4224 = vmatpush1.msra.mxu0 %v8181_v52  ;;  %4295 = vmatpush1.msra.mxu1 %v8184_v8 }
 0xcb7   :  { %4225 = vmatprep.subr.mxu0 %v8187_v62  ;;  %4296 = vmatprep.subr.mxu1 %v8190_v32 }
 0xcb8   :  { %4226 = vmatpush1.msra.mxu0 %v8193_v37  ;;  %4297 = vmatpush1.msra.mxu1 %v8196_v15 }
 0xcb9   :  { %4227 = vmatprep.subr.mxu0 %v8199_v6  ;;  %4298 = vmatprep.subr.mxu1 %v8202_v38 }
 0xcba   :  { %4228 = vmatpush1.msra.mxu0 %v8205_v24  ;;  %4299 = vmatpush1.msra.mxu1 %v8208_v50 }
 0xcbb   :  { %4229 = vmatprep.subr.mxu0 %v8211_v57  ;;  %4300 = vmatprep.subr.mxu1 %v8214_v0 }
 0xcbc   :  { %4230 = vmatpush1.msra.mxu0 %v8217_v40  ;;  %4301 = vmatpush1.msra.mxu1 %v8220_v51 }
 0xcbd   :  { %4231 = vmatprep.subr.mxu0 %v8223_v46  ;;  %4302 = vmatprep.subr.mxu1 %v8226_v14 }
 0xcbe   :  { %4232 = vmatpush1.msra.mxu0 %v8229_v59  ;;  %4303 = vmatpush1.msra.mxu1 %v8232_v47 }
 0xcbf   :  { %4233 = vmatprep.subr.mxu0 %v8235_v54  ;;  %4304 = vmatprep.subr.mxu1 %v8238_v3  ;;  %v9335_v3 = vld [vmem:[#allocation37_spill] sm:$0xff] }
 0xcc0   :  { %4234 = vmatpush1.msra.mxu0 %v8241_v44  ;;  %4305 = vmatpush1.msra.mxu1 %v8244_v30 }
 0xcc1   :  { %4235 = vmatprep.subr.mxu0 %v8247_v27  ;;  %4306 = vmatprep.subr.mxu1 %v8250_v7 }
 0xcc2   :  { %4236 = vmatpush1.msra.mxu0 %v8253_v31  ;;  %4307 = vmatpush1.msra.mxu1 %v8256_v16 }
 0xcc3   :  { %4237 = vmatprep.subr.mxu0 %v8259_v21  ;;  %4308 = vmatprep.subr.mxu1 %v8262_v22  ;;  %v8277_v21 = vld [vmem:[#allocation11 + $0x20] sm:$0xff]  ;;  %v8280_v22 = vld [vmem:[#allocation11 + $0x30] sm:$0xff] }
 0xcc4   :  { %4238 = vmatpush1.msra.mxu0 %v8265_v33  ;;  %4309 = vmatpush1.msra.mxu1 %v8268_v4  ;;  %9326 = vst [vmem:[#allocation58_spill] sm:$0xff] %v8277_v21  ;;  %9327 = vst [vmem:[#allocation38_spill] sm:$0xff] %v8280_v22  ;;  %v8283_v33 = vld [vmem:[#allocation11 + $0x8] sm:$0xff]  ;;  %v8286_v4 = vld [vmem:[#allocation11 + $0x18] sm:$0xff] }
 0xcc5   :  { %4239 = vmatprep.subr.mxu0 %v8271_v13  ;;  %4310 = vmatprep.subr.mxu1 %v8274_v60  ;;  %9328 = vst [vmem:[#allocation28_spill] sm:$0xff] %v8283_v33  ;;  %9329 = vst [vmem:[#allocation19_spill] sm:$0xff] %v8286_v4  ;;  %v8289_v13 = vld [vmem:[#allocation11] sm:$0xff]  ;;  %v8293_v60 = vld [vmem:[#allocation11 + $0x10] sm:$0xff] }
 0xcc6   :  { %4240 = vmatpush1.msra.mxu0 %v8277_v21  ;;  %4311 = vmatpush1.msra.mxu1 %v8280_v22  ;;  %9330 = vst [vmem:[#allocation30_spill] sm:$0xff] %v8289_v13  ;;  %9331 = vst [vmem:[#allocation24_spill] sm:$0xff] %v8293_v60  ;;  %v9333_v21 = vld [vmem:[#allocation60_spill] sm:$0xff] }
 0xcc7   :  { %4241 = vmatprep.subr.mxu0 %v8283_v33  ;;  %4312 = vmatprep.subr.mxu1 %v8286_v4  ;;  %v9332_v33 = vld [vmem:[#allocation26_spill] sm:$0xff]  ;;  %v3159_v16 = vadd.f32 %v9333_v21, %v7832_v9 }
 0xcc8   :  { %4242 = vmatpush1.msra.mxu0 %v8289_v13  ;;  %4275 = vmatprep.mubr.f32.mxu0 %v9301_v41  ;;  %v3157_v22 = vadd.f32 %v9332_v33, %v9305_v36  ;;  %v3270_v33 = vadd.f32 %v9335_v3, %v7849_v20  ;;  %v9339_v3 = vld [vmem:[#allocation47_spill] sm:$0xff] }
 0xcc9   :  { %4313 = vmatpush1.msra.mxu1 %v8293_v60  ;;  %4346 = vmatprep.mubr.f32.mxu1 %v9301_v41 }
 0xcca   :  { %4387 = vmatprep.subr.mxu0 %v8119_v43  ;;  %4458 = vmatprep.subr.mxu1 %v8122_v53  ;;  %v9334_v43 = vld [vmem:[#allocation62_spill] sm:$0xff] }
 0xccb   :  { %v3272_v44 = vadd.f32 %v9334_v43, %v9263_v26 }
 0xd69   :  { %v4101_v4 = vpop.f32.mrf.mxu0  ;;  %v4172_v30 = vpop.f32.mrf.mxu1 }
 0xd6a   :  { %v4177_v13 = vadd.f32 %v4101_v4, %v3157_v22  ;;  %v4179_v36 = vadd.f32 %v4172_v30, %v3270_v33  ;;  %v9340_v30 = vld [vmem:[#allocation45_spill] sm:$0xff]  ;;  %v9341_v4 = vld [vmem:[#allocation48_spill] sm:$0xff]  ;;  %v9342_v33 = vld [vmem:[#allocation50_spill] sm:$0xff] }
 0xd6b   :  { %v4103_v31 = vpop.f32.mrf.mxu0  ;;  %v4174_v41 = vpop.f32.mrf.mxu1 }
 0xd6c   :  { %v5453_v7 = vmul.f32 -1.442695, %v4177_v13  ;;  %v4178_v27 = vadd.f32 %v4103_v31, %v3159_v16  ;;  %v4180_v53 = vadd.f32 %v4174_v41, %v3272_v44 }
 0xd6e   :  { %5736 = vpow2.f32 %v5453_v7  ;;  %v5454_v60 = vmul.f32 -1.442695, %v4178_v27  ;;  %v5455_v54 = vmul.f32 -1.442695, %v4180_v53 }
 0xd70   :  { %5738 = vpow2.f32 %v5454_v60 }
 0xd71   :  { %5740 = vtanh.f32 %v4179_v36 }
 0xd72   :  { %5742 = vpow2.f32 %v5455_v54  ;;  %v9338_v54 = vld [vmem:[#allocation46_spill] sm:$0xff] }
 0xd7b   :  { %v5737_v47 = vpop.eup %5736 }
 0xd7c   :  { %v4184_v21 = vadd.f32 1.0, %v5737_v47 }
 0xd7d   :  { %v5739_v22 = vpop.eup %5738 }
 0xd7e   :  { %5744 = vrcp.f32 %v4184_v21  ;;  %v4190_v13 = vadd.f32 1.0, %v5739_v22  ;;  %v5741_v27 = vpop.eup %5740  ;;  %v9343_v21 = vld [vmem:[#allocation51_spill] sm:$0xff]  ;;  %v9344_v22 = vld [vmem:[#allocation49_spill] sm:$0xff] }
 0xd7f   :  { %v5743_v60 = vpop.eup %5742 }
 0xd80   :  { %5746 = vrcp.f32 %v4190_v13  ;;  %v4197_v43 = vadd.f32 1.0, %v5743_v60  ;;  %v9345_v13 = vld [vmem:[#allocation52_spill] sm:$0xff]  ;;  %v9347_v60 = vld [vmem:[#allocation55_spill] sm:$0xff] }
 0xd82   :  { %5748 = vrcp.f32 %v4197_v43  ;;  %v9351_v43 = vld [vmem:[#allocation56_spill] sm:$0xff] }
 0xd8b   :  { %v5745_v7 = vpop.eup %5744 }
 0xd8c   :  { %v4201_v31 = vmul.f32 %v5745_v7, %v5741_v27  ;;  %v9346_v27 = vld [vmem:[#allocation54_spill] sm:$0xff]  ;;  %v9348_v7 = vld [vmem:[#allocation53_spill] sm:$0xff] }
 0xd8d   :  { %v5747_v16 = vpop.eup %5746 }
 0xd8e   :  { %v4200_v41 = vmul.f32 %v5747_v16, %v8134_v28  ;;  %v9337_v28 = vld [vmem:[#allocation44_spill] sm:$0xff]  ;;  %v9350_v16 = vld [vmem:[#allocation31_spill] sm:$0xff] }
 0xd8f   :  { %v5749_v53 = vpop.eup %5748 }
 0xd90   :  { %v8308_v44 = vadd.f32 %v4201_v31, %v4200_v41  ;;  %v9349_v31 = vld [vmem:[#allocation18_spill] sm:$0xff] }
 0xd91   :  { %v9352_v41 = vld [vmem:[#allocation58_spill] sm:$0xff] }
 0xd92   :  { %5750 = vtanh.f32 %v8308_v44 }
 0xd9f   :  { %v5751_v36 = vpop.eup %5750 }
 0xda0   :  { %v8311_v47 = vmul.f32 %v5751_v36, %v5749_v53  ;;  %v9353_v53 = vld [vmem:[#allocation38_spill] sm:$0xff]  ;;  %v9354_v36 = vld [vmem:[#allocation28_spill] sm:$0xff] }
 0xda2   :  { %9336 = vst [vmem:[#allocation34_spill] sm:$0xff] %v8311_v47  ;;  %4276 = vmatmul.mubr.f32.vlgmr.msra.gmra.mxu0 %v8311_v47  ;;  %4347 = vmatmul.mubr.f32.vlgmr.msra.gmra.mxu1 %v8311_v47  ;;  %v9355_v47 = vld [vmem:[#allocation19_spill] sm:$0xff] }
 0xda3   :  { %4388 = vmatpush1.msra.mxu0 %v8023_v19  ;;  %4459 = vmatpush1.msra.mxu1 %v8026_v39 }
 0xda4   :  { %4389 = vmatprep.subr.mxu0 %v8029_v18  ;;  %4460 = vmatprep.subr.mxu1 %v8032_v58 }
 0xda5   :  { %4390 = vmatpush1.msra.mxu0 %v8035_v63  ;;  %4461 = vmatpush1.msra.mxu1 %v8038_v29 }
 0xda6   :  { %4391 = vmatprep.subr.mxu0 %v8041_v45  ;;  %4462 = vmatprep.subr.mxu1 %v8044_v5 }
 0xda7   :  { %4392 = vmatpush1.msra.mxu0 %v8047_v25  ;;  %4463 = vmatpush1.msra.mxu1 %v8050_v11 }
 0xda8   :  { %4393 = vmatprep.subr.mxu0 %v8053_v34  ;;  %4464 = vmatprep.subr.mxu1 %v8056_v12 }
 0xda9   :  { %4394 = vmatpush1.msra.mxu0 %v8059_v56  ;;  %4465 = vmatpush1.msra.mxu1 %v8062_v1 }
 0xdaa   :  { %4395 = vmatprep.subr.mxu0 %v8065_v55  ;;  %4466 = vmatprep.subr.mxu1 %v8068_v10 }
 0xdab   :  { %4396 = vmatpush1.msra.mxu0 %v8157_v61  ;;  %4467 = vmatpush1.msra.mxu1 %v8160_v17 }
 0xdac   :  { %4397 = vmatprep.subr.mxu0 %v8163_v35  ;;  %4468 = vmatprep.subr.mxu1 %v8166_v23 }
 0xdad   :  { %4398 = vmatpush1.msra.mxu0 %v8169_v2  ;;  %4469 = vmatpush1.msra.mxu1 %v8172_v42 }
 0xdae   :  { %4399 = vmatprep.subr.mxu0 %v8175_v48  ;;  %4470 = vmatprep.subr.mxu1 %v8178_v49 }
 0xdaf   :  { %4400 = vmatpush1.msra.mxu0 %v8181_v52  ;;  %4471 = vmatpush1.msra.mxu1 %v8184_v8 }
 0xdb0   :  { %4401 = vmatprep.subr.mxu0 %v8187_v62  ;;  %4472 = vmatprep.subr.mxu1 %v8190_v32 }
 0xdb1   :  { %4402 = vmatpush1.msra.mxu0 %v8193_v37  ;;  %4473 = vmatpush1.msra.mxu1 %v8196_v15 }
 0xdb2   :  { %4403 = vmatprep.subr.mxu0 %v8199_v6  ;;  %4474 = vmatprep.subr.mxu1 %v8202_v38 }
 0xdb3   :  { %4404 = vmatpush1.msra.mxu0 %v8205_v24  ;;  %4475 = vmatpush1.msra.mxu1 %v8208_v50 }
 0xdb4   :  { %4405 = vmatprep.subr.mxu0 %v8211_v57  ;;  %4476 = vmatprep.subr.mxu1 %v8214_v0 }
 0xdb5   :  { %4406 = vmatpush1.msra.mxu0 %v8217_v40  ;;  %4477 = vmatpush1.msra.mxu1 %v8220_v51 }
 0xdb6   :  { %4407 = vmatprep.subr.mxu0 %v8223_v46  ;;  %4478 = vmatprep.subr.mxu1 %v8226_v14 }
 0xdb7   :  { %4408 = vmatpush1.msra.mxu0 %v8229_v59  ;;  %4479 = vmatpush1.msra.mxu1 %v9337_v28 }
 0xdb8   :  { %4409 = vmatprep.subr.mxu0 %v9338_v54  ;;  %4480 = vmatprep.subr.mxu1 %v9339_v3  ;;  %v9365_v3 = vld [vmem:[#allocation61_spill] sm:$0xff] }
 0xdb9   :  { %4410 = vmatpush1.msra.mxu0 %v9340_v30  ;;  %4481 = vmatpush1.msra.mxu1 %v9341_v4 }
 0xdba   :  { %4411 = vmatprep.subr.mxu0 %v9342_v33  ;;  %4482 = vmatprep.subr.mxu1 %v9343_v21 }
 0xdbb   :  { %4412 = vmatpush1.msra.mxu0 %v9344_v22  ;;  %4483 = vmatpush1.msra.mxu1 %v9345_v13  ;;  %v9356_v13 = vld [vmem:[#allocation30_spill] sm:$0xff] }
 0xdbc   :  { %4413 = vmatprep.subr.mxu0 %v9346_v27  ;;  %4484 = vmatprep.subr.mxu1 %v9347_v60  ;;  %v9357_v27 = vmov 0.0   ;;  %v9358_v60 = vld [vmem:[#allocation24_spill] sm:$0xff] }
 0xdbd   :  { %4414 = vmatpush1.msra.mxu0 %v9348_v7  ;;  %4485 = vmatpush1.msra.mxu1 %v9349_v31  ;;  %v9359_v31 = vld [vmem:[#allocation16_spill] sm:$0xff] }
 0xdbe   :  { %4415 = vmatprep.subr.mxu0 %v9350_v16  ;;  %4486 = vmatprep.subr.mxu1 %v9351_v43  ;;  %v9360_v16 = vld [vmem:[#allocation23_spill] sm:$0xff] }
 0xdbf   :  { %4416 = vmatpush1.msra.mxu0 %v9352_v41  ;;  %4487 = vmatpush1.msra.mxu1 %v9353_v53  ;;  %v9361_v43 = vld [vmem:[#allocation43_spill] sm:$0xff] }
 0xdc0   :  { %4417 = vmatprep.subr.mxu0 %v9354_v36  ;;  %4488 = vmatprep.subr.mxu1 %v9355_v47  ;;  %v9362_v41 = vld [vmem:[#allocation63_spill] sm:$0xff] }
 0xdc1   :  { %4418 = vmatpush1.msra.mxu0 %v9356_v13  ;;  %4451 = vmatprep.mubr.f32.mxu0 %v9357_v27  ;;  %v3163_v7 = vadd.f32 %v9362_v41, %v9361_v43  ;;  %v9363_v36 = vld [vmem:[#allocation67_spill] sm:$0xff]  ;;  %v3276_v41 = vadd.f32 %v9365_v3, %v7849_v20 }
 0xdc2   :  { %4489 = vmatpush1.msra.mxu1 %v9358_v60  ;;  %4522 = vmatprep.mubr.f32.mxu1 %v9357_v27  ;;  %v3165_v22 = vadd.f32 %v9363_v36, %v7832_v9 }
 0xdc3   :  { %4563 = vmatprep.subr.mxu0 %v9359_v31  ;;  %4634 = vmatprep.subr.mxu1 %v9360_v16  ;;  %v9364_v31 = vld [vmem:[#allocation39_spill] sm:$0xff] }
 0xdc4   :  { %v3278_v30 = vadd.f32 %v9364_v31, %v9263_v26 }
 0xe62   :  { %v4277_v53 = vpop.f32.mrf.mxu0  ;;  %v4348_v4 = vpop.f32.mrf.mxu1 }
 0xe63   :  { %v4353_v47 = vadd.f32 %v4277_v53, %v3163_v7  ;;  %v4355_v43 = vadd.f32 %v4348_v4, %v3276_v41 }
 0xe64   :  { %v4279_v21 = vpop.f32.mrf.mxu0  ;;  %v4350_v27 = vpop.f32.mrf.mxu1 }
 0xe65   :  { %v5456_v13 = vmul.f32 -1.442695, %v4353_v47  ;;  %v4354_v33 = vadd.f32 %v4279_v21, %v3165_v22  ;;  %v4356_v16 = vadd.f32 %v4350_v27, %v3278_v30 }
 0xe67   :  { %5752 = vpow2.f32 %v5456_v13  ;;  %v5457_v60 = vmul.f32 -1.442695, %v4354_v33  ;;  %v5458_v54 = vmul.f32 -1.442695, %v4356_v16 }
 0xe69   :  { %5754 = vpow2.f32 %v5457_v60 }
 0xe6a   :  { %5756 = vtanh.f32 %v4355_v43 }
 0xe6b   :  { %5758 = vpow2.f32 %v5458_v54 }
 0xe74   :  { %v5753_v28 = vpop.eup %5752 }
 0xe75   :  { %v4360_v36 = vadd.f32 1.0, %v5753_v28 }
 0xe76   :  { %v5755_v7 = vpop.eup %5754 }
 0xe77   :  { %5760 = vrcp.f32 %v4360_v36  ;;  %v4366_v47 = vadd.f32 1.0, %v5755_v7  ;;  %v5757_v33 = vpop.eup %5756 }
 0xe78   :  { %v5759_v21 = vpop.eup %5758 }
 0xe79   :  { %5762 = vrcp.f32 %v4366_v47  ;;  %v4373_v53 = vadd.f32 1.0, %v5759_v21 }
 0xe7b   :  { %5764 = vrcp.f32 %v4373_v53 }
 0xe84   :  { %v5761_v22 = vpop.eup %5760 }
 0xe85   :  { %v4377_v13 = vmul.f32 %v5761_v22, %v5757_v33 }
 0xe86   :  { %v5763_v60 = vpop.eup %5762 }
 0xe87   :  { %v4376_v30 = vmul.f32 %v5763_v60, %v8308_v44 }
 0xe88   :  { %v5765_v28 = vpop.eup %5764 }
 0xe89   :  { %v8390_v27 = vadd.f32 %v4377_v13, %v4376_v30 }
 0xe8b   :  { %5766 = vtanh.f32 %v8390_v27 }
 0xe98   :  { %v5767_v3 = vpop.eup %5766 }
 0xe99   :  { %v8393_v4 = vmul.f32 %v5767_v3, %v5765_v28  ;;  %v4759_v3 = vld [vmem:[%s8751_s7 + $0x70] sm:$0xff] }
 0xe9b   :  { %4452 = vmatmul.mubr.f32.vlgmr.msra.gmra.mxu0 %v8393_v4  ;;  %4523 = vmatmul.mubr.f32.vlgmr.msra.gmra.mxu1 %v8393_v4 }
 0xe9c   :  { %4564 = vmatpush1.msra.mxu0 %v8023_v19  ;;  %4635 = vmatpush1.msra.mxu1 %v8026_v39  ;;  %v9366_v19 = vld [vmem:[#allocation44_spill] sm:$0xff]  ;;  %v9367_v39 = vld [vmem:[#allocation46_spill] sm:$0xff] }
 0xe9d   :  { %4565 = vmatprep.subr.mxu0 %v8029_v18  ;;  %4636 = vmatprep.subr.mxu1 %v8032_v58  ;;  %v9368_v18 = vld [vmem:[#allocation47_spill] sm:$0xff]  ;;  %v9369_v58 = vld [vmem:[#allocation45_spill] sm:$0xff] }
 0xe9e   :  { %4566 = vmatpush1.msra.mxu0 %v8035_v63  ;;  %4637 = vmatpush1.msra.mxu1 %v8038_v29  ;;  %v9370_v63 = vld [vmem:[#allocation48_spill] sm:$0xff]  ;;  %v9371_v29 = vld [vmem:[#allocation50_spill] sm:$0xff] }
 0xe9f   :  { %4567 = vmatprep.subr.mxu0 %v8041_v45  ;;  %4638 = vmatprep.subr.mxu1 %v8044_v5  ;;  %v9372_v45 = vld [vmem:[#allocation51_spill] sm:$0xff]  ;;  %v9373_v5 = vld [vmem:[#allocation49_spill] sm:$0xff] }
 0xea0   :  { %4568 = vmatpush1.msra.mxu0 %v8047_v25  ;;  %4639 = vmatpush1.msra.mxu1 %v8050_v11  ;;  %v9374_v25 = vld [vmem:[#allocation52_spill] sm:$0xff]  ;;  %v9375_v11 = vld [vmem:[#allocation54_spill] sm:$0xff] }
 0xea1   :  { %4569 = vmatprep.subr.mxu0 %v8053_v34  ;;  %4640 = vmatprep.subr.mxu1 %v8056_v12  ;;  %v9376_v34 = vld [vmem:[#allocation55_spill] sm:$0xff]  ;;  %v9377_v12 = vld [vmem:[#allocation53_spill] sm:$0xff] }
 0xea2   :  { %4570 = vmatpush1.msra.mxu0 %v8059_v56  ;;  %4641 = vmatpush1.msra.mxu1 %v8062_v1  ;;  %v9378_v56 = vld [vmem:[#allocation18_spill] sm:$0xff]  ;;  %v9379_v1 = vld [vmem:[#allocation31_spill] sm:$0xff] }
 0xea3   :  { %4571 = vmatprep.subr.mxu0 %v8065_v55  ;;  %4642 = vmatprep.subr.mxu1 %v8068_v10  ;;  %v9380_v55 = vld [vmem:[#allocation56_spill] sm:$0xff]  ;;  %v9381_v10 = vld [vmem:[#allocation58_spill] sm:$0xff] }
 0xea4   :  { %4572 = vmatpush1.msra.mxu0 %v8157_v61  ;;  %4643 = vmatpush1.msra.mxu1 %v8160_v17  ;;  %v9382_v61 = vld [vmem:[#allocation38_spill] sm:$0xff]  ;;  %v9383_v17 = vld [vmem:[#allocation28_spill] sm:$0xff] }
 0xea5   :  { %4573 = vmatprep.subr.mxu0 %v8163_v35  ;;  %4644 = vmatprep.subr.mxu1 %v8166_v23  ;;  %v9384_v35 = vld [vmem:[#allocation19_spill] sm:$0xff]  ;;  %v9385_v23 = vld [vmem:[#allocation30_spill] sm:$0xff] }
 0xea6   :  { %4574 = vmatpush1.msra.mxu0 %v8169_v2  ;;  %4645 = vmatpush1.msra.mxu1 %v8172_v42  ;;  %v9386_v2 = vmov 0.0   ;;  %v9387_v42 = vld [vmem:[#allocation24_spill] sm:$0xff] }
 0xea7   :  { %4575 = vmatprep.subr.mxu0 %v8175_v48  ;;  %4646 = vmatprep.subr.mxu1 %v8178_v49  ;;  %v4760_v48 = vld [vmem:[%s8751_s7 + $0x78] sm:$0xff] }
 0xea8   :  { %4576 = vmatpush1.msra.mxu0 %v8181_v52  ;;  %4647 = vmatpush1.msra.mxu1 %v8184_v8  ;;  %v9388_v49 = vld [vmem:[#allocation43_spill] sm:$0xff]  ;;  %v9389_v52 = vld [vmem:[#allocation41_spill] sm:$0xff] }
 0xea9   :  { %4577 = vmatprep.subr.mxu0 %v8187_v62  ;;  %4648 = vmatprep.subr.mxu1 %v8190_v32  ;;  %v3169_v8 = vadd.f32 %v9389_v52, %v9388_v49  ;;  %v9390_v32 = vld [vmem:[#allocation27_spill] sm:$0xff] }
 0xeaa   :  { %4578 = vmatpush1.msra.mxu0 %v8193_v37  ;;  %4649 = vmatpush1.msra.mxu1 %v8196_v15  ;;  %v3171_v37 = vadd.f32 %v9390_v32, %v7832_v9 }
 0xeab   :  { %4579 = vmatprep.subr.mxu0 %v8199_v6  ;;  %4650 = vmatprep.subr.mxu1 %v8202_v38 }
 0xeac   :  { %4580 = vmatpush1.msra.mxu0 %v8205_v24  ;;  %4651 = vmatpush1.msra.mxu1 %v8208_v50 }
 0xead   :  { %4581 = vmatprep.subr.mxu0 %v8211_v57  ;;  %4652 = vmatprep.subr.mxu1 %v8214_v0 }
 0xeae   :  { %4582 = vmatpush1.msra.mxu0 %v8217_v40  ;;  %4653 = vmatpush1.msra.mxu1 %v8220_v51  ;;  %v9391_v40 = vld [vmem:[#allocation68_spill] sm:$0xff] }
 0xeaf   :  { %4583 = vmatprep.subr.mxu0 %v8223_v46  ;;  %4654 = vmatprep.subr.mxu1 %v8226_v14  ;;  %v3284_v51 = vadd.f32 %v9391_v40, %v9263_v26  ;;  %v9392_v14 = vld [vmem:[#allocation21_spill] sm:$0xff] }
 0xeb0   :  { %4584 = vmatpush1.msra.mxu0 %v8229_v59  ;;  %4655 = vmatpush1.msra.mxu1 %v9366_v19  ;;  %v3282_v59 = vadd.f32 %v9392_v14, %v7849_v20  ;;  %v9393_v19 = vld [vmem:[#allocation69_spill] sm:$0xff]  ;;  %v8538_v14 = vld [vmem:[%s8752_s8] ss:$0 sm:$0xff]  ;;  %s6053_s8 = smov [#allocation12]  }
 0xeb1   :  { %4585 = vmatprep.subr.mxu0 %v9367_v39  ;;  %4656 = vmatprep.subr.mxu1 %v9368_v18  ;;  %v4757_v39 = vld [vmem:[%s8751_s7 + $0x60] sm:$0xff]  ;;  %v4756_v18 = vld [vmem:[%s8751_s7 + $0x58] sm:$0xff]  ;;  %s5374_s29 = sshll.u32 %s6053_s8, 4  ;;  %s5375_s29 = int_to_ptr.vmem [resolvable:$true] %s5374_s29 }
 0xeb2   :  { %4586 = vmatpush1.msra.mxu0 %v9369_v58  ;;  %4657 = vmatpush1.msra.mxu1 %v9370_v63  ;;  %v4755_v58 = vld [vmem:[%s8751_s7 + $0x50] sm:$0xff]  ;;  %v4754_v63 = vld [vmem:[%s8751_s7 + $0x48] sm:$0xff]  ;;  %s6020_s30 = scalar_lea.vmem %s5375_s29, 1024  ;;  %p6025_p2 = scmp.lt.s32.totalorder %s5375_s29, %s5375_s29 }
 0xeb3   :  { %4587 = vmatprep.subr.mxu0 %v9371_v29  ;;  %4658 = vmatprep.subr.mxu1 %v9372_v45  ;;  %v4753_v29 = vld [vmem:[%s8751_s7 + $0x40] sm:$0xff]  ;;  %v4752_v45 = vld [vmem:[%s8751_s7 + $0x38] sm:$0xff]  ;;  %p6021_p1 = scmp.ne.s32.totalorder %s5375_s29, %s6020_s30  ;;  %p6026_p3 = scmp.lt.s32.totalorder %s6020_s30, %s6020_s30 }
 0xeb4   :  { %4588 = vmatpush1.msra.mxu0 %v9373_v5  ;;  %4659 = vmatpush1.msra.mxu1 %v9374_v25  ;;  %v4751_v5 = vld [vmem:[%s8751_s7 + $0x30] sm:$0xff]  ;;  %v4750_v25 = vld [vmem:[%s8751_s7 + $0x28] sm:$0xff] }
 0xeb5   :  { %4589 = vmatprep.subr.mxu0 %v9375_v11  ;;  %4660 = vmatprep.subr.mxu1 %v9376_v34  ;;  %v4749_v11 = vld [vmem:[%s8751_s7 + $0x20] sm:$0xff]  ;;  %v4748_v34 = vld [vmem:[%s8751_s7 + $0x18] sm:$0xff]  ;;  %p6027_p4 = por %p6026_p3, %p6025_p2 }
 0xeb6   :  { %4590 = vmatpush1.msra.mxu0 %v9377_v12  ;;  %4661 = vmatpush1.msra.mxu1 %v9378_v56  ;;  %v4747_v12 = vld [vmem:[%s8751_s7 + $0x10] sm:$0xff]  ;;  %v4746_v56 = vld [vmem:[%s8751_s7 + $0x8] sm:$0xff] }
 0xeb7   :  { %4591 = vmatprep.subr.mxu0 %v9379_v1  ;;  %4662 = vmatprep.subr.mxu1 %v9380_v55  ;;  %v4745_v1 = vld [vmem:[%s8751_s7] sm:$0xff]  ;;  %p6028_p5 = pnand %p6027_p4, %p6021_p1 }
 0xeb8   :  { %4592 = vmatpush1.msra.mxu0 %v9381_v10  ;;  %4663 = vmatpush1.msra.mxu1 %v9382_v61  ;;  %v9394_v55 = vld [vmem:[#allocation40_spill] sm:$0xff]  ;;  %v9395_v10 = vld [vmem:[#allocation29_spill] sm:$0xff] }
 0xeb9   :  { %4593 = vmatprep.subr.mxu0 %v9383_v17  ;;  %4664 = vmatprep.subr.mxu1 %v9384_v35  ;;  %v9396_v61 = vld [vmem:[#allocation33_spill] sm:$0xff]  ;;  %v9397_v17 = vld [vmem:[#allocation34_spill] sm:$0xff]  ;;  %v9398_v35 = vld [vmem:[#allocation64_spill] sm:$0xff] }
 0xeba   :  { %4594 = vmatpush1.msra.mxu0 %v9385_v23  ;;  %4627 = vmatprep.mubr.f32.mxu0 %v9386_v2  ;;  %v3175_v23 = vadd.f32 %v9398_v35, %v9388_v49 }
 0xebb   :  { %4665 = vmatpush1.msra.mxu1 %v9387_v42  ;;  %4698 = vmatprep.mubr.f32.mxu1 %v9386_v2  ;;  %v9399_v42 = vld [vmem:[#allocation65_spill] sm:$0xff] }
 0xebc   :  { %5490 = vmatprep.subr.mxu0 %v4760_v48 }
 0xf5b   :  { %v4453_v62 = vpop.f32.mrf.mxu0  ;;  %v4524_v50 = vpop.f32.mrf.mxu1 }
 0xf5c   :  { %v4529_v15 = vadd.f32 %v4453_v62, %v3169_v8  ;;  %v4531_v44 = vadd.f32 %v4524_v50, %v3282_v59  ;;  %v9401_v50 = vld [vmem:[#allocation66_spill] sm:$0xff] }
 0xf5d   :  { %v4455_v6 = vpop.f32.mrf.mxu0  ;;  %v4526_v0 = vpop.f32.mrf.mxu1  ;;  %v3288_v49 = vadd.f32 %v9401_v50, %v7849_v20 }
 0xf5e   :  { %v5459_v38 = vmul.f32 -1.442695, %v4529_v15  ;;  %v4530_v24 = vadd.f32 %v4455_v6, %v3171_v37  ;;  %v4532_v46 = vadd.f32 %v4526_v0, %v3284_v51 }
 0xf60   :  { %5768 = vpow2.f32 %v5459_v38  ;;  %v5460_v57 = vmul.f32 -1.442695, %v4530_v24  ;;  %v5461_v54 = vmul.f32 -1.442695, %v4532_v46  ;;  %v9400_v38 = vld [vmem:[#allocation17_spill] sm:$0xff] }
 0xf62   :  { %5770 = vpow2.f32 %v5460_v57 }
 0xf63   :  { %5772 = vtanh.f32 %v4531_v44 }
 0xf64   :  { %5774 = vpow2.f32 %v5461_v54 }
 0xf6d   :  { %v5769_v43 = vpop.eup %5768 }
 0xf6e   :  { %v4536_v31 = vadd.f32 1.0, %v5769_v43 }
 0xf6f   :  { %v5771_v16 = vpop.eup %5770 }
 0xf70   :  { %5776 = vrcp.f32 %v4536_v31  ;;  %v4542_v41 = vadd.f32 1.0, %v5771_v16  ;;  %v5773_v36 = vpop.eup %5772 }
 0xf71   :  { %v5775_v7 = vpop.eup %5774 }
 0xf72   :  { %5778 = vrcp.f32 %v4542_v41  ;;  %v4549_v22 = vadd.f32 1.0, %v5775_v7 }
 0xf74   :  { %5780 = vrcp.f32 %v4549_v22 }
 0xf7d   :  { %v5777_v47 = vpop.eup %5776 }
 0xf7e   :  { %v4553_v33 = vmul.f32 %v5777_v47, %v5773_v36 }
 0xf7f   :  { %v5779_v21 = vpop.eup %5778 }
 0xf80   :  { %v4552_v13 = vmul.f32 %v5779_v21, %v8390_v27  ;;  %v4758_v27 = vld [vmem:[%s8751_s7 + $0x68] sm:$0xff] }
 0xf81   :  { %v5781_v53 = vpop.eup %5780 }
 0xf82   :  { %v8473_v60 = vadd.f32 %v4553_v33, %v4552_v13 }
 0xf84   :  { %5782 = vtanh.f32 %v8473_v60 }
 0xf91   :  { %v5783_v30 = vpop.eup %5782 }
 0xf92   :  { %v4556_v28 = vmul.f32 %v5783_v30, %v5781_v53 }
 0xf94   :  { %4628 = vmatmul.mubr.f32.vlgmr.msra.gmra.mxu0 %v4556_v28  ;;  %4699 = vmatmul.mubr.f32.vlgmr.msra.gmra.mxu1 %v4556_v28 }
 0xf95   :  { %5491 = vmatpush3.msra.mxu0 %v4760_v48  ;;  %5522 = vmatprep.mubr.f32.mxu0 %v9393_v19  ;;  %v3177_v48 = vadd.f32 %v9399_v42, %v7832_v9 }
 0xf96   :  { %5492 = vmatprep.subr.mxu0 %v4759_v3 }
 0xf97   :  { %5493 = vmatpush3.msra.mxu0 %v4759_v3 }
 0xf98   :  { %5494 = vmatprep.subr.mxu0 %v4758_v27 }
 0xf99   :  { %5495 = vmatpush3.msra.mxu0 %v4758_v27 }
 0xf9a   :  { %5496 = vmatprep.subr.mxu0 %v4757_v39 }
 0xf9b   :  { %5497 = vmatpush3.msra.mxu0 %v4757_v39 }
 0xf9c   :  { %5498 = vmatprep.subr.mxu0 %v4756_v18 }
 0xf9d   :  { %5499 = vmatpush3.msra.mxu0 %v4756_v18 }
 0xf9e   :  { %5500 = vmatprep.subr.mxu0 %v4755_v58 }
 0xf9f   :  { %5501 = vmatpush3.msra.mxu0 %v4755_v58 }
 0xfa0   :  { %5502 = vmatprep.subr.mxu0 %v4754_v63 }
 0xfa1   :  { %5503 = vmatpush3.msra.mxu0 %v4754_v63 }
 0xfa2   :  { %5504 = vmatprep.subr.mxu0 %v4753_v29 }
 0xfa3   :  { %5505 = vmatpush3.msra.mxu0 %v4753_v29 }
 0xfa4   :  { %5506 = vmatprep.subr.mxu0 %v4752_v45 }
 0xfa5   :  { %5507 = vmatpush3.msra.mxu0 %v4752_v45 }
 0xfa6   :  { %5508 = vmatprep.subr.mxu0 %v4751_v5 }
 0xfa7   :  { %5509 = vmatpush3.msra.mxu0 %v4751_v5 }
 0xfa8   :  { %5510 = vmatprep.subr.mxu0 %v4750_v25 }
 0xfa9   :  { %5511 = vmatpush3.msra.mxu0 %v4750_v25 }
 0xfaa   :  { %5512 = vmatprep.subr.mxu0 %v4749_v11 }
 0xfab   :  { %5513 = vmatpush3.msra.mxu0 %v4749_v11 }
 0xfac   :  { %5514 = vmatprep.subr.mxu0 %v4748_v34 }
 0xfad   :  { %5515 = vmatpush3.msra.mxu0 %v4748_v34 }
 0xfae   :  { %5516 = vmatprep.subr.mxu0 %v4747_v12 }
 0xfaf   :  { %5517 = vmatpush3.msra.mxu0 %v4747_v12 }
 0xfb0   :  { %5518 = vmatprep.subr.mxu0 %v4746_v56 }
 0xfb1   :  { %5519 = vmatpush3.msra.mxu0 %v4746_v56 }
 0xfb2   :  { %5520 = vmatprep.subr.mxu0 %v4745_v1 }
 0xfb3   :  { %5521 = vmatpush3.msra.mxu0 %v4745_v1 }
 0xfb4   :  { %5523 = vmatmul.mubr.f32.vlgmr.msra.gmra.mxu0 %v9394_v55 }
 0xfb5   :  { %5525 = vmatprep.mubr.f32.mxu0 %v9395_v10 }
 0xfb8   :  { %5526 = vmatmul.mubr.f32.gmra.mxu0 %v9396_v61 }
 0xfb9   :  { %5528 = vmatprep.mubr.f32.mxu0 %v9397_v17 }
 0xfbc   :  { %5529 = vmatmul.mubr.f32.gmra.mxu0 %v8393_v4  ;;  %v3290_v4 = vadd.f32 %v9400_v38, %v9263_v26 }
 0xfbd   :  { %5531 = vmatprep.mubr.f32.mxu0 %v4556_v28 }
0x1054   :  { %v4629_v2 = vpop.f32.mrf.mxu0  ;;  %v4700_v37 = vpop.f32.mrf.mxu1 }
0x1055   :  { %v4705_v52 = vadd.f32 %v4629_v2, %v3175_v23  ;;  %v4707_v57 = vadd.f32 %v4700_v37, %v3288_v49 }
0x1056   :  { %v4631_v8 = vpop.f32.mrf.mxu0  ;;  %v4702_v6 = vpop.f32.mrf.mxu1 }
0x1057   :  { %v5462_v62 = vmul.f32 -1.442695, %v4705_v52  ;;  %v4706_v32 = vadd.f32 %v4631_v8, %v3177_v48  ;;  %v4708_v24 = vadd.f32 %v4702_v6, %v3290_v4 }
0x1059   :  { %5784 = vpow2.f32 %v5462_v62  ;;  %v5463_v15 = vmul.f32 -1.442695, %v4706_v32  ;;  %v5464_v0 = vmul.f32 -1.442695, %v4708_v24 }
0x105b   :  { %5786 = vpow2.f32 %v5463_v15 }
0x105c   :  { %5788 = vtanh.f32 %v4707_v57 }
0x105d   :  { %5790 = vpow2.f32 %v5464_v0 }
0x1066   :  { %v5785_v40 = vpop.eup %5784 }
0x1067   :  { %v4712_v9 = vadd.f32 1.0, %v5785_v40 }
0x1068   :  { %v5787_v51 = vpop.eup %5786 }
0x1069   :  { %5792 = vrcp.f32 %v4712_v9  ;;  %v4718_v46 = vadd.f32 1.0, %v5787_v51  ;;  %v5789_v26 = vpop.eup %5788 }
0x106a   :  { %v5791_v44 = vpop.eup %5790 }
0x106b   :  { %5794 = vrcp.f32 %v4718_v46  ;;  %v4725_v7 = vadd.f32 1.0, %v5791_v44 }
0x106d   :  { %5796 = vrcp.f32 %v4725_v7 }
0x1074   :  { %v5524_v59 = vpop.f32.mrf.mxu0 }
0x1075   :  { %v4840_v20 = vadd.f32 %v5524_v59, %v8538_v14 }
0x1076   :  { %v5793_v54 = vpop.eup %5792  ;;  %v4834_v43 = vpop.f32.mrf.mxu0 }
0x1077   :  { %v4729_v31 = vmul.f32 %v5793_v54, %v5789_v26  ;;  %v4835_v16 = vadd.f32 %v8538_v14, %v4834_v43  ;;  %v4877_v41 = vsel %vm4873_vm8, %v4840_v20, -inf }
0x1078   :  { %v5795_v36 = vpop.eup %5794  ;;  %4878 = vmax.xlane.f32.xlu1 %v4877_v41  ;;  %v5527_v47 = vpop.f32.mrf.mxu0 }
0x1079   :  { %v4728_v33 = vmul.f32 %v5795_v36, %v8473_v60  ;;  %v4850_v21 = vadd.f32 %v5527_v47, %v8538_v14  ;;  %v4874_v22 = vsel %vm4873_vm8, %v4835_v16, -inf }
0x107a   :  { %v4844_v13 = vpop.f32.mrf.mxu0  ;;  %4875 = vmax.xlane.f32.xlu0 %v4874_v22  ;;  %v5797_v63 = vpop.eup %5796 }
0x107b   :  { %v4845_v53 = vadd.f32 %v8538_v14, %v4844_v13  ;;  %v4883_v30 = vsel %vm4873_vm8, %v4850_v21, -inf  ;;  %v4730_v28 = vadd.f32 %v4729_v31, %v4728_v33 }
0x107c   :  { %4884 = vmax.xlane.f32.xlu1 %v4883_v30  ;;  %v5530_v3 = vpop.f32.mrf.mxu0 }
0x107d   :  { %5798 = vtanh.f32 %v4730_v28  ;;  %v4860_v27 = vadd.f32 %v5530_v3, %v8538_v14  ;;  %v4880_v39 = vsel %vm4873_vm8, %v4845_v53, -inf }
0x107e   :  { %v4854_v19 = vpop.f32.mrf.mxu0 }
0x107f   :  { %v4855_v60 = vadd.f32 %v8538_v14, %v4854_v19  ;;  %v4889_v58 = vsel %vm4873_vm8, %v4860_v27, -inf }
0x1080   :  { %4881 = vmax.xlane.f32.xlu1 %v4880_v39 }
0x1081   :  { %v4886_v18 = vsel %vm4873_vm8, %v4855_v60, -inf }
0x1082   :  { %4887 = vmax.xlane.f32.xlu0 %v4886_v18 }
0x1084   :  { %4890 = vmax.xlane.f32.xlu1 %v4889_v58 }
0x108a   :  { %v5799_v29 = vpop.eup %5798 }
0x108b   :  { %v4732_v45 = vmul.f32 %v5799_v29, %v5797_v63 }
0x108d   :  { %5532 = vmatmul.mubr.f32.gmra.mxu0 %v4732_v45 }
0x1101   :  { %v4879_v5 = vpop.xlane.xlu1 %4878 }
0x1102   :  { %v8553_v12 = vsub.f32 %v4840_v20, %v4879_v5 }
0x1103   :  { %v4876_v11 = vpop.xlane.xlu0 %4875 }
0x1104   :  { %v8555_v56 = vsub.f32 %v4835_v16, %v4876_v11  ;;  %v4908_v1 = vmul.f32 1.442695, %v8553_v12 }
0x1105   :  { %v4885_v25 = vpop.xlane.xlu1 %4884 }
0x1106   :  { %v8558_v55 = vsub.f32 %v4850_v21, %v4885_v25  ;;  %v4906_v61 = vmul.f32 1.442695, %v8555_v56  ;;  %5800 = vpow2.f32 %v4908_v1 }
0x1108   :  { %v4912_v23 = vmul.f32 1.442695, %v8558_v55  ;;  %5802 = vpow2.f32 %v4906_v61 }
0x1109   :  { %v4882_v34 = vpop.xlane.xlu1 %4881 }
0x110a   :  { %v8561_v17 = vsub.f32 %v4845_v53, %v4882_v34  ;;  %5804 = vpow2.f32 %v4912_v23 }
0x110b   :  { %v4888_v35 = vpop.xlane.xlu0 %4887 }
0x110c   :  { %v4910_v42 = vmul.f32 1.442695, %v8561_v17  ;;  %v8567_v48 = vsub.f32 %v4855_v60, %v4888_v35 }
0x110d   :  { %v4891_v10 = vpop.xlane.xlu1 %4890 }
0x110e   :  { %v8564_v2 = vsub.f32 %v4860_v27, %v4891_v10  ;;  %5806 = vpow2.f32 %v4910_v42  ;;  %v4914_v8 = vmul.f32 1.442695, %v8567_v48 }
0x1110   :  { %v4916_v52 = vmul.f32 1.442695, %v8564_v2 }
0x1112   :  { %5808 = vpow2.f32 %v4916_v52 }
0x1113   :  { %5810 = vpow2.f32 %v4914_v8  ;;  %v5801_v38 = vpop.eup %5800 }
0x1114   :  { %v4925_v50 = vsel %vm4873_vm8, %v5801_v38, 0.0 }
0x1115   :  { %v5803_v24 = vpop.eup %5802 }
0x1116   :  { %v4922_v57 = vsel %vm4873_vm8, %v5803_v24, 0.0 }
0x1117   :  { %v5805_v49 = vpop.eup %5804 }
0x1118   :  { %v4931_v40 = vsel %vm4873_vm8, %v5805_v49, 0.0 }
0x111b   :  { %v5807_v0 = vpop.eup %5806 }
0x111c   :  { %v4928_v51 = vsel %vm4873_vm8, %v5807_v0, 0.0 }
0x111f   :  { %v5809_v9 = vpop.eup %5808 }
0x1120   :  { %v5811_v46 = vpop.eup %5810 }
0x1121   :  { %v4934_v26 = vsel %vm4873_vm8, %v5811_v46, 0.0 }
0x114d   :  { %v5533_v62 = vpop.f32.mrf.mxu0 }
0x114e   :  { %v4870_v32 = vadd.f32 %v5533_v62, %v8538_v14 }
0x114f   :  { %v4864_v37 = vpop.f32.mrf.mxu0 }
0x1150   :  { %v4865_v15 = vadd.f32 %v8538_v14, %v4864_v37  ;;  %v4895_v6 = vsel %vm4873_vm8, %v4870_v32, -inf  ;;  %v4937_v14 = vsel %vm4873_vm8, %v5809_v9, 0.0 }
0x1151   :  { %4896 = vmax.xlane.f32.xlu1 %v4895_v6 }
0x1152   :  { %v4892_v4 = vsel %vm4873_vm8, %v4865_v15, -inf }
0x1153   :  { %4893 = vmax.xlane.f32.xlu0 %v4892_v4 }
0x1155   :  { %4926 = vadd.xlane.f32.xlu1 %v4925_v50 }
0x1157   :  { %4923 = vadd.xlane.f32.xlu0 %v4922_v57 }
0x1159   :  { %4932 = vadd.xlane.f32.xlu1 %v4931_v40 }
0x115b   :  { %4929 = vadd.xlane.f32.xlu0 %v4928_v51 }
0x115d   :  { %4938 = vadd.xlane.f32.xlu1 %v4937_v14 }
0x115f   :  { %4935 = vadd.xlane.f32.xlu0 %v4934_v26 }
0x11da   :  { %v4897_v59 = vpop.xlane.xlu1 %4896 }
0x11db   :  { %v8581_v44 = vsub.f32 %v4870_v32, %v4897_v59 }
0x11dc   :  { %v4894_v20 = vpop.xlane.xlu0 %4893 }
0x11dd   :  { %v4920_v54 = vmul.f32 1.442695, %v8581_v44  ;;  %v8584_v43 = vsub.f32 %v4865_v15, %v4894_v20 }
0x11de   :  { %v4927_v33 = vpop.xlane.xlu1 %4926 }
0x11df   :  { %5812 = vpow2.f32 %v4920_v54  ;;  %v4918_v31 = vmul.f32 1.442695, %v8584_v43 }
0x11e0   :  { %v4924_v47 = vpop.xlane.xlu0 %4923 }
0x11e1   :  { %5814 = vpow2.f32 %v4918_v31 }
0x11e2   :  { %5816 = vlog2.f32 %v4927_v33  ;;  %v4933_v22 = vpop.xlane.xlu1 %4932 }
0x11e3   :  { %5818 = vlog2.f32 %v4924_v47 }
0x11e4   :  { %v4930_v21 = vpop.xlane.xlu0 %4929 }
0x11e5   :  { %5820 = vlog2.f32 %v4930_v21 }
0x11e6   :  { %v4939_v53 = vpop.xlane.xlu1 %4938 }
0x11e8   :  { %v4936_v13 = vpop.xlane.xlu0 %4935 }
0x11e9   :  { %5822 = vlog2.f32 %v4936_v13 }
0x11ea   :  { %5824 = vlog2.f32 %v4933_v22 }
0x11eb   :  { %5826 = vlog2.f32 %v4939_v53 }
0x11ec   :  { %v5813_v16 = vpop.eup %5812 }
0x11ed   :  { %v4943_v41 = vsel %vm4873_vm8, %v5813_v16, 0.0 }
0x11ee   :  { %v5815_v36 = vpop.eup %5814  ;;  %4944 = vadd.xlane.f32.xlu1 %v4943_v41 }
0x11ef   :  { %v4940_v7 = vsel %vm4873_vm8, %v5815_v36, 0.0  ;;  %v5817_v30 = vpop.eup %5816 }
0x11f0   :  { %4941 = vadd.xlane.f32.xlu0 %v4940_v7  ;;  %v5819_v28 = vpop.eup %5818  ;;  %v4949_v19 = vmul.f32 0.6931472, %v5817_v30 }
0x11f1   :  { %v4947_v27 = vmul.f32 0.6931472, %v5819_v28 }
0x11f2   :  { %v5821_v3 = vpop.eup %5820  ;;  %v8590_v58 = vsub.f32 %v8553_v12, %v4949_v19 }
0x11f3   :  { %v4951_v60 = vmul.f32 0.6931472, %v5821_v3  ;;  %v8593_v63 = vsub.f32 %v8555_v56, %v4947_v27 }
0x11f4   :  { %v4978_v34 = vrot.slane %v8590_v58, 7  ;;  %v5221_v52 = vrot.slane %v8590_v58, 4  ;;  %v5080_v62 = vrot.slane %v8590_v58, 1  ;;  %v5315_v51 = vrot.slane %v8590_v58, 6 }
0x11f5   :  { %v8596_v45 = vsub.f32 %v8561_v17, %v4951_v60  ;;  %v5032_v61 = vrot.slane %v8593_v63, 1  ;;  %v5220_v12 = vrot.slane %v8593_v63, 5  ;;  %v5079_v56 = vrot.slane %v8593_v63, 2 }
0x11f6   :  { %v5823_v39 = vpop.eup %5822  ;;  %v5314_v59 = vrot.slane %v8593_v63, 7  ;;  %v5126_v47 = vrot.slane %v8593_v63, 3  ;;  %v5127_v21 = vrot.slane %v8590_v58, 2 }
0x11f7   :  { %v5825_v18 = vpop.eup %5824  ;;  %v4955_v5 = vmul.f32 0.6931472, %v5823_v39  ;;  %v5034_v17 = vrot.slane %v8596_v45, 7  ;;  %v4981_v23 = vrot.slane %v8596_v45, 6  ;;  %v5223_v8 = vrot.slane %v8596_v45, 3 }
0x11f8   :  { %v5827_v29 = vpop.eup %5826  ;;  %v4953_v25 = vmul.f32 0.6931472, %v5825_v18  ;;  %v5033_v37 = vsel %vm4979_vm9, %v8590_v58, %v5032_v61  ;;  %v5081_v15 = vsel %vm4979_vm9, %v5080_v62, %v5079_v56  ;;  %v5317_v7 = vrot.slane %v8596_v45, 5 }
0x11f9   :  { %v4957_v1 = vmul.f32 0.6931472, %v5827_v29  ;;  %v8603_v35 = vsub.f32 %v8567_v48, %v4955_v5  ;;  %v4980_v48 = vsel %vm4979_vm9, %v4978_v34, %v8593_v63  ;;  %v5035_v6 = vsel %vm4982_vm10, %v5034_v17, %v5033_v37 }
0x11fa   :  { %v8608_v42 = vsub.f32 %v8558_v55, %v4953_v25  ;;  %v5222_v55 = vsel %vm4979_vm9, %v5221_v52, %v5220_v12  ;;  %v4983_v4 = vsel %vm4982_vm10, %v4981_v23, %v4980_v48  ;;  %v5082_v40 = vsel %vm4982_vm10, %v8596_v45, %v5081_v15 }
0x11fb   :  { %v8616_v32 = vsub.f32 %v8564_v2, %v4957_v1  ;;  %v5038_v38 = vrot.slane %v8603_v35, 5  ;;  %v4987_v24 = vrot.slane %v8603_v35, 4  ;;  %v5224_v49 = vsel %vm4982_vm10, %v5223_v8, %v5222_v55 }
0x11fc   :  { %v5036_v50 = vrot.slane %v8608_v42, 6  ;;  %v4984_v2 = vrot.slane %v8608_v42, 5  ;;  %v5227_v57 = vrot.slane %v8603_v35, 1  ;;  %v5225_v0 = vrot.slane %v8608_v42, 2 }
0x11fd   :  { %v5083_v9 = vrot.slane %v8608_v42, 7  ;;  %v5040_v14 = vrot.slane %v8616_v32, 4  ;;  %v5085_v16 = vrot.slane %v8603_v35, 6  ;;  %v4990_v41 = vrot.slane %v8616_v32, 3 }
0x11fe   :  { %v5037_v46 = vsel %vm4985_vm11, %v5036_v50, %v5035_v6  ;;  %v4986_v26 = vsel %vm4985_vm11, %v4984_v2, %v4983_v4  ;;  %v5226_v31 = vsel %vm4985_vm11, %v5225_v0, %v5224_v49  ;;  %v5129_v22 = vrot.slane %v8596_v45, 1 }
0x11ff   :  { %v5039_v20 = vsel %vm4988_vm12, %v5038_v38, %v5037_v46  ;;  %v4989_v54 = vsel %vm4988_vm12, %v4987_v24, %v4986_v26  ;;  %v5228_v36 = vsel %vm4988_vm12, %v5227_v57, %v5226_v31  ;;  %v5084_v33 = vsel %vm4985_vm11, %v5083_v9, %v5082_v40 }
0x1200   :  { %v5041_v53 = vsel %vm4991_vm13, %v5040_v14, %v5039_v20  ;;  %v4992_v30 = vsel %vm4991_vm13, %v4990_v41, %v4989_v54  ;;  %v5087_v28 = vrot.slane %v8616_v32, 5  ;;  %v5316_v3 = vsel %vm4979_vm9, %v5315_v51, %v5314_v59 }
0x1201   :  { %v5229_v27 = vsel %vm4991_vm13, %v8616_v32, %v5228_v36  ;;  %v5086_v60 = vsel %vm4988_vm12, %v5085_v16, %v5084_v33  ;;  %v5173_v39 = vrot.slane %v8593_v63, 4  ;;  %v5318_v29 = vsel %vm4982_vm10, %v5317_v7, %v5316_v3 }
0x1202   :  { %v5321_v5 = vrot.slane %v8603_v35, 3  ;;  %v5128_v25 = vsel %vm4979_vm9, %v5127_v21, %v5126_v47  ;;  %v5319_v1 = vrot.slane %v8608_v42, 4  ;;  %v5174_v61 = vrot.slane %v8590_v58, 3 }
0x1203   :  { %v5088_v56 = vsel %vm4991_vm13, %v5087_v28, %v5086_v60  ;;  %v5323_v17 = vrot.slane %v8616_v32, 2  ;;  %v5132_v23 = vrot.slane %v8603_v35, 7  ;;  %v5134_v62 = vrot.slane %v8616_v32, 6 }
0x1204   :  { %v5320_v8 = vsel %vm4985_vm11, %v5319_v1, %v5318_v29  ;;  %v5175_v48 = vsel %vm4979_vm9, %v5174_v61, %v5173_v39  ;;  %v5178_v15 = vrot.slane %v8608_v42, 1  ;;  %v5267_v2 = vrot.slane %v8593_v63, 6 }
0x1205   :  { %v5322_v37 = vsel %vm4988_vm12, %v5321_v5, %v5320_v8  ;;  %v5270_v46 = vrot.slane %v8596_v45, 4  ;;  %v5268_v31 = vrot.slane %v8590_v58, 5  ;;  %v5181_v36 = vrot.slane %v8616_v32, 7 }
0x1206   :  { %v5324_v16 = vsel %vm4991_vm13, %v5323_v17, %v5322_v37  ;;  %v5274_v21 = vrot.slane %v8603_v35, 2  ;;  %v5272_v28 = vrot.slane %v8608_v42, 3  ;;  %v5276_v29 = vrot.slane %v8616_v32, 1 }
0x1207   :  { %v5269_v33 = vsel %vm4979_vm9, %v5268_v31, %v5267_v2 }
0x1277   :  { %v4945_v11 = vpop.xlane.xlu1 %4944 }
0x1278   :  { %5828 = vlog2.f32 %v4945_v11  ;;  %v5176_v11 = vrot.slane %v8596_v45, 2 }
0x1279   :  { %v4942_v10 = vpop.xlane.xlu0 %4941 }
0x127a   :  { %5830 = vlog2.f32 %v4942_v10  ;;  %v5130_v10 = vsel %vm4982_vm10, %v5129_v22, %v5128_v25  ;;  %v5177_v55 = vsel %vm4982_vm10, %v5176_v11, %v5175_v48 }
0x127b   :  { %v5179_v51 = vsel %vm4985_vm11, %v5178_v15, %v5177_v55 }
0x127c   :  { %v5180_v41 = vsel %vm4988_vm12, %v8603_v35, %v5179_v51 }
0x127d   :  { %v5182_v35 = vsel %vm4991_vm13, %v5181_v36, %v5180_v41 }
0x1285   :  { %v5829_v13 = vpop.eup %5828 }
0x1286   :  { %v4961_v19 = vmul.f32 0.6931472, %v5829_v13 }
0x1287   :  { %v5831_v18 = vpop.eup %5830 }
0x1288   :  { %v4959_v34 = vmul.f32 0.6931472, %v5831_v18  ;;  %v8666_v12 = vsub.f32 %v8581_v44, %v4961_v19  ;;  %v5131_v44 = vsel %vm4985_vm11, %v8608_v42, %v5130_v10 }
0x1289   :  { %v5133_v0 = vsel %vm4988_vm12, %v5132_v23, %v5131_v44 }
0x128a   :  { %v8672_v52 = vsub.f32 %v8584_v43, %v4959_v34  ;;  %v5044_v24 = vrot.slane %v8666_v12, 2  ;;  %v4996_v50 = vrot.slane %v8666_v12, 1  ;;  %v5232_v20 = vrot.slane %v8666_v12, 6 }
0x128b   :  { %v5091_v54 = vrot.slane %v8666_v12, 3  ;;  %v5135_v45 = vsel %vm4991_vm13, %v5134_v62, %v5133_v0  ;;  %v5185_v18 = vrot.slane %v8666_v12, 5  ;;  %v5279_v25 = vrot.slane %v8666_v12, 7 }
0x128c   :  { %v5042_v6 = vrot.slane %v8672_v52, 3  ;;  %v4993_v43 = vrot.slane %v8672_v52, 2  ;;  %v5230_v38 = vrot.slane %v8672_v52, 7  ;;  %v5089_v4 = vrot.slane %v8672_v52, 4 }
0x128d   :  { %v5325_v26 = vrot.slane %v8672_v52, 1  ;;  %v5136_v59 = vrot.slane %v8672_v52, 5  ;;  %v5183_v13 = vrot.slane %v8672_v52, 6 }
0x128e   :  { %v5043_v49 = vsel %vm4994_vm14, %v5042_v6, %v5041_v53  ;;  %v4995_v57 = vsel %vm4994_vm14, %v4993_v43, %v4992_v30  ;;  %v5231_v14 = vsel %vm4994_vm14, %v5230_v38, %v5229_v27  ;;  %v5090_v63 = vsel %vm4994_vm14, %v5089_v4, %v5088_v56 }
0x128f   :  { %v5045_v40 = vsel %vm4997_vm15, %v5044_v24, %v5043_v49  ;;  %v4998_v9 = vsel %vm4997_vm15, %v4996_v50, %v4995_v57  ;;  %v5233_v7 = vsel %vm4997_vm15, %v5232_v20, %v5231_v14  ;;  %v5092_v47 = vsel %vm4997_vm15, %v5091_v54, %v5090_v63 }
0x1290   :  { %5047 = vxpose.xlu1.b32.start.end [1/1] (short) (narrow) %v5045_v40, 8  ;;  %5000 = vxpose.xlu0.b32.start.end [1/1] (short) (narrow) %v4998_v9, 8  ;;  %v5326_v58 = vsel %vm4994_vm14, %v5325_v26, %v5324_v16  ;;  %v5137_v22 = vsel %vm4994_vm14, %v5136_v59, %v5135_v45  ;;  %v5271_v53 = vsel %vm4982_vm10, %v5270_v46, %v5269_v33  ;;  %v5138_v30 = vrot.slane %v8666_v12, 4 }
0x1291   :  { %v5327_v3 = vsel %vm4997_vm15, %v8666_v12, %v5326_v58  ;;  %v5273_v27 = vsel %vm4985_vm11, %v5272_v28, %v5271_v53  ;;  %v5184_v60 = vsel %vm4994_vm14, %v5183_v13, %v5182_v35 }
0x1292   :  { %v5139_v19 = vsel %vm4997_vm15, %v5138_v30, %v5137_v22  ;;  %v5275_v39 = vsel %vm4988_vm12, %v5274_v21, %v5273_v27  ;;  %v5186_v42 = vsel %vm4997_vm15, %v5185_v18, %v5184_v60 }
0x1293   :  { %v5277_v5 = vsel %vm4991_vm13, %v5276_v29, %v5275_v39 }
0x1294   :  { %5235 = vxpose.xlu1.b32.start.end [1/1] (short) (narrow) %v5233_v7, 8  ;;  %5094 = vxpose.xlu0.b32.start.end [1/1] (short) (narrow) %v5092_v47, 8  ;;  %v5278_v11 = vsel %vm4994_vm14, %v8672_v52, %v5277_v5 }
0x1295   :  { %v5280_v34 = vsel %vm4997_vm15, %v5279_v25, %v5278_v11 }
0x1298   :  { %5329 = vxpose.xlu1.b32.start.end [1/1] (short) (narrow) %v5327_v3, 8  ;;  %5141 = vxpose.xlu0.b32.start.end [1/1] (short) (narrow) %v5139_v19, 8 }
0x129c   :  { %5188 = vxpose.xlu0.b32.start.end [1/1] (short) (narrow) %v5186_v42, 8 }
0x12a0   :  { %5282 = vxpose.xlu0.b32.start.end [1/1] (short) (narrow) %v5280_v34, 8 }
0x130c   :  { %v5016_v1 = vpop.trf.xlu0  ;;  %v5063_v10 = vpop.trf.xlu1 }
0x130d   :  { %5361 = vst.msk [vmem:[#allocation12] sm:$0xff] %vm4873_vm8, %v5016_v1  ;;  %5362 = vst.msk [vmem:[#allocation12 + $0x8] sm:$0xff] %vm4873_vm8, %v5063_v10 }
0x1310   :  { %v5110_v32 = vpop.trf.xlu0  ;;  %v5251_v61 = vpop.trf.xlu1 }
0x1311   :  { %5363 = vst.msk [vmem:[#allocation12 + $0x10] sm:$0xff] %vm4873_vm8, %v5110_v32  ;;  %5366 = vst.msk [vmem:[#allocation12 + $0x28] sm:$0xff] %vm4873_vm8, %v5251_v61 }
0x1314   :  { %v5157_v12 = vpop.trf.xlu0  ;;  %v5345_v56 = vpop.trf.xlu1 }
0x1315   :  { %5364 = vst.msk [vmem:[#allocation12 + $0x18] sm:$0xff] %vm4873_vm8, %v5157_v12  ;;  %5368 = vst.msk [vmem:[#allocation12 + $0x38] sm:$0xff] %vm4873_vm8, %v5345_v56 }
0x1318   :  { %v5204_v17 = vpop.trf.xlu0 }
0x1319   :  { %5365 = vst.msk [vmem:[#allocation12 + $0x20] sm:$0xff] %vm4873_vm8, %v5204_v17 }
0x131c   :  { %v5298_v23 = vpop.trf.xlu0 }
0x131d   :  { %5367 = vst.msk [vmem:[#allocation12 + $0x30] sm:$0xff] %vm4873_vm8, %v5298_v23 }
0x131e   :  { %6031 = shalt.err (!%p6028_p5)
}
0x131f   :  { %s6054_s5 = smov 128   ;;  %s6055_s10 = smov 8  }
0x1320   :  { %5380 = dma.vmem_to_hbm [thread:$0]  %s5375_s29, 1024, %s8753_s9, [#allocation8], %s6054_s5, %s6054_s5, %s6055_s10  }
0x1321   :  { %6044 = dma.done.wait [#allocation8], 1024  }
0x1322   :  { %6045 = vsyncadd [#allocation8], 4294966272 }
0x1323   :  { %5384 = vsyncpa [#allocation7], 1 }
0x1324   :  { %5385 = vsyncpa [#allocation10], 1 }
0x1325   :  { %5386 = vsyncpa [#allocation8], 1 }

</bundles_post_ra>
